<compile_context>
chip_gen: v6e
topology: v6e:2x2x1
jax: 0.10.0
libtpu: 0.0.40
codegen_flags: <defaults>
</compile_context>

<pallas_src>
import functools
import math

import jax
import jax.numpy as jnp
from jax.experimental import pallas as pl
from jax.experimental.pallas import tpu as pltpu


# ---------------------------------------------------------------------------
# small helpers
# ---------------------------------------------------------------------------
def _round_up(v, m):
    return (v + m - 1) // m * m


def _pick_tile(n, cap):
    for t in (512, 256, 128, 64, 32, 16, 8):
        if t <= cap and n % t == 0:
            return t
    return None


def _act(y, act):
    if act == "leaky":
        return jnp.where(y >= 0, y, 0.01 * y)          # nn.LeakyReLU default slope
    if act == "sigmoid":
        return 0.5 * (jnp.tanh(0.5 * y) + 1.0)          # stable sigmoid via EUP tanh
    return y


def _pad_vec(v, n):
    return jnp.pad(v.astype(jnp.float32), (0, n - v.shape[0])).reshape(1, n)


# ---------------------------------------------------------------------------
# Pallas kernel 1: fused matmul
#   out = out_act( in_act(A * si + ti) @ W + bias )
#   (si/ti are per-K-column, bias per-N-column; W is bf16, accumulation f32)
# ---------------------------------------------------------------------------
def _mm_fused_multi_kernel(a_ref, w_ref, si_ref, ti_ref, b_ref, o_ref, acc_ref,
                           *, in_act, out_act):
    k = pl.program_id(2)

    @pl.when(k == 0)
    def _():
        acc_ref[...] = jnp.zeros_like(acc_ref)

    a = _act(a_ref[...] * si_ref[...] + ti_ref[...], in_act)
    acc_ref[...] += jnp.dot(a.astype(jnp.bfloat16), w_ref[...],
                            preferred_element_type=jnp.float32)

    @pl.when(k == pl.num_programs(2) - 1)
    def _():
        o_ref[...] = _act(acc_ref[...] + b_ref[...], out_act).astype(o_ref.dtype)


def _mm_fused_single_kernel(a_ref, w_ref, si_ref, ti_ref, b_ref, o_ref,
                            *, in_act, out_act):
    # Specialized single-K-step path: no accumulator scratch, no zero-init.
    a = _act(a_ref[...] * si_ref[...] + ti_ref[...], in_act)
    y = jnp.dot(a.astype(jnp.bfloat16), w_ref[...],
                preferred_element_type=jnp.float32)
    o_ref[...] = _act(y + b_ref[...], out_act).astype(o_ref.dtype)


def _matmul_fused(a, w_mat, bias, in_scale_k, in_shift_k, *, in_act, out_act):
    """a: (M, K) f32, w_mat: (K, N) f32, bias: (N,), in_scale_k/in_shift_k: (K,).

    Returns (M, Np) f32 with Np = round_up(N, 128); padded output channels are
    exactly zero for out_act in {"none", "leaky"}.
    """
    M, K = a.shape
    _, N = w_mat.shape
    Np = _round_up(N, 128)
    Kp = _round_up(K, 128)
    tn = 256 if Np % 256 == 0 else 128
    tk = 256 if Kp % 256 == 0 else 128
    tm = _pick_tile(M, 256)
    if tm is None:
        Mp = _round_up(M, 128)
        tm = 128
    else:
        Mp = M

    a_p = a if (Mp == M and Kp == K) else jnp.pad(a, ((0, Mp - M), (0, Kp - K)))
    w_p = jnp.pad(w_mat, ((0, Kp - K), (0, Np - N))).astype(jnp.bfloat16)
    b_p = jnp.pad(bias.astype(jnp.float32), (0, Np - N)).reshape(1, Np)
    si_p = jnp.pad(in_scale_k.astype(jnp.float32), (0, Kp - K)).reshape(1, Kp)
    ti_p = jnp.pad(in_shift_k.astype(jnp.float32), (0, Kp - K)).reshape(1, Kp)

    nm, nn, nk = Mp // tm, Np // tn, Kp // tk

    if nk == 1:
        out = pl.pallas_call(
            functools.partial(_mm_fused_single_kernel,
                              in_act=in_act, out_act=out_act),
            out_shape=jax.ShapeDtypeStruct((Mp, Np), jnp.float32),
            grid_spec=pltpu.PrefetchScalarGridSpec(
                num_scalar_prefetch=0,
                grid=(nm, nn),
                in_specs=[
                    pl.BlockSpec((tm, Kp), lambda i, j: (i, 0)),
                    pl.BlockSpec((Kp, tn), lambda i, j: (0, j)),
                    pl.BlockSpec((1, Kp), lambda i, j: (0, 0)),
                    pl.BlockSpec((1, Kp), lambda i, j: (0, 0)),
                    pl.BlockSpec((1, tn), lambda i, j: (0, j)),
                ],
                out_specs=pl.BlockSpec((tm, tn), lambda i, j: (i, j)),
            ),
            compiler_params=pltpu.CompilerParams(
                dimension_semantics=("parallel", "parallel")),
        )(a_p, w_p, si_p, ti_p, b_p)
    else:
        out = pl.pallas_call(
            functools.partial(_mm_fused_multi_kernel,
                              in_act=in_act, out_act=out_act),
            out_shape=jax.ShapeDtypeStruct((Mp, Np), jnp.float32),
            grid_spec=pltpu.PrefetchScalarGridSpec(
                num_scalar_prefetch=0,
                grid=(nm, nn, nk),
                in_specs=[
                    pl.BlockSpec((tm, tk), lambda i, j, k: (i, k)),
                    pl.BlockSpec((tk, tn), lambda i, j, k: (k, j)),
                    pl.BlockSpec((1, tk), lambda i, j, k: (0, k)),
                    pl.BlockSpec((1, tk), lambda i, j, k: (0, k)),
                    pl.BlockSpec((1, tn), lambda i, j, k: (0, j)),
                ],
                out_specs=pl.BlockSpec((tm, tn), lambda i, j, k: (i, j)),
                scratch_shapes=[pltpu.VMEM((tm, tn), jnp.float32)],
            ),
            compiler_params=pltpu.CompilerParams(
                dimension_semantics=("parallel", "parallel", "arbitrary")),
        )(a_p, w_p, si_p, ti_p, b_p)

    return out if Mp == M else out[:M]


# ---------------------------------------------------------------------------
# Pallas kernel 2: tiled, lane-dense elementwise passes
# ---------------------------------------------------------------------------
def _affine_act_kernel(x_ref, s_ref, t_ref, o_ref, *, act):
    o_ref[...] = _act(x_ref[...] * s_ref[...] + t_ref[...], act)


def _res_tail_kernel(x_ref, sx_ref, tx_ref, r_ref, sr_ref, tr_ref, o_ref,
                     *, skip_act):
    skip = _act(r_ref[...] * sr_ref[...] + tr_ref[...], skip_act)
    o_ref[...] = x_ref[...] * sx_ref[...] + tx_ref[...] + skip


def apply_affine_act(x_bhwc, scale_c, shift_c, *, act):
    """out = act(x * scale + shift) over a 128-channel-padded NHWC tensor."""
    B, H, W, Cp = x_bhwc.shape
    M = B * H * W
    tm = _pick_tile(M, 512) or M
    out = pl.pallas_call(
        functools.partial(_affine_act_kernel, act=act),
        out_shape=jax.ShapeDtypeStruct((M, Cp), jnp.float32),
        grid=(M // tm,),
        in_specs=[pl.BlockSpec((tm, Cp), lambda i: (i, 0)),
                  pl.BlockSpec((1, Cp), lambda i: (0, 0)),
                  pl.BlockSpec((1, Cp), lambda i: (0, 0))],
        out_specs=pl.BlockSpec((tm, Cp), lambda i: (i, 0)),
        compiler_params=pltpu.CompilerParams(dimension_semantics=("parallel",)),
    )(x_bhwc.reshape(M, Cp), _pad_vec(scale_c, Cp), _pad_vec(shift_c, Cp))
    return out.reshape(B, H, W, Cp)


def residual_tail(h2, h2_scale, h2_shift, skip_raw, skip_scale, skip_shift,
                  skip_act, C):
    """out = act_s(skip*ss + ts) + h2*s2 + t2   (residual block tail, fused)."""
    B, H, W, Cp = h2.shape
    M = B * H * W
    tm = _pick_tile(M, 512) or M
    if skip_scale is None:
        skip_scale = jnp.ones((C,), jnp.float32)
        skip_shift = jnp.zeros((C,), jnp.float32)
    out = pl.pallas_call(
        functools.partial(_res_tail_kernel, skip_act=skip_act),
        out_shape=jax.ShapeDtypeStruct((M, Cp), jnp.float32),
        grid=(M // tm,),
        in_specs=[pl.BlockSpec((tm, Cp), lambda i: (i, 0)),
                  pl.BlockSpec((1, Cp), lambda i: (0, 0)),
                  pl.BlockSpec((1, Cp), lambda i: (0, 0)),
                  pl.BlockSpec((tm, Cp), lambda i: (i, 0)),
                  pl.BlockSpec((1, Cp), lambda i: (0, 0)),
                  pl.BlockSpec((1, Cp), lambda i: (0, 0))],
        out_specs=pl.BlockSpec((tm, Cp), lambda i: (i, 0)),
        compiler_params=pltpu.CompilerParams(dimension_semantics=("parallel",)),
    )(h2.reshape(M, Cp), _pad_vec(h2_scale, Cp), _pad_vec(h2_shift, Cp),
      skip_raw.reshape(M, Cp), _pad_vec(skip_scale, Cp), _pad_vec(skip_shift, Cp))
    return out.reshape(B, H, W, Cp)


# ---------------------------------------------------------------------------
# Convolution wrappers (patch construction in JAX glue, matmul in Pallas)
# ---------------------------------------------------------------------------
def _im2col(x_p, KH, KW, stride):
    B, Hp, Wp, C = x_p.shape
    Ho = (Hp - KH) // stride + 1
    Wo = (Wp - KW) // stride + 1
    cols = []
    for i in range(KH):
        for j in range(KW):
            cols.append(x_p[:, i:i + stride * (Ho - 1) + 1:stride,
                            j:j + stride * (Wo - 1) + 1:stride, :])
    a = jnp.concatenate(cols, axis=-1).reshape(B * Ho * Wo, KH * KW * C)
    return a, Ho, Wo


def _tap_affine(scale_c, shift_c, cin, taps):
    if scale_c is None:
        scale_c = jnp.ones((cin,), jnp.float32)
        shift_c = jnp.zeros((cin,), jnp.float32)
    return (jnp.tile(scale_c.astype(jnp.float32), taps),
            jnp.tile(shift_c.astype(jnp.float32), taps))


def conv2d_fused(x_bhwc, cin, w_oihw, bias, *, stride, pad,
                 in_scale=None, in_shift=None, in_act="none", out_act="none"):
    """Reflect-padded Conv2d.  The producer's deferred BatchNorm affine +
    LeakyReLU (in_scale/in_shift/in_act) is applied to the A operand inside the
    Pallas kernel; bias + out_act are fused into the epilogue."""
    B = x_bhwc.shape[0]
    cout, _, KH, KW = w_oihw.shape
    x = x_bhwc[..., :cin]                       # read only the true channels
    x_p = jnp.pad(x, ((0, 0), (pad, pad), (pad, pad), (0, 0)), mode="reflect")
    # TODO(synk): the im2col patch matrix is still materialized in HBM (KH*KW x
    # blowup); fully folding the tap loop into the kernel needs windowed /
    # strided BlockSpecs (manual DMA), left for a follow-up.
    a, Ho, Wo = _im2col(x_p, KH, KW, stride)
    w_mat = jnp.transpose(w_oihw, (2, 3, 1, 0)).reshape(KH * KW * cin, cout)
    si, ti = _tap_affine(in_scale, in_shift, cin, KH * KW)
    y = _matmul_fused(a, w_mat, bias, si, ti, in_act=in_act, out_act=out_act)
    return y.reshape(B, Ho, Wo, y.shape[1]), cout


def conv_transpose2d_fused(x_bhwc, cin, w_iohw, bias, *, stride, pad, out_pad,
                           out_act="none"):
    """ConvTranspose2d(stride, padding, output_padding) via zero-dilation +
    flipped-kernel correlation (same fused Pallas matmul path)."""
    B, H, W, _ = x_bhwc.shape
    _, cout, KH, KW = w_iohw.shape
    x = x_bhwc[..., :cin]
    Hd, Wd = (H - 1) * stride + 1, (W - 1) * stride + 1
    xd = jnp.zeros((B, Hd, Wd, cin), x.dtype).at[:, ::stride, ::stride, :].set(x)
    lo = KH - 1 - pad
    hi = KH - 1 - pad + out_pad
    x_p = jnp.pad(xd, ((0, 0), (lo, hi), (lo, hi), (0, 0)))
    # TODO(synk): a stride^2 sub-pixel decomposition would avoid the 4x
    # structural zeros in the dilated patch matrix.
    a, Ho, Wo = _im2col(x_p, KH, KW, 1)
    w_conv = jnp.transpose(w_iohw[:, :, ::-1, ::-1], (1, 0, 2, 3))
    w_mat = jnp.transpose(w_conv, (2, 3, 1, 0)).reshape(KH * KW * cin, cout)
    si, ti = _tap_affine(None, None, cin, KH * KW)
    y = _matmul_fused(a, w_mat, bias, si, ti, in_act="none", out_act=out_act)
    return y.reshape(B, Ho, Wo, y.shape[1]), cout


# ---------------------------------------------------------------------------
# BatchNorm (train-mode batch statistics, eps=1e-5) -> per-channel scale/shift
# ---------------------------------------------------------------------------
def _bn_scale_shift(y_bhwc, cout, gamma, beta, eps=1e-5):
    # TODO(synk): one-pass batch-stat reduction kept in JAX glue; could be
    # accumulated for free inside the matmul epilogue as an extra output.
    yt = y_bhwc[..., :cout]
    mean = jnp.mean(yt, axis=(0, 1, 2))
    var = jnp.mean(jnp.square(yt), axis=(0, 1, 2)) - jnp.square(mean)  # biased
    scale = gamma * jax.lax.rsqrt(var + eps)
    shift = beta - mean * scale
    return scale, shift


# ---------------------------------------------------------------------------
# Generator forward
# ---------------------------------------------------------------------------
def generator_forward(x_nchw, P):
    x = jnp.transpose(x_nchw, (0, 2, 3, 1)).astype(jnp.float32)   # NCHW -> NHWC
    img_c = x.shape[-1]
    nf = P["init"]["w"].shape[0]

    # initial: Conv(k7, s1, p3, reflect) with bias + LeakyReLU fused in epilogue
    a0, _ = conv2d_fused(x, img_c, P["init"]["w"], P["init"]["b"],
                         stride=1, pad=3, out_act="leaky")

    # down 1: conv + bias (raw); its BN + LeakyReLU is deferred to the consumer
    d1 = P["down"][0]
    y1, C1 = conv2d_fused(a0, nf, d1["w"], d1["b"], stride=2, pad=1)
    s1, t1 = _bn_scale_shift(y1, C1, d1["gamma"], d1["beta"])

    # down 2: consumes leaky(affine1(y1)) via the fused A-operand transform
    d2 = P["down"][1]
    y2, C2 = conv2d_fused(y1, C1, d2["w"], d2["b"], stride=2, pad=1,
                          in_scale=s1, in_shift=t1, in_act="leaky")
    s2, t2 = _bn_scale_shift(y2, C2, d2["gamma"], d2["beta"])

    # residual blocks: the carried tensor's true value is act(raw*scale + shift),
    # kept in deferred form and applied inside the consuming Pallas kernels.
    C = C2
    cur_raw, cur_s, cur_t, cur_act = y2, s2, t2, "leaky"
    for rp in P["res"]:
        h1, _ = conv2d_fused(cur_raw, C, rp["w1"], rp["b1"], stride=1, pad=1,
                             in_scale=cur_s, in_shift=cur_t, in_act=cur_act)
        sh1, th1 = _bn_scale_shift(h1, C, rp["g1"], rp["be1"])
        h2, _ = conv2d_fused(h1, C, rp["w2"], rp["b2"], stride=1, pad=1,
                             in_scale=sh1, in_shift=th1, in_act="leaky")
        sh2, th2 = _bn_scale_shift(h2, C, rp["g2"], rp["be2"])
        out = residual_tail(h2, sh2, th2, cur_raw, cur_s, cur_t, cur_act, C)
        cur_raw, cur_s, cur_t, cur_act = out, None, None, "none"

    if cur_s is not None:            # only reached when num_residuals == 0
        z = apply_affine_act(cur_raw, cur_s, cur_t, act=cur_act)
    else:
        z = cur_raw

    # up 1: ConvTranspose + bias; BN + LeakyReLU must be materialized because the
    # next layer is also a transposed conv (zero-dilated input breaks A-fusion).
    u1 = P["up"][0]
    yu1, Cu1 = conv_transpose2d_fused(z, C, u1["w"], u1["b"],
                                      stride=2, pad=1, out_pad=1)
    su1, tu1 = _bn_scale_shift(yu1, Cu1, u1["gamma"], u1["beta"])
    au1 = apply_affine_act(yu1, su1, tu1, act="leaky")

    # up 2: ConvTranspose + bias; its BN + LeakyReLU is deferred into `last`
    u2 = P["up"][1]
    yu2, Cu2 = conv_transpose2d_fused(au1, Cu1, u2["w"], u2["b"],
                                      stride=2, pad=1, out_pad=1)
    su2, tu2 = _bn_scale_shift(yu2, Cu2, u2["gamma"], u2["beta"])

    # last: Conv(k7, s1, p3, reflect) with fused input BN+LeakyReLU and sigmoid
    yl, Cl = conv2d_fused(yu2, Cu2, P["last"]["w"], P["last"]["b"],
                          stride=1, pad=3,
                          in_scale=su2, in_shift=tu2, in_act="leaky",
                          out_act="sigmoid")
    out = yl[..., :Cl]
    return jnp.transpose(out, (0, 3, 1, 2))  # back to NCHW


# ---------------------------------------------------------------------------
# Deterministic parameter initialization (shapes from Generator.__init__)
# ---------------------------------------------------------------------------
def init_generator_params(key, img_channels=3, num_features=8, num_residuals=2):
    keys = iter(jax.random.split(key, 64))

    def conv_p(cin, cout, k):
        fan = cin * k * k
        w = jax.random.normal(next(keys), (cout, cin, k, k), jnp.float32) / math.sqrt(fan)
        b = jax.random.normal(next(keys), (cout,), jnp.float32) * 0.01
        return w, b

    def convT_p(cin, cout, k):
        fan = cin * k * k
        w = jax.random.normal(next(keys), (cin, cout, k, k), jnp.float32) / math.sqrt(fan)
        b = jax.random.normal(next(keys), (cout,), jnp.float32) * 0.01
        return w, b

    nf = num_features
    P = {}
    w, b = conv_p(img_channels, nf, 7)
    P["init"] = {"w": w, "b": b}

    P["down"] = []
    for cin, cout in [(nf, 2 * nf), (2 * nf, 4 * nf)]:
        w, b = conv_p(cin, cout, 3)
        P["down"].append({"w": w, "b": b,
                          "gamma": jnp.ones((cout,), jnp.float32),
                          "beta": jnp.zeros((cout,), jnp.float32)})

    P["res"] = []
    c = 4 * nf
    for _ in range(num_residuals):
        w1, b1 = conv_p(c, c, 3)
        w2, b2 = conv_p(c, c, 3)
        P["res"].append({"w1": w1, "b1": b1,
                         "g1": jnp.ones((c,), jnp.float32),
                         "be1": jnp.zeros((c,), jnp.float32),
                         "w2": w2, "b2": b2,
                         "g2": jnp.ones((c,), jnp.float32),
                         "be2": jnp.zeros((c,), jnp.float32)})

    P["up"] = []
    for cin, cout in [(4 * nf, 2 * nf), (2 * nf, nf)]:
        w, b = convT_p(cin, cout, 3)
        P["up"].append({"w": w, "b": b,
                        "gamma": jnp.ones((cout,), jnp.float32),
                        "beta": jnp.zeros((cout,), jnp.float32)})

    w, b = conv_p(nf, img_channels, 7)
    P["last"] = {"w": w, "b": b}
    return P


if __name__ == "__main__":
    key = jax.random.PRNGKey(0)
    pkey, xkey = jax.random.split(key)

    img_channels, num_features, num_residuals = 3, 8, 2
    params = init_generator_params(pkey, img_channels, num_features, num_residuals)

    # NCHW input, matching the PyTorch module's convention.
    x = jax.random.normal(xkey, (2, img_channels, 16, 16), jnp.float32)

    fwd = jax.jit(lambda inp: generator_forward(inp, params))
    out = jax.block_until_ready(fwd(x))

    assert out.shape == (2, img_channels, 16, 16), out.shape
    assert bool(jnp.all(jnp.isfinite(out)))
    assert bool(jnp.all((out >= 0.0) & (out <= 1.0)))  # sigmoid output range
    print("KERNEL_OK")
</pallas_src>

<mosaic_0001>
module attributes {stable_mosaic.version = 11 : i64} {
  func.func @_mm_fused_single_kernel(%arg0: i32, %arg1: i32, %arg2: memref<256x256xf32, #tpu.memory_space<vmem>>, %arg3: memref<256x128xbf16, #tpu.memory_space<vmem>>, %arg4: memref<1x256xf32, #tpu.memory_space<vmem>>, %arg5: memref<1x256xf32, #tpu.memory_space<vmem>>, %arg6: memref<1x128xf32, #tpu.memory_space<vmem>>, %arg7: memref<256x128xf32, #tpu.memory_space<vmem>>) attributes {dimension_semantics = [#tpu.dimension_semantics<parallel>, #tpu.dimension_semantics<parallel>], iteration_bounds = array<i64: 2, 1>, scalar_prefetch = 0 : i64, scratch_operands = 0 : i64, tpu.core_type = #tpu.core_type<tc>, window_params = [{transform_indices = @transform_0, window_bounds = array<i64: 256, 256>}, {transform_indices = @transform_1, window_bounds = array<i64: 256, 128>}, {pipeline_mode = #tpu.pipeline_mode<synchronous>, transform_indices = @transform_2, window_bounds = array<i64: 1, 256>}, {pipeline_mode = #tpu.pipeline_mode<synchronous>, transform_indices = @transform_3, window_bounds = array<i64: 1, 256>}, {transform_indices = @transform_4, window_bounds = array<i64: 1, 128>}, {transform_indices = @transform_5, window_bounds = array<i64: 256, 128>}]} {
    %c0 = arith.constant 0 : index
    %c0_0 = arith.constant 0 : index
    %0 = vector.load %arg2[%c0, %c0_0] : memref<256x256xf32, #tpu.memory_space<vmem>>, vector<256x256xf32>
    %c0_1 = arith.constant 0 : index
    %c0_2 = arith.constant 0 : index
    %1 = vector.load %arg4[%c0_1, %c0_2] : memref<1x256xf32, #tpu.memory_space<vmem>>, vector<1x256xf32>
    %2 = vector.broadcast %1 : vector<1x256xf32> to vector<256x256xf32>
    %3 = arith.mulf %0, %2 : vector<256x256xf32>
    %c0_3 = arith.constant 0 : index
    %c0_4 = arith.constant 0 : index
    %4 = vector.load %arg5[%c0_3, %c0_4] : memref<1x256xf32, #tpu.memory_space<vmem>>, vector<1x256xf32>
    %5 = vector.broadcast %4 : vector<1x256xf32> to vector<256x256xf32>
    %6 = arith.addf %3, %5 : vector<256x256xf32>
    %7 = arith.truncf %6 : vector<256x256xf32> to vector<256x256xbf16>
    %c0_5 = arith.constant 0 : index
    %c0_6 = arith.constant 0 : index
    %8 = vector.load %arg3[%c0_5, %c0_6] : memref<256x128xbf16, #tpu.memory_space<vmem>>, vector<256x128xbf16>
    %cst = arith.constant dense<0.000000e+00> : vector<256x128xf32>
    %9 = tpu.matmul %7, %8, %cst {dimension_numbers = #tpu.dot_dimension_numbers<[1], [0], [0], [1], [0, 0, 1, 1], [], []>} : vector<256x256xbf16>, vector<256x128xbf16>, vector<256x128xf32> -> vector<256x128xf32>
    %c0_7 = arith.constant 0 : index
    %c0_8 = arith.constant 0 : index
    %10 = vector.load %arg6[%c0_7, %c0_8] : memref<1x128xf32, #tpu.memory_space<vmem>>, vector<1x128xf32>
    %11 = vector.broadcast %10 : vector<1x128xf32> to vector<256x128xf32>
    %12 = arith.addf %9, %11 : vector<256x128xf32>
    %cst_9 = arith.constant 0.000000e+00 : f32
    %13 = vector.broadcast %cst_9 : f32 to vector<256x128xf32>
    %14 = arith.cmpf oge, %12, %13 : vector<256x128xf32>
    %cst_10 = arith.constant 0.00999999977 : f32
    %15 = vector.broadcast %cst_10 : f32 to vector<256x128xf32>
    %16 = arith.mulf %15, %12 : vector<256x128xf32>
    %17 = arith.select %14, %12, %16 : vector<256x128xi1>, vector<256x128xf32>
    %c0_11 = arith.constant 0 : index
    %c0_12 = arith.constant 0 : index
    %18 = vector.load %arg7[%c0_11, %c0_12] : memref<256x128xf32, #tpu.memory_space<vmem>>, vector<256x128xf32>
    tpu.vector_store %arg7[%c0_11, %c0_12], %17 {strides = array<i32>} : memref<256x128xf32, #tpu.memory_space<vmem>>, vector<256x128xf32>,
    return
  }
  func.func @transform_0(%arg0: i32, %arg1: i32) -> (i32, i32) {
    %c0_i32 = arith.constant 0 : i32
    %c0_i32_0 = arith.constant 0 : i32
    return %arg0, %c0_i32 : i32, i32
  }
  func.func @transform_1(%arg0: i32, %arg1: i32) -> (i32, i32) {
    %c0_i32 = arith.constant 0 : i32
    %c0_i32_0 = arith.constant 0 : i32
    return %c0_i32, %arg1 : i32, i32
  }
  func.func @transform_2(%arg0: i32, %arg1: i32) -> (i32, i32) {
    %c0_i32 = arith.constant 0 : i32
    %c0_i32_0 = arith.constant 0 : i32
    %c0_i32_1 = arith.constant 0 : i32
    return %c0_i32, %c0_i32_0 : i32, i32
  }
  func.func @transform_3(%arg0: i32, %arg1: i32) -> (i32, i32) {
    %c0_i32 = arith.constant 0 : i32
    %c0_i32_0 = arith.constant 0 : i32
    %c0_i32_1 = arith.constant 0 : i32
    return %c0_i32, %c0_i32_0 : i32, i32
  }
  func.func @transform_4(%arg0: i32, %arg1: i32) -> (i32, i32) {
    %c0_i32 = arith.constant 0 : i32
    %c0_i32_0 = arith.constant 0 : i32
    return %c0_i32, %arg1 : i32, i32
  }
  func.func @transform_5(%arg0: i32, %arg1: i32) -> (i32, i32) {
    %c0_i32 = arith.constant 0 : i32
    return %arg0, %arg1 : i32, i32
  }
}

module attributes {stable_mosaic.version = 11 : i64} {
  func.func @_mm_fused_single_kernel(%arg0: i32, %arg1: i32, %arg2: memref<128x128xf32, #tpu.memory_space<vmem>>, %arg3: memref<128x128xbf16, #tpu.memory_space<vmem>>, %arg4: memref<1x128xf32, #tpu.memory_space<vmem>>, %arg5: memref<1x128xf32, #tpu.memory_space<vmem>>, %arg6: memref<1x128xf32, #tpu.memory_space<vmem>>, %arg7: memref<128x128xf32, #tpu.memory_space<vmem>>) attributes {dimension_semantics = [#tpu.dimension_semantics<parallel>, #tpu.dimension_semantics<parallel>], iteration_bounds = array<i64: 1, 1>, scalar_prefetch = 0 : i64, scratch_operands = 0 : i64, tpu.core_type = #tpu.core_type<tc>, window_params = [{transform_indices = @transform_0, window_bounds = array<i64: 128, 128>}, {transform_indices = @transform_1, window_bounds = array<i64: 128, 128>}, {pipeline_mode = #tpu.pipeline_mode<synchronous>, transform_indices = @transform_2, window_bounds = array<i64: 1, 128>}, {pipeline_mode = #tpu.pipeline_mode<synchronous>, transform_indices = @transform_3, window_bounds = array<i64: 1, 128>}, {transform_indices = @transform_4, window_bounds = array<i64: 1, 128>}, {transform_indices = @transform_5, window_bounds = array<i64: 128, 128>}]} {
    %c0 = arith.constant 0 : index
    %c0_0 = arith.constant 0 : index
    %0 = vector.load %arg2[%c0, %c0_0] : memref<128x128xf32, #tpu.memory_space<vmem>>, vector<128x128xf32>
    %c0_1 = arith.constant 0 : index
    %c0_2 = arith.constant 0 : index
    %1 = vector.load %arg4[%c0_1, %c0_2] : memref<1x128xf32, #tpu.memory_space<vmem>>, vector<1x128xf32>
    %2 = vector.broadcast %1 : vector<1x128xf32> to vector<128x128xf32>
    %3 = arith.mulf %0, %2 : vector<128x128xf32>
    %c0_3 = arith.constant 0 : index
    %c0_4 = arith.constant 0 : index
    %4 = vector.load %arg5[%c0_3, %c0_4] : memref<1x128xf32, #tpu.memory_space<vmem>>, vector<1x128xf32>
    %5 = vector.broadcast %4 : vector<1x128xf32> to vector<128x128xf32>
    %6 = arith.addf %3, %5 : vector<128x128xf32>
    %7 = arith.truncf %6 : vector<128x128xf32> to vector<128x128xbf16>
    %c0_5 = arith.constant 0 : index
    %c0_6 = arith.constant 0 : index
    %8 = vector.load %arg3[%c0_5, %c0_6] : memref<128x128xbf16, #tpu.memory_space<vmem>>, vector<128x128xbf16>
    %cst = arith.constant dense<0.000000e+00> : vector<128x128xf32>
    %9 = tpu.matmul %7, %8, %cst {dimension_numbers = #tpu.dot_dimension_numbers<[1], [0], [0], [1], [0, 0, 1, 1], [], []>} : vector<128x128xbf16>, vector<128x128xbf16>, vector<128x128xf32> -> vector<128x128xf32>
    %c0_7 = arith.constant 0 : index
    %c0_8 = arith.constant 0 : index
    %10 = vector.load %arg6[%c0_7, %c0_8] : memref<1x128xf32, #tpu.memory_space<vmem>>, vector<1x128xf32>
    %11 = vector.broadcast %10 : vector<1x128xf32> to vector<128x128xf32>
    %12 = arith.addf %9, %11 : vector<128x128xf32>
    %c0_9 = arith.constant 0 : index
    %c0_10 = arith.constant 0 : index
    %13 = vector.load %arg7[%c0_9, %c0_10] : memref<128x128xf32, #tpu.memory_space<vmem>>, vector<128x128xf32>
    tpu.vector_store %arg7[%c0_9, %c0_10], %12 {strides = array<i32>} : memref<128x128xf32, #tpu.memory_space<vmem>>, vector<128x128xf32>,
    return
  }
  func.func @transform_0(%arg0: i32, %arg1: i32) -> (i32, i32) {
    %c0_i32 = arith.constant 0 : i32
    %c0_i32_0 = arith.constant 0 : i32
    return %arg0, %c0_i32 : i32, i32
  }
  func.func @transform_1(%arg0: i32, %arg1: i32) -> (i32, i32) {
    %c0_i32 = arith.constant 0 : i32
    %c0_i32_0 = arith.constant 0 : i32
    return %c0_i32, %arg1 : i32, i32
  }
  func.func @transform_2(%arg0: i32, %arg1: i32) -> (i32, i32) {
    %c0_i32 = arith.constant 0 : i32
    %c0_i32_0 = arith.constant 0 : i32
    %c0_i32_1 = arith.constant 0 : i32
    return %c0_i32, %c0_i32_0 : i32, i32
  }
  func.func @transform_3(%arg0: i32, %arg1: i32) -> (i32, i32) {
    %c0_i32 = arith.constant 0 : i32
    %c0_i32_0 = arith.constant 0 : i32
    %c0_i32_1 = arith.constant 0 : i32
    return %c0_i32, %c0_i32_0 : i32, i32
  }
  func.func @transform_4(%arg0: i32, %arg1: i32) -> (i32, i32) {
    %c0_i32 = arith.constant 0 : i32
    %c0_i32_0 = arith.constant 0 : i32
    return %c0_i32, %arg1 : i32, i32
  }
  func.func @transform_5(%arg0: i32, %arg1: i32) -> (i32, i32) {
    %c0_i32 = arith.constant 0 : i32
    return %arg0, %arg1 : i32, i32
  }
}

module attributes {stable_mosaic.version = 11 : i64} {
  func.func @_mm_fused_single_kernel(%arg0: i32, %arg1: i32, %arg2: memref<32x256xf32, #tpu.memory_space<vmem>>, %arg3: memref<256x128xbf16, #tpu.memory_space<vmem>>, %arg4: memref<1x256xf32, #tpu.memory_space<vmem>>, %arg5: memref<1x256xf32, #tpu.memory_space<vmem>>, %arg6: memref<1x128xf32, #tpu.memory_space<vmem>>, %arg7: memref<32x128xf32, #tpu.memory_space<vmem>>) attributes {dimension_semantics = [#tpu.dimension_semantics<parallel>, #tpu.dimension_semantics<parallel>], iteration_bounds = array<i64: 1, 1>, scalar_prefetch = 0 : i64, scratch_operands = 0 : i64, tpu.core_type = #tpu.core_type<tc>, window_params = [{transform_indices = @transform_0, window_bounds = array<i64: 32, 256>}, {transform_indices = @transform_1, window_bounds = array<i64: 256, 128>}, {pipeline_mode = #tpu.pipeline_mode<synchronous>, transform_indices = @transform_2, window_bounds = array<i64: 1, 256>}, {pipeline_mode = #tpu.pipeline_mode<synchronous>, transform_indices = @transform_3, window_bounds = array<i64: 1, 256>}, {transform_indices = @transform_4, window_bounds = array<i64: 1, 128>}, {transform_indices = @transform_5, window_bounds = array<i64: 32, 128>}]} {
    %c0 = arith.constant 0 : index
    %c0_0 = arith.constant 0 : index
    %0 = vector.load %arg2[%c0, %c0_0] : memref<32x256xf32, #tpu.memory_space<vmem>>, vector<32x256xf32>
    %c0_1 = arith.constant 0 : index
    %c0_2 = arith.constant 0 : index
    %1 = vector.load %arg4[%c0_1, %c0_2] : memref<1x256xf32, #tpu.memory_space<vmem>>, vector<1x256xf32>
    %2 = vector.broadcast %1 : vector<1x256xf32> to vector<32x256xf32>
    %3 = arith.mulf %0, %2 : vector<32x256xf32>
    %c0_3 = arith.constant 0 : index
    %c0_4 = arith.constant 0 : index
    %4 = vector.load %arg5[%c0_3, %c0_4] : memref<1x256xf32, #tpu.memory_space<vmem>>, vector<1x256xf32>
    %5 = vector.broadcast %4 : vector<1x256xf32> to vector<32x256xf32>
    %6 = arith.addf %3, %5 : vector<32x256xf32>
    %cst = arith.constant 0.000000e+00 : f32
    %7 = vector.broadcast %cst : f32 to vector<32x256xf32>
    %8 = arith.cmpf oge, %6, %7 : vector<32x256xf32>
    %cst_5 = arith.constant 0.00999999977 : f32
    %9 = vector.broadcast %cst_5 : f32 to vector<32x256xf32>
    %10 = arith.mulf %9, %6 : vector<32x256xf32>
    %11 = arith.select %8, %6, %10 : vector<32x256xi1>, vector<32x256xf32>
    %12 = arith.truncf %11 : vector<32x256xf32> to vector<32x256xbf16>
    %c0_6 = arith.constant 0 : index
    %c0_7 = arith.constant 0 : index
    %13 = vector.load %arg3[%c0_6, %c0_7] : memref<256x128xbf16, #tpu.memory_space<vmem>>, vector<256x128xbf16>
    %cst_8 = arith.constant dense<0.000000e+00> : vector<32x128xf32>
    %14 = tpu.matmul %12, %13, %cst_8 {dimension_numbers = #tpu.dot_dimension_numbers<[1], [0], [0], [1], [0, 0, 1, 1], [], []>} : vector<32x256xbf16>, vector<256x128xbf16>, vector<32x128xf32> -> vector<32x128xf32>
    %c0_9 = arith.constant 0 : index
    %c0_10 = arith.constant 0 : index
    %15 = vector.load %arg6[%c0_9, %c0_10] : memref<1x128xf32, #tpu.memory_space<vmem>>, vector<1x128xf32>
    %16 = vector.broadcast %15 : vector<1x128xf32> to vector<32x128xf32>
    %17 = arith.addf %14, %16 : vector<32x128xf32>
    %c0_11 = arith.constant 0 : index
    %c0_12 = arith.constant 0 : index
    %18 = vector.load %arg7[%c0_11, %c0_12] : memref<32x128xf32, #tpu.memory_space<vmem>>, vector<32x128xf32>
    tpu.vector_store %arg7[%c0_11, %c0_12], %17 {strides = array<i32>} : memref<32x128xf32, #tpu.memory_space<vmem>>, vector<32x128xf32>,
    return
  }
  func.func @transform_0(%arg0: i32, %arg1: i32) -> (i32, i32) {
    %c0_i32 = arith.constant 0 : i32
    %c0_i32_0 = arith.constant 0 : i32
    return %arg0, %c0_i32 : i32, i32
  }
  func.func @transform_1(%arg0: i32, %arg1: i32) -> (i32, i32) {
    %c0_i32 = arith.constant 0 : i32
    %c0_i32_0 = arith.constant 0 : i32
    return %c0_i32, %arg1 : i32, i32
  }
  func.func @transform_2(%arg0: i32, %arg1: i32) -> (i32, i32) {
    %c0_i32 = arith.constant 0 : i32
    %c0_i32_0 = arith.constant 0 : i32
    %c0_i32_1 = arith.constant 0 : i32
    return %c0_i32, %c0_i32_0 : i32, i32
  }
  func.func @transform_3(%arg0: i32, %arg1: i32) -> (i32, i32) {
    %c0_i32 = arith.constant 0 : i32
    %c0_i32_0 = arith.constant 0 : i32
    %c0_i32_1 = arith.constant 0 : i32
    return %c0_i32, %c0_i32_0 : i32, i32
  }
  func.func @transform_4(%arg0: i32, %arg1: i32) -> (i32, i32) {
    %c0_i32 = arith.constant 0 : i32
    %c0_i32_0 = arith.constant 0 : i32
    return %c0_i32, %arg1 : i32, i32
  }
  func.func @transform_5(%arg0: i32, %arg1: i32) -> (i32, i32) {
    %c0_i32 = arith.constant 0 : i32
    return %arg0, %arg1 : i32, i32
  }
}

module attributes {stable_mosaic.version = 11 : i64} {
  func.func @_mm_fused_multi_kernel(%arg0: i32, %arg1: i32, %arg2: i32, %arg3: memref<32x128xf32, #tpu.memory_space<vmem>>, %arg4: memref<128x128xbf16, #tpu.memory_space<vmem>>, %arg5: memref<1x128xf32, #tpu.memory_space<vmem>>, %arg6: memref<1x128xf32, #tpu.memory_space<vmem>>, %arg7: memref<1x128xf32, #tpu.memory_space<vmem>>, %arg8: memref<32x128xf32, #tpu.memory_space<vmem>>, %arg9: memref<32x128xf32, #tpu.memory_space<vmem>>) attributes {dimension_semantics = [#tpu.dimension_semantics<parallel>, #tpu.dimension_semantics<parallel>, #tpu.dimension_semantics<arbitrary>], iteration_bounds = array<i64: 1, 1, 3>, scalar_prefetch = 0 : i64, scratch_operands = 1 : i64, tpu.core_type = #tpu.core_type<tc>, window_params = [{transform_indices = @transform_0, window_bounds = array<i64: 32, 128>}, {transform_indices = @transform_1, window_bounds = array<i64: 128, 128>}, {transform_indices = @transform_2, window_bounds = array<i64: 1, 128>}, {transform_indices = @transform_3, window_bounds = array<i64: 1, 128>}, {transform_indices = @transform_4, window_bounds = array<i64: 1, 128>}, {transform_indices = @transform_5, window_bounds = array<i64: 32, 128>}]} {
    %c0_i32 = arith.constant 0 : i32
    %0 = arith.cmpi eq, %arg2, %c0_i32 : i32
    %1 = arith.extui %0 : i1 to i32
    %c0_i32_0 = arith.constant 0 : i32
    %2 = arith.cmpi ne, %1, %c0_i32_0 : i32
    scf.if %2 {
      %cst_15 = arith.constant 0.000000e+00 : f32
      %24 = vector.broadcast %cst_15 : f32 to vector<32x128xf32>
      %c0_16 = arith.constant 0 : index
      %c0_17 = arith.constant 0 : index
      %25 = vector.load %arg9[%c0_16, %c0_17] : memref<32x128xf32, #tpu.memory_space<vmem>>, vector<32x128xf32>
      tpu.vector_store %arg9[%c0_16, %c0_17], %24 {strides = array<i32>} : memref<32x128xf32, #tpu.memory_space<vmem>>, vector<32x128xf32>,
    } else {
    }
    %c0 = arith.constant 0 : index
    %c0_1 = arith.constant 0 : index
    %3 = vector.load %arg3[%c0, %c0_1] : memref<32x128xf32, #tpu.memory_space<vmem>>, vector<32x128xf32>
    %c0_2 = arith.constant 0 : index
    %c0_3 = arith.constant 0 : index
    %4 = vector.load %arg5[%c0_2, %c0_3] : memref<1x128xf32, #tpu.memory_space<vmem>>, vector<1x128xf32>
    %5 = vector.broadcast %4 : vector<1x128xf32> to vector<32x128xf32>
    %6 = arith.mulf %3, %5 : vector<32x128xf32>
    %c0_4 = arith.constant 0 : index
    %c0_5 = arith.constant 0 : index
    %7 = vector.load %arg6[%c0_4, %c0_5] : memref<1x128xf32, #tpu.memory_space<vmem>>, vector<1x128xf32>
    %8 = vector.broadcast %7 : vector<1x128xf32> to vector<32x128xf32>
    %9 = arith.addf %6, %8 : vector<32x128xf32>
    %cst = arith.constant 0.000000e+00 : f32
    %10 = vector.broadcast %cst : f32 to vector<32x128xf32>
    %11 = arith.cmpf oge, %9, %10 : vector<32x128xf32>
    %cst_6 = arith.constant 0.00999999977 : f32
    %12 = vector.broadcast %cst_6 : f32 to vector<32x128xf32>
    %13 = arith.mulf %12, %9 : vector<32x128xf32>
    %14 = arith.select %11, %9, %13 : vector<32x128xi1>, vector<32x128xf32>
    %c0_7 = arith.constant 0 : index
    %c0_8 = arith.constant 0 : index
    %15 = vector.load %arg9[%c0_7, %c0_8] : memref<32x128xf32, #tpu.memory_space<vmem>>, vector<32x128xf32>
    %16 = arith.truncf %14 : vector<32x128xf32> to vector<32x128xbf16>
    %c0_9 = arith.constant 0 : index
    %c0_10 = arith.constant 0 : index
    %17 = vector.load %arg4[%c0_9, %c0_10] : memref<128x128xbf16, #tpu.memory_space<vmem>>, vector<128x128xbf16>
    %cst_11 = arith.constant dense<0.000000e+00> : vector<32x128xf32>
    %18 = tpu.matmul %16, %17, %cst_11 {dimension_numbers = #tpu.dot_dimension_numbers<[1], [0], [0], [1], [0, 0, 1, 1], [], []>} : vector<32x128xbf16>, vector<128x128xbf16>, vector<32x128xf32> -> vector<32x128xf32>
    %19 = arith.addf %15, %18 : vector<32x128xf32>
    %c0_12 = arith.constant 0 : index
    %c0_13 = arith.constant 0 : index
    %20 = vector.load %arg9[%c0_12, %c0_13] : memref<32x128xf32, #tpu.memory_space<vmem>>, vector<32x128xf32>
    tpu.vector_store %arg9[%c0_12, %c0_13], %19 {strides = array<i32>} : memref<32x128xf32, #tpu.memory_space<vmem>>, vector<32x128xf32>,
    %c2_i32 = arith.constant 2 : i32
    %21 = arith.cmpi eq, %arg2, %c2_i32 : i32
    %22 = arith.extui %21 : i1 to i32
    %c0_i32_14 = arith.constant 0 : i32
    %23 = arith.cmpi ne, %22, %c0_i32_14 : i32
    scf.if %23 {
      %c0_15 = arith.constant 0 : index
      %c0_16 = arith.constant 0 : index
      %24 = vector.load %arg9[%c0_15, %c0_16] : memref<32x128xf32, #tpu.memory_space<vmem>>, vector<32x128xf32>
      %c0_17 = arith.constant 0 : index
      %c0_18 = arith.constant 0 : index
      %25 = vector.load %arg7[%c0_17, %c0_18] : memref<1x128xf32, #tpu.memory_space<vmem>>, vector<1x128xf32>
      %26 = vector.broadcast %25 : vector<1x128xf32> to vector<32x128xf32>
      %27 = arith.addf %24, %26 : vector<32x128xf32>
      %c0_19 = arith.constant 0 : index
      %c0_20 = arith.constant 0 : index
      %28 = vector.load %arg8[%c0_19, %c0_20] : memref<32x128xf32, #tpu.memory_space<vmem>>, vector<32x128xf32>
      tpu.vector_store %arg8[%c0_19, %c0_20], %27 {strides = array<i32>} : memref<32x128xf32, #tpu.memory_space<vmem>>, vector<32x128xf32>,
    } else {
    }
    return
  }
  func.func @transform_0(%arg0: i32, %arg1: i32, %arg2: i32) -> (i32, i32) {
    %c0_i32 = arith.constant 0 : i32
    return %arg0, %arg2 : i32, i32
  }
  func.func @transform_1(%arg0: i32, %arg1: i32, %arg2: i32) -> (i32, i32) {
    %c0_i32 = arith.constant 0 : i32
    return %arg2, %arg1 : i32, i32
  }
  func.func @transform_2(%arg0: i32, %arg1: i32, %arg2: i32) -> (i32, i32) {
    %c0_i32 = arith.constant 0 : i32
    %c0_i32_0 = arith.constant 0 : i32
    return %c0_i32, %arg2 : i32, i32
  }
  func.func @transform_3(%arg0: i32, %arg1: i32, %arg2: i32) -> (i32, i32) {
    %c0_i32 = arith.constant 0 : i32
    %c0_i32_0 = arith.constant 0 : i32
    return %c0_i32, %arg2 : i32, i32
  }
  func.func @transform_4(%arg0: i32, %arg1: i32, %arg2: i32) -> (i32, i32) {
    %c0_i32 = arith.constant 0 : i32
    %c0_i32_0 = arith.constant 0 : i32
    return %c0_i32, %arg1 : i32, i32
  }
  func.func @transform_5(%arg0: i32, %arg1: i32, %arg2: i32) -> (i32, i32) {
    %c0_i32 = arith.constant 0 : i32
    return %arg0, %arg1 : i32, i32
  }
}

module attributes {stable_mosaic.version = 11 : i64} {
  func.func @_mm_fused_multi_kernel(%arg0: i32, %arg1: i32, %arg2: i32, %arg3: memref<32x128xf32, #tpu.memory_space<vmem>>, %arg4: memref<128x128xbf16, #tpu.memory_space<vmem>>, %arg5: memref<1x128xf32, #tpu.memory_space<vmem>>, %arg6: memref<1x128xf32, #tpu.memory_space<vmem>>, %arg7: memref<1x128xf32, #tpu.memory_space<vmem>>, %arg8: memref<32x128xf32, #tpu.memory_space<vmem>>, %arg9: memref<32x128xf32, #tpu.memory_space<vmem>>) attributes {dimension_semantics = [#tpu.dimension_semantics<parallel>, #tpu.dimension_semantics<parallel>, #tpu.dimension_semantics<arbitrary>], iteration_bounds = array<i64: 1, 1, 3>, scalar_prefetch = 0 : i64, scratch_operands = 1 : i64, tpu.core_type = #tpu.core_type<tc>, window_params = [{transform_indices = @transform_0, window_bounds = array<i64: 32, 128>}, {transform_indices = @transform_1, window_bounds = array<i64: 128, 128>}, {transform_indices = @transform_2, window_bounds = array<i64: 1, 128>}, {transform_indices = @transform_3, window_bounds = array<i64: 1, 128>}, {transform_indices = @transform_4, window_bounds = array<i64: 1, 128>}, {transform_indices = @transform_5, window_bounds = array<i64: 32, 128>}]} {
    %c0_i32 = arith.constant 0 : i32
    %0 = arith.cmpi eq, %arg2, %c0_i32 : i32
    %1 = arith.extui %0 : i1 to i32
    %c0_i32_0 = arith.constant 0 : i32
    %2 = arith.cmpi ne, %1, %c0_i32_0 : i32
    scf.if %2 {
      %cst_13 = arith.constant 0.000000e+00 : f32
      %19 = vector.broadcast %cst_13 : f32 to vector<32x128xf32>
      %c0_14 = arith.constant 0 : index
      %c0_15 = arith.constant 0 : index
      %20 = vector.load %arg9[%c0_14, %c0_15] : memref<32x128xf32, #tpu.memory_space<vmem>>, vector<32x128xf32>
      tpu.vector_store %arg9[%c0_14, %c0_15], %19 {strides = array<i32>} : memref<32x128xf32, #tpu.memory_space<vmem>>, vector<32x128xf32>,
    } else {
    }
    %c0 = arith.constant 0 : index
    %c0_1 = arith.constant 0 : index
    %3 = vector.load %arg3[%c0, %c0_1] : memref<32x128xf32, #tpu.memory_space<vmem>>, vector<32x128xf32>
    %c0_2 = arith.constant 0 : index
    %c0_3 = arith.constant 0 : index
    %4 = vector.load %arg5[%c0_2, %c0_3] : memref<1x128xf32, #tpu.memory_space<vmem>>, vector<1x128xf32>
    %5 = vector.broadcast %4 : vector<1x128xf32> to vector<32x128xf32>
    %6 = arith.mulf %3, %5 : vector<32x128xf32>
    %c0_4 = arith.constant 0 : index
    %c0_5 = arith.constant 0 : index
    %7 = vector.load %arg6[%c0_4, %c0_5] : memref<1x128xf32, #tpu.memory_space<vmem>>, vector<1x128xf32>
    %8 = vector.broadcast %7 : vector<1x128xf32> to vector<32x128xf32>
    %9 = arith.addf %6, %8 : vector<32x128xf32>
    %c0_6 = arith.constant 0 : index
    %c0_7 = arith.constant 0 : index
    %10 = vector.load %arg9[%c0_6, %c0_7] : memref<32x128xf32, #tpu.memory_space<vmem>>, vector<32x128xf32>
    %11 = arith.truncf %9 : vector<32x128xf32> to vector<32x128xbf16>
    %c0_8 = arith.constant 0 : index
    %c0_9 = arith.constant 0 : index
    %12 = vector.load %arg4[%c0_8, %c0_9] : memref<128x128xbf16, #tpu.memory_space<vmem>>, vector<128x128xbf16>
    %cst = arith.constant dense<0.000000e+00> : vector<32x128xf32>
    %13 = tpu.matmul %11, %12, %cst {dimension_numbers = #tpu.dot_dimension_numbers<[1], [0], [0], [1], [0, 0, 1, 1], [], []>} : vector<32x128xbf16>, vector<128x128xbf16>, vector<32x128xf32> -> vector<32x128xf32>
    %14 = arith.addf %10, %13 : vector<32x128xf32>
    %c0_10 = arith.constant 0 : index
    %c0_11 = arith.constant 0 : index
    %15 = vector.load %arg9[%c0_10, %c0_11] : memref<32x128xf32, #tpu.memory_space<vmem>>, vector<32x128xf32>
    tpu.vector_store %arg9[%c0_10, %c0_11], %14 {strides = array<i32>} : memref<32x128xf32, #tpu.memory_space<vmem>>, vector<32x128xf32>,
    %c2_i32 = arith.constant 2 : i32
    %16 = arith.cmpi eq, %arg2, %c2_i32 : i32
    %17 = arith.extui %16 : i1 to i32
    %c0_i32_12 = arith.constant 0 : i32
    %18 = arith.cmpi ne, %17, %c0_i32_12 : i32
    scf.if %18 {
      %c0_13 = arith.constant 0 : index
      %c0_14 = arith.constant 0 : index
      %19 = vector.load %arg9[%c0_13, %c0_14] : memref<32x128xf32, #tpu.memory_space<vmem>>, vector<32x128xf32>
      %c0_15 = arith.constant 0 : index
      %c0_16 = arith.constant 0 : index
      %20 = vector.load %arg7[%c0_15, %c0_16] : memref<1x128xf32, #tpu.memory_space<vmem>>, vector<1x128xf32>
      %21 = vector.broadcast %20 : vector<1x128xf32> to vector<32x128xf32>
      %22 = arith.addf %19, %21 : vector<32x128xf32>
      %c0_17 = arith.constant 0 : index
      %c0_18 = arith.constant 0 : index
      %23 = vector.load %arg8[%c0_17, %c0_18] : memref<32x128xf32, #tpu.memory_space<vmem>>, vector<32x128xf32>
      tpu.vector_store %arg8[%c0_17, %c0_18], %22 {strides = array<i32>} : memref<32x128xf32, #tpu.memory_space<vmem>>, vector<32x128xf32>,
    } else {
    }
    return
  }
  func.func @transform_0(%arg0: i32, %arg1: i32, %arg2: i32) -> (i32, i32) {
    %c0_i32 = arith.constant 0 : i32
    return %arg0, %arg2 : i32, i32
  }
  func.func @transform_1(%arg0: i32, %arg1: i32, %arg2: i32) -> (i32, i32) {
    %c0_i32 = arith.constant 0 : i32
    return %arg2, %arg1 : i32, i32
  }
  func.func @transform_2(%arg0: i32, %arg1: i32, %arg2: i32) -> (i32, i32) {
    %c0_i32 = arith.constant 0 : i32
    %c0_i32_0 = arith.constant 0 : i32
    return %c0_i32, %arg2 : i32, i32
  }
  func.func @transform_3(%arg0: i32, %arg1: i32, %arg2: i32) -> (i32, i32) {
    %c0_i32 = arith.constant 0 : i32
    %c0_i32_0 = arith.constant 0 : i32
    return %c0_i32, %arg2 : i32, i32
  }
  func.func @transform_4(%arg0: i32, %arg1: i32, %arg2: i32) -> (i32, i32) {
    %c0_i32 = arith.constant 0 : i32
    %c0_i32_0 = arith.constant 0 : i32
    return %c0_i32, %arg1 : i32, i32
  }
  func.func @transform_5(%arg0: i32, %arg1: i32, %arg2: i32) -> (i32, i32) {
    %c0_i32 = arith.constant 0 : i32
    return %arg0, %arg1 : i32, i32
  }
}

module attributes {stable_mosaic.version = 11 : i64} {
  func.func @_res_tail_kernel(%arg0: i32, %arg1: memref<32x128xf32, #tpu.memory_space<vmem>>, %arg2: memref<1x128xf32, #tpu.memory_space<vmem>>, %arg3: memref<1x128xf32, #tpu.memory_space<vmem>>, %arg4: memref<32x128xf32, #tpu.memory_space<vmem>>, %arg5: memref<1x128xf32, #tpu.memory_space<vmem>>, %arg6: memref<1x128xf32, #tpu.memory_space<vmem>>, %arg7: memref<32x128xf32, #tpu.memory_space<vmem>>) attributes {dimension_semantics = [#tpu.dimension_semantics<parallel>], iteration_bounds = array<i64: 1>, scalar_prefetch = 0 : i64, scratch_operands = 0 : i64, tpu.core_type = #tpu.core_type<tc>, window_params = [{transform_indices = @transform_0, window_bounds = array<i64: 32, 128>}, {pipeline_mode = #tpu.pipeline_mode<synchronous>, transform_indices = @transform_1, window_bounds = array<i64: 1, 128>}, {pipeline_mode = #tpu.pipeline_mode<synchronous>, transform_indices = @transform_2, window_bounds = array<i64: 1, 128>}, {transform_indices = @transform_3, window_bounds = array<i64: 32, 128>}, {pipeline_mode = #tpu.pipeline_mode<synchronous>, transform_indices = @transform_4, window_bounds = array<i64: 1, 128>}, {pipeline_mode = #tpu.pipeline_mode<synchronous>, transform_indices = @transform_5, window_bounds = array<i64: 1, 128>}, {transform_indices = @transform_6, window_bounds = array<i64: 32, 128>}]} {
    %c0 = arith.constant 0 : index
    %c0_0 = arith.constant 0 : index
    %0 = vector.load %arg4[%c0, %c0_0] : memref<32x128xf32, #tpu.memory_space<vmem>>, vector<32x128xf32>
    %c0_1 = arith.constant 0 : index
    %c0_2 = arith.constant 0 : index
    %1 = vector.load %arg5[%c0_1, %c0_2] : memref<1x128xf32, #tpu.memory_space<vmem>>, vector<1x128xf32>
    %2 = vector.broadcast %1 : vector<1x128xf32> to vector<32x128xf32>
    %3 = arith.mulf %0, %2 : vector<32x128xf32>
    %c0_3 = arith.constant 0 : index
    %c0_4 = arith.constant 0 : index
    %4 = vector.load %arg6[%c0_3, %c0_4] : memref<1x128xf32, #tpu.memory_space<vmem>>, vector<1x128xf32>
    %5 = vector.broadcast %4 : vector<1x128xf32> to vector<32x128xf32>
    %6 = arith.addf %3, %5 : vector<32x128xf32>
    %cst = arith.constant 0.000000e+00 : f32
    %7 = vector.broadcast %cst : f32 to vector<32x128xf32>
    %8 = arith.cmpf oge, %6, %7 : vector<32x128xf32>
    %cst_5 = arith.constant 0.00999999977 : f32
    %9 = vector.broadcast %cst_5 : f32 to vector<32x128xf32>
    %10 = arith.mulf %9, %6 : vector<32x128xf32>
    %11 = arith.select %8, %6, %10 : vector<32x128xi1>, vector<32x128xf32>
    %c0_6 = arith.constant 0 : index
    %c0_7 = arith.constant 0 : index
    %12 = vector.load %arg1[%c0_6, %c0_7] : memref<32x128xf32, #tpu.memory_space<vmem>>, vector<32x128xf32>
    %c0_8 = arith.constant 0 : index
    %c0_9 = arith.constant 0 : index
    %13 = vector.load %arg2[%c0_8, %c0_9] : memref<1x128xf32, #tpu.memory_space<vmem>>, vector<1x128xf32>
    %14 = vector.broadcast %13 : vector<1x128xf32> to vector<32x128xf32>
    %15 = arith.mulf %12, %14 : vector<32x128xf32>
    %c0_10 = arith.constant 0 : index
    %c0_11 = arith.constant 0 : index
    %16 = vector.load %arg3[%c0_10, %c0_11] : memref<1x128xf32, #tpu.memory_space<vmem>>, vector<1x128xf32>
    %17 = vector.broadcast %16 : vector<1x128xf32> to vector<32x128xf32>
    %18 = arith.addf %15, %17 : vector<32x128xf32>
    %19 = arith.addf %18, %11 : vector<32x128xf32>
    %c0_12 = arith.constant 0 : index
    %c0_13 = arith.constant 0 : index
    %20 = vector.load %arg7[%c0_12, %c0_13] : memref<32x128xf32, #tpu.memory_space<vmem>>, vector<32x128xf32>
    tpu.vector_store %arg7[%c0_12, %c0_13], %19 {strides = array<i32>} : memref<32x128xf32, #tpu.memory_space<vmem>>, vector<32x128xf32>,
    return
  }
  func.func @transform_0(%arg0: i32) -> (i32, i32) {
    %c0_i32 = arith.constant 0 : i32
    %c0_i32_0 = arith.constant 0 : i32
    return %arg0, %c0_i32 : i32, i32
  }
  func.func @transform_1(%arg0: i32) -> (i32, i32) {
    %c0_i32 = arith.constant 0 : i32
    %c0_i32_0 = arith.constant 0 : i32
    %c0_i32_1 = arith.constant 0 : i32
    return %c0_i32, %c0_i32_0 : i32, i32
  }
  func.func @transform_2(%arg0: i32) -> (i32, i32) {
    %c0_i32 = arith.constant 0 : i32
    %c0_i32_0 = arith.constant 0 : i32
    %c0_i32_1 = arith.constant 0 : i32
    return %c0_i32, %c0_i32_0 : i32, i32
  }
  func.func @transform_3(%arg0: i32) -> (i32, i32) {
    %c0_i32 = arith.constant 0 : i32
    %c0_i32_0 = arith.constant 0 : i32
    return %arg0, %c0_i32 : i32, i32
  }
  func.func @transform_4(%arg0: i32) -> (i32, i32) {
    %c0_i32 = arith.constant 0 : i32
    %c0_i32_0 = arith.constant 0 : i32
    %c0_i32_1 = arith.constant 0 : i32
    return %c0_i32, %c0_i32_0 : i32, i32
  }
  func.func @transform_5(%arg0: i32) -> (i32, i32) {
    %c0_i32 = arith.constant 0 : i32
    %c0_i32_0 = arith.constant 0 : i32
    %c0_i32_1 = arith.constant 0 : i32
    return %c0_i32, %c0_i32_0 : i32, i32
  }
  func.func @transform_6(%arg0: i32) -> (i32, i32) {
    %c0_i32 = arith.constant 0 : i32
    %c0_i32_0 = arith.constant 0 : i32
    return %arg0, %c0_i32 : i32, i32
  }
}

module attributes {stable_mosaic.version = 11 : i64} {
  func.func @_res_tail_kernel(%arg0: i32, %arg1: memref<32x128xf32, #tpu.memory_space<vmem>>, %arg2: memref<1x128xf32, #tpu.memory_space<vmem>>, %arg3: memref<1x128xf32, #tpu.memory_space<vmem>>, %arg4: memref<32x128xf32, #tpu.memory_space<vmem>>, %arg5: memref<1x128xf32, #tpu.memory_space<vmem>>, %arg6: memref<1x128xf32, #tpu.memory_space<vmem>>, %arg7: memref<32x128xf32, #tpu.memory_space<vmem>>) attributes {dimension_semantics = [#tpu.dimension_semantics<parallel>], iteration_bounds = array<i64: 1>, scalar_prefetch = 0 : i64, scratch_operands = 0 : i64, tpu.core_type = #tpu.core_type<tc>, window_params = [{transform_indices = @transform_0, window_bounds = array<i64: 32, 128>}, {pipeline_mode = #tpu.pipeline_mode<synchronous>, transform_indices = @transform_1, window_bounds = array<i64: 1, 128>}, {pipeline_mode = #tpu.pipeline_mode<synchronous>, transform_indices = @transform_2, window_bounds = array<i64: 1, 128>}, {transform_indices = @transform_3, window_bounds = array<i64: 32, 128>}, {pipeline_mode = #tpu.pipeline_mode<synchronous>, transform_indices = @transform_4, window_bounds = array<i64: 1, 128>}, {pipeline_mode = #tpu.pipeline_mode<synchronous>, transform_indices = @transform_5, window_bounds = array<i64: 1, 128>}, {transform_indices = @transform_6, window_bounds = array<i64: 32, 128>}]} {
    %c0 = arith.constant 0 : index
    %c0_0 = arith.constant 0 : index
    %0 = vector.load %arg4[%c0, %c0_0] : memref<32x128xf32, #tpu.memory_space<vmem>>, vector<32x128xf32>
    %c0_1 = arith.constant 0 : index
    %c0_2 = arith.constant 0 : index
    %1 = vector.load %arg5[%c0_1, %c0_2] : memref<1x128xf32, #tpu.memory_space<vmem>>, vector<1x128xf32>
    %2 = vector.broadcast %1 : vector<1x128xf32> to vector<32x128xf32>
    %3 = arith.mulf %0, %2 : vector<32x128xf32>
    %c0_3 = arith.constant 0 : index
    %c0_4 = arith.constant 0 : index
    %4 = vector.load %arg6[%c0_3, %c0_4] : memref<1x128xf32, #tpu.memory_space<vmem>>, vector<1x128xf32>
    %5 = vector.broadcast %4 : vector<1x128xf32> to vector<32x128xf32>
    %6 = arith.addf %3, %5 : vector<32x128xf32>
    %c0_5 = arith.constant 0 : index
    %c0_6 = arith.constant 0 : index
    %7 = vector.load %arg1[%c0_5, %c0_6] : memref<32x128xf32, #tpu.memory_space<vmem>>, vector<32x128xf32>
    %c0_7 = arith.constant 0 : index
    %c0_8 = arith.constant 0 : index
    %8 = vector.load %arg2[%c0_7, %c0_8] : memref<1x128xf32, #tpu.memory_space<vmem>>, vector<1x128xf32>
    %9 = vector.broadcast %8 : vector<1x128xf32> to vector<32x128xf32>
    %10 = arith.mulf %7, %9 : vector<32x128xf32>
    %c0_9 = arith.constant 0 : index
    %c0_10 = arith.constant 0 : index
    %11 = vector.load %arg3[%c0_9, %c0_10] : memref<1x128xf32, #tpu.memory_space<vmem>>, vector<1x128xf32>
    %12 = vector.broadcast %11 : vector<1x128xf32> to vector<32x128xf32>
    %13 = arith.addf %10, %12 : vector<32x128xf32>
    %14 = arith.addf %13, %6 : vector<32x128xf32>
    %c0_11 = arith.constant 0 : index
    %c0_12 = arith.constant 0 : index
    %15 = vector.load %arg7[%c0_11, %c0_12] : memref<32x128xf32, #tpu.memory_space<vmem>>, vector<32x128xf32>
    tpu.vector_store %arg7[%c0_11, %c0_12], %14 {strides = array<i32>} : memref<32x128xf32, #tpu.memory_space<vmem>>, vector<32x128xf32>,
    return
  }
  func.func @transform_0(%arg0: i32) -> (i32, i32) {
    %c0_i32 = arith.constant 0 : i32
    %c0_i32_0 = arith.constant 0 : i32
    return %arg0, %c0_i32 : i32, i32
  }
  func.func @transform_1(%arg0: i32) -> (i32, i32) {
    %c0_i32 = arith.constant 0 : i32
    %c0_i32_0 = arith.constant 0 : i32
    %c0_i32_1 = arith.constant 0 : i32
    return %c0_i32, %c0_i32_0 : i32, i32
  }
  func.func @transform_2(%arg0: i32) -> (i32, i32) {
    %c0_i32 = arith.constant 0 : i32
    %c0_i32_0 = arith.constant 0 : i32
    %c0_i32_1 = arith.constant 0 : i32
    return %c0_i32, %c0_i32_0 : i32, i32
  }
  func.func @transform_3(%arg0: i32) -> (i32, i32) {
    %c0_i32 = arith.constant 0 : i32
    %c0_i32_0 = arith.constant 0 : i32
    return %arg0, %c0_i32 : i32, i32
  }
  func.func @transform_4(%arg0: i32) -> (i32, i32) {
    %c0_i32 = arith.constant 0 : i32
    %c0_i32_0 = arith.constant 0 : i32
    %c0_i32_1 = arith.constant 0 : i32
    return %c0_i32, %c0_i32_0 : i32, i32
  }
  func.func @transform_5(%arg0: i32) -> (i32, i32) {
    %c0_i32 = arith.constant 0 : i32
    %c0_i32_0 = arith.constant 0 : i32
    %c0_i32_1 = arith.constant 0 : i32
    return %c0_i32, %c0_i32_0 : i32, i32
  }
  func.func @transform_6(%arg0: i32) -> (i32, i32) {
    %c0_i32 = arith.constant 0 : i32
    %c0_i32_0 = arith.constant 0 : i32
    return %arg0, %c0_i32 : i32, i32
  }
}

module attributes {stable_mosaic.version = 11 : i64} {
  func.func @_mm_fused_multi_kernel(%arg0: i32, %arg1: i32, %arg2: i32, %arg3: memref<128x128xf32, #tpu.memory_space<vmem>>, %arg4: memref<128x128xbf16, #tpu.memory_space<vmem>>, %arg5: memref<1x128xf32, #tpu.memory_space<vmem>>, %arg6: memref<1x128xf32, #tpu.memory_space<vmem>>, %arg7: memref<1x128xf32, #tpu.memory_space<vmem>>, %arg8: memref<128x128xf32, #tpu.memory_space<vmem>>, %arg9: memref<128x128xf32, #tpu.memory_space<vmem>>) attributes {dimension_semantics = [#tpu.dimension_semantics<parallel>, #tpu.dimension_semantics<parallel>, #tpu.dimension_semantics<arbitrary>], iteration_bounds = array<i64: 1, 1, 3>, scalar_prefetch = 0 : i64, scratch_operands = 1 : i64, tpu.core_type = #tpu.core_type<tc>, window_params = [{transform_indices = @transform_0, window_bounds = array<i64: 128, 128>}, {transform_indices = @transform_1, window_bounds = array<i64: 128, 128>}, {transform_indices = @transform_2, window_bounds = array<i64: 1, 128>}, {transform_indices = @transform_3, window_bounds = array<i64: 1, 128>}, {transform_indices = @transform_4, window_bounds = array<i64: 1, 128>}, {transform_indices = @transform_5, window_bounds = array<i64: 128, 128>}]} {
    %c0_i32 = arith.constant 0 : i32
    %0 = arith.cmpi eq, %arg2, %c0_i32 : i32
    %1 = arith.extui %0 : i1 to i32
    %c0_i32_0 = arith.constant 0 : i32
    %2 = arith.cmpi ne, %1, %c0_i32_0 : i32
    scf.if %2 {
      %cst_13 = arith.constant 0.000000e+00 : f32
      %19 = vector.broadcast %cst_13 : f32 to vector<128x128xf32>
      %c0_14 = arith.constant 0 : index
      %c0_15 = arith.constant 0 : index
      %20 = vector.load %arg9[%c0_14, %c0_15] : memref<128x128xf32, #tpu.memory_space<vmem>>, vector<128x128xf32>
      tpu.vector_store %arg9[%c0_14, %c0_15], %19 {strides = array<i32>} : memref<128x128xf32, #tpu.memory_space<vmem>>, vector<128x128xf32>,
    } else {
    }
    %c0 = arith.constant 0 : index
    %c0_1 = arith.constant 0 : index
    %3 = vector.load %arg3[%c0, %c0_1] : memref<128x128xf32, #tpu.memory_space<vmem>>, vector<128x128xf32>
    %c0_2 = arith.constant 0 : index
    %c0_3 = arith.constant 0 : index
    %4 = vector.load %arg5[%c0_2, %c0_3] : memref<1x128xf32, #tpu.memory_space<vmem>>, vector<1x128xf32>
    %5 = vector.broadcast %4 : vector<1x128xf32> to vector<128x128xf32>
    %6 = arith.mulf %3, %5 : vector<128x128xf32>
    %c0_4 = arith.constant 0 : index
    %c0_5 = arith.constant 0 : index
    %7 = vector.load %arg6[%c0_4, %c0_5] : memref<1x128xf32, #tpu.memory_space<vmem>>, vector<1x128xf32>
    %8 = vector.broadcast %7 : vector<1x128xf32> to vector<128x128xf32>
    %9 = arith.addf %6, %8 : vector<128x128xf32>
    %c0_6 = arith.constant 0 : index
    %c0_7 = arith.constant 0 : index
    %10 = vector.load %arg9[%c0_6, %c0_7] : memref<128x128xf32, #tpu.memory_space<vmem>>, vector<128x128xf32>
    %11 = arith.truncf %9 : vector<128x128xf32> to vector<128x128xbf16>
    %c0_8 = arith.constant 0 : index
    %c0_9 = arith.constant 0 : index
    %12 = vector.load %arg4[%c0_8, %c0_9] : memref<128x128xbf16, #tpu.memory_space<vmem>>, vector<128x128xbf16>
    %cst = arith.constant dense<0.000000e+00> : vector<128x128xf32>
    %13 = tpu.matmul %11, %12, %cst {dimension_numbers = #tpu.dot_dimension_numbers<[1], [0], [0], [1], [0, 0, 1, 1], [], []>} : vector<128x128xbf16>, vector<128x128xbf16>, vector<128x128xf32> -> vector<128x128xf32>
    %14 = arith.addf %10, %13 : vector<128x128xf32>
    %c0_10 = arith.constant 0 : index
    %c0_11 = arith.constant 0 : index
    %15 = vector.load %arg9[%c0_10, %c0_11] : memref<128x128xf32, #tpu.memory_space<vmem>>, vector<128x128xf32>
    tpu.vector_store %arg9[%c0_10, %c0_11], %14 {strides = array<i32>} : memref<128x128xf32, #tpu.memory_space<vmem>>, vector<128x128xf32>,
    %c2_i32 = arith.constant 2 : i32
    %16 = arith.cmpi eq, %arg2, %c2_i32 : i32
    %17 = arith.extui %16 : i1 to i32
    %c0_i32_12 = arith.constant 0 : i32
    %18 = arith.cmpi ne, %17, %c0_i32_12 : i32
    scf.if %18 {
      %c0_13 = arith.constant 0 : index
      %c0_14 = arith.constant 0 : index
      %19 = vector.load %arg9[%c0_13, %c0_14] : memref<128x128xf32, #tpu.memory_space<vmem>>, vector<128x128xf32>
      %c0_15 = arith.constant 0 : index
      %c0_16 = arith.constant 0 : index
      %20 = vector.load %arg7[%c0_15, %c0_16] : memref<1x128xf32, #tpu.memory_space<vmem>>, vector<1x128xf32>
      %21 = vector.broadcast %20 : vector<1x128xf32> to vector<128x128xf32>
      %22 = arith.addf %19, %21 : vector<128x128xf32>
      %c0_17 = arith.constant 0 : index
      %c0_18 = arith.constant 0 : index
      %23 = vector.load %arg8[%c0_17, %c0_18] : memref<128x128xf32, #tpu.memory_space<vmem>>, vector<128x128xf32>
      tpu.vector_store %arg8[%c0_17, %c0_18], %22 {strides = array<i32>} : memref<128x128xf32, #tpu.memory_space<vmem>>, vector<128x128xf32>,
    } else {
    }
    return
  }
  func.func @transform_0(%arg0: i32, %arg1: i32, %arg2: i32) -> (i32, i32) {
    %c0_i32 = arith.constant 0 : i32
    return %arg0, %arg2 : i32, i32
  }
  func.func @transform_1(%arg0: i32, %arg1: i32, %arg2: i32) -> (i32, i32) {
    %c0_i32 = arith.constant 0 : i32
    return %arg2, %arg1 : i32, i32
  }
  func.func @transform_2(%arg0: i32, %arg1: i32, %arg2: i32) -> (i32, i32) {
    %c0_i32 = arith.constant 0 : i32
    %c0_i32_0 = arith.constant 0 : i32
    return %c0_i32, %arg2 : i32, i32
  }
  func.func @transform_3(%arg0: i32, %arg1: i32, %arg2: i32) -> (i32, i32) {
    %c0_i32 = arith.constant 0 : i32
    %c0_i32_0 = arith.constant 0 : i32
    return %c0_i32, %arg2 : i32, i32
  }
  func.func @transform_4(%arg0: i32, %arg1: i32, %arg2: i32) -> (i32, i32) {
    %c0_i32 = arith.constant 0 : i32
    %c0_i32_0 = arith.constant 0 : i32
    return %c0_i32, %arg1 : i32, i32
  }
  func.func @transform_5(%arg0: i32, %arg1: i32, %arg2: i32) -> (i32, i32) {
    %c0_i32 = arith.constant 0 : i32
    return %arg0, %arg1 : i32, i32
  }
}

module attributes {stable_mosaic.version = 11 : i64} {
  func.func @_affine_act_kernel(%arg0: i32, %arg1: memref<128x128xf32, #tpu.memory_space<vmem>>, %arg2: memref<1x128xf32, #tpu.memory_space<vmem>>, %arg3: memref<1x128xf32, #tpu.memory_space<vmem>>, %arg4: memref<128x128xf32, #tpu.memory_space<vmem>>) attributes {dimension_semantics = [#tpu.dimension_semantics<parallel>], iteration_bounds = array<i64: 1>, scalar_prefetch = 0 : i64, scratch_operands = 0 : i64, tpu.core_type = #tpu.core_type<tc>, window_params = [{transform_indices = @transform_0, window_bounds = array<i64: 128, 128>}, {pipeline_mode = #tpu.pipeline_mode<synchronous>, transform_indices = @transform_1, window_bounds = array<i64: 1, 128>}, {pipeline_mode = #tpu.pipeline_mode<synchronous>, transform_indices = @transform_2, window_bounds = array<i64: 1, 128>}, {transform_indices = @transform_3, window_bounds = array<i64: 128, 128>}]} {
    %c0 = arith.constant 0 : index
    %c0_0 = arith.constant 0 : index
    %0 = vector.load %arg1[%c0, %c0_0] : memref<128x128xf32, #tpu.memory_space<vmem>>, vector<128x128xf32>
    %c0_1 = arith.constant 0 : index
    %c0_2 = arith.constant 0 : index
    %1 = vector.load %arg2[%c0_1, %c0_2] : memref<1x128xf32, #tpu.memory_space<vmem>>, vector<1x128xf32>
    %2 = vector.broadcast %1 : vector<1x128xf32> to vector<128x128xf32>
    %3 = arith.mulf %0, %2 : vector<128x128xf32>
    %c0_3 = arith.constant 0 : index
    %c0_4 = arith.constant 0 : index
    %4 = vector.load %arg3[%c0_3, %c0_4] : memref<1x128xf32, #tpu.memory_space<vmem>>, vector<1x128xf32>
    %5 = vector.broadcast %4 : vector<1x128xf32> to vector<128x128xf32>
    %6 = arith.addf %3, %5 : vector<128x128xf32>
    %cst = arith.constant 0.000000e+00 : f32
    %7 = vector.broadcast %cst : f32 to vector<128x128xf32>
    %8 = arith.cmpf oge, %6, %7 : vector<128x128xf32>
    %cst_5 = arith.constant 0.00999999977 : f32
    %9 = vector.broadcast %cst_5 : f32 to vector<128x128xf32>
    %10 = arith.mulf %9, %6 : vector<128x128xf32>
    %11 = arith.select %8, %6, %10 : vector<128x128xi1>, vector<128x128xf32>
    %c0_6 = arith.constant 0 : index
    %c0_7 = arith.constant 0 : index
    %12 = vector.load %arg4[%c0_6, %c0_7] : memref<128x128xf32, #tpu.memory_space<vmem>>, vector<128x128xf32>
    tpu.vector_store %arg4[%c0_6, %c0_7], %11 {strides = array<i32>} : memref<128x128xf32, #tpu.memory_space<vmem>>, vector<128x128xf32>,
    return
  }
  func.func @transform_0(%arg0: i32) -> (i32, i32) {
    %c0_i32 = arith.constant 0 : i32
    %c0_i32_0 = arith.constant 0 : i32
    return %arg0, %c0_i32 : i32, i32
  }
  func.func @transform_1(%arg0: i32) -> (i32, i32) {
    %c0_i32 = arith.constant 0 : i32
    %c0_i32_0 = arith.constant 0 : i32
    %c0_i32_1 = arith.constant 0 : i32
    return %c0_i32, %c0_i32_0 : i32, i32
  }
  func.func @transform_2(%arg0: i32) -> (i32, i32) {
    %c0_i32 = arith.constant 0 : i32
    %c0_i32_0 = arith.constant 0 : i32
    %c0_i32_1 = arith.constant 0 : i32
    return %c0_i32, %c0_i32_0 : i32, i32
  }
  func.func @transform_3(%arg0: i32) -> (i32, i32) {
    %c0_i32 = arith.constant 0 : i32
    %c0_i32_0 = arith.constant 0 : i32
    return %arg0, %c0_i32 : i32, i32
  }
}

module attributes {stable_mosaic.version = 11 : i64} {
  func.func @_mm_fused_single_kernel(%arg0: i32, %arg1: i32, %arg2: memref<256x256xf32, #tpu.memory_space<vmem>>, %arg3: memref<256x128xbf16, #tpu.memory_space<vmem>>, %arg4: memref<1x256xf32, #tpu.memory_space<vmem>>, %arg5: memref<1x256xf32, #tpu.memory_space<vmem>>, %arg6: memref<1x128xf32, #tpu.memory_space<vmem>>, %arg7: memref<256x128xf32, #tpu.memory_space<vmem>>) attributes {dimension_semantics = [#tpu.dimension_semantics<parallel>, #tpu.dimension_semantics<parallel>], iteration_bounds = array<i64: 2, 1>, scalar_prefetch = 0 : i64, scratch_operands = 0 : i64, tpu.core_type = #tpu.core_type<tc>, window_params = [{transform_indices = @transform_0, window_bounds = array<i64: 256, 256>}, {transform_indices = @transform_1, window_bounds = array<i64: 256, 128>}, {pipeline_mode = #tpu.pipeline_mode<synchronous>, transform_indices = @transform_2, window_bounds = array<i64: 1, 256>}, {pipeline_mode = #tpu.pipeline_mode<synchronous>, transform_indices = @transform_3, window_bounds = array<i64: 1, 256>}, {transform_indices = @transform_4, window_bounds = array<i64: 1, 128>}, {transform_indices = @transform_5, window_bounds = array<i64: 256, 128>}]} {
    %c0 = arith.constant 0 : index
    %c0_0 = arith.constant 0 : index
    %0 = vector.load %arg2[%c0, %c0_0] : memref<256x256xf32, #tpu.memory_space<vmem>>, vector<256x256xf32>
    %c0_1 = arith.constant 0 : index
    %c0_2 = arith.constant 0 : index
    %1 = vector.load %arg4[%c0_1, %c0_2] : memref<1x256xf32, #tpu.memory_space<vmem>>, vector<1x256xf32>
    %2 = vector.broadcast %1 : vector<1x256xf32> to vector<256x256xf32>
    %3 = arith.mulf %0, %2 : vector<256x256xf32>
    %c0_3 = arith.constant 0 : index
    %c0_4 = arith.constant 0 : index
    %4 = vector.load %arg5[%c0_3, %c0_4] : memref<1x256xf32, #tpu.memory_space<vmem>>, vector<1x256xf32>
    %5 = vector.broadcast %4 : vector<1x256xf32> to vector<256x256xf32>
    %6 = arith.addf %3, %5 : vector<256x256xf32>
    %7 = arith.truncf %6 : vector<256x256xf32> to vector<256x256xbf16>
    %c0_5 = arith.constant 0 : index
    %c0_6 = arith.constant 0 : index
    %8 = vector.load %arg3[%c0_5, %c0_6] : memref<256x128xbf16, #tpu.memory_space<vmem>>, vector<256x128xbf16>
    %cst = arith.constant dense<0.000000e+00> : vector<256x128xf32>
    %9 = tpu.matmul %7, %8, %cst {dimension_numbers = #tpu.dot_dimension_numbers<[1], [0], [0], [1], [0, 0, 1, 1], [], []>} : vector<256x256xbf16>, vector<256x128xbf16>, vector<256x128xf32> -> vector<256x128xf32>
    %c0_7 = arith.constant 0 : index
    %c0_8 = arith.constant 0 : index
    %10 = vector.load %arg6[%c0_7, %c0_8] : memref<1x128xf32, #tpu.memory_space<vmem>>, vector<1x128xf32>
    %11 = vector.broadcast %10 : vector<1x128xf32> to vector<256x128xf32>
    %12 = arith.addf %9, %11 : vector<256x128xf32>
    %c0_9 = arith.constant 0 : index
    %c0_10 = arith.constant 0 : index
    %13 = vector.load %arg7[%c0_9, %c0_10] : memref<256x128xf32, #tpu.memory_space<vmem>>, vector<256x128xf32>
    tpu.vector_store %arg7[%c0_9, %c0_10], %12 {strides = array<i32>} : memref<256x128xf32, #tpu.memory_space<vmem>>, vector<256x128xf32>,
    return
  }
  func.func @transform_0(%arg0: i32, %arg1: i32) -> (i32, i32) {
    %c0_i32 = arith.constant 0 : i32
    %c0_i32_0 = arith.constant 0 : i32
    return %arg0, %c0_i32 : i32, i32
  }
  func.func @transform_1(%arg0: i32, %arg1: i32) -> (i32, i32) {
    %c0_i32 = arith.constant 0 : i32
    %c0_i32_0 = arith.constant 0 : i32
    return %c0_i32, %arg1 : i32, i32
  }
  func.func @transform_2(%arg0: i32, %arg1: i32) -> (i32, i32) {
    %c0_i32 = arith.constant 0 : i32
    %c0_i32_0 = arith.constant 0 : i32
    %c0_i32_1 = arith.constant 0 : i32
    return %c0_i32, %c0_i32_0 : i32, i32
  }
  func.func @transform_3(%arg0: i32, %arg1: i32) -> (i32, i32) {
    %c0_i32 = arith.constant 0 : i32
    %c0_i32_0 = arith.constant 0 : i32
    %c0_i32_1 = arith.constant 0 : i32
    return %c0_i32, %c0_i32_0 : i32, i32
  }
  func.func @transform_4(%arg0: i32, %arg1: i32) -> (i32, i32) {
    %c0_i32 = arith.constant 0 : i32
    %c0_i32_0 = arith.constant 0 : i32
    return %c0_i32, %arg1 : i32, i32
  }
  func.func @transform_5(%arg0: i32, %arg1: i32) -> (i32, i32) {
    %c0_i32 = arith.constant 0 : i32
    return %arg0, %arg1 : i32, i32
  }
}

module attributes {stable_mosaic.version = 11 : i64} {
  func.func @_mm_fused_multi_kernel(%arg0: i32, %arg1: i32, %arg2: i32, %arg3: memref<256x256xf32, #tpu.memory_space<vmem>>, %arg4: memref<256x128xbf16, #tpu.memory_space<vmem>>, %arg5: memref<1x256xf32, #tpu.memory_space<vmem>>, %arg6: memref<1x256xf32, #tpu.memory_space<vmem>>, %arg7: memref<1x128xf32, #tpu.memory_space<vmem>>, %arg8: memref<256x128xf32, #tpu.memory_space<vmem>>, %arg9: memref<256x128xf32, #tpu.memory_space<vmem>>) attributes {dimension_semantics = [#tpu.dimension_semantics<parallel>, #tpu.dimension_semantics<parallel>, #tpu.dimension_semantics<arbitrary>], iteration_bounds = array<i64: 2, 1, 2>, scalar_prefetch = 0 : i64, scratch_operands = 1 : i64, tpu.core_type = #tpu.core_type<tc>, window_params = [{transform_indices = @transform_0, window_bounds = array<i64: 256, 256>}, {transform_indices = @transform_1, window_bounds = array<i64: 256, 128>}, {transform_indices = @transform_2, window_bounds = array<i64: 1, 256>}, {transform_indices = @transform_3, window_bounds = array<i64: 1, 256>}, {transform_indices = @transform_4, window_bounds = array<i64: 1, 128>}, {transform_indices = @transform_5, window_bounds = array<i64: 256, 128>}]} {
    %c0_i32 = arith.constant 0 : i32
    %0 = arith.cmpi eq, %arg2, %c0_i32 : i32
    %1 = arith.extui %0 : i1 to i32
    %c0_i32_0 = arith.constant 0 : i32
    %2 = arith.cmpi ne, %1, %c0_i32_0 : i32
    scf.if %2 {
      %cst_15 = arith.constant 0.000000e+00 : f32
      %24 = vector.broadcast %cst_15 : f32 to vector<256x128xf32>
      %c0_16 = arith.constant 0 : index
      %c0_17 = arith.constant 0 : index
      %25 = vector.load %arg9[%c0_16, %c0_17] : memref<256x128xf32, #tpu.memory_space<vmem>>, vector<256x128xf32>
      tpu.vector_store %arg9[%c0_16, %c0_17], %24 {strides = array<i32>} : memref<256x128xf32, #tpu.memory_space<vmem>>, vector<256x128xf32>,
    } else {
    }
    %c0 = arith.constant 0 : index
    %c0_1 = arith.constant 0 : index
    %3 = vector.load %arg3[%c0, %c0_1] : memref<256x256xf32, #tpu.memory_space<vmem>>, vector<256x256xf32>
    %c0_2 = arith.constant 0 : index
    %c0_3 = arith.constant 0 : index
    %4 = vector.load %arg5[%c0_2, %c0_3] : memref<1x256xf32, #tpu.memory_space<vmem>>, vector<1x256xf32>
    %5 = vector.broadcast %4 : vector<1x256xf32> to vector<256x256xf32>
    %6 = arith.mulf %3, %5 : vector<256x256xf32>
    %c0_4 = arith.constant 0 : index
    %c0_5 = arith.constant 0 : index
    %7 = vector.load %arg6[%c0_4, %c0_5] : memref<1x256xf32, #tpu.memory_space<vmem>>, vector<1x256xf32>
    %8 = vector.broadcast %7 : vector<1x256xf32> to vector<256x256xf32>
    %9 = arith.addf %6, %8 : vector<256x256xf32>
    %cst = arith.constant 0.000000e+00 : f32
    %10 = vector.broadcast %cst : f32 to vector<256x256xf32>
    %11 = arith.cmpf oge, %9, %10 : vector<256x256xf32>
    %cst_6 = arith.constant 0.00999999977 : f32
    %12 = vector.broadcast %cst_6 : f32 to vector<256x256xf32>
    %13 = arith.mulf %12, %9 : vector<256x256xf32>
    %14 = arith.select %11, %9, %13 : vector<256x256xi1>, vector<256x256xf32>
    %c0_7 = arith.constant 0 : index
    %c0_8 = arith.constant 0 : index
    %15 = vector.load %arg9[%c0_7, %c0_8] : memref<256x128xf32, #tpu.memory_space<vmem>>, vector<256x128xf32>
    %16 = arith.truncf %14 : vector<256x256xf32> to vector<256x256xbf16>
    %c0_9 = arith.constant 0 : index
    %c0_10 = arith.constant 0 : index
    %17 = vector.load %arg4[%c0_9, %c0_10] : memref<256x128xbf16, #tpu.memory_space<vmem>>, vector<256x128xbf16>
    %cst_11 = arith.constant dense<0.000000e+00> : vector<256x128xf32>
    %18 = tpu.matmul %16, %17, %cst_11 {dimension_numbers = #tpu.dot_dimension_numbers<[1], [0], [0], [1], [0, 0, 1, 1], [], []>} : vector<256x256xbf16>, vector<256x128xbf16>, vector<256x128xf32> -> vector<256x128xf32>
    %19 = arith.addf %15, %18 : vector<256x128xf32>
    %c0_12 = arith.constant 0 : index
    %c0_13 = arith.constant 0 : index
    %20 = vector.load %arg9[%c0_12, %c0_13] : memref<256x128xf32, #tpu.memory_space<vmem>>, vector<256x128xf32>
    tpu.vector_store %arg9[%c0_12, %c0_13], %19 {strides = array<i32>} : memref<256x128xf32, #tpu.memory_space<vmem>>, vector<256x128xf32>,
    %c1_i32 = arith.constant 1 : i32
    %21 = arith.cmpi eq, %arg2, %c1_i32 : i32
    %22 = arith.extui %21 : i1 to i32
    %c0_i32_14 = arith.constant 0 : i32
    %23 = arith.cmpi ne, %22, %c0_i32_14 : i32
    scf.if %23 {
      %c0_15 = arith.constant 0 : index
      %c0_16 = arith.constant 0 : index
      %24 = vector.load %arg9[%c0_15, %c0_16] : memref<256x128xf32, #tpu.memory_space<vmem>>, vector<256x128xf32>
      %c0_17 = arith.constant 0 : index
      %c0_18 = arith.constant 0 : index
      %25 = vector.load %arg7[%c0_17, %c0_18] : memref<1x128xf32, #tpu.memory_space<vmem>>, vector<1x128xf32>
      %26 = vector.broadcast %25 : vector<1x128xf32> to vector<256x128xf32>
      %27 = arith.addf %24, %26 : vector<256x128xf32>
      %cst_19 = arith.constant 5.000000e-01 : f32
      %28 = vector.broadcast %cst_19 : f32 to vector<256x128xf32>
      %29 = arith.mulf %28, %27 : vector<256x128xf32>
      %30 = math.tanh %29 : vector<256x128xf32>
      %cst_20 = arith.constant 1.000000e+00 : f32
      %31 = vector.broadcast %cst_20 : f32 to vector<256x128xf32>
      %32 = arith.addf %30, %31 : vector<256x128xf32>
      %cst_21 = arith.constant 5.000000e-01 : f32
      %33 = vector.broadcast %cst_21 : f32 to vector<256x128xf32>
      %34 = arith.mulf %33, %32 : vector<256x128xf32>
      %c0_22 = arith.constant 0 : index
      %c0_23 = arith.constant 0 : index
      %35 = vector.load %arg8[%c0_22, %c0_23] : memref<256x128xf32, #tpu.memory_space<vmem>>, vector<256x128xf32>
      tpu.vector_store %arg8[%c0_22, %c0_23], %34 {strides = array<i32>} : memref<256x128xf32, #tpu.memory_space<vmem>>, vector<256x128xf32>,
    } else {
    }
    return
  }
  func.func @transform_0(%arg0: i32, %arg1: i32, %arg2: i32) -> (i32, i32) {
    %c0_i32 = arith.constant 0 : i32
    return %arg0, %arg2 : i32, i32
  }
  func.func @transform_1(%arg0: i32, %arg1: i32, %arg2: i32) -> (i32, i32) {
    %c0_i32 = arith.constant 0 : i32
    return %arg2, %arg1 : i32, i32
  }
  func.func @transform_2(%arg0: i32, %arg1: i32, %arg2: i32) -> (i32, i32) {
    %c0_i32 = arith.constant 0 : i32
    %c0_i32_0 = arith.constant 0 : i32
    return %c0_i32, %arg2 : i32, i32
  }
  func.func @transform_3(%arg0: i32, %arg1: i32, %arg2: i32) -> (i32, i32) {
    %c0_i32 = arith.constant 0 : i32
    %c0_i32_0 = arith.constant 0 : i32
    return %c0_i32, %arg2 : i32, i32
  }
  func.func @transform_4(%arg0: i32, %arg1: i32, %arg2: i32) -> (i32, i32) {
    %c0_i32 = arith.constant 0 : i32
    %c0_i32_0 = arith.constant 0 : i32
    return %c0_i32, %arg1 : i32, i32
  }
  func.func @transform_5(%arg0: i32, %arg1: i32, %arg2: i32) -> (i32, i32) {
    %c0_i32 = arith.constant 0 : i32
    return %arg0, %arg1 : i32, i32
  }
}

</mosaic_0001>

<bundles_post_ra>
// kernel: tile.61
= control target key start
LH: loop header
LB: loop body
LE: loop exit
PB: predicated region body
PF: predicated region fallthrough
CT: control target
= control target key end

     0   :  { %s20_s0 = inlined_call_operand.<no memory space> [shape: f32[], index: 0, kind: input, shape index: {}]   ;;  %s21_s1 = inlined_call_operand.vmem [shape: f32[147], index: 1, kind: output, shape index: {}]  }
   0x1   :  { %v2_v0 = vstv %s20_s0 }
   0x2   :  { %3 = vst [vmem:[%s21_s1] sm:$0x3] %v2_v0 }

// kernel: _lambda_.13
= control target key start
LH: loop header
LB: loop body
LE: loop exit
PB: predicated region body
PF: predicated region fallthrough
CT: control target
= control target key end

     0   :  { %s1311_s18 = smov 0   ;;  %s1313_s19 = smov 0   ;;  %s1675_s0 = inlined_call_operand.vmem [shape: f32[512,256], index: 0, kind: input, shape index: {}]   ;;  %s1676_s1 = inlined_call_operand.vmem [shape: bf16[256,128], index: 1, kind: input, shape index: {}]   ;;  %s1677_s2 = inlined_call_operand.vmem [shape: f32[1,256], index: 2, kind: input, shape index: {}]   ;;  %s1678_s3 = inlined_call_operand.vmem [shape: f32[1,256], index: 3, kind: input, shape index: {}]   ;;  %s1679_s4 = inlined_call_operand.vmem [shape: f32[1,128], index: 4, kind: input, shape index: {}]   ;;  %s1680_s5 = inlined_call_operand.vmem [shape: f32[512,128], index: 5, kind: output, shape index: {}]  }
   0x1   :  { %s1315_s20 = smov 0  }
   0x2 LB: > { %s27_s21 = sadd.s32 1, %s1275_s19  ;;  %p1063_p0 = scmp.ge.s32.totalorder %s1279_s20, 1  ;;  %s1279_s20 = sphi %s1315_s20, %s15_s20   ;;  %s1275_s19 = sphi %s1313_s19, %s1682_s19   ;;  %s1271_s18 = sphi %s1311_s18, %s1681_s18  }
   0x3   : > { %p29_p1 = scmp.ge.s32.totalorder %s27_s21, 2  ;;  %p220_p2 = scmp.lt.s32.totalorder %s1279_s20, 3 }
   0x5   : > { %s1684_s21 = smov (%p29_p1, %s27_s21), 0  ;;  %p221_p3 = pnand %p1063_p0, %p220_p2 }
   0x6   : > { %s1064_s24 = sshll.u32 (!%p221_p3), %s1271_s18, 5 }
   0x7   : > { %224 = sbr.rel (%p221_p3) target bundleno = 309 (0x135), region = 40  ;;  %p260_p4 = scmp.lt.s32.totalorder (!%p221_p3), %s1064_s24, 63 }
   0xc   : > { %v1241_v0 = vld [vmem:[%s1676_s1 + $0x78] sm:$0xff]   ;;  %v1243_v2 = vld [vmem:[%s1676_s1 + $0x70] sm:$0xff]   ;;  %v1245_v4 = vld [vmem:[%s1676_s1 + $0x68] sm:$0xff]   ;;  %v349_v5 = vlaneseq  ;;  %s1686_s24 = smov (!%p260_p4, %s1064_s24), 63 }
   0xd   : > { %v1242_v1 = vld [vmem:[%s1676_s1 + $0x38] sm:$0xff]   ;;  %1089 = vmatprep.subr.bf16.mxu0 %v1241_v0  ;;  %1201 = vmatprep.subr.bf16.mxu1 %v1241_v0  ;;  %v1244_v3 = vld [vmem:[%s1676_s1 + $0x30] sm:$0xff]   ;;  %v1246_v6 = vld [vmem:[%s1676_s1 + $0x28] sm:$0xff]   ;;  %s1088_s12 = sshll.u32 %s1686_s24, 4 }
   0xe   : > { %1090 = vmatpush3.bf16.msra.mxu0 %v1242_v1  ;;  %1209 = vmatpush3.bf16.msra.mxu1 %v1242_v1  ;;  %v1247_v7 = vld [vmem:[%s1676_s1 + $0x60] sm:$0xff]   ;;  %v350_v8 = vshrl.u32 %v349_v5, 7  ;;  %v1249_v10 = vld [vmem:[%s1676_s1 + $0x58] sm:$0xff]   ;;  %s1362_s22 = scalar_lea.vmem %s1675_s0, %s1088_s12  ;;  %v1251_v14 = vld [vmem:[%s1676_s1 + $0x50] sm:$0xff]  }
   0xf   : > { %1091 = vmatprep.subr.bf16.mxu0 %v1243_v2  ;;  %1202 = vmatprep.subr.bf16.mxu1 %v1243_v2  ;;  %v1248_v9 = vld [vmem:[%s1676_s1 + $0x20] sm:$0xff]   ;;  %v1250_v13 = vld [vmem:[%s1676_s1 + $0x18] sm:$0xff]   ;;  %v284_v15 = vld [vmem:[%s1362_s22 + $0x8] sm:$0xff] }
  0x10   : > { %v351_v11 = vsub.s32 0, %v350_v8  ;;  %v355_v12 = vsub.s32 1, %v350_v8  ;;  %v286_v16 = vld [vmem:[%s1362_s22 + $0x18] sm:$0xff]  ;;  %v347_v17 = vld [vmem:[%s1677_s2] sm:$0x3]  ;;  %v316_v21 = vld [vmem:[%s1362_s22 + $0x108] sm:$0xff] }
  0x11   : > { %v423_v20 = vld [vmem:[%s1678_s3] sm:$0x3]  ;;  %v318_v22 = vld [vmem:[%s1362_s22 + $0x118] sm:$0xff]  ;;  %v285_v26 = vld [vmem:[%s1362_s22 + $0x10] sm:$0xff] }
  0x12   : > { %1092 = vmatpush3.bf16.msra.mxu0 %v1244_v3  ;;  %1210 = vmatpush3.bf16.msra.mxu1 %v1244_v3  ;;  %v1375_v18 = vrot.slane %v347_v17, %v351_v11  ;;  %v1377_v19 = vrot.slane %v347_v17, %v355_v12  ;;  %v1384_v23 = vrot.slane %v423_v20, %v351_v11  ;;  %v283_v25 = vld [vmem:[%s1362_s22] sm:$0xff]  ;;  %v1252_v27 = vld [vmem:[%s1676_s1 + $0x10] sm:$0xff]   ;;  %v1253_v33 = vld [vmem:[%s1676_s1 + $0x48] sm:$0xff]  }
  0x13   : > { %1093 = vmatprep.subr.bf16.mxu0 %v1245_v4  ;;  %1203 = vmatprep.subr.bf16.mxu1 %v1245_v4  ;;  %v1386_v24 = vrot.slane %v423_v20, %v355_v12  ;;  %v315_v31 = vld [vmem:[%s1362_s22 + $0x100] sm:$0xff]  ;;  %v317_v32 = vld [vmem:[%s1362_s22 + $0x110] sm:$0xff]  ;;  %v288_v37 = vld [vmem:[%s1362_s22 + $0x28] sm:$0xff] }
  0x14   : > { %v360_v28 = vmul.f32 %v1377_v19, %v284_v15  ;;  %v362_v29 = vmul.f32 %v1377_v19, %v286_v16  ;;  %v392_v30 = vmul.f32 %v1377_v19, %v316_v21  ;;  %v394_v34 = vmul.f32 %v1377_v19, %v318_v22  ;;  %v290_v44 = vld [vmem:[%s1362_s22 + $0x38] sm:$0xff]  ;;  %v320_v45 = vld [vmem:[%s1362_s22 + $0x128] sm:$0xff]  ;;  %v1255_v50 = vld [vmem:[%s1676_s1 + $0x40] sm:$0xff]  }
  0x15   : > { %v359_v35 = vmul.f32 %v1375_v18, %v283_v25  ;;  %v361_v36 = vmul.f32 %v1375_v18, %v285_v26  ;;  %v391_v42 = vmul.f32 %v1375_v18, %v315_v31  ;;  %v393_v43 = vmul.f32 %v1375_v18, %v317_v32  ;;  %v322_v46 = vld [vmem:[%s1362_s22 + $0x138] sm:$0xff]  ;;  %v1254_v47 = vld [vmem:[%s1676_s1 + $0x8] sm:$0xff]   ;;  %v287_v57 = vld [vmem:[%s1362_s22 + $0x20] sm:$0xff] }
  0x16   : > { %1094 = vmatpush3.bf16.msra.mxu0 %v1246_v6  ;;  %1211 = vmatpush3.bf16.msra.mxu1 %v1246_v6  ;;  %v436_v38 = vadd.f32 %v1386_v24, %v360_v28  ;;  %v438_v39 = vadd.f32 %v1386_v24, %v362_v29  ;;  %v468_v40 = vadd.f32 %v1386_v24, %v392_v30  ;;  %v289_v61 = vld [vmem:[%s1362_s22 + $0x30] sm:$0xff]  ;;  %v319_v62 = vld [vmem:[%s1362_s22 + $0x120] sm:$0xff]  ;;  %v292_v4 = vld [vmem:[%s1362_s22 + $0x48] sm:$0xff] }
  0x17   : > { %1095 = vmatprep.subr.bf16.mxu0 %v1247_v7  ;;  %1204 = vmatprep.subr.bf16.mxu1 %v1247_v7  ;;  %v470_v41 = vadd.f32 %v1386_v24, %v394_v34  ;;  %v364_v49 = vmul.f32 %v1377_v19, %v288_v37  ;;  %v435_v52 = vadd.f32 %v1384_v23, %v359_v35  ;;  %v321_v63 = vld [vmem:[%s1362_s22 + $0x130] sm:$0xff]  ;;  %v1256_v0 = vld [vmem:[%s1676_s1] sm:$0xff]   ;;  %v294_v5 = vld [vmem:[%s1362_s22 + $0x58] sm:$0xff] }
  0x18   : > { %v500_v48 = vpack.c.bf16 %v438_v39, %v436_v38  ;;  %v437_v53 = vadd.f32 %v1384_v23, %v361_v36  ;;  %v366_v54 = vmul.f32 %v1377_v19, %v290_v44  ;;  %v396_v55 = vmul.f32 %v1377_v19, %v320_v45  ;;  %v324_v7 = vld [vmem:[%s1362_s22 + $0x148] sm:$0xff]  ;;  %v326_v8 = vld [vmem:[%s1362_s22 + $0x158] sm:$0xff]  ;;  %v291_v30 = vld [vmem:[%s1362_s22 + $0x40] sm:$0xff] }
  0x19   : > { %v516_v51 = vpack.c.bf16 %v470_v41, %v468_v40  ;;  %v398_v56 = vmul.f32 %v1377_v19, %v322_v46  ;;  %v467_v58 = vadd.f32 %v1384_v23, %v391_v42  ;;  %v469_v59 = vadd.f32 %v1384_v23, %v393_v43  ;;  %v293_v31 = vld [vmem:[%s1362_s22 + $0x50] sm:$0xff]  ;;  %v323_v34 = vld [vmem:[%s1362_s22 + $0x140] sm:$0xff]  ;;  %v296_v36 = vld [vmem:[%s1362_s22 + $0x68] sm:$0xff] }
  0x1a   : > { %1096 = vmatpush3.bf16.msra.mxu0 %v1248_v9  ;;  %1212 = vmatpush3.bf16.msra.mxu1 %v1248_v9  ;;  %v440_v60 = vadd.f32 %v1386_v24, %v364_v49  ;;  %v442_v1 = vadd.f32 %v1386_v24, %v366_v54  ;;  %v472_v2 = vadd.f32 %v1386_v24, %v396_v55  ;;  %v325_v35 = vld [vmem:[%s1362_s22 + $0x150] sm:$0xff]  ;;  %v298_v37 = vld [vmem:[%s1362_s22 + $0x78] sm:$0xff]  ;;  %v328_v38 = vld [vmem:[%s1362_s22 + $0x168] sm:$0xff] }
  0x1b   : > { %1097 = vmatprep.subr.bf16.mxu0 %v1249_v10  ;;  %1205 = vmatprep.subr.bf16.mxu1 %v1249_v10  ;;  %v474_v3 = vadd.f32 %v1386_v24, %v398_v56  ;;  %v499_v6 = vpack.c.bf16 %v437_v53, %v435_v52  ;;  %v363_v9 = vmul.f32 %v1375_v18, %v287_v57  ;;  %v330_v39 = vld [vmem:[%s1362_s22 + $0x178] sm:$0xff]  ;;  %v295_v54 = vld [vmem:[%s1362_s22 + $0x60] sm:$0xff] }
  0x1c   : > { %698 = vmatprep.mubr.bf16.mxu0 %v500_v48  ;;  %762 = vmatprep.mubr.bf16.mxu1 %v516_v51  ;;  %v365_v10 = vmul.f32 %v1375_v18, %v289_v61  ;;  %v395_v11 = vmul.f32 %v1375_v18, %v319_v62  ;;  %v397_v12 = vmul.f32 %v1375_v18, %v321_v63 }
  0x1d   : > { %v368_v15 = vmul.f32 %v1377_v19, %v292_v4  ;;  %v370_v16 = vmul.f32 %v1377_v19, %v294_v5  ;;  %v518_v17 = vpack.c.bf16 %v474_v3, %v472_v2  ;;  %v400_v20 = vmul.f32 %v1377_v19, %v324_v7  ;;  %v332_v2 = vld [vmem:[%s1362_s22 + $0x188] sm:$0xff]  ;;  %v334_v3 = vld [vmem:[%s1362_s22 + $0x198] sm:$0xff] }
  0x1e   : > { %1098 = vmatpush3.bf16.msra.mxu0 %v1250_v13  ;;  %1213 = vmatpush3.bf16.msra.mxu1 %v1250_v13  ;;  %v515_v13 = vpack.c.bf16 %v469_v59, %v467_v58  ;;  %v402_v21 = vmul.f32 %v1377_v19, %v326_v8  ;;  %v439_v22 = vadd.f32 %v1384_v23, %v363_v9  ;;  %v297_v58 = vld [vmem:[%s1362_s22 + $0x70] sm:$0xff]  ;;  %v327_v59 = vld [vmem:[%s1362_s22 + $0x160] sm:$0xff] }
  0x1f   : > { %1099 = vmatprep.subr.bf16.mxu0 %v1251_v14  ;;  %1206 = vmatprep.subr.bf16.mxu1 %v1251_v14  ;;  %v502_v14 = vpack.c.bf16 %v442_v1, %v440_v60  ;;  %v441_v25 = vadd.f32 %v1384_v23, %v365_v10  ;;  %v471_v26 = vadd.f32 %v1384_v23, %v395_v11  ;;  %v329_v60 = vld [vmem:[%s1362_s22 + $0x170] sm:$0xff]  ;;  %v302_v1 = vld [vmem:[%s1362_s22 + $0x98] sm:$0xff] }
  0x20   : > { %v444_v28 = vadd.f32 %v1386_v24, %v368_v15  ;;  %v446_v29 = vadd.f32 %v1386_v24, %v370_v16  ;;  %v476_v32 = vadd.f32 %v1386_v24, %v400_v20  ;;  %v367_v42 = vmul.f32 %v1375_v18, %v291_v30  ;;  %v331_v30 = vld [vmem:[%s1362_s22 + $0x180] sm:$0xff] }
  0x21   : > { %v501_v40 = vpack.c.bf16 %v441_v25, %v439_v22  ;;  %v369_v43 = vmul.f32 %v1375_v18, %v293_v31  ;;  %v399_v45 = vmul.f32 %v1375_v18, %v323_v34  ;;  %v401_v46 = vmul.f32 %v1375_v18, %v325_v35  ;;  %v333_v31 = vld [vmem:[%s1362_s22 + $0x190] sm:$0xff]  ;;  %v336_v34 = vld [vmem:[%s1362_s22 + $0x1a8] sm:$0xff]  ;;  %v338_v35 = vld [vmem:[%s1362_s22 + $0x1b8] sm:$0xff] }
  0x22   : > { %1100 = vmatpush3.bf16.msra.mxu0 %v1252_v27  ;;  %1214 = vmatpush3.bf16.msra.mxu1 %v1252_v27  ;;  %v473_v27 = vadd.f32 %v1384_v23, %v397_v12  ;;  %v504_v44 = vpack.c.bf16 %v446_v29, %v444_v28  ;;  %v374_v49 = vmul.f32 %v1377_v19, %v298_v37 }
  0x23   : > { %1101 = vmatprep.subr.bf16.mxu0 %v1253_v33  ;;  %1207 = vmatprep.subr.bf16.mxu1 %v1253_v33  ;;  %v478_v33 = vadd.f32 %v1386_v24, %v402_v21  ;;  %v406_v51 = vmul.f32 %v1377_v19, %v330_v39  ;;  %v443_v52 = vadd.f32 %v1384_v23, %v367_v42 }
  0x24   : > { %v517_v41 = vpack.c.bf16 %v473_v27, %v471_v26  ;;  %v445_v53 = vadd.f32 %v1384_v23, %v369_v43  ;;  %v475_v55 = vadd.f32 %v1384_v23, %v399_v45  ;;  %v477_v56 = vadd.f32 %v1384_v23, %v401_v46  ;;  %v299_v26 = vld [vmem:[%s1362_s22 + $0x80] sm:$0xff]  ;;  %v301_v27 = vld [vmem:[%s1362_s22 + $0x90] sm:$0xff] }
  0x25   : > { %v520_v48 = vpack.c.bf16 %v478_v33, %v476_v32  ;;  %v450_v61 = vadd.f32 %v1386_v24, %v374_v49  ;;  %v482_v63 = vadd.f32 %v1386_v24, %v406_v51  ;;  %v371_v4 = vmul.f32 %v1375_v18, %v295_v54  ;;  %v304_v32 = vld [vmem:[%s1362_s22 + $0xa8] sm:$0xff]  ;;  %v306_v33 = vld [vmem:[%s1362_s22 + $0xb8] sm:$0xff]  ;;  %v305_v54 = vld [vmem:[%s1362_s22 + $0xb0] sm:$0xff] }
  0x26   : > { %1102 = vmatpush3.bf16.msra.mxu0 %v1254_v47  ;;  %1215 = vmatpush3.bf16.msra.mxu1 %v1254_v47  ;;  %v372_v47 = vmul.f32 %v1377_v19, %v296_v36  ;;  %v373_v5 = vmul.f32 %v1375_v18, %v297_v58  ;;  %v405_v7 = vmul.f32 %v1375_v18, %v329_v60  ;;  %v308_v60 = vld [vmem:[%s1362_s22 + $0xc8] sm:$0xff] }
  0x27   : > { %1103 = vmatprep.subr.bf16.mxu0 %v1255_v50  ;;  %1208 = vmatprep.subr.bf16.mxu1 %v1255_v50  ;;  %v404_v50 = vmul.f32 %v1377_v19, %v328_v38  ;;  %v503_v8 = vpack.c.bf16 %v445_v53, %v443_v52  ;;  %v519_v9 = vpack.c.bf16 %v477_v56, %v475_v55  ;;  %v335_v55 = vld [vmem:[%s1362_s22 + $0x1a0] sm:$0xff]  ;;  %v337_v56 = vld [vmem:[%s1362_s22 + $0x1b0] sm:$0xff] }
  0x28   : > { %v448_v57 = vadd.f32 %v1386_v24, %v372_v47  ;;  %v378_v11 = vmul.f32 %v1377_v19, %v302_v1  ;;  %v410_v15 = vmul.f32 %v1377_v19, %v334_v3  ;;  %v447_v16 = vadd.f32 %v1384_v23, %v371_v4 }
  0x29   : > { %v480_v62 = vadd.f32 %v1386_v24, %v404_v50  ;;  %v481_v21 = vadd.f32 %v1384_v23, %v405_v7  ;;  %v375_v38 = vmul.f32 %v1375_v18, %v299_v26  ;;  %v377_v39 = vmul.f32 %v1375_v18, %v301_v27  ;;  %v303_v50 = vld [vmem:[%s1362_s22 + $0xa0] sm:$0xff]  ;;  %v341_v27 = vld [vmem:[%s1362_s22 + $0x1d0] sm:$0xff] }
  0x2a   : > { %1104 = vmatpush3.bf16.msra.mxu0 %v1256_v0  ;;  %1216 = vmatpush3.bf16.msra.mxu1 %v1256_v0  ;;  %v300_v0 = vld [vmem:[%s1362_s22 + $0x88] sm:$0xff]  ;;  %v506_v12 = vpack.c.bf16 %v450_v61, %v448_v57  ;;  %v454_v25 = vadd.f32 %v1386_v24, %v378_v11  ;;  %v486_v29 = vadd.f32 %v1386_v24, %v410_v15  ;;  %v310_v61 = vld [vmem:[%s1362_s22 + $0xd8] sm:$0xff]  ;;  %v339_v26 = vld [vmem:[%s1362_s22 + $0x1c0] sm:$0xff] }
  0x2b   : > { %v376_v10 = vmul.f32 %v1377_v19, %v300_v0  ;;  %v409_v42 = vmul.f32 %v1375_v18, %v333_v31  ;;  %v380_v43 = vmul.f32 %v1377_v19, %v304_v32  ;;  %v382_v45 = vmul.f32 %v1377_v19, %v306_v33  ;;  %v346_v31 = vld [vmem:[%s1362_s22 + $0x1f8] sm:$0xff] }
  0x2c   : > { %v412_v46 = vmul.f32 %v1377_v19, %v336_v34  ;;  %v414_v47 = vmul.f32 %v1377_v19, %v338_v35  ;;  %v453_v49 = vadd.f32 %v1384_v23, %v377_v39  ;;  %v379_v0 = vmul.f32 %v1375_v18, %v303_v50 }
  0x2d   : > { %699 = vmatmul.mubr.bf16.vlgmr.msra.gmra.mxu0 %v499_v6  ;;  %763 = vmatmul.mubr.bf16.vlgmr.msra.gmra.mxu1 %v515_v13  ;;  %v403_v6 = vmul.f32 %v1375_v18, %v327_v59  ;;  %v522_v13 = vpack.c.bf16 %v482_v63, %v480_v62  ;;  %v452_v22 = vadd.f32 %v1386_v24, %v376_v10  ;;  %v340_v62 = vld [vmem:[%s1362_s22 + $0x1c8] sm:$0xff]  ;;  %v342_v63 = vld [vmem:[%s1362_s22 + $0x1d8] sm:$0xff] }
  0x2e   : > { %706 = vmatprep.mubr.bf16.mxu0 %v502_v14  ;;  %770 = vmatprep.mubr.bf16.mxu1 %v518_v17  ;;  %v408_v14 = vmul.f32 %v1377_v19, %v332_v2  ;;  %v449_v17 = vadd.f32 %v1384_v23, %v373_v5  ;;  %v485_v52 = vadd.f32 %v1384_v23, %v409_v42 }
  0x2f   : > { %v479_v20 = vadd.f32 %v1384_v23, %v403_v6  ;;  %v456_v53 = vadd.f32 %v1386_v24, %v380_v43  ;;  %v458_v57 = vadd.f32 %v1386_v24, %v382_v45  ;;  %v488_v58 = vadd.f32 %v1386_v24, %v412_v46 }
  0x30   : > { %v484_v28 = vadd.f32 %v1386_v24, %v408_v14  ;;  %v505_v36 = vpack.c.bf16 %v449_v17, %v447_v16  ;;  %v490_v59 = vadd.f32 %v1386_v24, %v414_v47  ;;  %v381_v1 = vmul.f32 %v1375_v18, %v305_v54  ;;  %v345_v54 = vld [vmem:[%s1362_s22 + $0x1f0] sm:$0xff] }
  0x31   : > { %v521_v37 = vpack.c.bf16 %v481_v21, %v479_v20  ;;  %v411_v2 = vmul.f32 %v1375_v18, %v335_v55  ;;  %v413_v3 = vmul.f32 %v1375_v18, %v337_v56  ;;  %v384_v6 = vmul.f32 %v1377_v19, %v308_v60  ;;  %v307_v20 = vld [vmem:[%s1362_s22 + $0xc0] sm:$0xff]  ;;  %v309_v21 = vld [vmem:[%s1362_s22 + $0xd0] sm:$0xff] }
  0x32   : > { %v386_v7 = vmul.f32 %v1377_v19, %v310_v61  ;;  %v416_v10 = vmul.f32 %v1377_v19, %v340_v62  ;;  %v418_v11 = vmul.f32 %v1377_v19, %v342_v63  ;;  %v383_v34 = vmul.f32 %v1375_v18, %v307_v20 }
  0x33   : > { %v487_v14 = vadd.f32 %v1384_v23, %v411_v2  ;;  %v489_v15 = vadd.f32 %v1384_v23, %v413_v3  ;;  %v460_v16 = vadd.f32 %v1386_v24, %v384_v6  ;;  %v385_v35 = vmul.f32 %v1375_v18, %v309_v21 }
  0x34   : > { %v462_v17 = vadd.f32 %v1386_v24, %v386_v7  ;;  %v422_v43 = vmul.f32 %v1377_v19, %v346_v31  ;;  %v421_v60 = vmul.f32 %v1375_v18, %v345_v54 }
  0x35   : > { %707 = vmatmul.mubr.bf16.gmra.mxu0 %v501_v40  ;;  %771 = vmatmul.mubr.bf16.gmra.mxu1 %v517_v41  ;;  %v508_v40 = vpack.c.bf16 %v454_v25, %v452_v22  ;;  %v407_v41 = vmul.f32 %v1375_v18, %v331_v30  ;;  %v492_v22 = vadd.f32 %v1386_v24, %v416_v10  ;;  %v344_v30 = vld [vmem:[%s1362_s22 + $0x1e8] sm:$0xff] }
  0x36   : > { %714 = vmatprep.mubr.bf16.mxu0 %v504_v44  ;;  %778 = vmatprep.mubr.bf16.mxu1 %v520_v48  ;;  %v524_v44 = vpack.c.bf16 %v486_v29, %v484_v28  ;;  %v451_v48 = vadd.f32 %v1384_v23, %v375_v38  ;;  %v494_v25 = vadd.f32 %v1386_v24, %v418_v11  ;;  %v312_v28 = vld [vmem:[%s1362_s22 + $0xe8] sm:$0xff]  ;;  %v314_v29 = vld [vmem:[%s1362_s22 + $0xf8] sm:$0xff] }
  0x37   : > { %v483_v51 = vadd.f32 %v1384_v23, %v407_v41  ;;  %v525_v33 = vpack.c.bf16 %v489_v15, %v487_v14  ;;  %v417_v38 = vmul.f32 %v1375_v18, %v341_v27  ;;  %v388_v39 = vmul.f32 %v1377_v19, %v312_v28 }
  0x38   : > { %v507_v4 = vpack.c.bf16 %v453_v49, %v451_v48  ;;  %v390_v41 = vmul.f32 %v1377_v19, %v314_v29  ;;  %v420_v42 = vmul.f32 %v1377_v19, %v344_v30  ;;  %v461_v45 = vadd.f32 %v1384_v23, %v385_v35  ;;  %v311_v49 = vld [vmem:[%s1362_s22 + $0xe0] sm:$0xff] }
  0x39   : > { %v523_v5 = vpack.c.bf16 %v485_v52, %v483_v51  ;;  %v493_v47 = vadd.f32 %v1384_v23, %v417_v38  ;;  %v464_v48 = vadd.f32 %v1386_v24, %v388_v39  ;;  %v498_v51 = vadd.f32 %v1386_v24, %v422_v43  ;;  %v313_v52 = vld [vmem:[%s1362_s22 + $0xf0] sm:$0xff] }
  0x3a   : > { %v466_v50 = vadd.f32 %v1386_v24, %v390_v41  ;;  %v496_v19 = vadd.f32 %v1386_v24, %v420_v42  ;;  %v387_v56 = vmul.f32 %v1375_v18, %v311_v49 }
  0x3c   : > { %v514_v61 = vpack.c.bf16 %v466_v50, %v464_v48  ;;  %v530_v62 = vpack.c.bf16 %v498_v51, %v496_v19  ;;  %v463_v63 = vadd.f32 %v1384_v23, %v387_v56 }
  0x3d   : > { %715 = vmatmul.mubr.bf16.gmra.mxu0 %v503_v8  ;;  %779 = vmatmul.mubr.bf16.gmra.mxu1 %v519_v9  ;;  %v510_v8 = vpack.c.bf16 %v458_v57, %v456_v53  ;;  %v526_v9 = vpack.c.bf16 %v490_v59, %v488_v58  ;;  %v343_v53 = vld [vmem:[%s1362_s22 + $0x1e0] sm:$0xff]  ;;  %v389_v58 = vmul.f32 %v1375_v18, %v313_v52  ;;  %s1068_s22 = sshll.u32 %s1686_s24, 3 }
  0x3e   : > { %722 = vmatprep.mubr.bf16.mxu0 %v506_v12  ;;  %786 = vmatprep.mubr.bf16.mxu1 %v522_v13  ;;  %v455_v12 = vadd.f32 %v1384_v23, %v379_v0  ;;  %v457_v13 = vadd.f32 %v1384_v23, %v381_v1  ;;  %v419_v59 = vmul.f32 %v1375_v18, %v343_v53  ;;  %s1602_s26 = scalar_lea.vmem %s1680_s5, %s1068_s22 }
  0x3f   : > { %v465_v24 = vadd.f32 %v1384_v23, %v389_v58  ;;  %v497_v1 = vadd.f32 %v1384_v23, %v421_v60 }
  0x40   : > { %v509_v32 = vpack.c.bf16 %v457_v13, %v455_v12  ;;  %v495_v0 = vadd.f32 %v1384_v23, %v419_v59 }
  0x41   : > { %v513_v2 = vpack.c.bf16 %v465_v24, %v463_v63 }
  0x42   : > { %v529_v3 = vpack.c.bf16 %v497_v1, %v495_v0 }
  0x45   : > { %723 = vmatmul.mubr.bf16.gmra.mxu0 %v505_v36  ;;  %787 = vmatmul.mubr.bf16.gmra.mxu1 %v521_v37  ;;  %v512_v36 = vpack.c.bf16 %v462_v17, %v460_v16  ;;  %v415_v37 = vmul.f32 %v1375_v18, %v339_v26 }
  0x46   : > { %730 = vmatprep.mubr.bf16.mxu0 %v508_v40  ;;  %794 = vmatprep.mubr.bf16.mxu1 %v524_v44  ;;  %v528_v40 = vpack.c.bf16 %v494_v25, %v492_v22  ;;  %v459_v44 = vadd.f32 %v1384_v23, %v383_v34 }
  0x47   : > { %v491_v46 = vadd.f32 %v1384_v23, %v415_v37 }
  0x48   : > { %v511_v55 = vpack.c.bf16 %v461_v45, %v459_v44 }
  0x49   : > { %v527_v57 = vpack.c.bf16 %v493_v47, %v491_v46 }
  0x4d   : > { %731 = vmatmul.mubr.bf16.gmra.mxu0 %v507_v4  ;;  %795 = vmatmul.mubr.bf16.gmra.mxu1 %v523_v5  ;;  %v1594_v5 = vld [vmem:[%s1679_s4] ss:$0 sm:$0xff] }
  0x4e   : > { %738 = vmatprep.mubr.bf16.mxu0 %v510_v8  ;;  %802 = vmatprep.mubr.bf16.mxu1 %v526_v9 }
  0x55   : > { %739 = vmatmul.mubr.bf16.gmra.mxu0 %v509_v32  ;;  %803 = vmatmul.mubr.bf16.gmra.mxu1 %v525_v33 }
  0x56   : > { %746 = vmatprep.mubr.bf16.mxu0 %v512_v36  ;;  %810 = vmatprep.mubr.bf16.mxu1 %v528_v40 }
  0x5d   : > { %747 = vmatmul.mubr.bf16.gmra.mxu0 %v511_v55  ;;  %811 = vmatmul.mubr.bf16.gmra.mxu1 %v527_v57 }
  0x5e   : > { %754 = vmatprep.mubr.bf16.mxu0 %v514_v61  ;;  %818 = vmatprep.mubr.bf16.mxu1 %v530_v62 }
  0x65   : > { %755 = vmatmul.mubr.bf16.gmra.mxu0 %v513_v2  ;;  %819 = vmatmul.mubr.bf16.gmra.mxu1 %v529_v3 }
  0xed   : > { %v1105_v18 = vpop.f32.mrf.mxu0  ;;  %v1153_v4 = vpop.f32.mrf.mxu1 }
  0xef   : > { %v1106_v6 = vpop.f32.mrf.mxu0  ;;  %v1154_v7 = vpop.f32.mrf.mxu1 }
  0xf0   : > { %v1107_v8 = vadd.f32 %v1106_v6, %v1105_v18  ;;  %v1155_v9 = vadd.f32 %v1154_v7, %v1153_v4 }
  0xf1   : > { %v1108_v10 = vpop.f32.mrf.mxu0  ;;  %v1156_v23 = vpop.f32.mrf.mxu1 }
  0xf2   : > { %v701_v11 = vadd.f32 %v1107_v8, %v1594_v5  ;;  %v765_v12 = vadd.f32 %v1155_v9, %v1594_v5 }
  0xf3   : > { %v1109_v13 = vpop.f32.mrf.mxu0  ;;  %v1157_v14 = vpop.f32.mrf.mxu1 }
  0xf4   : > { %vm827_vm0 = vcmp.ge.f32.partialorder %v701_v11, 0.0  ;;  %v859_v15 = vmul.f32 0.01, %v701_v11  ;;  %vm843_vm1 = vcmp.ge.f32.partialorder %v765_v12, 0.0  ;;  %v875_v16 = vmul.f32 0.01, %v765_v12 }
  0xf5   : > { %v1110_v17 = vadd.f32 %v1109_v13, %v1108_v10  ;;  %v1158_v20 = vadd.f32 %v1157_v14, %v1156_v23  ;;  %v1111_v21 = vpop.f32.mrf.mxu0  ;;  %v1159_v22 = vpop.f32.mrf.mxu1 }
  0xf6   : > { %v891_v25 = vsel %vm827_vm0, %v701_v11, %v859_v15  ;;  %v907_v26 = vsel %vm843_vm1, %v765_v12, %v875_v16 }
  0xf7   : > { %923 = vst [vmem:[%s1602_s26] sm:$0xff] %v891_v25  ;;  %939 = vst [vmem:[%s1602_s26 + $0x80] sm:$0xff] %v907_v26  ;;  %v704_v27 = vadd.f32 %v1110_v17, %v1594_v5  ;;  %v768_v28 = vadd.f32 %v1158_v20, %v1594_v5  ;;  %v1112_v29 = vpop.f32.mrf.mxu0  ;;  %v1160_v30 = vpop.f32.mrf.mxu1 }
  0xf8   : > { %v1113_v31 = vadd.f32 %v1112_v29, %v1111_v21  ;;  %v1161_v32 = vadd.f32 %v1160_v30, %v1159_v22 }
  0xf9   : > { %vm828_vm2 = vcmp.ge.f32.partialorder %v704_v27, 0.0  ;;  %v860_v33 = vmul.f32 0.01, %v704_v27  ;;  %vm844_vm3 = vcmp.ge.f32.partialorder %v768_v28, 0.0  ;;  %v876_v34 = vmul.f32 0.01, %v768_v28  ;;  %v1114_v35 = vpop.f32.mrf.mxu0  ;;  %v1162_v36 = vpop.f32.mrf.mxu1 }
  0xfa   : > { %v709_v37 = vadd.f32 %v1113_v31, %v1594_v5  ;;  %v773_v38 = vadd.f32 %v1161_v32, %v1594_v5 }
  0xfb   : > { %v892_v39 = vsel %vm828_vm2, %v704_v27, %v860_v33  ;;  %v908_v40 = vsel %vm844_vm3, %v768_v28, %v876_v34  ;;  %v1115_v41 = vpop.f32.mrf.mxu0  ;;  %v1163_v42 = vpop.f32.mrf.mxu1 }
  0xfc   : > { %924 = vst [vmem:[%s1602_s26 + $0x8] sm:$0xff] %v892_v39  ;;  %940 = vst [vmem:[%s1602_s26 + $0x88] sm:$0xff] %v908_v40  ;;  %vm829_vm4 = vcmp.ge.f32.partialorder %v709_v37, 0.0  ;;  %v861_v43 = vmul.f32 0.01, %v709_v37  ;;  %vm845_vm5 = vcmp.ge.f32.partialorder %v773_v38, 0.0  ;;  %v1116_v45 = vadd.f32 %v1115_v41, %v1114_v35 }
  0xfd   : > { %v877_v44 = vmul.f32 0.01, %v773_v38  ;;  %v1164_v46 = vadd.f32 %v1163_v42, %v1162_v36  ;;  %v1117_v47 = vpop.f32.mrf.mxu0  ;;  %v1165_v48 = vpop.f32.mrf.mxu1 }
  0xfe   : > { %v893_v49 = vsel %vm829_vm4, %v709_v37, %v861_v43  ;;  %v712_v19 = vadd.f32 %v1116_v45, %v1594_v5 }
  0xff   : > { %v909_v50 = vsel %vm845_vm5, %v773_v38, %v877_v44  ;;  %925 = vst [vmem:[%s1602_s26 + $0x10] sm:$0xff] %v893_v49  ;;  %v776_v51 = vadd.f32 %v1164_v46, %v1594_v5  ;;  %v1118_v52 = vpop.f32.mrf.mxu0  ;;  %v1166_v53 = vpop.f32.mrf.mxu1 }
 0x100   : > { %941 = vst [vmem:[%s1602_s26 + $0x90] sm:$0xff] %v909_v50  ;;  %v1119_v54 = vadd.f32 %v1118_v52, %v1117_v47  ;;  %v1167_v55 = vadd.f32 %v1166_v53, %v1165_v48  ;;  %vm830_vm6 = vcmp.ge.f32.partialorder %v712_v19, 0.0  ;;  %v862_v56 = vmul.f32 0.01, %v712_v19 }
 0x101   : > { %vm846_vm7 = vcmp.ge.f32.partialorder %v776_v51, 0.0  ;;  %v878_v57 = vmul.f32 0.01, %v776_v51  ;;  %v1120_v58 = vpop.f32.mrf.mxu0  ;;  %v1168_v59 = vpop.f32.mrf.mxu1 }
 0x102   : > { %v717_v60 = vadd.f32 %v1119_v54, %v1594_v5  ;;  %v781_v61 = vadd.f32 %v1167_v55, %v1594_v5  ;;  %v894_v62 = vsel %vm830_vm6, %v712_v19, %v862_v56 }
 0x103   : > { %v910_v63 = vsel %vm846_vm7, %v776_v51, %v878_v57  ;;  %v1121_v24 = vpop.f32.mrf.mxu0  ;;  %v1169_v0 = vpop.f32.mrf.mxu1  ;;  %926 = vst [vmem:[%s1602_s26 + $0x18] sm:$0xff] %v894_v62 }
 0x104   : > { %942 = vst [vmem:[%s1602_s26 + $0x98] sm:$0xff] %v910_v63  ;;  %vm831_vm8 = vcmp.ge.f32.partialorder %v717_v60, 0.0  ;;  %v863_v1 = vmul.f32 0.01, %v717_v60  ;;  %vm847_vm9 = vcmp.ge.f32.partialorder %v781_v61, 0.0  ;;  %v1122_v3 = vadd.f32 %v1121_v24, %v1120_v58 }
 0x105   : > { %v879_v2 = vmul.f32 0.01, %v781_v61  ;;  %v1170_v18 = vadd.f32 %v1169_v0, %v1168_v59  ;;  %v1123_v4 = vpop.f32.mrf.mxu0  ;;  %v1171_v6 = vpop.f32.mrf.mxu1 }
 0x106   : > { %v895_v7 = vsel %vm831_vm8, %v717_v60, %v863_v1  ;;  %v720_v9 = vadd.f32 %v1122_v3, %v1594_v5 }
 0x107   : > { %v911_v8 = vsel %vm847_vm9, %v781_v61, %v879_v2  ;;  %927 = vst [vmem:[%s1602_s26 + $0x20] sm:$0xff] %v895_v7  ;;  %v784_v10 = vadd.f32 %v1170_v18, %v1594_v5  ;;  %v1124_v23 = vpop.f32.mrf.mxu0  ;;  %v1172_v11 = vpop.f32.mrf.mxu1 }
 0x108   : > { %943 = vst [vmem:[%s1602_s26 + $0xa0] sm:$0xff] %v911_v8  ;;  %v1125_v12 = vadd.f32 %v1124_v23, %v1123_v4  ;;  %v1173_v13 = vadd.f32 %v1172_v11, %v1171_v6  ;;  %vm832_vm10 = vcmp.ge.f32.partialorder %v720_v9, 0.0  ;;  %v864_v14 = vmul.f32 0.01, %v720_v9 }
 0x109   : > { %vm848_vm11 = vcmp.ge.f32.partialorder %v784_v10, 0.0  ;;  %v880_v15 = vmul.f32 0.01, %v784_v10  ;;  %v1126_v16 = vpop.f32.mrf.mxu0  ;;  %v1174_v17 = vpop.f32.mrf.mxu1 }
 0x10a   : > { %v725_v20 = vadd.f32 %v1125_v12, %v1594_v5  ;;  %v789_v21 = vadd.f32 %v1173_v13, %v1594_v5  ;;  %v896_v22 = vsel %vm832_vm10, %v720_v9, %v864_v14 }
 0x10b   : > { %v912_v25 = vsel %vm848_vm11, %v784_v10, %v880_v15  ;;  %v1127_v26 = vpop.f32.mrf.mxu0  ;;  %v1175_v27 = vpop.f32.mrf.mxu1  ;;  %928 = vst [vmem:[%s1602_s26 + $0x28] sm:$0xff] %v896_v22 }
 0x10c   : > { %944 = vst [vmem:[%s1602_s26 + $0xa8] sm:$0xff] %v912_v25  ;;  %vm833_vm12 = vcmp.ge.f32.partialorder %v725_v20, 0.0  ;;  %v865_v28 = vmul.f32 0.01, %v725_v20  ;;  %vm849_vm13 = vcmp.ge.f32.partialorder %v789_v21, 0.0  ;;  %v1128_v30 = vadd.f32 %v1127_v26, %v1126_v16 }
 0x10d   : > { %v881_v29 = vmul.f32 0.01, %v789_v21  ;;  %v1176_v31 = vadd.f32 %v1175_v27, %v1174_v17  ;;  %v1129_v32 = vpop.f32.mrf.mxu0  ;;  %v1177_v33 = vpop.f32.mrf.mxu1 }
 0x10e   : > { %v897_v34 = vsel %vm833_vm12, %v725_v20, %v865_v28  ;;  %v728_v36 = vadd.f32 %v1128_v30, %v1594_v5 }
 0x10f   : > { %v913_v35 = vsel %vm849_vm13, %v789_v21, %v881_v29  ;;  %929 = vst [vmem:[%s1602_s26 + $0x30] sm:$0xff] %v897_v34  ;;  %v792_v37 = vadd.f32 %v1176_v31, %v1594_v5  ;;  %v1130_v38 = vpop.f32.mrf.mxu0  ;;  %v1178_v39 = vpop.f32.mrf.mxu1 }
 0x110   : > { %945 = vst [vmem:[%s1602_s26 + $0xb0] sm:$0xff] %v913_v35  ;;  %v1131_v40 = vadd.f32 %v1130_v38, %v1129_v32  ;;  %v1179_v41 = vadd.f32 %v1178_v39, %v1177_v33  ;;  %vm834_vm14 = vcmp.ge.f32.partialorder %v728_v36, 0.0  ;;  %v866_v42 = vmul.f32 0.01, %v728_v36 }
 0x111   : > { %vm850_vm15 = vcmp.ge.f32.partialorder %v792_v37, 0.0  ;;  %v882_v43 = vmul.f32 0.01, %v792_v37  ;;  %v1132_v44 = vpop.f32.mrf.mxu0  ;;  %v1180_v45 = vpop.f32.mrf.mxu1 }
 0x112   : > { %v733_v46 = vadd.f32 %v1131_v40, %v1594_v5  ;;  %v797_v47 = vadd.f32 %v1179_v41, %v1594_v5  ;;  %v898_v48 = vsel %vm834_vm14, %v728_v36, %v866_v42 }
 0x113   : > { %v914_v49 = vsel %vm850_vm15, %v792_v37, %v882_v43  ;;  %v1133_v50 = vpop.f32.mrf.mxu0  ;;  %v1181_v19 = vpop.f32.mrf.mxu1  ;;  %930 = vst [vmem:[%s1602_s26 + $0x38] sm:$0xff] %v898_v48 }
 0x114   : > { %946 = vst [vmem:[%s1602_s26 + $0xb8] sm:$0xff] %v914_v49  ;;  %vm835_vm0 = vcmp.ge.f32.partialorder %v733_v46, 0.0  ;;  %v867_v51 = vmul.f32 0.01, %v733_v46  ;;  %vm851_vm1 = vcmp.ge.f32.partialorder %v797_v47, 0.0  ;;  %v1134_v53 = vadd.f32 %v1133_v50, %v1132_v44 }
 0x115   : > { %v883_v52 = vmul.f32 0.01, %v797_v47  ;;  %v1182_v54 = vadd.f32 %v1181_v19, %v1180_v45  ;;  %v1135_v55 = vpop.f32.mrf.mxu0  ;;  %v1183_v56 = vpop.f32.mrf.mxu1 }
 0x116   : > { %v899_v57 = vsel %vm835_vm0, %v733_v46, %v867_v51  ;;  %v736_v59 = vadd.f32 %v1134_v53, %v1594_v5 }
 0x117   : > { %v915_v58 = vsel %vm851_vm1, %v797_v47, %v883_v52  ;;  %931 = vst [vmem:[%s1602_s26 + $0x40] sm:$0xff] %v899_v57  ;;  %v800_v60 = vadd.f32 %v1182_v54, %v1594_v5  ;;  %v1136_v61 = vpop.f32.mrf.mxu0  ;;  %v1184_v62 = vpop.f32.mrf.mxu1 }
 0x118   : > { %947 = vst [vmem:[%s1602_s26 + $0xc0] sm:$0xff] %v915_v58  ;;  %v1137_v63 = vadd.f32 %v1136_v61, %v1135_v55  ;;  %v1185_v24 = vadd.f32 %v1184_v62, %v1183_v56  ;;  %vm836_vm2 = vcmp.ge.f32.partialorder %v736_v59, 0.0  ;;  %v868_v0 = vmul.f32 0.01, %v736_v59 }
 0x119   : > { %vm852_vm3 = vcmp.ge.f32.partialorder %v800_v60, 0.0  ;;  %v884_v1 = vmul.f32 0.01, %v800_v60  ;;  %v1138_v2 = vpop.f32.mrf.mxu0  ;;  %v1186_v3 = vpop.f32.mrf.mxu1 }
 0x11a   : > { %v741_v18 = vadd.f32 %v1137_v63, %v1594_v5  ;;  %v805_v4 = vadd.f32 %v1185_v24, %v1594_v5  ;;  %v900_v6 = vsel %vm836_vm2, %v736_v59, %v868_v0 }
 0x11b   : > { %v916_v7 = vsel %vm852_vm3, %v800_v60, %v884_v1  ;;  %v1139_v8 = vpop.f32.mrf.mxu0  ;;  %v1187_v9 = vpop.f32.mrf.mxu1  ;;  %932 = vst [vmem:[%s1602_s26 + $0x48] sm:$0xff] %v900_v6 }
 0x11c   : > { %948 = vst [vmem:[%s1602_s26 + $0xc8] sm:$0xff] %v916_v7  ;;  %vm837_vm4 = vcmp.ge.f32.partialorder %v741_v18, 0.0  ;;  %v869_v10 = vmul.f32 0.01, %v741_v18  ;;  %vm853_vm5 = vcmp.ge.f32.partialorder %v805_v4, 0.0  ;;  %v1140_v11 = vadd.f32 %v1139_v8, %v1138_v2 }
 0x11d   : > { %v885_v23 = vmul.f32 0.01, %v805_v4  ;;  %v1188_v12 = vadd.f32 %v1187_v9, %v1186_v3  ;;  %v1141_v13 = vpop.f32.mrf.mxu0  ;;  %v1189_v14 = vpop.f32.mrf.mxu1 }
 0x11e   : > { %v901_v15 = vsel %vm837_vm4, %v741_v18, %v869_v10  ;;  %v744_v17 = vadd.f32 %v1140_v11, %v1594_v5 }
 0x11f   : > { %v917_v16 = vsel %vm853_vm5, %v805_v4, %v885_v23  ;;  %933 = vst [vmem:[%s1602_s26 + $0x50] sm:$0xff] %v901_v15  ;;  %v808_v20 = vadd.f32 %v1188_v12, %v1594_v5  ;;  %v1142_v21 = vpop.f32.mrf.mxu0  ;;  %v1190_v22 = vpop.f32.mrf.mxu1 }
 0x120   : > { %949 = vst [vmem:[%s1602_s26 + $0xd0] sm:$0xff] %v917_v16  ;;  %v1143_v25 = vadd.f32 %v1142_v21, %v1141_v13  ;;  %v1191_v26 = vadd.f32 %v1190_v22, %v1189_v14  ;;  %vm838_vm6 = vcmp.ge.f32.partialorder %v744_v17, 0.0  ;;  %v870_v27 = vmul.f32 0.01, %v744_v17 }
 0x121   : > { %vm854_vm7 = vcmp.ge.f32.partialorder %v808_v20, 0.0  ;;  %v886_v28 = vmul.f32 0.01, %v808_v20  ;;  %v1144_v29 = vpop.f32.mrf.mxu0  ;;  %v1192_v30 = vpop.f32.mrf.mxu1 }
 0x122   : > { %v749_v31 = vadd.f32 %v1143_v25, %v1594_v5  ;;  %v813_v32 = vadd.f32 %v1191_v26, %v1594_v5  ;;  %v902_v33 = vsel %vm838_vm6, %v744_v17, %v870_v27 }
 0x123   : > { %v918_v34 = vsel %vm854_vm7, %v808_v20, %v886_v28  ;;  %v1145_v35 = vpop.f32.mrf.mxu0  ;;  %v1193_v36 = vpop.f32.mrf.mxu1  ;;  %934 = vst [vmem:[%s1602_s26 + $0x58] sm:$0xff] %v902_v33 }
 0x124   : > { %950 = vst [vmem:[%s1602_s26 + $0xd8] sm:$0xff] %v918_v34  ;;  %vm839_vm8 = vcmp.ge.f32.partialorder %v749_v31, 0.0  ;;  %v871_v37 = vmul.f32 0.01, %v749_v31  ;;  %vm855_vm9 = vcmp.ge.f32.partialorder %v813_v32, 0.0  ;;  %v1146_v39 = vadd.f32 %v1145_v35, %v1144_v29 }
 0x125   : > { %v887_v38 = vmul.f32 0.01, %v813_v32  ;;  %v1194_v40 = vadd.f32 %v1193_v36, %v1192_v30  ;;  %v1147_v41 = vpop.f32.mrf.mxu0  ;;  %v1195_v42 = vpop.f32.mrf.mxu1 }
 0x126   : > { %v903_v43 = vsel %vm839_vm8, %v749_v31, %v871_v37  ;;  %v752_v45 = vadd.f32 %v1146_v39, %v1594_v5 }
 0x127   : > { %v919_v44 = vsel %vm855_vm9, %v813_v32, %v887_v38  ;;  %935 = vst [vmem:[%s1602_s26 + $0x60] sm:$0xff] %v903_v43  ;;  %v816_v46 = vadd.f32 %v1194_v40, %v1594_v5  ;;  %v1148_v47 = vpop.f32.mrf.mxu0  ;;  %v1196_v48 = vpop.f32.mrf.mxu1 }
 0x128   : > { %951 = vst [vmem:[%s1602_s26 + $0xe0] sm:$0xff] %v919_v44  ;;  %v1149_v49 = vadd.f32 %v1148_v47, %v1147_v41  ;;  %v1197_v50 = vadd.f32 %v1196_v48, %v1195_v42  ;;  %vm840_vm10 = vcmp.ge.f32.partialorder %v752_v45, 0.0  ;;  %v872_v19 = vmul.f32 0.01, %v752_v45 }
 0x129   : > { %vm856_vm11 = vcmp.ge.f32.partialorder %v816_v46, 0.0  ;;  %v888_v51 = vmul.f32 0.01, %v816_v46  ;;  %v1150_v52 = vpop.f32.mrf.mxu0  ;;  %v1198_v53 = vpop.f32.mrf.mxu1 }
 0x12a   : > { %v757_v54 = vadd.f32 %v1149_v49, %v1594_v5  ;;  %v821_v55 = vadd.f32 %v1197_v50, %v1594_v5  ;;  %v904_v56 = vsel %vm840_vm10, %v752_v45, %v872_v19 }
 0x12b   : > { %v920_v57 = vsel %vm856_vm11, %v816_v46, %v888_v51  ;;  %v1151_v58 = vpop.f32.mrf.mxu0  ;;  %v1199_v59 = vpop.f32.mrf.mxu1  ;;  %936 = vst [vmem:[%s1602_s26 + $0x68] sm:$0xff] %v904_v56 }
 0x12c   : > { %952 = vst [vmem:[%s1602_s26 + $0xe8] sm:$0xff] %v920_v57  ;;  %vm841_vm12 = vcmp.ge.f32.partialorder %v757_v54, 0.0  ;;  %v873_v60 = vmul.f32 0.01, %v757_v54  ;;  %vm857_vm13 = vcmp.ge.f32.partialorder %v821_v55, 0.0  ;;  %v1152_v62 = vadd.f32 %v1151_v58, %v1150_v52 }
 0x12d   : > { %v889_v61 = vmul.f32 0.01, %v821_v55  ;;  %v1200_v63 = vadd.f32 %v1199_v59, %v1198_v53 }
 0x12e   : > { %v905_v24 = vsel %vm841_vm12, %v757_v54, %v873_v60  ;;  %v760_v1 = vadd.f32 %v1152_v62, %v1594_v5 }
 0x12f   : > { %v921_v0 = vsel %vm857_vm13, %v821_v55, %v889_v61  ;;  %937 = vst [vmem:[%s1602_s26 + $0x70] sm:$0xff] %v905_v24  ;;  %v824_v2 = vadd.f32 %v1200_v63, %v1594_v5 }
 0x130   : > { %953 = vst [vmem:[%s1602_s26 + $0xf0] sm:$0xff] %v921_v0  ;;  %vm842_vm14 = vcmp.ge.f32.partialorder %v760_v1, 0.0  ;;  %v874_v3 = vmul.f32 0.01, %v760_v1 }
 0x131   : > { %vm858_vm15 = vcmp.ge.f32.partialorder %v824_v2, 0.0  ;;  %v890_v18 = vmul.f32 0.01, %v824_v2 }
 0x132   : > { %v906_v4 = vsel %vm842_vm14, %v760_v1, %v874_v3 }
 0x133   : > { %v922_v6 = vsel %vm858_vm15, %v824_v2, %v890_v18  ;;  %938 = vst [vmem:[%s1602_s26 + $0x78] sm:$0xff] %v906_v4 }
 0x134   : > { %954 = vst [vmem:[%s1602_s26 + $0xf8] sm:$0xff] %v922_v6 }
 0x135 PF: > { %s15_s20 = sadd.s32 1, %s1279_s20   ;;  %s1681_s18 = smov %s1275_s19 }
 0x136   : > { %p12_p5 = scmp.ge.s32.totalorder %s15_s20, 4   ;;  %s1682_s19 = smov %s1684_s21 }
 0x138   :  { %14 = sbr.rel (!%p12_p5) target bundleno = 2 (0x2), region = 76 }

// kernel: tile.58
= control target key start
LH: loop header
LB: loop body
LE: loop exit
PB: predicated region body
PF: predicated region fallthrough
CT: control target
= control target key end

     0   :  { %s20_s0 = inlined_call_operand.<no memory space> [shape: f32[], index: 0, kind: input, shape index: {}]   ;;  %s21_s1 = inlined_call_operand.vmem [shape: f32[72], index: 1, kind: output, shape index: {}]  }
   0x1   :  { %v2_v0 = vstv %s20_s0 }
   0x2   :  { %3 = vst [vmem:[%s21_s1] sm:$0x1] %v2_v0 }

// kernel: _lambda_.14
= control target key start
LH: loop header
LB: loop body
LE: loop exit
PB: predicated region body
PF: predicated region fallthrough
CT: control target
= control target key end

     0   :  { %s557_s1 = inlined_call_operand.vmem [shape: bf16[128,128], index: 1, kind: input, shape index: {}]   ;;  %s558_s0 = inlined_call_operand.vmem [shape: f32[128,128], index: 0, kind: input, shape index: {}]   ;;  %s559_s2 = inlined_call_operand.vmem [shape: f32[1,128], index: 2, kind: input, shape index: {}]   ;;  %s560_s3 = inlined_call_operand.vmem [shape: f32[1,128], index: 3, kind: input, shape index: {}]   ;;  %s561_s4 = inlined_call_operand.vmem [shape: f32[1,128], index: 4, kind: input, shape index: {}]   ;;  %s562_s5 = inlined_call_operand.vmem [shape: f32[128,128], index: 5, kind: output, shape index: {}]  }
   0x1   :  { %v354_v0 = vld [vmem:[%s557_s1 + $0x38] sm:$0xff]   ;;  %v355_v1 = vld [vmem:[%s557_s1 + $0x30] sm:$0xff]   ;;  %v356_v2 = vld [vmem:[%s557_s1 + $0x28] sm:$0xff]  }
   0x2   :  { %306 = vmatprep.subr.bf16.mxu0 %v354_v0  ;;  %338 = vmatprep.subr.bf16.mxu1 %v354_v0  ;;  %v357_v3 = vld [vmem:[%s557_s1 + $0x20] sm:$0xff]   ;;  %v22_v5 = vld [vmem:[%s558_s0 + $0x8] sm:$0xff]  ;;  %v358_v16 = vld [vmem:[%s557_s1 + $0x18] sm:$0xff]  }
   0x3   :  { %307 = vmatpush3.bf16.msra.mxu0 %v354_v0  ;;  %346 = vmatpush3.bf16.msra.mxu1 %v354_v0  ;;  %v21_v4 = vld [vmem:[%s558_s0] sm:$0xff]  ;;  %v30_v11 = vld [vmem:[%s558_s0 + $0x48] sm:$0xff]  ;;  %v359_v21 = vld [vmem:[%s557_s1 + $0x10] sm:$0xff]  }
   0x4   :  { %308 = vmatprep.subr.bf16.mxu0 %v355_v1  ;;  %339 = vmatprep.subr.bf16.mxu1 %v355_v1  ;;  %v413_v6 = vld [vmem:[%s559_s2] ss:$0 sm:$0xff]  ;;  %v360_v22 = vld [vmem:[%s557_s1 + $0x8] sm:$0xff]   ;;  %v23_v23 = vld [vmem:[%s558_s0 + $0x10] sm:$0xff] }
   0x5   :  { %v44_v7 = vmul.f32 %v413_v6, %v21_v4  ;;  %v45_v8 = vmul.f32 %v413_v6, %v22_v5  ;;  %v420_v9 = vld [vmem:[%s560_s3] ss:$0 sm:$0xff]  ;;  %v53_v13 = vmul.f32 %v413_v6, %v30_v11  ;;  %v24_v24 = vld [vmem:[%s558_s0 + $0x18] sm:$0xff]  ;;  %v31_v25 = vld [vmem:[%s558_s0 + $0x50] sm:$0xff]  ;;  %v46_v31 = vmul.f32 %v413_v6, %v23_v23 }
   0x6   :  { %v29_v10 = vld [vmem:[%s558_s0 + $0x40] sm:$0xff]  ;;  %v32_v26 = vld [vmem:[%s558_s0 + $0x58] sm:$0xff]  ;;  %v26_v28 = vld [vmem:[%s558_s0 + $0x28] sm:$0xff]  ;;  %v47_v32 = vmul.f32 %v413_v6, %v24_v24  ;;  %v54_v33 = vmul.f32 %v413_v6, %v31_v25 }
   0x7   :  { %309 = vmatpush3.bf16.msra.mxu0 %v355_v1  ;;  %347 = vmatpush3.bf16.msra.mxu1 %v355_v1  ;;  %v52_v12 = vmul.f32 %v413_v6, %v29_v10  ;;  %v67_v14 = vadd.f32 %v420_v9, %v44_v7  ;;  %v68_v15 = vadd.f32 %v420_v9, %v45_v8  ;;  %v25_v27 = vld [vmem:[%s558_s0 + $0x20] sm:$0xff]  ;;  %v34_v30 = vld [vmem:[%s558_s0 + $0x68] sm:$0xff]  ;;  %v27_v45 = vld [vmem:[%s558_s0 + $0x30] sm:$0xff] }
   0x8   :  { %310 = vmatprep.subr.bf16.mxu0 %v356_v2  ;;  %340 = vmatprep.subr.bf16.mxu1 %v356_v2  ;;  %v76_v18 = vadd.f32 %v420_v9, %v53_v13  ;;  %v33_v29 = vld [vmem:[%s558_s0 + $0x60] sm:$0xff]  ;;  %v55_v34 = vmul.f32 %v413_v6, %v32_v26  ;;  %v48_v35 = vmul.f32 %v413_v6, %v25_v27  ;;  %v28_v49 = vld [vmem:[%s558_s0 + $0x38] sm:$0xff]  ;;  %v35_v50 = vld [vmem:[%s558_s0 + $0x70] sm:$0xff] }
   0x9   :  { %v75_v17 = vadd.f32 %v420_v9, %v52_v12  ;;  %v83_v19 = vpack.c.bf16 %v68_v15, %v67_v14  ;;  %v49_v36 = vmul.f32 %v413_v6, %v26_v28  ;;  %v56_v37 = vmul.f32 %v413_v6, %v33_v29  ;;  %v361_v39 = vld [vmem:[%s557_s1] sm:$0xff]   ;;  %v36_v51 = vld [vmem:[%s558_s0 + $0x78] sm:$0xff] }
   0xa   :  { %v57_v38 = vmul.f32 %v413_v6, %v34_v30  ;;  %v69_v40 = vadd.f32 %v420_v9, %v46_v31  ;;  %v70_v41 = vadd.f32 %v420_v9, %v47_v32  ;;  %v77_v42 = vadd.f32 %v420_v9, %v54_v33 }
   0xb   :  { %311 = vmatpush3.bf16.msra.mxu0 %v356_v2  ;;  %348 = vmatpush3.bf16.msra.mxu1 %v356_v2  ;;  %v87_v20 = vpack.c.bf16 %v76_v18, %v75_v17  ;;  %v78_v43 = vadd.f32 %v420_v9, %v55_v34  ;;  %v71_v44 = vadd.f32 %v420_v9, %v48_v35  ;;  %v281_v2 = vld [vmem:[%s561_s4] ss:$0 sm:$0xff] }
   0xc   :  { %312 = vmatprep.subr.bf16.mxu0 %v357_v3  ;;  %341 = vmatprep.subr.bf16.mxu1 %v357_v3  ;;  %v72_v46 = vadd.f32 %v420_v9, %v49_v36  ;;  %v79_v47 = vadd.f32 %v420_v9, %v56_v37  ;;  %v80_v48 = vadd.f32 %v420_v9, %v57_v38 }
   0xd   :  { %322 = vmatprep.mubr.bf16.mxu0 %v83_v19  ;;  %330 = vmatprep.mubr.bf16.mxu1 %v87_v20  ;;  %v84_v52 = vpack.c.bf16 %v70_v41, %v69_v40  ;;  %v50_v53 = vmul.f32 %v413_v6, %v27_v45  ;;  %v88_v54 = vpack.c.bf16 %v78_v43, %v77_v42 }
   0xe   :  { %v51_v55 = vmul.f32 %v413_v6, %v28_v49  ;;  %v58_v56 = vmul.f32 %v413_v6, %v35_v50  ;;  %v59_v57 = vmul.f32 %v413_v6, %v36_v51  ;;  %v85_v58 = vpack.c.bf16 %v72_v46, %v71_v44 }
   0xf   :  { %313 = vmatpush3.bf16.msra.mxu0 %v357_v3  ;;  %349 = vmatpush3.bf16.msra.mxu1 %v357_v3  ;;  %v89_v59 = vpack.c.bf16 %v80_v48, %v79_v47  ;;  %v73_v60 = vadd.f32 %v420_v9, %v50_v53 }
  0x10   :  { %314 = vmatprep.subr.bf16.mxu0 %v358_v16  ;;  %342 = vmatprep.subr.bf16.mxu1 %v358_v16  ;;  %v74_v61 = vadd.f32 %v420_v9, %v51_v55  ;;  %v81_v62 = vadd.f32 %v420_v9, %v58_v56  ;;  %v82_v63 = vadd.f32 %v420_v9, %v59_v57 }
  0x12   :  { %v86_v0 = vpack.c.bf16 %v74_v61, %v73_v60  ;;  %v90_v1 = vpack.c.bf16 %v82_v63, %v81_v62 }
  0x13   :  { %315 = vmatpush3.bf16.msra.mxu0 %v358_v16  ;;  %350 = vmatpush3.bf16.msra.mxu1 %v358_v16 }
  0x14   :  { %316 = vmatprep.subr.bf16.mxu0 %v359_v21  ;;  %343 = vmatprep.subr.bf16.mxu1 %v359_v21 }
  0x17   :  { %317 = vmatpush3.bf16.msra.mxu0 %v359_v21  ;;  %351 = vmatpush3.bf16.msra.mxu1 %v359_v21 }
  0x18   :  { %318 = vmatprep.subr.bf16.mxu0 %v360_v22  ;;  %344 = vmatprep.subr.bf16.mxu1 %v360_v22 }
  0x1b   :  { %319 = vmatpush3.bf16.msra.mxu0 %v360_v22  ;;  %352 = vmatpush3.bf16.msra.mxu1 %v360_v22 }
  0x1c   :  { %320 = vmatprep.subr.bf16.mxu0 %v361_v39  ;;  %345 = vmatprep.subr.bf16.mxu1 %v361_v39 }
  0x1f   :  { %321 = vmatpush3.bf16.msra.mxu0 %v361_v39  ;;  %353 = vmatpush3.bf16.msra.mxu1 %v361_v39 }
  0x22   :  { %323 = vmatmul.mubr.bf16.vlgmr.msra.gmra.mxu0 %v84_v52  ;;  %331 = vmatmul.mubr.bf16.vlgmr.msra.gmra.mxu1 %v88_v54 }
  0x23   :  { %326 = vmatprep.mubr.bf16.mxu0 %v85_v58  ;;  %334 = vmatprep.mubr.bf16.mxu1 %v89_v59 }
  0x2a   :  { %327 = vmatmul.mubr.bf16.gmra.mxu0 %v86_v0  ;;  %335 = vmatmul.mubr.bf16.gmra.mxu1 %v90_v1 }
  0xe2   :  { %v324_v3 = vpop.f32.mrf.mxu0  ;;  %v332_v4 = vpop.f32.mrf.mxu1 }
  0xe3   :  { %v205_v5 = vadd.f32 %v324_v3, %v281_v2  ;;  %v237_v6 = vadd.f32 %v332_v4, %v281_v2 }
  0xe4   :  { %v196_v7 = vpop.f32.mrf.mxu0  ;;  %v228_v8 = vpop.f32.mrf.mxu1 }
  0xe5   :  { %261 = vst [vmem:[%s562_s5 + $0x10] sm:$0xff] %v205_v5  ;;  %269 = vst [vmem:[%s562_s5 + $0x50] sm:$0xff] %v237_v6  ;;  %v197_v9 = vadd.f32 %v281_v2, %v196_v7  ;;  %v229_v10 = vadd.f32 %v281_v2, %v228_v8 }
  0xe6   :  { %v325_v11 = vpop.f32.mrf.mxu0  ;;  %v333_v12 = vpop.f32.mrf.mxu1 }
  0xe7   :  { %259 = vst [vmem:[%s562_s5] sm:$0xff] %v197_v9  ;;  %267 = vst [vmem:[%s562_s5 + $0x40] sm:$0xff] %v229_v10  ;;  %v208_v13 = vadd.f32 %v325_v11, %v281_v2  ;;  %v240_v14 = vadd.f32 %v333_v12, %v281_v2 }
  0xe8   :  { %v199_v15 = vpop.f32.mrf.mxu0  ;;  %v231_v16 = vpop.f32.mrf.mxu1 }
  0xe9   :  { %262 = vst [vmem:[%s562_s5 + $0x18] sm:$0xff] %v208_v13  ;;  %270 = vst [vmem:[%s562_s5 + $0x58] sm:$0xff] %v240_v14  ;;  %v200_v17 = vadd.f32 %v281_v2, %v199_v15  ;;  %v232_v18 = vadd.f32 %v281_v2, %v231_v16 }
  0xea   :  { %v328_v19 = vpop.f32.mrf.mxu0  ;;  %v336_v20 = vpop.f32.mrf.mxu1 }
  0xeb   :  { %260 = vst [vmem:[%s562_s5 + $0x8] sm:$0xff] %v200_v17  ;;  %268 = vst [vmem:[%s562_s5 + $0x48] sm:$0xff] %v232_v18  ;;  %v221_v21 = vadd.f32 %v328_v19, %v281_v2  ;;  %v253_v22 = vadd.f32 %v336_v20, %v281_v2 }
  0xec   :  { %v212_v23 = vpop.f32.mrf.mxu0  ;;  %v244_v24 = vpop.f32.mrf.mxu1 }
  0xed   :  { %265 = vst [vmem:[%s562_s5 + $0x30] sm:$0xff] %v221_v21  ;;  %273 = vst [vmem:[%s562_s5 + $0x70] sm:$0xff] %v253_v22  ;;  %v213_v25 = vadd.f32 %v281_v2, %v212_v23  ;;  %v245_v26 = vadd.f32 %v281_v2, %v244_v24 }
  0xee   :  { %v329_v27 = vpop.f32.mrf.mxu0  ;;  %v337_v28 = vpop.f32.mrf.mxu1 }
  0xef   :  { %263 = vst [vmem:[%s562_s5 + $0x20] sm:$0xff] %v213_v25  ;;  %271 = vst [vmem:[%s562_s5 + $0x60] sm:$0xff] %v245_v26  ;;  %v224_v29 = vadd.f32 %v329_v27, %v281_v2  ;;  %v256_v30 = vadd.f32 %v337_v28, %v281_v2 }
  0xf0   :  { %v215_v31 = vpop.f32.mrf.mxu0  ;;  %v247_v32 = vpop.f32.mrf.mxu1 }
  0xf1   :  { %266 = vst [vmem:[%s562_s5 + $0x38] sm:$0xff] %v224_v29  ;;  %274 = vst [vmem:[%s562_s5 + $0x78] sm:$0xff] %v256_v30  ;;  %v216_v33 = vadd.f32 %v281_v2, %v215_v31  ;;  %v248_v34 = vadd.f32 %v281_v2, %v247_v32 }
  0xf3   :  { %264 = vst [vmem:[%s562_s5 + $0x28] sm:$0xff] %v216_v33  ;;  %272 = vst [vmem:[%s562_s5 + $0x68] sm:$0xff] %v248_v34 }

// kernel: tile.65
= control target key start
LH: loop header
LB: loop body
LE: loop exit
PB: predicated region body
PF: predicated region fallthrough
CT: control target
= control target key end

     0   :  { %s28_s0 = inlined_call_operand.vmem [shape: f32[16], index: 0, kind: input, shape index: {}]   ;;  %s29_s1 = inlined_call_operand.vmem [shape: f32[9,16], index: 1, kind: output, shape index: {}]  }
   0x1   :  { %v4_v0 = vld [vmem:[%s28_s0] ss:$0 sm:$0xff] }
   0x2   :  { %5 = vst [vmem:[%s29_s1] sm:$0xff] %v4_v0  ;;  %8 = vst [vmem:[%s29_s1 + $0x8] sm:$0xff] %v4_v0 }

// kernel: tile.66
= control target key start
LH: loop header
LB: loop body
LE: loop exit
PB: predicated region body
PF: predicated region fallthrough
CT: control target
= control target key end

     0   :  { %s70_s10 = smov 112   ;;  %s71_s11 = smov 80   ;;  %vm4_vm0 = vcmask 130048   ;;  %vm10_vm1 = vcmask 1048448   ;;  %vm16_vm2 = vcmask 917248   ;;  %vm22_vm3 = vcmask 786048   ;;  %s114_s0 = inlined_call_operand.vmem [shape: f32[9,16], index: 0, kind: input, shape index: {}]   ;;  %s115_s1 = inlined_call_operand.vmem [shape: f32[144], index: 1, kind: output, shape index: {}]  }
   0x1   :  { %v56_v0 = vld [vmem:[%s114_s0 + $0x7] sm:$0x1]   ;;  %v58_v1 = vld [vmem:[%s114_s0 + $0x5] sm:$0x1]   ;;  %v57_v2 = vld [vmem:[%s114_s0 + $0x6] sm:$0x1]  }
   0x2   :  { %8 = vrot.lane.b32.xlu0 %v56_v0, %s70_s10  ;;  %20 = vrot.lane.b32.xlu1 %v58_v1, %s71_s11  ;;  %v59_v3 = vld [vmem:[%s114_s0 + $0x4] sm:$0x1]   ;;  %s2_s16 = smov 3  ;;  %s72_s19 = smov 96   ;;  %v60_v5 = vld [vmem:[%s114_s0 + $0x3] sm:$0x1]  }
   0x3   :  { %v3_v4 = vld [vmem:[%s114_s0] ss:$8 sm:%s2_s16]   ;;  %s73_s20 = smov 64   ;;  %v61_v6 = vld [vmem:[%s114_s0 + $0x2] sm:$0x1]   ;;  %s74_s25 = smov 48  }
   0x4   :  { %5 = vst.msk [vmem:[#allocation0] sm:$0x3] %vm4_vm0, %v3_v4   ;;  %s75_s26 = smov 32   ;;  %v62_v7 = vld [vmem:[%s114_s0 + $0x1] sm:$0x1]   ;;  %s76_s0 = smov 16  }
   0x5   :  { %vm28_vm4 = vcmask 654848   ;;  %vm34_vm5 = vcmask 523648   ;;  %vm40_vm6 = vcmask 392448   ;;  %vm46_vm7 = vcmask 261248  }
   0x6   :  { %14 = vrot.lane.b32.xlu0 %v57_v2, %s72_s19  ;;  %26 = vrot.lane.b32.xlu1 %v59_v3, %s73_s20 }
   0xa   :  { %32 = vrot.lane.b32.xlu0 %v60_v5, %s74_s25  ;;  %38 = vrot.lane.b32.xlu1 %v61_v6, %s75_s26 }
   0xe   :  { %44 = vrot.lane.b32.xlu0 %v62_v7, %s76_s0 }
  0x74   :  { %v9_v8 = vpop.permute.xlu0 %8   ;;  %v21_v9 = vpop.permute.xlu1 %20  }
  0x75   :  { %11 = vst.msk [vmem:[#allocation0] sm:$0x1] %vm10_vm1, %v9_v8  }
  0x78   :  { %v15_v10 = vpop.permute.xlu0 %14   ;;  %v27_v11 = vpop.permute.xlu1 %26  }
  0x79   :  { %17 = vst.msk [vmem:[#allocation0] sm:$0x1] %vm16_vm2, %v15_v10  }
  0x7a   :  { %23 = vst.msk [vmem:[#allocation0] sm:$0x1] %vm22_vm3, %v21_v9  }
  0x7b   :  { %29 = vst.msk [vmem:[#allocation0] sm:$0x1] %vm28_vm4, %v27_v11  }
  0x7c   :  { %v33_v12 = vpop.permute.xlu0 %32   ;;  %v39_v13 = vpop.permute.xlu1 %38  }
  0x7d   :  { %35 = vst.msk [vmem:[#allocation0] sm:$0x1] %vm34_vm5, %v33_v12  }
  0x7e   :  { %41 = vst.msk [vmem:[#allocation0] sm:$0x1] %vm40_vm6, %v39_v13  }
  0x80   :  { %v45_v14 = vpop.permute.xlu0 %44  }
  0x81   :  { %47 = vst.msk [vmem:[#allocation0] sm:$0x1] %vm46_vm7, %v45_v14  }
  0x88   :  { %v52_v15 = vld [vmem:[#allocation0] sm:$0x3] }
  0x89   :  { %55 = vst [vmem:[%s115_s1] sm:$0x3] %v52_v15 }

// kernel: tile.75
= control target key start
LH: loop header
LB: loop body
LE: loop exit
PB: predicated region body
PF: predicated region fallthrough
CT: control target
= control target key end

     0   :  { %s28_s0 = inlined_call_operand.vmem [shape: f32[32], index: 0, kind: input, shape index: {}]   ;;  %s29_s1 = inlined_call_operand.vmem [shape: f32[9,32], index: 1, kind: output, shape index: {}]  }
   0x1   :  { %v4_v0 = vld [vmem:[%s28_s0] ss:$0 sm:$0xff] }
   0x2   :  { %5 = vst [vmem:[%s29_s1] sm:$0xff] %v4_v0  ;;  %8 = vst [vmem:[%s29_s1 + $0x8] sm:$0xff] %v4_v0 }

// kernel: tile.76
= control target key start
LH: loop header
LB: loop body
LE: loop exit
PB: predicated region body
PF: predicated region fallthrough
CT: control target
= control target key end

     0   :  { %s6_s6 = smov 3  ;;  %s13_s11 = smov 3  ;;  %vm3_vm0 = vcmask 261120   ;;  %vm10_vm1 = vcmask 1048320   ;;  %vm17_vm2 = vcmask 785920   ;;  %vm24_vm3 = vcmask 523520   ;;  %s68_s0 = inlined_call_operand.vmem [shape: f32[9,32], index: 0, kind: input, shape index: {}]   ;;  %s69_s1 = inlined_call_operand.vmem [shape: f32[288], index: 1, kind: output, shape index: {}]  }
   0x1   :  { %v2_v0 = vld [vmem:[%s68_s0] ss:$4 sm:$0x7]   ;;  %v34_v1 = vld [vmem:[%s68_s0 + $0x3] ss:$4 sm:%s6_s6]   ;;  %s40_s12 = smov 96  }
   0x2   :  { %8 = vrot.lane.b32.xlu0 %v34_v1, %s40_s12  ;;  %s20_s13 = smov 3  ;;  %4 = vst.msk [vmem:[#allocation0] sm:$0x7] %vm3_vm0, %v2_v0   ;;  %v35_v2 = vld [vmem:[%s68_s0 + $0x2] ss:$4 sm:%s13_s11]   ;;  %s42_s18 = smov 64  }
   0x3   :  { %v36_v3 = vld [vmem:[%s68_s0 + $0x1] ss:$4 sm:%s20_s13]   ;;  %s41_s0 = smov 32  }
   0x4   :  { %22 = vrot.lane.b32.xlu1 %v36_v3, %s41_s0 }
   0x6   :  { %15 = vrot.lane.b32.xlu0 %v35_v2, %s42_s18 }
  0x74   :  { %v9_v4 = vpop.permute.xlu0 %8  }
  0x75   :  { %11 = vst.msk [vmem:[#allocation0] sm:$0x3] %vm10_vm1, %v9_v4  }
  0x76   :  { %v23_v5 = vpop.permute.xlu1 %22  }
  0x78   :  { %v16_v6 = vpop.permute.xlu0 %15  }
  0x79   :  { %18 = vst.msk [vmem:[#allocation0] sm:$0x3] %vm17_vm2, %v16_v6  }
  0x7a   :  { %25 = vst.msk [vmem:[#allocation0] sm:$0x3] %vm24_vm3, %v23_v5  }
  0x81   :  { %v30_v7 = vld [vmem:[#allocation0] sm:$0xf] }
  0x82   :  { %33 = vst [vmem:[%s69_s1] sm:$0xf] %v30_v7 }

// kernel: _lambda_.16
= control target key start
LH: loop header
LB: loop body
LE: loop exit
PB: predicated region body
PF: predicated region fallthrough
CT: control target
= control target key end

     0   :  { %s883_s18 = smov 0   ;;  %s885_s19 = smov 0   ;;  %s983_s0 = inlined_call_operand.vmem [shape: f32[32,384], index: 0, kind: input, shape index: {}]   ;;  %s984_s1 = inlined_call_operand.vmem [shape: bf16[384,128], index: 1, kind: input, shape index: {}]   ;;  %s985_s2 = inlined_call_operand.vmem [shape: f32[1,384], index: 2, kind: input, shape index: {}]   ;;  %s986_s3 = inlined_call_operand.vmem [shape: f32[1,384], index: 3, kind: input, shape index: {}]   ;;  %s987_s4 = inlined_call_operand.vmem [shape: f32[1,128], index: 4, kind: input, shape index: {}]   ;;  %s988_s5 = inlined_call_operand.vmem [shape: f32[32,128], index: 5, kind: output, shape index: {}]  }
   0x1   :  { %s887_s20 = smov 0   ;;  %s889_s21 = smov 0  }
   0x2   :  { %s891_s22 = smov 0  }
   0x3 LB: > { %s27_s23 = sadd.s32 1, %s846_s21  ;;  %p50_p1 = scmp.ne.s32.totalorder %s838_s19, %s834_s18  ;;  %s850_s22 = sphi %s891_s22, %s15_s22   ;;  %s846_s21 = sphi %s889_s21, %s992_s21   ;;  %s842_s20 = sphi %s887_s20, %s991_s20   ;;  %s838_s19 = sphi %s885_s19, %s990_s19   ;;  %s834_s18 = sphi %s883_s18, %s989_s18  }
   0x4   : > { %p28_p0 = scmp.ge.s32.totalorder %s27_s23, 3  ;;  %p51_p2 = scmp.eq.s32.totalorder %s850_s22, 0 }
   0x5   : > { %s43_s25 = sadd.s32 1, %s838_s19  ;;  %p709_p5 = scmp.ge.s32.totalorder %s850_s22, 3 }
   0x6   : > { %s994_s23 = smov (%p28_p0, %s27_s23), 0  ;;  %p52_p3 = por %p51_p2, %p50_p1 }
   0x7   : > { %s39_s24 = ssub.s32 %s846_s21, %s994_s23  ;;  %216 = sbr.rel (%p709_p5) target bundleno = 18 (0x12), region = 20 }
   0x8   : > { %p41_p4 = scmp.eq.s32.totalorder %s39_s24, 0 }
   0xa   : > { %s918_s26 = scalar_select %p41_p4, %s838_s19, %s43_s25  }
   0xc   : > { %219 = sbr.rel (!%p52_p3) target bundleno = 18 (0x12), region = 24  ;;  %s221_s27 = sand.u32 (%p52_p3), 1, %s838_s19  }
   0xd   : > { %s711_s28 = sshll.u32 (%p52_p3), %s846_s21, 3  ;;  %s710_s29 = sshll.u32 (%p52_p3), %s221_s27, 5 }
   0xe   : > { %s228_s7 = scalar_lea.vmem (%p52_p3), %s983_s0, %s711_s28  ;;  %s223_s8 = scalar_lea.vmem (%p52_p3), [#allocation3], %s710_s29 }
   0xf   : > { %v263_v0 = vld [vmem:[%s228_s7] sm:$0xff] (%p52_p3)  ;;  %v265_v1 = vld [vmem:[%s228_s7 + $0x18] sm:$0xff] (%p52_p3)  ;;  %v267_v2 = vld [vmem:[%s228_s7 + $0x30] sm:$0xff] (%p52_p3) }
  0x10   : > { %264 = vst [vmem:[%s223_s8] sm:$0xff] (%p52_p3), %v263_v0  ;;  %266 = vst [vmem:[%s223_s8 + $0x8] sm:$0xff] (%p52_p3), %v265_v1  ;;  %v269_v3 = vld [vmem:[%s228_s7 + $0x48] sm:$0xff] (%p52_p3) }
  0x11   : > { %268 = vst [vmem:[%s223_s8 + $0x10] sm:$0xff] %v267_v2  ;;  %270 = vst [vmem:[%s223_s8 + $0x18] sm:$0xff] %v269_v3 }
  0x12 PF: > { %p712_p6 = scmp.ge.s32.totalorder %s850_s22, 1  ;;  %p299_p7 = scmp.lt.s32.totalorder %s850_s22, 4 }
  0x14   : > { %p300_p8 = pnand %p712_p6, %p299_p7 }
  0x15   : > { %s306_s9 = sand.u32 (!%p300_p8), 1, %s834_s18   ;;  %s714_s10 = sshll.u32 (!%p300_p8), %s842_s20, 4 }
  0x16   : > { %303 = sbr.rel (%p300_p8) target bundleno = 280 (0x118), region = 74  ;;  %s713_s11 = sshll.u32 (!%p300_p8), %s306_s9, 5 }
  0x17   : > { %p355_p9 = scmp.lt.s32.totalorder (!%p300_p8), %s714_s10, 47  ;;  %p363_p10 = scmp.lt.s32.totalorder (!%p300_p8), %s842_s20, 2 }
  0x18   : > { %s308_s29 = scalar_lea.vmem (!%p300_p8), [#allocation3], %s713_s11  ;;  %p716_p11 = scmp.ne.s32.totalorder (!%p300_p8), %s842_s20, 0 }
  0x1b   : > { %s996_s10 = smov (!%p355_p9, %s714_s10), 47  ;;  %385 = sbr.rel (%p716_p11) target bundleno = 35 (0x23), region = 82 }
  0x1c   : > { %s364_s12 = scalar_select %p363_p10, %s842_s20, 2 }
  0x1d   : > { %s715_s13 = sshll.u32 %s996_s10, 2 }
  0x1e   : > { %s935_s16 = scalar_lea.vmem %s984_s1, %s715_s13  ;;  %s365_s25 = scalar_lea.vmem %s985_s2, %s364_s12 }
  0x1f   : > { %s368_s18 = scalar_lea.vmem %s986_s3, %s364_s12 }
  0x20   : > { %v852_v4 = vmov 0.0  }
  0x21   : > { %386 = vst [vmem:[#allocation2 + $0x10] sm:$0xff] %v852_v4  ;;  %387 = vst [vmem:[#allocation2] sm:$0xff] %v852_v4 }
  0x22   : > { %388 = vst [vmem:[#allocation2 + $0x18] sm:$0xff] %v852_v4  ;;  %389 = vst [vmem:[#allocation2 + $0x8] sm:$0xff] %v852_v4 }
  0x23 PF: > { %v804_v5 = vld [vmem:[%s935_s16 + $0x38] sm:$0xff]   ;;  %v805_v6 = vld [vmem:[%s935_s16 + $0x30] sm:$0xff]   ;;  %v806_v7 = vld [vmem:[%s935_s16 + $0x28] sm:$0xff]   ;;  %p727_p12 = scmp.ne.s32.totalorder %s842_s20, 2 }
  0x24   : > { %743 = vmatprep.subr.bf16.mxu0 %v804_v5  ;;  %v807_v8 = vld [vmem:[%s935_s16 + $0x20] sm:$0xff]   ;;  %v391_v10 = vld [vmem:[%s308_s29 + $0x8] sm:$0xff]  ;;  %v808_v17 = vld [vmem:[%s935_s16 + $0x18] sm:$0xff]  }
  0x25   : > { %744 = vmatpush3.bf16.msra.mxu0 %v804_v5  ;;  %v390_v9 = vld [vmem:[%s308_s29] sm:$0xff]  ;;  %v392_v18 = vld [vmem:[%s308_s29 + $0x10] sm:$0xff]  ;;  %v393_v19 = vld [vmem:[%s308_s29 + $0x18] sm:$0xff] }
  0x26   : > { %745 = vmatprep.subr.bf16.mxu0 %v805_v6  ;;  %v717_v11 = vld [vmem:[%s365_s25] ss:$0 sm:$0xff]  ;;  %v809_v26 = vld [vmem:[%s935_s16 + $0x10] sm:$0xff]   ;;  %v810_v30 = vld [vmem:[%s935_s16 + $0x8] sm:$0xff]  }
  0x27   : > { %v401_v12 = vmul.f32 %v717_v11, %v390_v9  ;;  %v402_v13 = vmul.f32 %v717_v11, %v391_v10  ;;  %v718_v14 = vld [vmem:[%s368_s18] ss:$0 sm:$0xff]  ;;  %v403_v24 = vmul.f32 %v717_v11, %v392_v18  ;;  %v404_v25 = vmul.f32 %v717_v11, %v393_v19 }
  0x28   : > { %v811_v33 = vld [vmem:[%s935_s16] sm:$0xff]   ;;  %v428_v39 = vld [vmem:[#allocation2 + $0x10] sm:$0xff] }
  0x29   : > { %746 = vmatpush3.bf16.msra.mxu0 %v805_v6  ;;  %v412_v15 = vadd.f32 %v718_v14, %v401_v12  ;;  %v413_v16 = vadd.f32 %v718_v14, %v402_v13  ;;  %v414_v28 = vadd.f32 %v718_v14, %v403_v24  ;;  %v415_v29 = vadd.f32 %v718_v14, %v404_v25  ;;  %v430_v37 = vld [vmem:[#allocation2 + $0x18] sm:$0xff]  ;;  %v431_v42 = vld [vmem:[#allocation2 + $0x8] sm:$0xff]  ;;  %v429_v45 = vld [vmem:[#allocation2] sm:$0xff] }
  0x2a   : > { %747 = vmatprep.subr.bf16.mxu0 %v806_v7 }
  0x2b   : > { %vm416_vm0 = vcmp.ge.f32.partialorder %v412_v15, 0.0  ;;  %vm417_vm1 = vcmp.ge.f32.partialorder %v413_v16, 0.0  ;;  %v420_v20 = vmul.f32 0.01, %v412_v15  ;;  %v421_v21 = vmul.f32 0.01, %v413_v16 }
  0x2c   : > { %v422_v31 = vmul.f32 0.01, %v414_v28  ;;  %v423_v32 = vmul.f32 0.01, %v415_v29  ;;  %vm418_vm2 = vcmp.ge.f32.partialorder %v414_v28, 0.0  ;;  %vm419_vm3 = vcmp.ge.f32.partialorder %v415_v29, 0.0 }
  0x2d   : > { %748 = vmatpush3.bf16.msra.mxu0 %v806_v7  ;;  %v424_v22 = vsel %vm416_vm0, %v412_v15, %v420_v20  ;;  %v425_v23 = vsel %vm417_vm1, %v413_v16, %v421_v21 }
  0x2e   : > { %749 = vmatprep.subr.bf16.mxu0 %v807_v8  ;;  %v432_v27 = vpack.c.bf16 %v425_v23, %v424_v22  ;;  %v426_v34 = vsel %vm418_vm2, %v414_v28, %v422_v31  ;;  %v427_v35 = vsel %vm419_vm3, %v415_v29, %v423_v32 }
  0x2f   : > { %v433_v36 = vpack.c.bf16 %v427_v35, %v426_v34 }
  0x30   : > { %759 = vmatprep.mubr.bf16.mxu0 %v432_v27 }
  0x31   : > { %750 = vmatpush3.bf16.msra.mxu0 %v807_v8 }
  0x32   : > { %751 = vmatprep.subr.bf16.mxu0 %v808_v17 }
  0x35   : > { %752 = vmatpush3.bf16.msra.mxu0 %v808_v17 }
  0x36   : > { %753 = vmatprep.subr.bf16.mxu0 %v809_v26 }
  0x39   : > { %754 = vmatpush3.bf16.msra.mxu0 %v809_v26 }
  0x3a   : > { %755 = vmatprep.subr.bf16.mxu0 %v810_v30 }
  0x3d   : > { %756 = vmatpush3.bf16.msra.mxu0 %v810_v30 }
  0x3e   : > { %757 = vmatprep.subr.bf16.mxu0 %v811_v33 }
  0x41   : > { %758 = vmatpush3.bf16.msra.mxu0 %v811_v33 }
  0x44   : > { %760 = vmatmul.mubr.bf16.vlgmr.msra.gmra.mxu0 %v433_v36 }
 0x104   : > { %v761_v38 = vpop.f32.mrf.mxu0 }
 0x105   : > { %v549_v40 = vadd.f32 %v761_v38, %v430_v37 }
 0x106   : > { %v532_v41 = vpop.f32.mrf.mxu0 }
 0x107   : > { %553 = vst [vmem:[#allocation2 + $0x18] sm:$0xff] %v549_v40  ;;  %v547_v43 = vadd.f32 %v532_v41, %v428_v39 }
 0x108   : > { %v762_v44 = vpop.f32.mrf.mxu0 }
 0x109   : > { %551 = vst [vmem:[#allocation2 + $0x10] sm:$0xff] %v547_v43  ;;  %v550_v46 = vadd.f32 %v762_v44, %v431_v42  ;;  %558 = sbr.rel (%p727_p12) target bundleno = 280 (0x118), region = 86 }
 0x10a   : > { %v535_v47 = vpop.f32.mrf.mxu0 }
 0x10b   : > { %554 = vst [vmem:[#allocation2 + $0x8] sm:$0xff] %v550_v46  ;;  %v548_v48 = vadd.f32 %v535_v47, %v429_v45 }
 0x10d   : > { %552 = vst [vmem:[#allocation2] sm:$0xff] %v548_v48 }
 0x10e   : > { %v728_v50 = vld [vmem:[%s987_s4] ss:$0 sm:$0xff]  ;;  %v561_v54 = vld [vmem:[#allocation2 + $0x18] sm:$0xff] }
 0x10f   : > { %v572_v56 = vadd.f32 %v728_v50, %v561_v54 }
 0x110   : > { %v559_v49 = vld [vmem:[#allocation2 + $0x10] sm:$0xff] }
 0x111   : > { %v570_v52 = vadd.f32 %v728_v50, %v559_v49  ;;  %576 = vst [vmem:[%s988_s5 + $0x10] sm:$0xff] %v572_v56 }
 0x112   : > { %v562_v55 = vld [vmem:[#allocation2 + $0x8] sm:$0xff] }
 0x113   : > { %v573_v57 = vadd.f32 %v728_v50, %v562_v55  ;;  %574 = vst [vmem:[%s988_s5] sm:$0xff] %v570_v52 }
 0x114   : > { %v560_v51 = vld [vmem:[#allocation2] sm:$0xff] }
 0x115   : > { %v571_v53 = vadd.f32 %v728_v50, %v560_v51  ;;  %577 = vst [vmem:[%s988_s5 + $0x18] sm:$0xff] %v573_v57 }
 0x117   : > { %575 = vst [vmem:[%s988_s5 + $0x8] sm:$0xff] %v571_v53 }
 0x118 PF: > { %s15_s22 = sadd.s32 1, %s850_s22   ;;  %s989_s18 = smov %s838_s19 }
 0x119   : > { %p12_p13 = scmp.ge.s32.totalorder %s15_s22, 5   ;;  %s990_s19 = smov %s918_s26 }
 0x11a   : > { %s991_s20 = smov %s846_s21  ;;  %s992_s21 = smov %s994_s23 }
 0x11b   :  { %14 = sbr.rel (!%p12_p13) target bundleno = 3 (0x3), region = 133 }

// kernel: _lambda_.15
= control target key start
LH: loop header
LB: loop body
LE: loop exit
PB: predicated region body
PF: predicated region fallthrough
CT: control target
= control target key end

     0   :  { %v31_v5 = vlaneseq  ;;  %s490_s1 = inlined_call_operand.vmem [shape: bf16[256,128], index: 1, kind: input, shape index: {}]   ;;  %s491_s0 = inlined_call_operand.vmem [shape: f32[32,256], index: 0, kind: input, shape index: {}]   ;;  %s492_s2 = inlined_call_operand.vmem [shape: f32[1,256], index: 2, kind: input, shape index: {}]   ;;  %s493_s3 = inlined_call_operand.vmem [shape: f32[1,256], index: 3, kind: input, shape index: {}]   ;;  %s494_s4 = inlined_call_operand.vmem [shape: f32[1,128], index: 4, kind: input, shape index: {}]   ;;  %s495_s5 = inlined_call_operand.vmem [shape: f32[32,128], index: 5, kind: output, shape index: {}]  }
   0x1   :  { %v350_v0 = vld [vmem:[%s490_s1 + $0x78] sm:$0xff]   ;;  %v352_v2 = vld [vmem:[%s490_s1 + $0x70] sm:$0xff]   ;;  %v354_v4 = vld [vmem:[%s490_s1 + $0x68] sm:$0xff]  }
   0x2   :  { %v351_v1 = vld [vmem:[%s490_s1 + $0x38] sm:$0xff]   ;;  %306 = vmatprep.subr.bf16.mxu0 %v350_v0  ;;  %334 = vmatprep.subr.bf16.mxu1 %v350_v0  ;;  %v353_v3 = vld [vmem:[%s490_s1 + $0x30] sm:$0xff]   ;;  %v355_v6 = vld [vmem:[%s490_s1 + $0x28] sm:$0xff]   ;;  %v32_v8 = vshrl.u32 %v31_v5, 7 }
   0x3   :  { %307 = vmatpush3.bf16.msra.mxu0 %v351_v1  ;;  %342 = vmatpush3.bf16.msra.mxu1 %v351_v1  ;;  %v356_v7 = vld [vmem:[%s490_s1 + $0x60] sm:$0xff]   ;;  %v358_v10 = vld [vmem:[%s490_s1 + $0x58] sm:$0xff]   ;;  %v360_v14 = vld [vmem:[%s490_s1 + $0x50] sm:$0xff]  }
   0x4   :  { %308 = vmatprep.subr.bf16.mxu0 %v352_v2  ;;  %335 = vmatprep.subr.bf16.mxu1 %v352_v2  ;;  %v357_v9 = vld [vmem:[%s490_s1 + $0x20] sm:$0xff]   ;;  %v33_v11 = vsub.s32 0, %v32_v8  ;;  %v37_v12 = vsub.s32 1, %v32_v8  ;;  %v359_v13 = vld [vmem:[%s490_s1 + $0x18] sm:$0xff]   ;;  %v22_v15 = vld [vmem:[%s491_s0 + $0x8] sm:$0xff] }
   0x5   :  { %v24_v16 = vld [vmem:[%s491_s0 + $0x18] sm:$0xff]  ;;  %v29_v17 = vld [vmem:[%s492_s2] sm:$0x3]  ;;  %v26_v21 = vld [vmem:[%s491_s0 + $0x28] sm:$0xff] }
   0x6   :  { %v34_v18 = vrot.slane %v29_v17, %v33_v11  ;;  %v38_v19 = vrot.slane %v29_v17, %v37_v12  ;;  %v49_v20 = vld [vmem:[%s493_s3] sm:$0x3]  ;;  %v28_v22 = vld [vmem:[%s491_s0 + $0x38] sm:$0xff]  ;;  %v23_v26 = vld [vmem:[%s491_s0 + $0x10] sm:$0xff] }
   0x7   :  { %309 = vmatpush3.bf16.msra.mxu0 %v353_v3  ;;  %343 = vmatpush3.bf16.msra.mxu1 %v353_v3  ;;  %v54_v23 = vrot.slane %v49_v20, %v33_v11  ;;  %v58_v24 = vrot.slane %v49_v20, %v37_v12  ;;  %v21_v25 = vld [vmem:[%s491_s0] sm:$0xff]  ;;  %v361_v28 = vld [vmem:[%s490_s1 + $0x10] sm:$0xff]   ;;  %v362_v33 = vld [vmem:[%s490_s1 + $0x48] sm:$0xff]  }
   0x8   :  { %310 = vmatprep.subr.bf16.mxu0 %v354_v4  ;;  %336 = vmatprep.subr.bf16.mxu1 %v354_v4  ;;  %v25_v27 = vld [vmem:[%s491_s0 + $0x20] sm:$0xff]  ;;  %v42_v29 = vmul.f32 %v38_v19, %v22_v15  ;;  %v44_v30 = vmul.f32 %v38_v19, %v24_v16  ;;  %v46_v31 = vmul.f32 %v38_v19, %v26_v21  ;;  %v27_v32 = vld [vmem:[%s491_s0 + $0x30] sm:$0xff]  ;;  %v363_v41 = vld [vmem:[%s490_s1 + $0x8] sm:$0xff]  }
   0x9   :  { %v48_v34 = vmul.f32 %v38_v19, %v28_v22  ;;  %v41_v35 = vmul.f32 %v34_v18, %v21_v25  ;;  %v43_v36 = vmul.f32 %v34_v18, %v23_v26  ;;  %v45_v40 = vmul.f32 %v34_v18, %v25_v27  ;;  %v364_v42 = vld [vmem:[%s490_s1 + $0x40] sm:$0xff]  }
   0xa   :  { %v62_v37 = vadd.f32 %v58_v24, %v42_v29  ;;  %v64_v38 = vadd.f32 %v58_v24, %v44_v30  ;;  %v66_v39 = vadd.f32 %v58_v24, %v46_v31  ;;  %v47_v46 = vmul.f32 %v34_v18, %v27_v32  ;;  %v365_v57 = vld [vmem:[%s490_s1] sm:$0xff]  }
   0xb   :  { %311 = vmatpush3.bf16.msra.mxu0 %v355_v6  ;;  %344 = vmatpush3.bf16.msra.mxu1 %v355_v6  ;;  %v68_v43 = vadd.f32 %v58_v24, %v48_v34  ;;  %v61_v44 = vadd.f32 %v54_v23, %v41_v35  ;;  %v63_v45 = vadd.f32 %v54_v23, %v43_v36  ;;  %v289_v8 = vld [vmem:[%s494_s4] ss:$0 sm:$0xff] }
   0xc   :  { %312 = vmatprep.subr.bf16.mxu0 %v356_v7  ;;  %337 = vmatprep.subr.bf16.mxu1 %v356_v7  ;;  %vm70_vm0 = vcmp.ge.f32.partialorder %v62_v37, 0.0  ;;  %vm72_vm1 = vcmp.ge.f32.partialorder %v64_v38, 0.0  ;;  %v78_v47 = vmul.f32 0.01, %v62_v37  ;;  %v80_v48 = vmul.f32 0.01, %v64_v38 }
   0xd   :  { %vm74_vm2 = vcmp.ge.f32.partialorder %v66_v39, 0.0  ;;  %vm76_vm3 = vcmp.ge.f32.partialorder %v68_v43, 0.0  ;;  %v82_v49 = vmul.f32 0.01, %v66_v39  ;;  %v84_v50 = vmul.f32 0.01, %v68_v43 }
   0xe   :  { %v86_v51 = vsel %vm70_vm0, %v62_v37, %v78_v47  ;;  %v88_v52 = vsel %vm72_vm1, %v64_v38, %v80_v48  ;;  %vm69_vm4 = vcmp.ge.f32.partialorder %v61_v44, 0.0  ;;  %vm71_vm5 = vcmp.ge.f32.partialorder %v63_v45, 0.0 }
   0xf   :  { %313 = vmatpush3.bf16.msra.mxu0 %v357_v9  ;;  %345 = vmatpush3.bf16.msra.mxu1 %v357_v9  ;;  %v94_v53 = vpack.c.bf16 %v88_v52, %v86_v51  ;;  %v90_v54 = vsel %vm74_vm2, %v66_v39, %v82_v49  ;;  %v92_v55 = vsel %vm76_vm3, %v68_v43, %v84_v50  ;;  %v77_v56 = vmul.f32 0.01, %v61_v44 }
  0x10   :  { %314 = vmatprep.subr.bf16.mxu0 %v358_v10  ;;  %338 = vmatprep.subr.bf16.mxu1 %v358_v10  ;;  %v96_v58 = vpack.c.bf16 %v92_v55, %v90_v54  ;;  %v79_v59 = vmul.f32 0.01, %v63_v45  ;;  %v65_v60 = vadd.f32 %v54_v23, %v45_v40  ;;  %v67_v61 = vadd.f32 %v54_v23, %v47_v46 }
  0x11   :  { %v85_v62 = vsel %vm69_vm4, %v61_v44, %v77_v56  ;;  %264 = vmatprep.mubr.bf16.mxu0 %v94_v53 }
  0x12   :  { %272 = vmatprep.mubr.bf16.mxu1 %v96_v58  ;;  %v87_v63 = vsel %vm71_vm5, %v63_v45, %v79_v59  ;;  %vm73_vm6 = vcmp.ge.f32.partialorder %v65_v60, 0.0  ;;  %vm75_vm7 = vcmp.ge.f32.partialorder %v67_v61, 0.0  ;;  %v81_v0 = vmul.f32 0.01, %v65_v60 }
  0x13   :  { %315 = vmatpush3.bf16.msra.mxu0 %v359_v13  ;;  %346 = vmatpush3.bf16.msra.mxu1 %v359_v13  ;;  %v93_v1 = vpack.c.bf16 %v87_v63, %v85_v62  ;;  %v83_v2 = vmul.f32 0.01, %v67_v61 }
  0x14   :  { %316 = vmatprep.subr.bf16.mxu0 %v360_v14  ;;  %339 = vmatprep.subr.bf16.mxu1 %v360_v14  ;;  %v89_v3 = vsel %vm73_vm6, %v65_v60, %v81_v0 }
  0x15   :  { %v91_v4 = vsel %vm75_vm7, %v67_v61, %v83_v2 }
  0x16   :  { %v95_v5 = vpack.c.bf16 %v91_v4, %v89_v3 }
  0x17   :  { %317 = vmatpush3.bf16.msra.mxu0 %v361_v28  ;;  %347 = vmatpush3.bf16.msra.mxu1 %v361_v28 }
  0x18   :  { %318 = vmatprep.subr.bf16.mxu0 %v362_v33  ;;  %340 = vmatprep.subr.bf16.mxu1 %v362_v33 }
  0x1b   :  { %319 = vmatpush3.bf16.msra.mxu0 %v363_v41  ;;  %348 = vmatpush3.bf16.msra.mxu1 %v363_v41 }
  0x1c   :  { %320 = vmatprep.subr.bf16.mxu0 %v364_v42  ;;  %341 = vmatprep.subr.bf16.mxu1 %v364_v42 }
  0x1f   :  { %321 = vmatpush3.bf16.msra.mxu0 %v365_v57  ;;  %349 = vmatpush3.bf16.msra.mxu1 %v365_v57 }
  0x22   :  { %265 = vmatmul.mubr.bf16.vlgmr.msra.gmra.mxu0 %v93_v1  ;;  %273 = vmatmul.mubr.bf16.vlgmr.msra.gmra.mxu1 %v95_v5 }
  0xe2   :  { %v322_v6 = vpop.f32.mrf.mxu0  ;;  %v328_v7 = vpop.f32.mrf.mxu1 }
  0xe4   :  { %v323_v9 = vpop.f32.mrf.mxu0  ;;  %v329_v11 = vpop.f32.mrf.mxu1 }
  0xe5   :  { %v324_v10 = vadd.f32 %v323_v9, %v322_v6  ;;  %v330_v12 = vadd.f32 %v329_v11, %v328_v7 }
  0xe6   :  { %v325_v13 = vpop.f32.mrf.mxu0  ;;  %v331_v15 = vpop.f32.mrf.mxu1 }
  0xe7   :  { %v267_v14 = vadd.f32 %v324_v10, %v289_v8  ;;  %v275_v16 = vadd.f32 %v330_v12, %v289_v8 }
  0xe8   :  { %v326_v17 = vpop.f32.mrf.mxu0  ;;  %v332_v19 = vpop.f32.mrf.mxu1 }
  0xe9   :  { %281 = vst [vmem:[%s495_s5] sm:$0xff] %v267_v14  ;;  %v327_v18 = vadd.f32 %v326_v17, %v325_v13  ;;  %283 = vst [vmem:[%s495_s5 + $0x10] sm:$0xff] %v275_v16  ;;  %v333_v20 = vadd.f32 %v332_v19, %v331_v15 }
  0xeb   :  { %v270_v21 = vadd.f32 %v327_v18, %v289_v8  ;;  %v278_v22 = vadd.f32 %v333_v20, %v289_v8 }
  0xed   :  { %282 = vst [vmem:[%s495_s5 + $0x8] sm:$0xff] %v270_v21  ;;  %284 = vst [vmem:[%s495_s5 + $0x18] sm:$0xff] %v278_v22 }

// kernel: _lambda_.19
= control target key start
LH: loop header
LB: loop body
LE: loop exit
PB: predicated region body
PF: predicated region fallthrough
CT: control target
= control target key end

     0   :  { %s871_s18 = smov 0   ;;  %s873_s19 = smov 0   ;;  %s977_s0 = inlined_call_operand.vmem [shape: f32[32,384], index: 0, kind: input, shape index: {}]   ;;  %s978_s1 = inlined_call_operand.vmem [shape: bf16[384,128], index: 1, kind: input, shape index: {}]   ;;  %s979_s2 = inlined_call_operand.vmem [shape: f32[1,384], index: 2, kind: input, shape index: {}]   ;;  %s980_s3 = inlined_call_operand.vmem [shape: f32[1,384], index: 3, kind: input, shape index: {}]   ;;  %s981_s4 = inlined_call_operand.vmem [shape: f32[1,128], index: 4, kind: input, shape index: {}]   ;;  %s982_s5 = inlined_call_operand.vmem [shape: f32[32,128], index: 5, kind: output, shape index: {}]  }
   0x1   :  { %s875_s20 = smov 0   ;;  %s877_s21 = smov 0  }
   0x2   :  { %s879_s22 = smov 0  }
   0x3 LB: > { %s27_s23 = sadd.s32 1, %s834_s21  ;;  %p50_p1 = scmp.ne.s32.totalorder %s826_s19, %s822_s18  ;;  %s838_s22 = sphi %s879_s22, %s15_s22   ;;  %s834_s21 = sphi %s877_s21, %s986_s21   ;;  %s830_s20 = sphi %s875_s20, %s985_s20   ;;  %s826_s19 = sphi %s873_s19, %s984_s19   ;;  %s822_s18 = sphi %s871_s18, %s983_s18  }
   0x4   : > { %p28_p0 = scmp.ge.s32.totalorder %s27_s23, 3  ;;  %p51_p2 = scmp.eq.s32.totalorder %s838_s22, 0 }
   0x5   : > { %s43_s25 = sadd.s32 1, %s826_s19  ;;  %p697_p5 = scmp.ge.s32.totalorder %s838_s22, 3 }
   0x6   : > { %s988_s23 = smov (%p28_p0, %s27_s23), 0  ;;  %p52_p3 = por %p51_p2, %p50_p1 }
   0x7   : > { %s39_s24 = ssub.s32 %s834_s21, %s988_s23  ;;  %216 = sbr.rel (%p697_p5) target bundleno = 18 (0x12), region = 20 }
   0x8   : > { %p41_p4 = scmp.eq.s32.totalorder %s39_s24, 0 }
   0xa   : > { %s906_s26 = scalar_select %p41_p4, %s826_s19, %s43_s25  }
   0xc   : > { %219 = sbr.rel (!%p52_p3) target bundleno = 18 (0x12), region = 24  ;;  %s221_s27 = sand.u32 (%p52_p3), 1, %s826_s19  }
   0xd   : > { %s699_s28 = sshll.u32 (%p52_p3), %s834_s21, 3  ;;  %s698_s29 = sshll.u32 (%p52_p3), %s221_s27, 5 }
   0xe   : > { %s228_s7 = scalar_lea.vmem (%p52_p3), %s977_s0, %s699_s28  ;;  %s223_s8 = scalar_lea.vmem (%p52_p3), [#allocation3], %s698_s29 }
   0xf   : > { %v263_v0 = vld [vmem:[%s228_s7] sm:$0xff] (%p52_p3)  ;;  %v265_v1 = vld [vmem:[%s228_s7 + $0x18] sm:$0xff] (%p52_p3)  ;;  %v267_v2 = vld [vmem:[%s228_s7 + $0x30] sm:$0xff] (%p52_p3) }
  0x10   : > { %264 = vst [vmem:[%s223_s8] sm:$0xff] (%p52_p3), %v263_v0  ;;  %266 = vst [vmem:[%s223_s8 + $0x8] sm:$0xff] (%p52_p3), %v265_v1  ;;  %v269_v3 = vld [vmem:[%s228_s7 + $0x48] sm:$0xff] (%p52_p3) }
  0x11   : > { %268 = vst [vmem:[%s223_s8 + $0x10] sm:$0xff] %v267_v2  ;;  %270 = vst [vmem:[%s223_s8 + $0x18] sm:$0xff] %v269_v3 }
  0x12 PF: > { %p700_p6 = scmp.ge.s32.totalorder %s838_s22, 1  ;;  %p299_p7 = scmp.lt.s32.totalorder %s838_s22, 4 }
  0x14   : > { %p300_p8 = pnand %p700_p6, %p299_p7 }
  0x15   : > { %s306_s9 = sand.u32 (!%p300_p8), 1, %s822_s18   ;;  %s702_s10 = sshll.u32 (!%p300_p8), %s830_s20, 4 }
  0x16   : > { %303 = sbr.rel (%p300_p8) target bundleno = 280 (0x118), region = 74  ;;  %s701_s11 = sshll.u32 (!%p300_p8), %s306_s9, 5 }
  0x17   : > { %p355_p9 = scmp.lt.s32.totalorder (!%p300_p8), %s702_s10, 47  ;;  %p363_p10 = scmp.lt.s32.totalorder (!%p300_p8), %s830_s20, 2 }
  0x18   : > { %s931_s29 = scalar_lea.vmem (!%p300_p8), [#allocation3], %s701_s11  ;;  %p704_p11 = scmp.ne.s32.totalorder (!%p300_p8), %s830_s20, 0 }
  0x1b   : > { %s990_s10 = smov (!%p355_p9, %s702_s10), 47  ;;  %385 = sbr.rel (%p704_p11) target bundleno = 35 (0x23), region = 82 }
  0x1c   : > { %s364_s12 = scalar_select %p363_p10, %s830_s20, 2 }
  0x1d   : > { %s703_s13 = sshll.u32 %s990_s10, 2 }
  0x1e   : > { %s923_s16 = scalar_lea.vmem %s978_s1, %s703_s13  ;;  %s365_s25 = scalar_lea.vmem %s979_s2, %s364_s12 }
  0x1f   : > { %s368_s18 = scalar_lea.vmem %s980_s3, %s364_s12 }
  0x20   : > { %v840_v4 = vmov 0.0  }
  0x21   : > { %386 = vst [vmem:[#allocation2 + $0x10] sm:$0xff] %v840_v4  ;;  %387 = vst [vmem:[#allocation2] sm:$0xff] %v840_v4 }
  0x22   : > { %388 = vst [vmem:[#allocation2 + $0x18] sm:$0xff] %v840_v4  ;;  %389 = vst [vmem:[#allocation2 + $0x8] sm:$0xff] %v840_v4 }
  0x23 PF: > { %v792_v5 = vld [vmem:[%s923_s16 + $0x38] sm:$0xff]   ;;  %v793_v6 = vld [vmem:[%s923_s16 + $0x30] sm:$0xff]   ;;  %v794_v7 = vld [vmem:[%s923_s16 + $0x28] sm:$0xff]   ;;  %p715_p12 = scmp.ne.s32.totalorder %s830_s20, 2 }
  0x24   : > { %731 = vmatprep.subr.bf16.mxu0 %v792_v5  ;;  %v795_v8 = vld [vmem:[%s923_s16 + $0x20] sm:$0xff]   ;;  %v391_v10 = vld [vmem:[%s931_s29 + $0x8] sm:$0xff]  ;;  %v796_v17 = vld [vmem:[%s923_s16 + $0x18] sm:$0xff]  }
  0x25   : > { %732 = vmatpush3.bf16.msra.mxu0 %v792_v5  ;;  %v390_v9 = vld [vmem:[%s931_s29] sm:$0xff]  ;;  %v797_v19 = vld [vmem:[%s923_s16 + $0x10] sm:$0xff]   ;;  %v393_v21 = vld [vmem:[%s931_s29 + $0x18] sm:$0xff] }
  0x26   : > { %733 = vmatprep.subr.bf16.mxu0 %v793_v6  ;;  %v705_v11 = vld [vmem:[%s365_s25] ss:$0 sm:$0xff]  ;;  %v392_v20 = vld [vmem:[%s931_s29 + $0x10] sm:$0xff]  ;;  %v798_v22 = vld [vmem:[%s923_s16 + $0x8] sm:$0xff]  }
  0x27   : > { %v401_v12 = vmul.f32 %v705_v11, %v390_v9  ;;  %v402_v13 = vmul.f32 %v705_v11, %v391_v10  ;;  %v706_v14 = vld [vmem:[%s368_s18] ss:$0 sm:$0xff]  ;;  %v403_v23 = vmul.f32 %v705_v11, %v392_v20  ;;  %v404_v24 = vmul.f32 %v705_v11, %v393_v21 }
  0x28   : > { %v799_v25 = vld [vmem:[%s923_s16] sm:$0xff]   ;;  %v416_v31 = vld [vmem:[#allocation2 + $0x10] sm:$0xff] }
  0x29   : > { %734 = vmatpush3.bf16.msra.mxu0 %v793_v6  ;;  %v412_v15 = vadd.f32 %v706_v14, %v401_v12  ;;  %v413_v16 = vadd.f32 %v706_v14, %v402_v13  ;;  %v414_v26 = vadd.f32 %v706_v14, %v403_v23  ;;  %v415_v27 = vadd.f32 %v706_v14, %v404_v24  ;;  %v418_v29 = vld [vmem:[#allocation2 + $0x18] sm:$0xff]  ;;  %v419_v34 = vld [vmem:[#allocation2 + $0x8] sm:$0xff]  ;;  %v417_v37 = vld [vmem:[#allocation2] sm:$0xff] }
  0x2a   : > { %735 = vmatprep.subr.bf16.mxu0 %v794_v7 }
  0x2b   : > { %v420_v18 = vpack.c.bf16 %v413_v16, %v412_v15  ;;  %v421_v28 = vpack.c.bf16 %v415_v27, %v414_v26 }
  0x2d   : > { %736 = vmatpush3.bf16.msra.mxu0 %v794_v7  ;;  %747 = vmatprep.mubr.bf16.mxu0 %v420_v18 }
  0x2e   : > { %737 = vmatprep.subr.bf16.mxu0 %v795_v8 }
  0x31   : > { %738 = vmatpush3.bf16.msra.mxu0 %v795_v8 }
  0x32   : > { %739 = vmatprep.subr.bf16.mxu0 %v796_v17 }
  0x35   : > { %740 = vmatpush3.bf16.msra.mxu0 %v796_v17 }
  0x36   : > { %741 = vmatprep.subr.bf16.mxu0 %v797_v19 }
  0x39   : > { %742 = vmatpush3.bf16.msra.mxu0 %v797_v19 }
  0x3a   : > { %743 = vmatprep.subr.bf16.mxu0 %v798_v22 }
  0x3d   : > { %744 = vmatpush3.bf16.msra.mxu0 %v798_v22 }
  0x3e   : > { %745 = vmatprep.subr.bf16.mxu0 %v799_v25 }
  0x41   : > { %746 = vmatpush3.bf16.msra.mxu0 %v799_v25 }
  0x44   : > { %748 = vmatmul.mubr.bf16.vlgmr.msra.gmra.mxu0 %v421_v28 }
 0x104   : > { %v749_v30 = vpop.f32.mrf.mxu0 }
 0x105   : > { %v537_v32 = vadd.f32 %v749_v30, %v418_v29 }
 0x106   : > { %v520_v33 = vpop.f32.mrf.mxu0 }
 0x107   : > { %541 = vst [vmem:[#allocation2 + $0x18] sm:$0xff] %v537_v32  ;;  %v535_v35 = vadd.f32 %v520_v33, %v416_v31 }
 0x108   : > { %v750_v36 = vpop.f32.mrf.mxu0 }
 0x109   : > { %539 = vst [vmem:[#allocation2 + $0x10] sm:$0xff] %v535_v35  ;;  %v538_v38 = vadd.f32 %v750_v36, %v419_v34  ;;  %546 = sbr.rel (%p715_p12) target bundleno = 280 (0x118), region = 86 }
 0x10a   : > { %v523_v39 = vpop.f32.mrf.mxu0 }
 0x10b   : > { %542 = vst [vmem:[#allocation2 + $0x8] sm:$0xff] %v538_v38  ;;  %v536_v40 = vadd.f32 %v523_v39, %v417_v37 }
 0x10d   : > { %540 = vst [vmem:[#allocation2] sm:$0xff] %v536_v40 }
 0x10e   : > { %v716_v42 = vld [vmem:[%s981_s4] ss:$0 sm:$0xff]  ;;  %v549_v46 = vld [vmem:[#allocation2 + $0x18] sm:$0xff] }
 0x10f   : > { %v560_v48 = vadd.f32 %v716_v42, %v549_v46 }
 0x110   : > { %v547_v41 = vld [vmem:[#allocation2 + $0x10] sm:$0xff] }
 0x111   : > { %v558_v44 = vadd.f32 %v716_v42, %v547_v41  ;;  %564 = vst [vmem:[%s982_s5 + $0x10] sm:$0xff] %v560_v48 }
 0x112   : > { %v550_v47 = vld [vmem:[#allocation2 + $0x8] sm:$0xff] }
 0x113   : > { %v561_v49 = vadd.f32 %v716_v42, %v550_v47  ;;  %562 = vst [vmem:[%s982_s5] sm:$0xff] %v558_v44 }
 0x114   : > { %v548_v43 = vld [vmem:[#allocation2] sm:$0xff] }
 0x115   : > { %v559_v45 = vadd.f32 %v716_v42, %v548_v43  ;;  %565 = vst [vmem:[%s982_s5 + $0x18] sm:$0xff] %v561_v49 }
 0x117   : > { %563 = vst [vmem:[%s982_s5 + $0x8] sm:$0xff] %v559_v45 }
 0x118 PF: > { %s15_s22 = sadd.s32 1, %s838_s22   ;;  %s983_s18 = smov %s826_s19 }
 0x119   : > { %p12_p13 = scmp.ge.s32.totalorder %s15_s22, 5   ;;  %s984_s19 = smov %s906_s26 }
 0x11a   : > { %s985_s20 = smov %s834_s21  ;;  %s986_s21 = smov %s988_s23 }
 0x11b   :  { %14 = sbr.rel (!%p12_p13) target bundleno = 3 (0x3), region = 133 }

// kernel: _lambda_.18
= control target key start
LH: loop header
LB: loop body
LE: loop exit
PB: predicated region body
PF: predicated region fallthrough
CT: control target
= control target key end

     0   :  { %s186_s0 = inlined_call_operand.vmem [shape: f32[32,128], index: 0, kind: input, shape index: {}]   ;;  %s187_s1 = inlined_call_operand.vmem [shape: f32[1,128], index: 1, kind: input, shape index: {}]   ;;  %s188_s2 = inlined_call_operand.vmem [shape: f32[1,128], index: 2, kind: input, shape index: {}]   ;;  %s189_s3 = inlined_call_operand.vmem [shape: f32[32,128], index: 3, kind: input, shape index: {}]   ;;  %s190_s4 = inlined_call_operand.vmem [shape: f32[1,128], index: 4, kind: input, shape index: {}]   ;;  %s191_s5 = inlined_call_operand.vmem [shape: f32[1,128], index: 5, kind: input, shape index: {}]   ;;  %s192_s6 = inlined_call_operand.vmem [shape: f32[32,128], index: 6, kind: output, shape index: {}]  }
   0x1   :  { %v23_v0 = vld [vmem:[%s189_s3] sm:$0xff]  ;;  %v24_v8 = vld [vmem:[%s189_s3 + $0x8] sm:$0xff]  ;;  %v25_v10 = vld [vmem:[%s189_s3 + $0x10] sm:$0xff] }
   0x2   :  { %v99_v1 = vld [vmem:[%s190_s4] ss:$0 sm:$0xff]  ;;  %v62_v9 = vld [vmem:[%s186_s0 + $0x8] sm:$0xff]  ;;  %v63_v15 = vld [vmem:[%s186_s0 + $0x10] sm:$0xff] }
   0x3   :  { %v100_v2 = vld [vmem:[%s191_s5] ss:$0 sm:$0xff]  ;;  %v34_v3 = vmul.f32 %v99_v1, %v23_v0  ;;  %v35_v12 = vmul.f32 %v99_v1, %v24_v8  ;;  %v36_v14 = vmul.f32 %v99_v1, %v25_v10  ;;  %v26_v16 = vld [vmem:[%s189_s3 + $0x18] sm:$0xff] }
   0x4   :  { %v61_v4 = vld [vmem:[%s186_s0] sm:$0xff]  ;;  %v64_v17 = vld [vmem:[%s186_s0 + $0x18] sm:$0xff]  ;;  %v37_v20 = vmul.f32 %v99_v1, %v26_v16 }
   0x5   :  { %v101_v5 = vld [vmem:[%s187_s1] ss:$0 sm:$0xff]  ;;  %v45_v11 = vadd.f32 %v100_v2, %v34_v3  ;;  %v46_v23 = vadd.f32 %v100_v2, %v35_v12  ;;  %v47_v25 = vadd.f32 %v100_v2, %v36_v14 }
   0x6   :  { %v102_v6 = vld [vmem:[%s188_s2] ss:$0 sm:$0xff]  ;;  %v72_v7 = vmul.f32 %v101_v5, %v61_v4  ;;  %v73_v13 = vmul.f32 %v101_v5, %v62_v9  ;;  %v74_v19 = vmul.f32 %v101_v5, %v63_v15  ;;  %v75_v21 = vmul.f32 %v101_v5, %v64_v17 }
   0x7   :  { %vm49_vm0 = vcmp.ge.f32.partialorder %v45_v11, 0.0  ;;  %v53_v22 = vmul.f32 0.01, %v45_v11  ;;  %v48_v27 = vadd.f32 %v100_v2, %v37_v20  ;;  %vm50_vm1 = vcmp.ge.f32.partialorder %v46_v23, 0.0 }
   0x8   :  { %v83_v18 = vadd.f32 %v102_v6, %v72_v7  ;;  %v84_v24 = vadd.f32 %v102_v6, %v73_v13  ;;  %v85_v26 = vadd.f32 %v102_v6, %v74_v19  ;;  %v54_v29 = vmul.f32 0.01, %v46_v23 }
   0x9   :  { %v57_v28 = vsel %vm49_vm0, %v45_v11, %v53_v22  ;;  %v86_v30 = vadd.f32 %v102_v6, %v75_v21  ;;  %vm51_vm2 = vcmp.ge.f32.partialorder %v47_v25, 0.0  ;;  %v55_v32 = vmul.f32 0.01, %v47_v25 }
   0xa   :  { %v87_v31 = vadd.f32 %v83_v18, %v57_v28  ;;  %vm52_vm3 = vcmp.ge.f32.partialorder %v48_v27, 0.0  ;;  %v58_v33 = vsel %vm50_vm1, %v46_v23, %v54_v29  ;;  %v56_v34 = vmul.f32 0.01, %v48_v27 }
   0xb   :  { %v88_v35 = vadd.f32 %v84_v24, %v58_v33  ;;  %v59_v36 = vsel %vm51_vm2, %v47_v25, %v55_v32 }
   0xc   :  { %91 = vst [vmem:[%s192_s6] sm:$0xff] %v87_v31  ;;  %v89_v37 = vadd.f32 %v85_v26, %v59_v36  ;;  %v60_v38 = vsel %vm52_vm3, %v48_v27, %v56_v34 }
   0xd   :  { %92 = vst [vmem:[%s192_s6 + $0x8] sm:$0xff] %v88_v35  ;;  %v90_v39 = vadd.f32 %v86_v30, %v60_v38 }
   0xe   :  { %93 = vst [vmem:[%s192_s6 + $0x10] sm:$0xff] %v89_v37 }
   0xf   :  { %94 = vst [vmem:[%s192_s6 + $0x18] sm:$0xff] %v90_v39 }

// kernel: _lambda_.21
= control target key start
LH: loop header
LB: loop body
LE: loop exit
PB: predicated region body
PF: predicated region fallthrough
CT: control target
= control target key end

     0   :  { %s174_s0 = inlined_call_operand.vmem [shape: f32[32,128], index: 0, kind: input, shape index: {}]   ;;  %s175_s1 = inlined_call_operand.vmem [shape: f32[1,128], index: 1, kind: input, shape index: {}]   ;;  %s176_s2 = inlined_call_operand.vmem [shape: f32[1,128], index: 2, kind: input, shape index: {}]   ;;  %s177_s3 = inlined_call_operand.vmem [shape: f32[32,128], index: 3, kind: input, shape index: {}]   ;;  %s178_s4 = inlined_call_operand.vmem [shape: f32[1,128], index: 4, kind: input, shape index: {}]   ;;  %s179_s5 = inlined_call_operand.vmem [shape: f32[1,128], index: 5, kind: input, shape index: {}]   ;;  %s180_s6 = inlined_call_operand.vmem [shape: f32[32,128], index: 6, kind: output, shape index: {}]  }
   0x1   :  { %v23_v0 = vld [vmem:[%s177_s3] sm:$0xff]  ;;  %v24_v8 = vld [vmem:[%s177_s3 + $0x8] sm:$0xff]  ;;  %v25_v10 = vld [vmem:[%s177_s3 + $0x10] sm:$0xff] }
   0x2   :  { %v87_v1 = vld [vmem:[%s178_s4] ss:$0 sm:$0xff]  ;;  %v50_v9 = vld [vmem:[%s174_s0 + $0x8] sm:$0xff]  ;;  %v51_v15 = vld [vmem:[%s174_s0 + $0x10] sm:$0xff] }
   0x3   :  { %v88_v2 = vld [vmem:[%s179_s5] ss:$0 sm:$0xff]  ;;  %v34_v3 = vmul.f32 %v87_v1, %v23_v0  ;;  %v35_v12 = vmul.f32 %v87_v1, %v24_v8  ;;  %v36_v14 = vmul.f32 %v87_v1, %v25_v10  ;;  %v26_v16 = vld [vmem:[%s177_s3 + $0x18] sm:$0xff] }
   0x4   :  { %v49_v4 = vld [vmem:[%s174_s0] sm:$0xff]  ;;  %v52_v17 = vld [vmem:[%s174_s0 + $0x18] sm:$0xff]  ;;  %v37_v20 = vmul.f32 %v87_v1, %v26_v16 }
   0x5   :  { %v89_v5 = vld [vmem:[%s175_s1] ss:$0 sm:$0xff]  ;;  %v45_v11 = vadd.f32 %v88_v2, %v34_v3  ;;  %v46_v22 = vadd.f32 %v88_v2, %v35_v12  ;;  %v47_v24 = vadd.f32 %v88_v2, %v36_v14 }
   0x6   :  { %v90_v6 = vld [vmem:[%s176_s2] ss:$0 sm:$0xff]  ;;  %v60_v7 = vmul.f32 %v89_v5, %v49_v4  ;;  %v61_v13 = vmul.f32 %v89_v5, %v50_v9  ;;  %v62_v19 = vmul.f32 %v89_v5, %v51_v15  ;;  %v63_v21 = vmul.f32 %v89_v5, %v52_v17 }
   0x7   :  { %v48_v27 = vadd.f32 %v88_v2, %v37_v20 }
   0x8   :  { %v71_v18 = vadd.f32 %v90_v6, %v60_v7  ;;  %v72_v23 = vadd.f32 %v90_v6, %v61_v13  ;;  %v73_v26 = vadd.f32 %v90_v6, %v62_v19  ;;  %v74_v28 = vadd.f32 %v90_v6, %v63_v21 }
   0xa   :  { %v75_v25 = vadd.f32 %v71_v18, %v45_v11  ;;  %v76_v29 = vadd.f32 %v72_v23, %v46_v22  ;;  %v77_v30 = vadd.f32 %v73_v26, %v47_v24  ;;  %v78_v31 = vadd.f32 %v74_v28, %v48_v27 }
   0xc   :  { %79 = vst [vmem:[%s180_s6] sm:$0xff] %v75_v25  ;;  %80 = vst [vmem:[%s180_s6 + $0x8] sm:$0xff] %v76_v29 }
   0xd   :  { %81 = vst [vmem:[%s180_s6 + $0x10] sm:$0xff] %v77_v30  ;;  %82 = vst [vmem:[%s180_s6 + $0x18] sm:$0xff] %v78_v31 }

// kernel: _lambda_.22
= control target key start
LH: loop header
LB: loop body
LE: loop exit
PB: predicated region body
PF: predicated region fallthrough
CT: control target
= control target key end

     0   :  { %s1127_s18 = smov 0   ;;  %s1129_s19 = smov 0   ;;  %s1349_s0 = inlined_call_operand.vmem [shape: f32[128,384], index: 0, kind: input, shape index: {}]   ;;  %s1350_s1 = inlined_call_operand.vmem [shape: bf16[384,128], index: 1, kind: input, shape index: {}]   ;;  %s1351_s2 = inlined_call_operand.vmem [shape: f32[1,384], index: 2, kind: input, shape index: {}]   ;;  %s1352_s3 = inlined_call_operand.vmem [shape: f32[1,384], index: 3, kind: input, shape index: {}]   ;;  %s1353_s4 = inlined_call_operand.vmem [shape: f32[1,128], index: 4, kind: input, shape index: {}]   ;;  %s1354_s5 = inlined_call_operand.vmem [shape: f32[128,128], index: 5, kind: output, shape index: {}]  }
   0x1   :  { %s1131_s20 = smov 0   ;;  %s1133_s21 = smov 0  }
   0x2   :  { %s1135_s22 = smov 0  }
   0x3 LB: > { %s27_s23 = sadd.s32 1, %s1090_s21  ;;  %p50_p1 = scmp.ne.s32.totalorder %s1082_s19, %s1078_s18  ;;  %s1094_s22 = sphi %s1135_s22, %s15_s22   ;;  %s1090_s21 = sphi %s1133_s21, %s1358_s21   ;;  %s1086_s20 = sphi %s1131_s20, %s1357_s20   ;;  %s1082_s19 = sphi %s1129_s19, %s1356_s19   ;;  %s1078_s18 = sphi %s1127_s18, %s1355_s18  }
   0x4   : > { %p28_p0 = scmp.ge.s32.totalorder %s27_s23, 3  ;;  %p51_p2 = scmp.eq.s32.totalorder %s1094_s22, 0 }
   0x5   : > { %s43_s25 = sadd.s32 1, %s1082_s19  ;;  %p919_p5 = scmp.ge.s32.totalorder %s1094_s22, 3 }
   0x6   : > { %s1360_s23 = smov (%p28_p0, %s27_s23), 0  ;;  %p52_p3 = por %p51_p2, %p50_p1 }
   0x7   : > { %s39_s24 = ssub.s32 %s1090_s21, %s1360_s23  ;;  %216 = sbr.rel (%p919_p5) target bundleno = 24 (0x18), region = 20 }
   0x8   : > { %p41_p4 = scmp.eq.s32.totalorder %s39_s24, 0 }
   0xa   : > { %s1162_s26 = scalar_select %p41_p4, %s1082_s19, %s43_s25  }
   0xc   : > { %219 = sbr.rel (!%p52_p3) target bundleno = 24 (0x18), region = 24  ;;  %s221_s27 = sand.u32 (%p52_p3), 1, %s1082_s19  }
   0xd   : > { %s921_s28 = sshll.u32 (%p52_p3), %s1090_s21, 3  ;;  %s920_s29 = sshll.u32 (%p52_p3), %s221_s27, 7 }
   0xe   : > { %s1170_s7 = scalar_lea.vmem (%p52_p3), %s1349_s0, %s921_s28  ;;  %s223_s8 = scalar_lea.vmem (%p52_p3), [#allocation3], %s920_s29 }
   0xf   : > { %v287_v0 = vld [vmem:[%s1170_s7] sm:$0xff] (%p52_p3)  ;;  %v289_v1 = vld [vmem:[%s1170_s7 + $0x18] sm:$0xff] (%p52_p3)  ;;  %v291_v2 = vld [vmem:[%s1170_s7 + $0x30] sm:$0xff] (%p52_p3) }
  0x10   : > { %288 = vst [vmem:[%s223_s8] sm:$0xff] (%p52_p3), %v287_v0  ;;  %290 = vst [vmem:[%s223_s8 + $0x8] sm:$0xff] (%p52_p3), %v289_v1  ;;  %v293_v3 = vld [vmem:[%s1170_s7 + $0x48] sm:$0xff] (%p52_p3)  ;;  %v295_v4 = vld [vmem:[%s1170_s7 + $0x60] sm:$0xff] (%p52_p3) }
  0x11   : > { %292 = vst [vmem:[%s223_s8 + $0x10] sm:$0xff] %v291_v2  ;;  %v297_v5 = vld [vmem:[%s1170_s7 + $0x78] sm:$0xff]  ;;  %294 = vst [vmem:[%s223_s8 + $0x18] sm:$0xff] %v293_v3  ;;  %v299_v6 = vld [vmem:[%s1170_s7 + $0x90] sm:$0xff] }
  0x12   : > { %296 = vst [vmem:[%s223_s8 + $0x20] sm:$0xff] %v295_v4  ;;  %298 = vst [vmem:[%s223_s8 + $0x28] sm:$0xff] %v297_v5  ;;  %v301_v7 = vld [vmem:[%s1170_s7 + $0xa8] sm:$0xff]  ;;  %v303_v8 = vld [vmem:[%s1170_s7 + $0xc0] sm:$0xff] }
  0x13   : > { %300 = vst [vmem:[%s223_s8 + $0x30] sm:$0xff] %v299_v6  ;;  %302 = vst [vmem:[%s223_s8 + $0x38] sm:$0xff] %v301_v7  ;;  %v305_v9 = vld [vmem:[%s1170_s7 + $0xd8] sm:$0xff]  ;;  %v307_v10 = vld [vmem:[%s1170_s7 + $0xf0] sm:$0xff] }
  0x14   : > { %304 = vst [vmem:[%s223_s8 + $0x40] sm:$0xff] %v303_v8  ;;  %v309_v11 = vld [vmem:[%s1170_s7 + $0x108] sm:$0xff]  ;;  %306 = vst [vmem:[%s223_s8 + $0x48] sm:$0xff] %v305_v9  ;;  %v311_v12 = vld [vmem:[%s1170_s7 + $0x120] sm:$0xff] }
  0x15   : > { %308 = vst [vmem:[%s223_s8 + $0x50] sm:$0xff] %v307_v10  ;;  %310 = vst [vmem:[%s223_s8 + $0x58] sm:$0xff] %v309_v11  ;;  %v313_v13 = vld [vmem:[%s1170_s7 + $0x138] sm:$0xff]  ;;  %v315_v14 = vld [vmem:[%s1170_s7 + $0x150] sm:$0xff] }
  0x16   : > { %312 = vst [vmem:[%s223_s8 + $0x60] sm:$0xff] %v311_v12  ;;  %314 = vst [vmem:[%s223_s8 + $0x68] sm:$0xff] %v313_v13  ;;  %v317_v15 = vld [vmem:[%s1170_s7 + $0x168] sm:$0xff] }
  0x17   : > { %316 = vst [vmem:[%s223_s8 + $0x70] sm:$0xff] %v315_v14  ;;  %318 = vst [vmem:[%s223_s8 + $0x78] sm:$0xff] %v317_v15 }
  0x18 PF: > { %p922_p6 = scmp.ge.s32.totalorder %s1094_s22, 1  ;;  %p347_p7 = scmp.lt.s32.totalorder %s1094_s22, 4 }
  0x1a   : > { %p348_p8 = pnand %p922_p6, %p347_p7 }
  0x1b   : > { %s354_s9 = sand.u32 (!%p348_p8), 1, %s1078_s18   ;;  %s924_s10 = sshll.u32 (!%p348_p8), %s1086_s20, 4 }
  0x1c   : > { %351 = sbr.rel (%p348_p8) target bundleno = 301 (0x12d), region = 74  ;;  %s923_s11 = sshll.u32 (!%p348_p8), %s354_s9, 7 }
  0x1d   : > { %p403_p9 = scmp.lt.s32.totalorder (!%p348_p8), %s924_s10, 47  ;;  %p411_p10 = scmp.lt.s32.totalorder (!%p348_p8), %s1086_s20, 2 }
  0x1e   : > { %s1209_s29 = scalar_lea.vmem (!%p348_p8), [#allocation3], %s923_s11  ;;  %p926_p11 = scmp.ne.s32.totalorder (!%p348_p8), %s1086_s20, 0 }
  0x21   : > { %s1362_s10 = smov (!%p403_p9, %s924_s10), 47  ;;  %433 = sbr.rel (%p926_p11) target bundleno = 47 (0x2f), region = 82 }
  0x22   : > { %s1194_s12 = scalar_select %p411_p10, %s1086_s20, 2 }
  0x23   : > { %s925_s13 = sshll.u32 %s1362_s10, 2 }
  0x24   : > { %s1199_s16 = scalar_lea.vmem %s1350_s1, %s925_s13  ;;  %s413_s25 = scalar_lea.vmem %s1351_s2, %s1194_s12 }
  0x25   : > { %s416_s28 = scalar_lea.vmem %s1352_s3, %s1194_s12 }
  0x26   : > { %v1096_v16 = vmov 0.0  }
  0x27   : > { %434 = vst [vmem:[#allocation2 + $0x30] sm:$0xff] %v1096_v16  ;;  %435 = vst [vmem:[#allocation2] sm:$0xff] %v1096_v16 }
  0x28   : > { %436 = vst [vmem:[#allocation2 + $0x58] sm:$0xff] %v1096_v16  ;;  %437 = vst [vmem:[#allocation2 + $0x18] sm:$0xff] %v1096_v16 }
  0x29   : > { %438 = vst [vmem:[#allocation2 + $0x50] sm:$0xff] %v1096_v16  ;;  %439 = vst [vmem:[#allocation2 + $0x68] sm:$0xff] %v1096_v16 }
  0x2a   : > { %440 = vst [vmem:[#allocation2 + $0x8] sm:$0xff] %v1096_v16  ;;  %441 = vst [vmem:[#allocation2 + $0x48] sm:$0xff] %v1096_v16 }
  0x2b   : > { %442 = vst [vmem:[#allocation2 + $0x40] sm:$0xff] %v1096_v16  ;;  %443 = vst [vmem:[#allocation2 + $0x20] sm:$0xff] %v1096_v16 }
  0x2c   : > { %444 = vst [vmem:[#allocation2 + $0x10] sm:$0xff] %v1096_v16  ;;  %445 = vst [vmem:[#allocation2 + $0x38] sm:$0xff] %v1096_v16 }
  0x2d   : > { %446 = vst [vmem:[#allocation2 + $0x60] sm:$0xff] %v1096_v16  ;;  %447 = vst [vmem:[#allocation2 + $0x70] sm:$0xff] %v1096_v16 }
  0x2e   : > { %448 = vst [vmem:[#allocation2 + $0x78] sm:$0xff] %v1096_v16  ;;  %449 = vst [vmem:[#allocation2 + $0x28] sm:$0xff] %v1096_v16 }
  0x2f PF: > { %v1048_v17 = vld [vmem:[%s1199_s16 + $0x38] sm:$0xff]   ;;  %v1049_v18 = vld [vmem:[%s1199_s16 + $0x30] sm:$0xff]   ;;  %v1050_v19 = vld [vmem:[%s1199_s16 + $0x28] sm:$0xff]   ;;  %p937_p12 = scmp.ne.s32.totalorder %s1086_s20, 2 }
  0x30   : > { %959 = vmatprep.subr.bf16.mxu0 %v1048_v17  ;;  %991 = vmatprep.subr.bf16.mxu1 %v1048_v17  ;;  %v1051_v20 = vld [vmem:[%s1199_s16 + $0x20] sm:$0xff]   ;;  %v451_v22 = vld [vmem:[%s1209_s29 + $0x8] sm:$0xff]  ;;  %v1052_v33 = vld [vmem:[%s1199_s16 + $0x18] sm:$0xff]  }
  0x31   : > { %960 = vmatpush3.bf16.msra.mxu0 %v1048_v17  ;;  %999 = vmatpush3.bf16.msra.mxu1 %v1048_v17  ;;  %v450_v21 = vld [vmem:[%s1209_s29] sm:$0xff]  ;;  %v459_v28 = vld [vmem:[%s1209_s29 + $0x48] sm:$0xff]  ;;  %v1053_v38 = vld [vmem:[%s1199_s16 + $0x10] sm:$0xff]  }
  0x32   : > { %961 = vmatprep.subr.bf16.mxu0 %v1049_v18  ;;  %992 = vmatprep.subr.bf16.mxu1 %v1049_v18  ;;  %v1223_v23 = vld [vmem:[%s413_s25] ss:$0 sm:$0xff]  ;;  %v1054_v39 = vld [vmem:[%s1199_s16 + $0x8] sm:$0xff]   ;;  %v452_v40 = vld [vmem:[%s1209_s29 + $0x10] sm:$0xff] }
  0x33   : > { %v473_v24 = vmul.f32 %v1223_v23, %v450_v21  ;;  %v474_v25 = vmul.f32 %v1223_v23, %v451_v22  ;;  %v1232_v26 = vld [vmem:[%s416_s28] ss:$0 sm:$0xff]  ;;  %v482_v30 = vmul.f32 %v1223_v23, %v459_v28  ;;  %v453_v41 = vld [vmem:[%s1209_s29 + $0x18] sm:$0xff]  ;;  %v460_v42 = vld [vmem:[%s1209_s29 + $0x50] sm:$0xff]  ;;  %v475_v48 = vmul.f32 %v1223_v23, %v452_v40 }
  0x34   : > { %v458_v27 = vld [vmem:[%s1209_s29 + $0x40] sm:$0xff]  ;;  %v461_v43 = vld [vmem:[%s1209_s29 + $0x58] sm:$0xff]  ;;  %v455_v45 = vld [vmem:[%s1209_s29 + $0x28] sm:$0xff]  ;;  %v476_v49 = vmul.f32 %v1223_v23, %v453_v41  ;;  %v483_v50 = vmul.f32 %v1223_v23, %v460_v42 }
  0x35   : > { %962 = vmatpush3.bf16.msra.mxu0 %v1049_v18  ;;  %1000 = vmatpush3.bf16.msra.mxu1 %v1049_v18  ;;  %v481_v29 = vmul.f32 %v1223_v23, %v458_v27  ;;  %v496_v31 = vadd.f32 %v1232_v26, %v473_v24  ;;  %v497_v32 = vadd.f32 %v1232_v26, %v474_v25  ;;  %v454_v44 = vld [vmem:[%s1209_s29 + $0x20] sm:$0xff]  ;;  %v463_v47 = vld [vmem:[%s1209_s29 + $0x68] sm:$0xff]  ;;  %v456_v62 = vld [vmem:[%s1209_s29 + $0x30] sm:$0xff] }
  0x36   : > { %963 = vmatprep.subr.bf16.mxu0 %v1050_v19  ;;  %993 = vmatprep.subr.bf16.mxu1 %v1050_v19  ;;  %v505_v35 = vadd.f32 %v1232_v26, %v482_v30  ;;  %v462_v46 = vld [vmem:[%s1209_s29 + $0x60] sm:$0xff]  ;;  %v484_v51 = vmul.f32 %v1223_v23, %v461_v43  ;;  %v477_v52 = vmul.f32 %v1223_v23, %v454_v44  ;;  %v457_v2 = vld [vmem:[%s1209_s29 + $0x38] sm:$0xff]  ;;  %v464_v3 = vld [vmem:[%s1209_s29 + $0x70] sm:$0xff] }
  0x37   : > { %v504_v34 = vadd.f32 %v1232_v26, %v481_v29  ;;  %v528_v36 = vpack.c.bf16 %v497_v32, %v496_v31  ;;  %v478_v53 = vmul.f32 %v1223_v23, %v455_v45  ;;  %v485_v54 = vmul.f32 %v1223_v23, %v462_v46  ;;  %v1055_v56 = vld [vmem:[%s1199_s16] sm:$0xff]   ;;  %v465_v4 = vld [vmem:[%s1209_s29 + $0x78] sm:$0xff]  ;;  %v518_v41 = vld [vmem:[#allocation2 + $0x8] sm:$0xff] }
  0x38   : > { %v486_v55 = vmul.f32 %v1223_v23, %v463_v47  ;;  %v498_v57 = vadd.f32 %v1232_v26, %v475_v48  ;;  %v499_v58 = vadd.f32 %v1232_v26, %v476_v49  ;;  %v506_v59 = vadd.f32 %v1232_v26, %v483_v50  ;;  %v520_v24 = vld [vmem:[#allocation2 + $0x40] sm:$0xff]  ;;  %v515_v30 = vld [vmem:[#allocation2 + $0x18] sm:$0xff]  ;;  %v516_v47 = vld [vmem:[#allocation2 + $0x50] sm:$0xff] }
  0x39   : > { %964 = vmatpush3.bf16.msra.mxu0 %v1050_v19  ;;  %1001 = vmatpush3.bf16.msra.mxu1 %v1050_v19  ;;  %v532_v37 = vpack.c.bf16 %v505_v35, %v504_v34  ;;  %v507_v60 = vadd.f32 %v1232_v26, %v484_v51  ;;  %v500_v61 = vadd.f32 %v1232_v26, %v477_v52  ;;  %v514_v19 = vld [vmem:[#allocation2 + $0x58] sm:$0xff]  ;;  %v513_v35 = vld [vmem:[#allocation2] sm:$0xff] }
  0x3a   : > { %965 = vmatprep.subr.bf16.mxu0 %v1051_v20  ;;  %994 = vmatprep.subr.bf16.mxu1 %v1051_v20  ;;  %v501_v63 = vadd.f32 %v1232_v26, %v478_v53  ;;  %v508_v0 = vadd.f32 %v1232_v26, %v485_v54  ;;  %v509_v1 = vadd.f32 %v1232_v26, %v486_v55  ;;  %v523_v31 = vld [vmem:[#allocation2 + $0x38] sm:$0xff]  ;;  %v524_v48 = vld [vmem:[#allocation2 + $0x60] sm:$0xff]  ;;  %v519_v53 = vld [vmem:[#allocation2 + $0x48] sm:$0xff] }
  0x3b   : > { %975 = vmatprep.mubr.bf16.mxu0 %v528_v36  ;;  %983 = vmatprep.mubr.bf16.mxu1 %v532_v37  ;;  %v529_v5 = vpack.c.bf16 %v499_v58, %v498_v57  ;;  %v479_v6 = vmul.f32 %v1223_v23, %v456_v62  ;;  %v533_v7 = vpack.c.bf16 %v507_v60, %v506_v59  ;;  %v521_v36 = vld [vmem:[#allocation2 + $0x20] sm:$0xff]  ;;  %v526_v42 = vld [vmem:[#allocation2 + $0x78] sm:$0xff]  ;;  %v527_v54 = vld [vmem:[#allocation2 + $0x28] sm:$0xff] }
  0x3c   : > { %v480_v8 = vmul.f32 %v1223_v23, %v457_v2  ;;  %v487_v9 = vmul.f32 %v1223_v23, %v464_v3  ;;  %v488_v10 = vmul.f32 %v1223_v23, %v465_v4  ;;  %v530_v11 = vpack.c.bf16 %v501_v63, %v500_v61  ;;  %v512_v23 = vld [vmem:[#allocation2 + $0x30] sm:$0xff]  ;;  %v517_v59 = vld [vmem:[#allocation2 + $0x68] sm:$0xff] }
  0x3d   : > { %966 = vmatpush3.bf16.msra.mxu0 %v1051_v20  ;;  %1002 = vmatpush3.bf16.msra.mxu1 %v1051_v20  ;;  %v534_v12 = vpack.c.bf16 %v509_v1, %v508_v0  ;;  %v502_v13 = vadd.f32 %v1232_v26, %v479_v6  ;;  %v522_v20 = vld [vmem:[#allocation2 + $0x10] sm:$0xff] }
  0x3e   : > { %967 = vmatprep.subr.bf16.mxu0 %v1052_v33  ;;  %995 = vmatprep.subr.bf16.mxu1 %v1052_v33  ;;  %v503_v14 = vadd.f32 %v1232_v26, %v480_v8  ;;  %v510_v15 = vadd.f32 %v1232_v26, %v487_v9  ;;  %v511_v16 = vadd.f32 %v1232_v26, %v488_v10  ;;  %v525_v60 = vld [vmem:[#allocation2 + $0x70] sm:$0xff] }
  0x40   : > { %v531_v17 = vpack.c.bf16 %v503_v14, %v502_v13  ;;  %v535_v18 = vpack.c.bf16 %v511_v16, %v510_v15 }
  0x41   : > { %968 = vmatpush3.bf16.msra.mxu0 %v1052_v33  ;;  %1003 = vmatpush3.bf16.msra.mxu1 %v1052_v33 }
  0x42   : > { %969 = vmatprep.subr.bf16.mxu0 %v1053_v38  ;;  %996 = vmatprep.subr.bf16.mxu1 %v1053_v38 }
  0x45   : > { %970 = vmatpush3.bf16.msra.mxu0 %v1053_v38  ;;  %1004 = vmatpush3.bf16.msra.mxu1 %v1053_v38 }
  0x46   : > { %971 = vmatprep.subr.bf16.mxu0 %v1054_v39  ;;  %997 = vmatprep.subr.bf16.mxu1 %v1054_v39 }
  0x49   : > { %972 = vmatpush3.bf16.msra.mxu0 %v1054_v39  ;;  %1005 = vmatpush3.bf16.msra.mxu1 %v1054_v39 }
  0x4a   : > { %973 = vmatprep.subr.bf16.mxu0 %v1055_v56  ;;  %998 = vmatprep.subr.bf16.mxu1 %v1055_v56 }
  0x4d   : > { %974 = vmatpush3.bf16.msra.mxu0 %v1055_v56  ;;  %1006 = vmatpush3.bf16.msra.mxu1 %v1055_v56 }
  0x50   : > { %976 = vmatmul.mubr.bf16.vlgmr.msra.gmra.mxu0 %v529_v5  ;;  %984 = vmatmul.mubr.bf16.vlgmr.msra.gmra.mxu1 %v533_v7 }
  0x51   : > { %979 = vmatprep.mubr.bf16.mxu0 %v530_v11  ;;  %987 = vmatprep.mubr.bf16.mxu1 %v534_v12 }
  0x58   : > { %980 = vmatmul.mubr.bf16.gmra.mxu0 %v531_v17  ;;  %988 = vmatmul.mubr.bf16.gmra.mxu1 %v535_v18 }
 0x110   : > { %v977_v21 = vpop.f32.mrf.mxu0  ;;  %v985_v22 = vpop.f32.mrf.mxu1 }
 0x111   : > { %v699_v25 = vadd.f32 %v977_v21, %v514_v19  ;;  %v707_v27 = vadd.f32 %v985_v22, %v522_v20 }
 0x112   : > { %v634_v28 = vpop.f32.mrf.mxu0  ;;  %v666_v29 = vpop.f32.mrf.mxu1 }
 0x113   : > { %715 = vst [vmem:[#allocation2 + $0x58] sm:$0xff] %v699_v25  ;;  %723 = vst [vmem:[#allocation2 + $0x10] sm:$0xff] %v707_v27  ;;  %v697_v26 = vadd.f32 %v634_v28, %v512_v23  ;;  %v705_v32 = vadd.f32 %v666_v29, %v520_v24 }
 0x114   : > { %v978_v33 = vpop.f32.mrf.mxu0  ;;  %v986_v34 = vpop.f32.mrf.mxu1 }
 0x115   : > { %713 = vst [vmem:[#allocation2 + $0x30] sm:$0xff] %v697_v26  ;;  %721 = vst [vmem:[#allocation2 + $0x40] sm:$0xff] %v705_v32  ;;  %v700_v37 = vadd.f32 %v978_v33, %v515_v30  ;;  %v708_v38 = vadd.f32 %v986_v34, %v523_v31 }
 0x116   : > { %v637_v39 = vpop.f32.mrf.mxu0  ;;  %v669_v40 = vpop.f32.mrf.mxu1 }
 0x117   : > { %716 = vst [vmem:[#allocation2 + $0x18] sm:$0xff] %v700_v37  ;;  %724 = vst [vmem:[#allocation2 + $0x38] sm:$0xff] %v708_v38  ;;  %v698_v43 = vadd.f32 %v637_v39, %v513_v35  ;;  %v706_v44 = vadd.f32 %v669_v40, %v521_v36 }
 0x118   : > { %v981_v45 = vpop.f32.mrf.mxu0  ;;  %v989_v46 = vpop.f32.mrf.mxu1 }
 0x119   : > { %714 = vst [vmem:[#allocation2] sm:$0xff] %v698_v43  ;;  %722 = vst [vmem:[#allocation2 + $0x20] sm:$0xff] %v706_v44  ;;  %v703_v49 = vadd.f32 %v981_v45, %v518_v41  ;;  %v711_v50 = vadd.f32 %v989_v46, %v526_v42 }
 0x11a   : > { %v650_v51 = vpop.f32.mrf.mxu0  ;;  %v682_v52 = vpop.f32.mrf.mxu1 }
 0x11b   : > { %719 = vst [vmem:[#allocation2 + $0x8] sm:$0xff] %v703_v49  ;;  %727 = vst [vmem:[#allocation2 + $0x78] sm:$0xff] %v711_v50  ;;  %v701_v55 = vadd.f32 %v650_v51, %v516_v47  ;;  %v709_v56 = vadd.f32 %v682_v52, %v524_v48 }
 0x11c   : > { %v982_v57 = vpop.f32.mrf.mxu0  ;;  %v990_v58 = vpop.f32.mrf.mxu1 }
 0x11d   : > { %717 = vst [vmem:[#allocation2 + $0x50] sm:$0xff] %v701_v55  ;;  %725 = vst [vmem:[#allocation2 + $0x60] sm:$0xff] %v709_v56  ;;  %v704_v61 = vadd.f32 %v982_v57, %v519_v53  ;;  %v712_v62 = vadd.f32 %v990_v58, %v527_v54  ;;  %732 = sbr.rel (%p937_p12) target bundleno = 301 (0x12d), region = 86 }
 0x11e   : > { %v653_v63 = vpop.f32.mrf.mxu0  ;;  %v685_v0 = vpop.f32.mrf.mxu1 }
 0x11f   : > { %720 = vst [vmem:[#allocation2 + $0x48] sm:$0xff] %v704_v61  ;;  %728 = vst [vmem:[#allocation2 + $0x28] sm:$0xff] %v712_v62  ;;  %v702_v1 = vadd.f32 %v653_v63, %v517_v59  ;;  %v710_v2 = vadd.f32 %v685_v0, %v525_v60 }
 0x121   : > { %718 = vst [vmem:[#allocation2 + $0x68] sm:$0xff] %v702_v1  ;;  %726 = vst [vmem:[#allocation2 + $0x70] sm:$0xff] %v710_v2 }
 0x122   : > { %v733_v3 = vld [vmem:[#allocation2 + $0x30] sm:$0xff]  ;;  %v938_v4 = vld [vmem:[%s1353_s4] ss:$0 sm:$0xff]  ;;  %v735_v8 = vld [vmem:[#allocation2 + $0x58] sm:$0xff] }
 0x123   : > { %v734_v5 = vld [vmem:[#allocation2] sm:$0xff]  ;;  %v756_v6 = vadd.f32 %v938_v4, %v733_v3  ;;  %v736_v9 = vld [vmem:[#allocation2 + $0x18] sm:$0xff]  ;;  %v758_v11 = vadd.f32 %v938_v4, %v735_v8  ;;  %v739_v15 = vld [vmem:[#allocation2 + $0x8] sm:$0xff] }
 0x124   : > { %v757_v7 = vadd.f32 %v938_v4, %v734_v5  ;;  %v737_v10 = vld [vmem:[#allocation2 + $0x50] sm:$0xff]  ;;  %v759_v12 = vadd.f32 %v938_v4, %v736_v9  ;;  %v762_v18 = vadd.f32 %v938_v4, %v739_v15  ;;  %v741_v20 = vld [vmem:[#allocation2 + $0x40] sm:$0xff]  ;;  %v744_v27 = vld [vmem:[#allocation2 + $0x38] sm:$0xff] }
 0x125   : > { %v760_v13 = vadd.f32 %v938_v4, %v737_v10  ;;  %772 = vst [vmem:[%s1354_s5] sm:$0xff] %v756_v6  ;;  %v742_v21 = vld [vmem:[#allocation2 + $0x20] sm:$0xff]  ;;  %v743_v22 = vld [vmem:[#allocation2 + $0x10] sm:$0xff]  ;;  %774 = vst [vmem:[%s1354_s5 + $0x10] sm:$0xff] %v758_v11  ;;  %v764_v23 = vadd.f32 %v938_v4, %v741_v20  ;;  %v767_v30 = vadd.f32 %v938_v4, %v744_v27 }
 0x126   : > { %v740_v16 = vld [vmem:[#allocation2 + $0x48] sm:$0xff]  ;;  %773 = vst [vmem:[%s1354_s5 + $0x8] sm:$0xff] %v757_v7  ;;  %775 = vst [vmem:[%s1354_s5 + $0x18] sm:$0xff] %v759_v12  ;;  %v765_v24 = vadd.f32 %v938_v4, %v742_v21  ;;  %v766_v25 = vadd.f32 %v938_v4, %v743_v22  ;;  %v745_v28 = vld [vmem:[#allocation2 + $0x60] sm:$0xff] }
 0x127   : > { %v763_v19 = vadd.f32 %v938_v4, %v740_v16  ;;  %776 = vst [vmem:[%s1354_s5 + $0x20] sm:$0xff] %v760_v13  ;;  %778 = vst [vmem:[%s1354_s5 + $0x30] sm:$0xff] %v762_v18  ;;  %v768_v31 = vadd.f32 %v938_v4, %v745_v28  ;;  %v747_v32 = vld [vmem:[#allocation2 + $0x78] sm:$0xff]  ;;  %v748_v33 = vld [vmem:[#allocation2 + $0x28] sm:$0xff] }
 0x128   : > { %v738_v14 = vld [vmem:[#allocation2 + $0x68] sm:$0xff]  ;;  %v746_v29 = vld [vmem:[#allocation2 + $0x70] sm:$0xff]  ;;  %780 = vst [vmem:[%s1354_s5 + $0x40] sm:$0xff] %v764_v23  ;;  %781 = vst [vmem:[%s1354_s5 + $0x48] sm:$0xff] %v765_v24  ;;  %v770_v34 = vadd.f32 %v938_v4, %v747_v32  ;;  %v771_v35 = vadd.f32 %v938_v4, %v748_v33 }
 0x129   : > { %v761_v17 = vadd.f32 %v938_v4, %v738_v14  ;;  %779 = vst [vmem:[%s1354_s5 + $0x38] sm:$0xff] %v763_v19  ;;  %v769_v26 = vadd.f32 %v938_v4, %v746_v29  ;;  %782 = vst [vmem:[%s1354_s5 + $0x50] sm:$0xff] %v766_v25 }
 0x12a   : > { %783 = vst [vmem:[%s1354_s5 + $0x58] sm:$0xff] %v767_v30  ;;  %784 = vst [vmem:[%s1354_s5 + $0x60] sm:$0xff] %v768_v31 }
 0x12b   : > { %777 = vst [vmem:[%s1354_s5 + $0x28] sm:$0xff] %v761_v17  ;;  %785 = vst [vmem:[%s1354_s5 + $0x68] sm:$0xff] %v769_v26 }
 0x12c   : > { %786 = vst [vmem:[%s1354_s5 + $0x70] sm:$0xff] %v770_v34  ;;  %787 = vst [vmem:[%s1354_s5 + $0x78] sm:$0xff] %v771_v35 }
 0x12d PF: > { %s15_s22 = sadd.s32 1, %s1094_s22   ;;  %s1355_s18 = smov %s1082_s19 }
 0x12e   : > { %p12_p13 = scmp.ge.s32.totalorder %s15_s22, 5   ;;  %s1356_s19 = smov %s1162_s26 }
 0x12f   : > { %s1357_s20 = smov %s1090_s21  ;;  %s1358_s21 = smov %s1360_s23 }
 0x130   :  { %14 = sbr.rel (!%p12_p13) target bundleno = 3 (0x3), region = 133 }

// kernel: _lambda_.23
= control target key start
LH: loop header
LB: loop body
LE: loop exit
PB: predicated region body
PF: predicated region fallthrough
CT: control target
= control target key end

     0   :  { %s305_s0 = inlined_call_operand.vmem [shape: f32[128,128], index: 0, kind: input, shape index: {}]   ;;  %s306_s1 = inlined_call_operand.vmem [shape: f32[1,128], index: 1, kind: input, shape index: {}]   ;;  %s307_s2 = inlined_call_operand.vmem [shape: f32[1,128], index: 2, kind: input, shape index: {}]   ;;  %s308_s3 = inlined_call_operand.vmem [shape: f32[128,128], index: 3, kind: output, shape index: {}]  }
   0x1   :  { %v14_v0 = vld [vmem:[%s305_s0] sm:$0xff]  ;;  %v15_v4 = vld [vmem:[%s305_s0 + $0x8] sm:$0xff]  ;;  %v16_v5 = vld [vmem:[%s305_s0 + $0x10] sm:$0xff] }
   0x2   :  { %v172_v1 = vld [vmem:[%s306_s1] ss:$0 sm:$0xff]  ;;  %v17_v6 = vld [vmem:[%s305_s0 + $0x18] sm:$0xff]  ;;  %v19_v11 = vld [vmem:[%s305_s0 + $0x28] sm:$0xff] }
   0x3   :  { %v177_v2 = vld [vmem:[%s307_s2] ss:$0 sm:$0xff]  ;;  %v37_v3 = vmul.f32 %v172_v1, %v14_v0  ;;  %v38_v7 = vmul.f32 %v172_v1, %v15_v4  ;;  %v39_v8 = vmul.f32 %v172_v1, %v16_v5  ;;  %v40_v9 = vmul.f32 %v172_v1, %v17_v6  ;;  %v20_v12 = vld [vmem:[%s305_s0 + $0x30] sm:$0xff]  ;;  %v21_v17 = vld [vmem:[%s305_s0 + $0x38] sm:$0xff] }
   0x4   :  { %v18_v10 = vld [vmem:[%s305_s0 + $0x20] sm:$0xff]  ;;  %v42_v15 = vmul.f32 %v172_v1, %v19_v11  ;;  %v43_v16 = vmul.f32 %v172_v1, %v20_v12  ;;  %v44_v21 = vmul.f32 %v172_v1, %v21_v17  ;;  %v23_v30 = vld [vmem:[%s305_s0 + $0x48] sm:$0xff]  ;;  %v24_v31 = vld [vmem:[%s305_s0 + $0x50] sm:$0xff] }
   0x5   :  { %v60_v13 = vadd.f32 %v177_v2, %v37_v3  ;;  %v41_v14 = vmul.f32 %v172_v1, %v18_v10  ;;  %v61_v18 = vadd.f32 %v177_v2, %v38_v7  ;;  %v62_v19 = vadd.f32 %v177_v2, %v39_v8  ;;  %v22_v25 = vld [vmem:[%s305_s0 + $0x40] sm:$0xff]  ;;  %v25_v43 = vld [vmem:[%s305_s0 + $0x58] sm:$0xff]  ;;  %v27_v45 = vld [vmem:[%s305_s0 + $0x68] sm:$0xff] }
   0x6   :  { %v63_v20 = vadd.f32 %v177_v2, %v40_v9  ;;  %v65_v24 = vadd.f32 %v177_v2, %v42_v15  ;;  %v66_v37 = vadd.f32 %v177_v2, %v43_v16  ;;  %v67_v38 = vadd.f32 %v177_v2, %v44_v21  ;;  %v26_v44 = vld [vmem:[%s305_s0 + $0x60] sm:$0xff]  ;;  %v28_v56 = vld [vmem:[%s305_s0 + $0x70] sm:$0xff]  ;;  %v29_v4 = vld [vmem:[%s305_s0 + $0x78] sm:$0xff] }
   0x7   :  { %vm76_vm0 = vcmp.ge.f32.partialorder %v60_v13, 0.0  ;;  %v92_v22 = vmul.f32 0.01, %v60_v13  ;;  %v64_v23 = vadd.f32 %v177_v2, %v41_v14  ;;  %vm77_vm1 = vcmp.ge.f32.partialorder %v61_v18, 0.0 }
   0x8   :  { %v93_v26 = vmul.f32 0.01, %v61_v18  ;;  %vm78_vm2 = vcmp.ge.f32.partialorder %v62_v19, 0.0  ;;  %v94_v27 = vmul.f32 0.01, %v62_v19  ;;  %vm79_vm3 = vcmp.ge.f32.partialorder %v63_v20, 0.0 }
   0x9   :  { %v108_v28 = vsel %vm76_vm0, %v60_v13, %v92_v22  ;;  %v95_v29 = vmul.f32 0.01, %v63_v20  ;;  %vm80_vm4 = vcmp.ge.f32.partialorder %v64_v23, 0.0  ;;  %v96_v34 = vmul.f32 0.01, %v64_v23 }
   0xa   :  { %124 = vst [vmem:[%s308_s3] sm:$0xff] %v108_v28  ;;  %v109_v32 = vsel %vm77_vm1, %v61_v18, %v93_v26  ;;  %v110_v33 = vsel %vm78_vm2, %v62_v19, %v94_v27  ;;  %vm81_vm5 = vcmp.ge.f32.partialorder %v65_v24, 0.0  ;;  %v97_v36 = vmul.f32 0.01, %v65_v24 }
   0xb   :  { %125 = vst [vmem:[%s308_s3 + $0x8] sm:$0xff] %v109_v32  ;;  %126 = vst [vmem:[%s308_s3 + $0x10] sm:$0xff] %v110_v33  ;;  %v111_v35 = vsel %vm79_vm3, %v63_v20, %v95_v29  ;;  %v112_v39 = vsel %vm80_vm4, %v64_v23, %v96_v34  ;;  %v45_v40 = vmul.f32 %v172_v1, %v22_v25  ;;  %vm82_vm6 = vcmp.ge.f32.partialorder %v66_v37, 0.0 }
   0xc   :  { %127 = vst [vmem:[%s308_s3 + $0x18] sm:$0xff] %v111_v35  ;;  %v46_v41 = vmul.f32 %v172_v1, %v23_v30  ;;  %v47_v42 = vmul.f32 %v172_v1, %v24_v31  ;;  %128 = vst [vmem:[%s308_s3 + $0x20] sm:$0xff] %v112_v39  ;;  %v113_v46 = vsel %vm81_vm5, %v65_v24, %v97_v36  ;;  %v98_v47 = vmul.f32 0.01, %v66_v37 }
   0xd   :  { %vm83_vm7 = vcmp.ge.f32.partialorder %v67_v38, 0.0  ;;  %129 = vst [vmem:[%s308_s3 + $0x28] sm:$0xff] %v113_v46  ;;  %v99_v48 = vmul.f32 0.01, %v67_v38  ;;  %v68_v49 = vadd.f32 %v177_v2, %v45_v40  ;;  %v48_v53 = vmul.f32 %v172_v1, %v25_v43 }
   0xe   :  { %v69_v50 = vadd.f32 %v177_v2, %v46_v41  ;;  %v70_v51 = vadd.f32 %v177_v2, %v47_v42  ;;  %v114_v52 = vsel %vm82_vm6, %v66_v37, %v98_v47  ;;  %v49_v54 = vmul.f32 %v172_v1, %v26_v44 }
   0xf   :  { %v50_v55 = vmul.f32 %v172_v1, %v27_v45  ;;  %130 = vst [vmem:[%s308_s3 + $0x30] sm:$0xff] %v114_v52  ;;  %v115_v57 = vsel %vm83_vm7, %v67_v38, %v99_v48  ;;  %vm84_vm8 = vcmp.ge.f32.partialorder %v68_v49, 0.0  ;;  %v100_v58 = vmul.f32 0.01, %v68_v49 }
  0x10   :  { %vm85_vm9 = vcmp.ge.f32.partialorder %v69_v50, 0.0  ;;  %131 = vst [vmem:[%s308_s3 + $0x38] sm:$0xff] %v115_v57  ;;  %v101_v59 = vmul.f32 0.01, %v69_v50  ;;  %vm86_vm10 = vcmp.ge.f32.partialorder %v70_v51, 0.0  ;;  %v71_v61 = vadd.f32 %v177_v2, %v48_v53 }
  0x11   :  { %v102_v60 = vmul.f32 0.01, %v70_v51  ;;  %v116_v62 = vsel %vm84_vm8, %v68_v49, %v100_v58  ;;  %v72_v63 = vadd.f32 %v177_v2, %v49_v54  ;;  %v73_v0 = vadd.f32 %v177_v2, %v50_v55 }
  0x12   :  { %v51_v3 = vmul.f32 %v172_v1, %v28_v56  ;;  %132 = vst [vmem:[%s308_s3 + $0x40] sm:$0xff] %v116_v62  ;;  %v117_v5 = vsel %vm85_vm9, %v69_v50, %v101_v59  ;;  %vm87_vm11 = vcmp.ge.f32.partialorder %v71_v61, 0.0  ;;  %v103_v7 = vmul.f32 0.01, %v71_v61 }
  0x13   :  { %v118_v6 = vsel %vm86_vm10, %v70_v51, %v102_v60  ;;  %133 = vst [vmem:[%s308_s3 + $0x48] sm:$0xff] %v117_v5  ;;  %vm88_vm12 = vcmp.ge.f32.partialorder %v72_v63, 0.0  ;;  %v104_v8 = vmul.f32 0.01, %v72_v63  ;;  %vm89_vm13 = vcmp.ge.f32.partialorder %v73_v0, 0.0 }
  0x14   :  { %134 = vst [vmem:[%s308_s3 + $0x50] sm:$0xff] %v118_v6  ;;  %v105_v9 = vmul.f32 0.01, %v73_v0  ;;  %v119_v10 = vsel %vm87_vm11, %v71_v61, %v103_v7  ;;  %v74_v11 = vadd.f32 %v177_v2, %v51_v3  ;;  %v52_v12 = vmul.f32 %v172_v1, %v29_v4 }
  0x15   :  { %135 = vst [vmem:[%s308_s3 + $0x58] sm:$0xff] %v119_v10  ;;  %v120_v13 = vsel %vm88_vm12, %v72_v63, %v104_v8 }
  0x16   :  { %v121_v14 = vsel %vm89_vm13, %v73_v0, %v105_v9  ;;  %136 = vst [vmem:[%s308_s3 + $0x60] sm:$0xff] %v120_v13  ;;  %vm90_vm14 = vcmp.ge.f32.partialorder %v74_v11, 0.0  ;;  %v106_v15 = vmul.f32 0.01, %v74_v11  ;;  %v75_v16 = vadd.f32 %v177_v2, %v52_v12 }
  0x17   :  { %137 = vst [vmem:[%s308_s3 + $0x68] sm:$0xff] %v121_v14 }
  0x18   :  { %v122_v17 = vsel %vm90_vm14, %v74_v11, %v106_v15  ;;  %vm91_vm15 = vcmp.ge.f32.partialorder %v75_v16, 0.0  ;;  %v107_v1 = vmul.f32 0.01, %v75_v16 }
  0x19   :  { %138 = vst [vmem:[%s308_s3 + $0x70] sm:$0xff] %v122_v17 }
  0x1a   :  { %v123_v18 = vsel %vm91_vm15, %v75_v16, %v107_v1 }
  0x1b   :  { %139 = vst [vmem:[%s308_s3 + $0x78] sm:$0xff] %v123_v18 }

// kernel: tile.57
= control target key start
LH: loop header
LB: loop body
LE: loop exit
PB: predicated region body
PF: predicated region fallthrough
CT: control target
= control target key end

     0   :  { %s20_s0 = inlined_call_operand.<no memory space> [shape: f32[], index: 0, kind: input, shape index: {}]   ;;  %s21_s1 = inlined_call_operand.vmem [shape: f32[144], index: 1, kind: output, shape index: {}]  }
   0x1   :  { %v2_v0 = vstv %s20_s0 }
   0x2   :  { %3 = vst [vmem:[%s21_s1] sm:$0x3] %v2_v0 }

// kernel: _lambda_.24
= control target key start
LH: loop header
LB: loop body
LE: loop exit
PB: predicated region body
PF: predicated region fallthrough
CT: control target
= control target key end

     0   :  { %s1215_s18 = smov 0   ;;  %s1217_s19 = smov 0   ;;  %s1579_s0 = inlined_call_operand.vmem [shape: f32[512,256], index: 0, kind: input, shape index: {}]   ;;  %s1580_s1 = inlined_call_operand.vmem [shape: bf16[256,128], index: 1, kind: input, shape index: {}]   ;;  %s1581_s2 = inlined_call_operand.vmem [shape: f32[1,256], index: 2, kind: input, shape index: {}]   ;;  %s1582_s3 = inlined_call_operand.vmem [shape: f32[1,256], index: 3, kind: input, shape index: {}]   ;;  %s1583_s4 = inlined_call_operand.vmem [shape: f32[1,128], index: 4, kind: input, shape index: {}]   ;;  %s1584_s5 = inlined_call_operand.vmem [shape: f32[512,128], index: 5, kind: output, shape index: {}]  }
   0x1   :  { %s1219_s20 = smov 0  }
   0x2 LB: > { %s27_s21 = sadd.s32 1, %s1179_s19  ;;  %p967_p0 = scmp.ge.s32.totalorder %s1183_s20, 1  ;;  %s1183_s20 = sphi %s1219_s20, %s15_s20   ;;  %s1179_s19 = sphi %s1217_s19, %s1586_s19   ;;  %s1175_s18 = sphi %s1215_s18, %s1585_s18  }
   0x3   : > { %p29_p1 = scmp.ge.s32.totalorder %s27_s21, 2  ;;  %p220_p2 = scmp.lt.s32.totalorder %s1183_s20, 3 }
   0x5   : > { %s1588_s21 = smov (%p29_p1, %s27_s21), 0  ;;  %p221_p3 = pnand %p967_p0, %p220_p2 }
   0x6   : > { %s968_s24 = sshll.u32 (!%p221_p3), %s1175_s18, 5 }
   0x7   : > { %224 = sbr.rel (%p221_p3) target bundleno = 305 (0x131), region = 40  ;;  %p260_p4 = scmp.lt.s32.totalorder (!%p221_p3), %s968_s24, 63 }
   0xc   : > { %v1145_v0 = vld [vmem:[%s1580_s1 + $0x78] sm:$0xff]   ;;  %v1147_v2 = vld [vmem:[%s1580_s1 + $0x70] sm:$0xff]   ;;  %v1149_v4 = vld [vmem:[%s1580_s1 + $0x68] sm:$0xff]   ;;  %v349_v5 = vlaneseq  ;;  %s1590_s24 = smov (!%p260_p4, %s968_s24), 63 }
   0xd   : > { %v1146_v1 = vld [vmem:[%s1580_s1 + $0x38] sm:$0xff]   ;;  %993 = vmatprep.subr.bf16.mxu0 %v1145_v0  ;;  %1105 = vmatprep.subr.bf16.mxu1 %v1145_v0  ;;  %v1148_v3 = vld [vmem:[%s1580_s1 + $0x30] sm:$0xff]   ;;  %v1150_v6 = vld [vmem:[%s1580_s1 + $0x28] sm:$0xff]   ;;  %s992_s12 = sshll.u32 %s1590_s24, 4  ;;  %s972_s17 = sshll.u32 %s1590_s24, 3 }
   0xe   : > { %994 = vmatpush3.bf16.msra.mxu0 %v1146_v1  ;;  %1113 = vmatpush3.bf16.msra.mxu1 %v1146_v1  ;;  %v1151_v7 = vld [vmem:[%s1580_s1 + $0x60] sm:$0xff]   ;;  %v350_v8 = vshrl.u32 %v349_v5, 7  ;;  %v1153_v10 = vld [vmem:[%s1580_s1 + $0x58] sm:$0xff]   ;;  %s1266_s22 = scalar_lea.vmem %s1579_s0, %s992_s12  ;;  %v1155_v14 = vld [vmem:[%s1580_s1 + $0x50] sm:$0xff]   ;;  %s1504_s26 = scalar_lea.vmem %s1584_s5, %s972_s17 }
   0xf   : > { %995 = vmatprep.subr.bf16.mxu0 %v1147_v2  ;;  %1106 = vmatprep.subr.bf16.mxu1 %v1147_v2  ;;  %v1152_v9 = vld [vmem:[%s1580_s1 + $0x20] sm:$0xff]   ;;  %v1154_v13 = vld [vmem:[%s1580_s1 + $0x18] sm:$0xff]   ;;  %v284_v15 = vld [vmem:[%s1266_s22 + $0x8] sm:$0xff] }
  0x10   : > { %v351_v11 = vsub.s32 0, %v350_v8  ;;  %v355_v12 = vsub.s32 1, %v350_v8  ;;  %v286_v16 = vld [vmem:[%s1266_s22 + $0x18] sm:$0xff]  ;;  %v347_v17 = vld [vmem:[%s1581_s2] sm:$0x3]  ;;  %v316_v21 = vld [vmem:[%s1266_s22 + $0x108] sm:$0xff] }
  0x11   : > { %v423_v20 = vld [vmem:[%s1582_s3] sm:$0x3]  ;;  %v318_v22 = vld [vmem:[%s1266_s22 + $0x118] sm:$0xff]  ;;  %v285_v26 = vld [vmem:[%s1266_s22 + $0x10] sm:$0xff] }
  0x12   : > { %996 = vmatpush3.bf16.msra.mxu0 %v1148_v3  ;;  %1114 = vmatpush3.bf16.msra.mxu1 %v1148_v3  ;;  %v1279_v18 = vrot.slane %v347_v17, %v351_v11  ;;  %v1281_v19 = vrot.slane %v347_v17, %v355_v12  ;;  %v1288_v23 = vrot.slane %v423_v20, %v351_v11  ;;  %v283_v25 = vld [vmem:[%s1266_s22] sm:$0xff]  ;;  %v1156_v27 = vld [vmem:[%s1580_s1 + $0x10] sm:$0xff]   ;;  %v1157_v33 = vld [vmem:[%s1580_s1 + $0x48] sm:$0xff]  }
  0x13   : > { %997 = vmatprep.subr.bf16.mxu0 %v1149_v4  ;;  %1107 = vmatprep.subr.bf16.mxu1 %v1149_v4  ;;  %v1290_v24 = vrot.slane %v423_v20, %v355_v12  ;;  %v315_v31 = vld [vmem:[%s1266_s22 + $0x100] sm:$0xff]  ;;  %v317_v32 = vld [vmem:[%s1266_s22 + $0x110] sm:$0xff]  ;;  %v288_v37 = vld [vmem:[%s1266_s22 + $0x28] sm:$0xff] }
  0x14   : > { %v360_v28 = vmul.f32 %v1281_v19, %v284_v15  ;;  %v362_v29 = vmul.f32 %v1281_v19, %v286_v16  ;;  %v392_v30 = vmul.f32 %v1281_v19, %v316_v21  ;;  %v394_v34 = vmul.f32 %v1281_v19, %v318_v22  ;;  %v290_v44 = vld [vmem:[%s1266_s22 + $0x38] sm:$0xff]  ;;  %v320_v45 = vld [vmem:[%s1266_s22 + $0x128] sm:$0xff]  ;;  %v1159_v50 = vld [vmem:[%s1580_s1 + $0x40] sm:$0xff]  }
  0x15   : > { %v359_v35 = vmul.f32 %v1279_v18, %v283_v25  ;;  %v361_v36 = vmul.f32 %v1279_v18, %v285_v26  ;;  %v391_v42 = vmul.f32 %v1279_v18, %v315_v31  ;;  %v393_v43 = vmul.f32 %v1279_v18, %v317_v32  ;;  %v322_v46 = vld [vmem:[%s1266_s22 + $0x138] sm:$0xff]  ;;  %v1158_v47 = vld [vmem:[%s1580_s1 + $0x8] sm:$0xff]   ;;  %v287_v57 = vld [vmem:[%s1266_s22 + $0x20] sm:$0xff] }
  0x16   : > { %998 = vmatpush3.bf16.msra.mxu0 %v1150_v6  ;;  %1115 = vmatpush3.bf16.msra.mxu1 %v1150_v6  ;;  %v436_v38 = vadd.f32 %v1290_v24, %v360_v28  ;;  %v438_v39 = vadd.f32 %v1290_v24, %v362_v29  ;;  %v468_v40 = vadd.f32 %v1290_v24, %v392_v30  ;;  %v289_v61 = vld [vmem:[%s1266_s22 + $0x30] sm:$0xff]  ;;  %v319_v62 = vld [vmem:[%s1266_s22 + $0x120] sm:$0xff]  ;;  %v292_v4 = vld [vmem:[%s1266_s22 + $0x48] sm:$0xff] }
  0x17   : > { %999 = vmatprep.subr.bf16.mxu0 %v1151_v7  ;;  %1108 = vmatprep.subr.bf16.mxu1 %v1151_v7  ;;  %v470_v41 = vadd.f32 %v1290_v24, %v394_v34  ;;  %v364_v49 = vmul.f32 %v1281_v19, %v288_v37  ;;  %v435_v52 = vadd.f32 %v1288_v23, %v359_v35  ;;  %v321_v63 = vld [vmem:[%s1266_s22 + $0x130] sm:$0xff]  ;;  %v1160_v0 = vld [vmem:[%s1580_s1] sm:$0xff]   ;;  %v294_v5 = vld [vmem:[%s1266_s22 + $0x58] sm:$0xff] }
  0x18   : > { %v500_v48 = vpack.c.bf16 %v438_v39, %v436_v38  ;;  %v437_v53 = vadd.f32 %v1288_v23, %v361_v36  ;;  %v366_v54 = vmul.f32 %v1281_v19, %v290_v44  ;;  %v396_v55 = vmul.f32 %v1281_v19, %v320_v45  ;;  %v324_v7 = vld [vmem:[%s1266_s22 + $0x148] sm:$0xff]  ;;  %v326_v8 = vld [vmem:[%s1266_s22 + $0x158] sm:$0xff]  ;;  %v291_v30 = vld [vmem:[%s1266_s22 + $0x40] sm:$0xff] }
  0x19   : > { %v516_v51 = vpack.c.bf16 %v470_v41, %v468_v40  ;;  %v398_v56 = vmul.f32 %v1281_v19, %v322_v46  ;;  %v467_v58 = vadd.f32 %v1288_v23, %v391_v42  ;;  %v469_v59 = vadd.f32 %v1288_v23, %v393_v43  ;;  %v293_v31 = vld [vmem:[%s1266_s22 + $0x50] sm:$0xff]  ;;  %v323_v34 = vld [vmem:[%s1266_s22 + $0x140] sm:$0xff]  ;;  %v296_v36 = vld [vmem:[%s1266_s22 + $0x68] sm:$0xff] }
  0x1a   : > { %1000 = vmatpush3.bf16.msra.mxu0 %v1152_v9  ;;  %1116 = vmatpush3.bf16.msra.mxu1 %v1152_v9  ;;  %v440_v60 = vadd.f32 %v1290_v24, %v364_v49  ;;  %v442_v1 = vadd.f32 %v1290_v24, %v366_v54  ;;  %v472_v2 = vadd.f32 %v1290_v24, %v396_v55  ;;  %v325_v35 = vld [vmem:[%s1266_s22 + $0x150] sm:$0xff]  ;;  %v298_v37 = vld [vmem:[%s1266_s22 + $0x78] sm:$0xff]  ;;  %v328_v38 = vld [vmem:[%s1266_s22 + $0x168] sm:$0xff] }
  0x1b   : > { %1001 = vmatprep.subr.bf16.mxu0 %v1153_v10  ;;  %1109 = vmatprep.subr.bf16.mxu1 %v1153_v10  ;;  %v474_v3 = vadd.f32 %v1290_v24, %v398_v56  ;;  %v499_v6 = vpack.c.bf16 %v437_v53, %v435_v52  ;;  %v363_v9 = vmul.f32 %v1279_v18, %v287_v57  ;;  %v330_v39 = vld [vmem:[%s1266_s22 + $0x178] sm:$0xff]  ;;  %v295_v54 = vld [vmem:[%s1266_s22 + $0x60] sm:$0xff] }
  0x1c   : > { %698 = vmatprep.mubr.bf16.mxu0 %v500_v48  ;;  %762 = vmatprep.mubr.bf16.mxu1 %v516_v51  ;;  %v365_v10 = vmul.f32 %v1279_v18, %v289_v61  ;;  %v395_v11 = vmul.f32 %v1279_v18, %v319_v62  ;;  %v397_v12 = vmul.f32 %v1279_v18, %v321_v63 }
  0x1d   : > { %v368_v15 = vmul.f32 %v1281_v19, %v292_v4  ;;  %v370_v16 = vmul.f32 %v1281_v19, %v294_v5  ;;  %v518_v17 = vpack.c.bf16 %v474_v3, %v472_v2  ;;  %v400_v20 = vmul.f32 %v1281_v19, %v324_v7  ;;  %v332_v2 = vld [vmem:[%s1266_s22 + $0x188] sm:$0xff]  ;;  %v334_v3 = vld [vmem:[%s1266_s22 + $0x198] sm:$0xff] }
  0x1e   : > { %1002 = vmatpush3.bf16.msra.mxu0 %v1154_v13  ;;  %1117 = vmatpush3.bf16.msra.mxu1 %v1154_v13  ;;  %v515_v13 = vpack.c.bf16 %v469_v59, %v467_v58  ;;  %v402_v21 = vmul.f32 %v1281_v19, %v326_v8  ;;  %v439_v22 = vadd.f32 %v1288_v23, %v363_v9  ;;  %v297_v58 = vld [vmem:[%s1266_s22 + $0x70] sm:$0xff]  ;;  %v327_v59 = vld [vmem:[%s1266_s22 + $0x160] sm:$0xff] }
  0x1f   : > { %1003 = vmatprep.subr.bf16.mxu0 %v1155_v14  ;;  %1110 = vmatprep.subr.bf16.mxu1 %v1155_v14  ;;  %v502_v14 = vpack.c.bf16 %v442_v1, %v440_v60  ;;  %v441_v25 = vadd.f32 %v1288_v23, %v365_v10  ;;  %v471_v26 = vadd.f32 %v1288_v23, %v395_v11  ;;  %v329_v60 = vld [vmem:[%s1266_s22 + $0x170] sm:$0xff]  ;;  %v302_v1 = vld [vmem:[%s1266_s22 + $0x98] sm:$0xff] }
  0x20   : > { %v444_v28 = vadd.f32 %v1290_v24, %v368_v15  ;;  %v446_v29 = vadd.f32 %v1290_v24, %v370_v16  ;;  %v476_v32 = vadd.f32 %v1290_v24, %v400_v20  ;;  %v367_v42 = vmul.f32 %v1279_v18, %v291_v30  ;;  %v331_v30 = vld [vmem:[%s1266_s22 + $0x180] sm:$0xff] }
  0x21   : > { %v501_v40 = vpack.c.bf16 %v441_v25, %v439_v22  ;;  %v369_v43 = vmul.f32 %v1279_v18, %v293_v31  ;;  %v399_v45 = vmul.f32 %v1279_v18, %v323_v34  ;;  %v401_v46 = vmul.f32 %v1279_v18, %v325_v35  ;;  %v333_v31 = vld [vmem:[%s1266_s22 + $0x190] sm:$0xff]  ;;  %v336_v34 = vld [vmem:[%s1266_s22 + $0x1a8] sm:$0xff]  ;;  %v338_v35 = vld [vmem:[%s1266_s22 + $0x1b8] sm:$0xff] }
  0x22   : > { %1004 = vmatpush3.bf16.msra.mxu0 %v1156_v27  ;;  %1118 = vmatpush3.bf16.msra.mxu1 %v1156_v27  ;;  %v473_v27 = vadd.f32 %v1288_v23, %v397_v12  ;;  %v504_v44 = vpack.c.bf16 %v446_v29, %v444_v28  ;;  %v374_v49 = vmul.f32 %v1281_v19, %v298_v37 }
  0x23   : > { %1005 = vmatprep.subr.bf16.mxu0 %v1157_v33  ;;  %1111 = vmatprep.subr.bf16.mxu1 %v1157_v33  ;;  %v478_v33 = vadd.f32 %v1290_v24, %v402_v21  ;;  %v406_v51 = vmul.f32 %v1281_v19, %v330_v39  ;;  %v443_v52 = vadd.f32 %v1288_v23, %v367_v42 }
  0x24   : > { %v517_v41 = vpack.c.bf16 %v473_v27, %v471_v26  ;;  %v445_v53 = vadd.f32 %v1288_v23, %v369_v43  ;;  %v475_v55 = vadd.f32 %v1288_v23, %v399_v45  ;;  %v477_v56 = vadd.f32 %v1288_v23, %v401_v46  ;;  %v299_v26 = vld [vmem:[%s1266_s22 + $0x80] sm:$0xff]  ;;  %v301_v27 = vld [vmem:[%s1266_s22 + $0x90] sm:$0xff] }
  0x25   : > { %v520_v48 = vpack.c.bf16 %v478_v33, %v476_v32  ;;  %v450_v61 = vadd.f32 %v1290_v24, %v374_v49  ;;  %v482_v63 = vadd.f32 %v1290_v24, %v406_v51  ;;  %v371_v4 = vmul.f32 %v1279_v18, %v295_v54  ;;  %v304_v32 = vld [vmem:[%s1266_s22 + $0xa8] sm:$0xff]  ;;  %v306_v33 = vld [vmem:[%s1266_s22 + $0xb8] sm:$0xff]  ;;  %v305_v54 = vld [vmem:[%s1266_s22 + $0xb0] sm:$0xff] }
  0x26   : > { %1006 = vmatpush3.bf16.msra.mxu0 %v1158_v47  ;;  %1119 = vmatpush3.bf16.msra.mxu1 %v1158_v47  ;;  %v372_v47 = vmul.f32 %v1281_v19, %v296_v36  ;;  %v373_v5 = vmul.f32 %v1279_v18, %v297_v58  ;;  %v405_v7 = vmul.f32 %v1279_v18, %v329_v60  ;;  %v308_v60 = vld [vmem:[%s1266_s22 + $0xc8] sm:$0xff] }
  0x27   : > { %1007 = vmatprep.subr.bf16.mxu0 %v1159_v50  ;;  %1112 = vmatprep.subr.bf16.mxu1 %v1159_v50  ;;  %v404_v50 = vmul.f32 %v1281_v19, %v328_v38  ;;  %v503_v8 = vpack.c.bf16 %v445_v53, %v443_v52  ;;  %v519_v9 = vpack.c.bf16 %v477_v56, %v475_v55  ;;  %v335_v55 = vld [vmem:[%s1266_s22 + $0x1a0] sm:$0xff]  ;;  %v337_v56 = vld [vmem:[%s1266_s22 + $0x1b0] sm:$0xff] }
  0x28   : > { %v448_v57 = vadd.f32 %v1290_v24, %v372_v47  ;;  %v378_v11 = vmul.f32 %v1281_v19, %v302_v1  ;;  %v410_v15 = vmul.f32 %v1281_v19, %v334_v3  ;;  %v447_v16 = vadd.f32 %v1288_v23, %v371_v4 }
  0x29   : > { %v480_v62 = vadd.f32 %v1290_v24, %v404_v50  ;;  %v481_v21 = vadd.f32 %v1288_v23, %v405_v7  ;;  %v375_v38 = vmul.f32 %v1279_v18, %v299_v26  ;;  %v377_v39 = vmul.f32 %v1279_v18, %v301_v27  ;;  %v303_v50 = vld [vmem:[%s1266_s22 + $0xa0] sm:$0xff]  ;;  %v341_v27 = vld [vmem:[%s1266_s22 + $0x1d0] sm:$0xff] }
  0x2a   : > { %1008 = vmatpush3.bf16.msra.mxu0 %v1160_v0  ;;  %1120 = vmatpush3.bf16.msra.mxu1 %v1160_v0  ;;  %v300_v0 = vld [vmem:[%s1266_s22 + $0x88] sm:$0xff]  ;;  %v506_v12 = vpack.c.bf16 %v450_v61, %v448_v57  ;;  %v454_v25 = vadd.f32 %v1290_v24, %v378_v11  ;;  %v486_v29 = vadd.f32 %v1290_v24, %v410_v15  ;;  %v310_v61 = vld [vmem:[%s1266_s22 + $0xd8] sm:$0xff]  ;;  %v339_v26 = vld [vmem:[%s1266_s22 + $0x1c0] sm:$0xff] }
  0x2b   : > { %v376_v10 = vmul.f32 %v1281_v19, %v300_v0  ;;  %v409_v42 = vmul.f32 %v1279_v18, %v333_v31  ;;  %v380_v43 = vmul.f32 %v1281_v19, %v304_v32  ;;  %v382_v45 = vmul.f32 %v1281_v19, %v306_v33  ;;  %v346_v31 = vld [vmem:[%s1266_s22 + $0x1f8] sm:$0xff] }
  0x2c   : > { %v412_v46 = vmul.f32 %v1281_v19, %v336_v34  ;;  %v414_v47 = vmul.f32 %v1281_v19, %v338_v35  ;;  %v453_v49 = vadd.f32 %v1288_v23, %v377_v39  ;;  %v379_v0 = vmul.f32 %v1279_v18, %v303_v50 }
  0x2d   : > { %699 = vmatmul.mubr.bf16.vlgmr.msra.gmra.mxu0 %v499_v6  ;;  %763 = vmatmul.mubr.bf16.vlgmr.msra.gmra.mxu1 %v515_v13  ;;  %v403_v6 = vmul.f32 %v1279_v18, %v327_v59  ;;  %v522_v13 = vpack.c.bf16 %v482_v63, %v480_v62  ;;  %v452_v22 = vadd.f32 %v1290_v24, %v376_v10  ;;  %v340_v62 = vld [vmem:[%s1266_s22 + $0x1c8] sm:$0xff]  ;;  %v342_v63 = vld [vmem:[%s1266_s22 + $0x1d8] sm:$0xff] }
  0x2e   : > { %706 = vmatprep.mubr.bf16.mxu0 %v502_v14  ;;  %770 = vmatprep.mubr.bf16.mxu1 %v518_v17  ;;  %v408_v14 = vmul.f32 %v1281_v19, %v332_v2  ;;  %v449_v17 = vadd.f32 %v1288_v23, %v373_v5  ;;  %v485_v52 = vadd.f32 %v1288_v23, %v409_v42 }
  0x2f   : > { %v479_v20 = vadd.f32 %v1288_v23, %v403_v6  ;;  %v456_v53 = vadd.f32 %v1290_v24, %v380_v43  ;;  %v458_v57 = vadd.f32 %v1290_v24, %v382_v45  ;;  %v488_v58 = vadd.f32 %v1290_v24, %v412_v46 }
  0x30   : > { %v484_v28 = vadd.f32 %v1290_v24, %v408_v14  ;;  %v505_v36 = vpack.c.bf16 %v449_v17, %v447_v16  ;;  %v490_v59 = vadd.f32 %v1290_v24, %v414_v47  ;;  %v381_v1 = vmul.f32 %v1279_v18, %v305_v54  ;;  %v345_v54 = vld [vmem:[%s1266_s22 + $0x1f0] sm:$0xff] }
  0x31   : > { %v521_v37 = vpack.c.bf16 %v481_v21, %v479_v20  ;;  %v411_v2 = vmul.f32 %v1279_v18, %v335_v55  ;;  %v413_v3 = vmul.f32 %v1279_v18, %v337_v56  ;;  %v384_v6 = vmul.f32 %v1281_v19, %v308_v60  ;;  %v307_v20 = vld [vmem:[%s1266_s22 + $0xc0] sm:$0xff]  ;;  %v309_v21 = vld [vmem:[%s1266_s22 + $0xd0] sm:$0xff] }
  0x32   : > { %v386_v7 = vmul.f32 %v1281_v19, %v310_v61  ;;  %v416_v10 = vmul.f32 %v1281_v19, %v340_v62  ;;  %v418_v11 = vmul.f32 %v1281_v19, %v342_v63  ;;  %v383_v34 = vmul.f32 %v1279_v18, %v307_v20 }
  0x33   : > { %v487_v14 = vadd.f32 %v1288_v23, %v411_v2  ;;  %v489_v15 = vadd.f32 %v1288_v23, %v413_v3  ;;  %v460_v16 = vadd.f32 %v1290_v24, %v384_v6  ;;  %v385_v35 = vmul.f32 %v1279_v18, %v309_v21 }
  0x34   : > { %v462_v17 = vadd.f32 %v1290_v24, %v386_v7  ;;  %v422_v43 = vmul.f32 %v1281_v19, %v346_v31  ;;  %v421_v60 = vmul.f32 %v1279_v18, %v345_v54 }
  0x35   : > { %707 = vmatmul.mubr.bf16.gmra.mxu0 %v501_v40  ;;  %771 = vmatmul.mubr.bf16.gmra.mxu1 %v517_v41  ;;  %v508_v40 = vpack.c.bf16 %v454_v25, %v452_v22  ;;  %v407_v41 = vmul.f32 %v1279_v18, %v331_v30  ;;  %v492_v22 = vadd.f32 %v1290_v24, %v416_v10  ;;  %v344_v30 = vld [vmem:[%s1266_s22 + $0x1e8] sm:$0xff] }
  0x36   : > { %714 = vmatprep.mubr.bf16.mxu0 %v504_v44  ;;  %778 = vmatprep.mubr.bf16.mxu1 %v520_v48  ;;  %v524_v44 = vpack.c.bf16 %v486_v29, %v484_v28  ;;  %v451_v48 = vadd.f32 %v1288_v23, %v375_v38  ;;  %v494_v25 = vadd.f32 %v1290_v24, %v418_v11  ;;  %v312_v28 = vld [vmem:[%s1266_s22 + $0xe8] sm:$0xff]  ;;  %v314_v29 = vld [vmem:[%s1266_s22 + $0xf8] sm:$0xff] }
  0x37   : > { %v483_v51 = vadd.f32 %v1288_v23, %v407_v41  ;;  %v525_v33 = vpack.c.bf16 %v489_v15, %v487_v14  ;;  %v417_v38 = vmul.f32 %v1279_v18, %v341_v27  ;;  %v388_v39 = vmul.f32 %v1281_v19, %v312_v28 }
  0x38   : > { %v507_v4 = vpack.c.bf16 %v453_v49, %v451_v48  ;;  %v390_v41 = vmul.f32 %v1281_v19, %v314_v29  ;;  %v420_v42 = vmul.f32 %v1281_v19, %v344_v30  ;;  %v461_v45 = vadd.f32 %v1288_v23, %v385_v35  ;;  %v311_v49 = vld [vmem:[%s1266_s22 + $0xe0] sm:$0xff] }
  0x39   : > { %v523_v5 = vpack.c.bf16 %v485_v52, %v483_v51  ;;  %v493_v47 = vadd.f32 %v1288_v23, %v417_v38  ;;  %v464_v48 = vadd.f32 %v1290_v24, %v388_v39  ;;  %v498_v51 = vadd.f32 %v1290_v24, %v422_v43  ;;  %v313_v52 = vld [vmem:[%s1266_s22 + $0xf0] sm:$0xff] }
  0x3a   : > { %v466_v50 = vadd.f32 %v1290_v24, %v390_v41  ;;  %v496_v19 = vadd.f32 %v1290_v24, %v420_v42  ;;  %v387_v56 = vmul.f32 %v1279_v18, %v311_v49 }
  0x3c   : > { %v514_v61 = vpack.c.bf16 %v466_v50, %v464_v48  ;;  %v530_v62 = vpack.c.bf16 %v498_v51, %v496_v19  ;;  %v463_v63 = vadd.f32 %v1288_v23, %v387_v56 }
  0x3d   : > { %715 = vmatmul.mubr.bf16.gmra.mxu0 %v503_v8  ;;  %779 = vmatmul.mubr.bf16.gmra.mxu1 %v519_v9  ;;  %v510_v8 = vpack.c.bf16 %v458_v57, %v456_v53  ;;  %v526_v9 = vpack.c.bf16 %v490_v59, %v488_v58  ;;  %v343_v53 = vld [vmem:[%s1266_s22 + $0x1e0] sm:$0xff]  ;;  %v389_v58 = vmul.f32 %v1279_v18, %v313_v52 }
  0x3e   : > { %722 = vmatprep.mubr.bf16.mxu0 %v506_v12  ;;  %786 = vmatprep.mubr.bf16.mxu1 %v522_v13  ;;  %v455_v12 = vadd.f32 %v1288_v23, %v379_v0  ;;  %v457_v13 = vadd.f32 %v1288_v23, %v381_v1  ;;  %v419_v59 = vmul.f32 %v1279_v18, %v343_v53 }
  0x3f   : > { %v465_v24 = vadd.f32 %v1288_v23, %v389_v58  ;;  %v497_v1 = vadd.f32 %v1288_v23, %v421_v60 }
  0x40   : > { %v509_v32 = vpack.c.bf16 %v457_v13, %v455_v12  ;;  %v495_v0 = vadd.f32 %v1288_v23, %v419_v59 }
  0x41   : > { %v513_v2 = vpack.c.bf16 %v465_v24, %v463_v63 }
  0x42   : > { %v529_v3 = vpack.c.bf16 %v497_v1, %v495_v0 }
  0x45   : > { %723 = vmatmul.mubr.bf16.gmra.mxu0 %v505_v36  ;;  %787 = vmatmul.mubr.bf16.gmra.mxu1 %v521_v37  ;;  %v512_v36 = vpack.c.bf16 %v462_v17, %v460_v16  ;;  %v415_v37 = vmul.f32 %v1279_v18, %v339_v26 }
  0x46   : > { %730 = vmatprep.mubr.bf16.mxu0 %v508_v40  ;;  %794 = vmatprep.mubr.bf16.mxu1 %v524_v44  ;;  %v528_v40 = vpack.c.bf16 %v494_v25, %v492_v22  ;;  %v459_v44 = vadd.f32 %v1288_v23, %v383_v34 }
  0x47   : > { %v491_v46 = vadd.f32 %v1288_v23, %v415_v37 }
  0x48   : > { %v511_v55 = vpack.c.bf16 %v461_v45, %v459_v44 }
  0x49   : > { %v527_v57 = vpack.c.bf16 %v493_v47, %v491_v46 }
  0x4d   : > { %731 = vmatmul.mubr.bf16.gmra.mxu0 %v507_v4  ;;  %795 = vmatmul.mubr.bf16.gmra.mxu1 %v523_v5  ;;  %v1499_v5 = vld [vmem:[%s1583_s4] ss:$0 sm:$0xff] }
  0x4e   : > { %738 = vmatprep.mubr.bf16.mxu0 %v510_v8  ;;  %802 = vmatprep.mubr.bf16.mxu1 %v526_v9 }
  0x55   : > { %739 = vmatmul.mubr.bf16.gmra.mxu0 %v509_v32  ;;  %803 = vmatmul.mubr.bf16.gmra.mxu1 %v525_v33 }
  0x56   : > { %746 = vmatprep.mubr.bf16.mxu0 %v512_v36  ;;  %810 = vmatprep.mubr.bf16.mxu1 %v528_v40 }
  0x5d   : > { %747 = vmatmul.mubr.bf16.gmra.mxu0 %v511_v55  ;;  %811 = vmatmul.mubr.bf16.gmra.mxu1 %v527_v57 }
  0x5e   : > { %754 = vmatprep.mubr.bf16.mxu0 %v514_v61  ;;  %818 = vmatprep.mubr.bf16.mxu1 %v530_v62 }
  0x65   : > { %755 = vmatmul.mubr.bf16.gmra.mxu0 %v513_v2  ;;  %819 = vmatmul.mubr.bf16.gmra.mxu1 %v529_v3 }
  0xed   : > { %v1009_v18 = vpop.f32.mrf.mxu0  ;;  %v1057_v4 = vpop.f32.mrf.mxu1 }
  0xef   : > { %v1010_v6 = vpop.f32.mrf.mxu0  ;;  %v1058_v7 = vpop.f32.mrf.mxu1 }
  0xf0   : > { %v1011_v8 = vadd.f32 %v1010_v6, %v1009_v18  ;;  %v1059_v9 = vadd.f32 %v1058_v7, %v1057_v4 }
  0xf1   : > { %v1012_v23 = vpop.f32.mrf.mxu0  ;;  %v1060_v10 = vpop.f32.mrf.mxu1 }
  0xf2   : > { %v701_v11 = vadd.f32 %v1011_v8, %v1499_v5  ;;  %v765_v12 = vadd.f32 %v1059_v9, %v1499_v5 }
  0xf3   : > { %v1013_v13 = vpop.f32.mrf.mxu0  ;;  %v1061_v14 = vpop.f32.mrf.mxu1 }
  0xf4   : > { %827 = vst [vmem:[%s1504_s26] sm:$0xff] %v701_v11  ;;  %843 = vst [vmem:[%s1504_s26 + $0x80] sm:$0xff] %v765_v12  ;;  %v1014_v15 = vadd.f32 %v1013_v13, %v1012_v23  ;;  %v1062_v16 = vadd.f32 %v1061_v14, %v1060_v10 }
  0xf5   : > { %v1015_v17 = vpop.f32.mrf.mxu0  ;;  %v1063_v20 = vpop.f32.mrf.mxu1 }
  0xf6   : > { %v704_v21 = vadd.f32 %v1014_v15, %v1499_v5  ;;  %v768_v22 = vadd.f32 %v1062_v16, %v1499_v5 }
  0xf7   : > { %v1016_v25 = vpop.f32.mrf.mxu0  ;;  %v1064_v26 = vpop.f32.mrf.mxu1 }
  0xf8   : > { %828 = vst [vmem:[%s1504_s26 + $0x8] sm:$0xff] %v704_v21  ;;  %844 = vst [vmem:[%s1504_s26 + $0x88] sm:$0xff] %v768_v22  ;;  %v1017_v27 = vadd.f32 %v1016_v25, %v1015_v17  ;;  %v1065_v28 = vadd.f32 %v1064_v26, %v1063_v20 }
  0xf9   : > { %v1018_v29 = vpop.f32.mrf.mxu0  ;;  %v1066_v30 = vpop.f32.mrf.mxu1 }
  0xfa   : > { %v709_v31 = vadd.f32 %v1017_v27, %v1499_v5  ;;  %v773_v32 = vadd.f32 %v1065_v28, %v1499_v5 }
  0xfb   : > { %v1019_v33 = vpop.f32.mrf.mxu0  ;;  %v1067_v34 = vpop.f32.mrf.mxu1 }
  0xfc   : > { %829 = vst [vmem:[%s1504_s26 + $0x10] sm:$0xff] %v709_v31  ;;  %845 = vst [vmem:[%s1504_s26 + $0x90] sm:$0xff] %v773_v32  ;;  %v1020_v35 = vadd.f32 %v1019_v33, %v1018_v29  ;;  %v1068_v36 = vadd.f32 %v1067_v34, %v1066_v30 }
  0xfd   : > { %v1021_v37 = vpop.f32.mrf.mxu0  ;;  %v1069_v38 = vpop.f32.mrf.mxu1 }
  0xfe   : > { %v712_v39 = vadd.f32 %v1020_v35, %v1499_v5  ;;  %v776_v40 = vadd.f32 %v1068_v36, %v1499_v5 }
  0xff   : > { %v1022_v41 = vpop.f32.mrf.mxu0  ;;  %v1070_v42 = vpop.f32.mrf.mxu1 }
 0x100   : > { %830 = vst [vmem:[%s1504_s26 + $0x18] sm:$0xff] %v712_v39  ;;  %846 = vst [vmem:[%s1504_s26 + $0x98] sm:$0xff] %v776_v40  ;;  %v1023_v43 = vadd.f32 %v1022_v41, %v1021_v37  ;;  %v1071_v44 = vadd.f32 %v1070_v42, %v1069_v38 }
 0x101   : > { %v1024_v45 = vpop.f32.mrf.mxu0  ;;  %v1072_v46 = vpop.f32.mrf.mxu1 }
 0x102   : > { %v717_v47 = vadd.f32 %v1023_v43, %v1499_v5  ;;  %v781_v48 = vadd.f32 %v1071_v44, %v1499_v5 }
 0x103   : > { %v1025_v49 = vpop.f32.mrf.mxu0  ;;  %v1073_v50 = vpop.f32.mrf.mxu1 }
 0x104   : > { %831 = vst [vmem:[%s1504_s26 + $0x20] sm:$0xff] %v717_v47  ;;  %847 = vst [vmem:[%s1504_s26 + $0xa0] sm:$0xff] %v781_v48  ;;  %v1026_v19 = vadd.f32 %v1025_v49, %v1024_v45  ;;  %v1074_v51 = vadd.f32 %v1073_v50, %v1072_v46 }
 0x105   : > { %v1027_v52 = vpop.f32.mrf.mxu0  ;;  %v1075_v53 = vpop.f32.mrf.mxu1 }
 0x106   : > { %v720_v54 = vadd.f32 %v1026_v19, %v1499_v5  ;;  %v784_v55 = vadd.f32 %v1074_v51, %v1499_v5 }
 0x107   : > { %v1028_v56 = vpop.f32.mrf.mxu0  ;;  %v1076_v57 = vpop.f32.mrf.mxu1 }
 0x108   : > { %832 = vst [vmem:[%s1504_s26 + $0x28] sm:$0xff] %v720_v54  ;;  %848 = vst [vmem:[%s1504_s26 + $0xa8] sm:$0xff] %v784_v55  ;;  %v1029_v58 = vadd.f32 %v1028_v56, %v1027_v52  ;;  %v1077_v59 = vadd.f32 %v1076_v57, %v1075_v53 }
 0x109   : > { %v1030_v60 = vpop.f32.mrf.mxu0  ;;  %v1078_v61 = vpop.f32.mrf.mxu1 }
 0x10a   : > { %v725_v62 = vadd.f32 %v1029_v58, %v1499_v5  ;;  %v789_v63 = vadd.f32 %v1077_v59, %v1499_v5 }
 0x10b   : > { %v1031_v24 = vpop.f32.mrf.mxu0  ;;  %v1079_v0 = vpop.f32.mrf.mxu1 }
 0x10c   : > { %833 = vst [vmem:[%s1504_s26 + $0x30] sm:$0xff] %v725_v62  ;;  %849 = vst [vmem:[%s1504_s26 + $0xb0] sm:$0xff] %v789_v63  ;;  %v1032_v1 = vadd.f32 %v1031_v24, %v1030_v60  ;;  %v1080_v2 = vadd.f32 %v1079_v0, %v1078_v61 }
 0x10d   : > { %v1033_v3 = vpop.f32.mrf.mxu0  ;;  %v1081_v18 = vpop.f32.mrf.mxu1 }
 0x10e   : > { %v728_v4 = vadd.f32 %v1032_v1, %v1499_v5  ;;  %v792_v6 = vadd.f32 %v1080_v2, %v1499_v5 }
 0x10f   : > { %v1034_v7 = vpop.f32.mrf.mxu0  ;;  %v1082_v8 = vpop.f32.mrf.mxu1 }
 0x110   : > { %834 = vst [vmem:[%s1504_s26 + $0x38] sm:$0xff] %v728_v4  ;;  %850 = vst [vmem:[%s1504_s26 + $0xb8] sm:$0xff] %v792_v6  ;;  %v1035_v9 = vadd.f32 %v1034_v7, %v1033_v3  ;;  %v1083_v23 = vadd.f32 %v1082_v8, %v1081_v18 }
 0x111   : > { %v1036_v10 = vpop.f32.mrf.mxu0  ;;  %v1084_v11 = vpop.f32.mrf.mxu1 }
 0x112   : > { %v733_v12 = vadd.f32 %v1035_v9, %v1499_v5  ;;  %v797_v13 = vadd.f32 %v1083_v23, %v1499_v5 }
 0x113   : > { %v1037_v14 = vpop.f32.mrf.mxu0  ;;  %v1085_v15 = vpop.f32.mrf.mxu1 }
 0x114   : > { %835 = vst [vmem:[%s1504_s26 + $0x40] sm:$0xff] %v733_v12  ;;  %851 = vst [vmem:[%s1504_s26 + $0xc0] sm:$0xff] %v797_v13  ;;  %v1038_v16 = vadd.f32 %v1037_v14, %v1036_v10  ;;  %v1086_v17 = vadd.f32 %v1085_v15, %v1084_v11 }
 0x115   : > { %v1039_v20 = vpop.f32.mrf.mxu0  ;;  %v1087_v21 = vpop.f32.mrf.mxu1 }
 0x116   : > { %v736_v22 = vadd.f32 %v1038_v16, %v1499_v5  ;;  %v800_v25 = vadd.f32 %v1086_v17, %v1499_v5 }
 0x117   : > { %v1040_v26 = vpop.f32.mrf.mxu0  ;;  %v1088_v27 = vpop.f32.mrf.mxu1 }
 0x118   : > { %836 = vst [vmem:[%s1504_s26 + $0x48] sm:$0xff] %v736_v22  ;;  %852 = vst [vmem:[%s1504_s26 + $0xc8] sm:$0xff] %v800_v25  ;;  %v1041_v28 = vadd.f32 %v1040_v26, %v1039_v20  ;;  %v1089_v29 = vadd.f32 %v1088_v27, %v1087_v21 }
 0x119   : > { %v1042_v30 = vpop.f32.mrf.mxu0  ;;  %v1090_v31 = vpop.f32.mrf.mxu1 }
 0x11a   : > { %v741_v32 = vadd.f32 %v1041_v28, %v1499_v5  ;;  %v805_v33 = vadd.f32 %v1089_v29, %v1499_v5 }
 0x11b   : > { %v1043_v34 = vpop.f32.mrf.mxu0  ;;  %v1091_v35 = vpop.f32.mrf.mxu1 }
 0x11c   : > { %837 = vst [vmem:[%s1504_s26 + $0x50] sm:$0xff] %v741_v32  ;;  %853 = vst [vmem:[%s1504_s26 + $0xd0] sm:$0xff] %v805_v33  ;;  %v1044_v36 = vadd.f32 %v1043_v34, %v1042_v30  ;;  %v1092_v37 = vadd.f32 %v1091_v35, %v1090_v31 }
 0x11d   : > { %v1045_v38 = vpop.f32.mrf.mxu0  ;;  %v1093_v39 = vpop.f32.mrf.mxu1 }
 0x11e   : > { %v744_v40 = vadd.f32 %v1044_v36, %v1499_v5  ;;  %v808_v41 = vadd.f32 %v1092_v37, %v1499_v5 }
 0x11f   : > { %v1046_v42 = vpop.f32.mrf.mxu0  ;;  %v1094_v43 = vpop.f32.mrf.mxu1 }
 0x120   : > { %838 = vst [vmem:[%s1504_s26 + $0x58] sm:$0xff] %v744_v40  ;;  %854 = vst [vmem:[%s1504_s26 + $0xd8] sm:$0xff] %v808_v41  ;;  %v1047_v44 = vadd.f32 %v1046_v42, %v1045_v38  ;;  %v1095_v45 = vadd.f32 %v1094_v43, %v1093_v39 }
 0x121   : > { %v1048_v46 = vpop.f32.mrf.mxu0  ;;  %v1096_v47 = vpop.f32.mrf.mxu1 }
 0x122   : > { %v749_v48 = vadd.f32 %v1047_v44, %v1499_v5  ;;  %v813_v49 = vadd.f32 %v1095_v45, %v1499_v5 }
 0x123   : > { %v1049_v50 = vpop.f32.mrf.mxu0  ;;  %v1097_v19 = vpop.f32.mrf.mxu1 }
 0x124   : > { %839 = vst [vmem:[%s1504_s26 + $0x60] sm:$0xff] %v749_v48  ;;  %855 = vst [vmem:[%s1504_s26 + $0xe0] sm:$0xff] %v813_v49  ;;  %v1050_v51 = vadd.f32 %v1049_v50, %v1048_v46  ;;  %v1098_v52 = vadd.f32 %v1097_v19, %v1096_v47 }
 0x125   : > { %v1051_v53 = vpop.f32.mrf.mxu0  ;;  %v1099_v54 = vpop.f32.mrf.mxu1 }
 0x126   : > { %v752_v55 = vadd.f32 %v1050_v51, %v1499_v5  ;;  %v816_v56 = vadd.f32 %v1098_v52, %v1499_v5 }
 0x127   : > { %v1052_v57 = vpop.f32.mrf.mxu0  ;;  %v1100_v58 = vpop.f32.mrf.mxu1 }
 0x128   : > { %840 = vst [vmem:[%s1504_s26 + $0x68] sm:$0xff] %v752_v55  ;;  %856 = vst [vmem:[%s1504_s26 + $0xe8] sm:$0xff] %v816_v56  ;;  %v1053_v59 = vadd.f32 %v1052_v57, %v1051_v53  ;;  %v1101_v60 = vadd.f32 %v1100_v58, %v1099_v54 }
 0x129   : > { %v1054_v61 = vpop.f32.mrf.mxu0  ;;  %v1102_v62 = vpop.f32.mrf.mxu1 }
 0x12a   : > { %v757_v63 = vadd.f32 %v1053_v59, %v1499_v5  ;;  %v821_v24 = vadd.f32 %v1101_v60, %v1499_v5 }
 0x12b   : > { %v1055_v0 = vpop.f32.mrf.mxu0  ;;  %v1103_v1 = vpop.f32.mrf.mxu1 }
 0x12c   : > { %841 = vst [vmem:[%s1504_s26 + $0x70] sm:$0xff] %v757_v63  ;;  %857 = vst [vmem:[%s1504_s26 + $0xf0] sm:$0xff] %v821_v24  ;;  %v1056_v2 = vadd.f32 %v1055_v0, %v1054_v61  ;;  %v1104_v3 = vadd.f32 %v1103_v1, %v1102_v62 }
 0x12e   : > { %v760_v18 = vadd.f32 %v1056_v2, %v1499_v5  ;;  %v824_v4 = vadd.f32 %v1104_v3, %v1499_v5 }
 0x130   : > { %842 = vst [vmem:[%s1504_s26 + $0x78] sm:$0xff] %v760_v18  ;;  %858 = vst [vmem:[%s1504_s26 + $0xf8] sm:$0xff] %v824_v4 }
 0x131 PF: > { %s15_s20 = sadd.s32 1, %s1183_s20   ;;  %s1585_s18 = smov %s1179_s19 }
 0x132   : > { %p12_p5 = scmp.ge.s32.totalorder %s15_s20, 4   ;;  %s1586_s19 = smov %s1588_s21 }
 0x134   :  { %14 = sbr.rel (!%p12_p5) target bundleno = 2 (0x2), region = 76 }

// kernel: tile.105
= control target key start
LH: loop header
LB: loop body
LE: loop exit
PB: predicated region body
PF: predicated region fallthrough
CT: control target
= control target key end

     0   :  { %s58_s0 = inlined_call_operand.vmem [shape: f32[8], index: 0, kind: input, shape index: {}]   ;;  %s59_s1 = inlined_call_operand.vmem [shape: f32[49,8], index: 1, kind: output, shape index: {}]  }
   0x1   :  { %v4_v0 = vld [vmem:[%s58_s0] ss:$0 sm:$0xff] }
   0x2   :  { %5 = vst [vmem:[%s59_s1] sm:$0xff] %v4_v0  ;;  %18 = vst [vmem:[%s59_s1 + $0x8] sm:$0xff] %v4_v0 }
   0x3   :  { %19 = vst [vmem:[%s59_s1 + $0x10] sm:$0xff] %v4_v0  ;;  %20 = vst [vmem:[%s59_s1 + $0x18] sm:$0xff] %v4_v0 }
   0x4   :  { %21 = vst [vmem:[%s59_s1 + $0x20] sm:$0xff] %v4_v0  ;;  %22 = vst [vmem:[%s59_s1 + $0x28] sm:$0xff] %v4_v0 }
   0x5   :  { %23 = vst [vmem:[%s59_s1 + $0x30] sm:$0xff] %v4_v0 }

// kernel: tile.106
= control target key start
LH: loop header
LB: loop body
LE: loop exit
PB: predicated region body
PF: predicated region fallthrough
CT: control target
= control target key end

     0   :  { %s11_s6 = smov 3  ;;  %vm15_vm0 = vcmask 1042434   ;;  %s33_s11 = smov 3  ;;  %vm6_vm1 = vcmask 1043458   ;;  %vm8_vm2 = vcmask 64512   ;;  %vm19_vm3 = vcmask 1048512   ;;  %s367_s0 = inlined_call_operand.vmem [shape: f32[49,8], index: 0, kind: input, shape index: {}]   ;;  %s368_s1 = inlined_call_operand.vmem [shape: f32[392], index: 1, kind: output, shape index: {}]  }
   0x1   :  { %v184_v0 = vld [vmem:[%s367_s0 + $0x2d] sm:$0x4]   ;;  %v188_v2 = vld [vmem:[%s367_s0 + $0x2b] sm:$0x4]   ;;  %s22_s16 = smov 3  ;;  %s228_s19 = smov 120  }
   0x2   :  { %v183_v1 = vld [vmem:[%s367_s0 + $0xf] ss:$16 sm:%s11_s6]   ;;  %v187_v4 = vld [vmem:[%s367_s0 + $0xd] ss:$16 sm:%s33_s11]   ;;  %s44_s22 = smov 3  ;;  %s229_s25 = smov 104  }
   0x3   :  { %v16_v3 = vsel %vm15_vm0, %v184_v0, %v183_v1  ;;  %v186_v5 = vld [vmem:[%s367_s0 + $0x2c] sm:$0x4]   ;;  %v38_v6 = vsel %vm15_vm0, %v188_v2, %v187_v4  ;;  %v190_v8 = vld [vmem:[%s367_s0 + $0x2a] sm:$0x4]   ;;  %s55_s28 = smov 3  ;;  %s66_s4 = smov 3 }
   0x4   :  { %17 = vrot.lane.b32.xlu0 %v16_v3, %s228_s19  ;;  %v185_v7 = vld [vmem:[%s367_s0 + $0xe] ss:$16 sm:%s22_s16]   ;;  %39 = vrot.lane.b32.xlu1 %v38_v6, %s229_s25  ;;  %s77_s9 = smov 3  ;;  %s230_s10 = smov 112   ;;  %vm30_vm4 = vcmask 982912   ;;  %vm41_vm5 = vcmask 917312  }
   0x5   :  { %v27_v9 = vsel %vm15_vm0, %v186_v5, %v185_v7  ;;  %v189_v10 = vld [vmem:[%s367_s0 + $0xc] ss:$16 sm:%s44_s22]   ;;  %v191_v12 = vld [vmem:[%s367_s0 + $0xb] ss:$16 sm:%s55_s28]   ;;  %s88_s11 = smov 3  ;;  %s231_s12 = smov 96  }
   0x6   :  { %v49_v11 = vsel %vm15_vm0, %v190_v8, %v189_v10  ;;  %v192_v13 = vld [vmem:[%s367_s0 + $0x29] sm:$0x4]   ;;  %v193_v14 = vld [vmem:[%s367_s0 + $0xa] ss:$16 sm:%s66_s4]   ;;  %v196_v19 = vld [vmem:[%s367_s0 + $0x27] sm:$0x4]  }
   0x7   :  { %v194_v15 = vld [vmem:[%s367_s0 + $0x28] sm:$0x4]   ;;  %v60_v16 = vsel %vm15_vm0, %v192_v13, %v191_v12  ;;  %v195_v18 = vld [vmem:[%s367_s0 + $0x9] ss:$16 sm:%s77_s9]   ;;  %v198_v21 = vld [vmem:[%s367_s0 + $0x26] sm:$0x4]  }
   0x8   :  { %28 = vrot.lane.b32.xlu0 %v27_v9, %s230_s10  ;;  %50 = vrot.lane.b32.xlu1 %v49_v11, %s231_s12  ;;  %v71_v17 = vsel %vm15_vm0, %v194_v15, %v193_v14  ;;  %v197_v20 = vld [vmem:[%s367_s0 + $0x8] ss:$16 sm:%s88_s11]   ;;  %s99_s21 = smov 3  ;;  %s232_s22 = smov 88   ;;  %v82_v22 = vsel %vm15_vm0, %v196_v19, %v195_v18  ;;  %vm52_vm6 = vcmask 851712   ;;  %vm63_vm7 = vcmask 786112  }
   0x9   :  { %s110_s23 = smov 3  ;;  %s233_s24 = smov 80   ;;  %v93_v23 = vsel %vm15_vm0, %v198_v21, %v197_v20  ;;  %v199_v24 = vld [vmem:[%s367_s0 + $0x7] ss:$16 sm:%s99_s21]   ;;  %v202_v27 = vld [vmem:[%s367_s0 + $0x24] sm:$0x4]  }
   0xa   :  { %v200_v25 = vld [vmem:[%s367_s0 + $0x25] sm:$0x4]   ;;  %v201_v26 = vld [vmem:[%s367_s0 + $0x6] ss:$16 sm:%s110_s23]   ;;  %s121_s4 = smov 3  ;;  %s132_s5 = smov 3 }
   0xb   :  { %s234_s6 = smov 72   ;;  %s2_s7 = smov 3  ;;  %v104_v28 = vsel %vm15_vm0, %v200_v25, %v199_v24  ;;  %v204_v29 = vld [vmem:[%s367_s0 + $0x23] sm:$0x4]   ;;  %v115_v31 = vsel %vm15_vm0, %v202_v27, %v201_v26  ;;  %v205_v34 = vld [vmem:[%s367_s0 + $0x4] ss:$16 sm:%s132_s5]  }
   0xc   :  { %61 = vrot.lane.b32.xlu0 %v60_v16, %s232_s22  ;;  %72 = vrot.lane.b32.xlu1 %v71_v17, %s233_s24  ;;  %s4_s8 = smov 12  ;;  %s235_s9 = smov 64   ;;  %v3_v30 = vld [vmem:[%s367_s0] ss:$16 sm:%s2_s7]   ;;  %vm74_vm8 = vcmask 720512   ;;  %vm85_vm9 = vcmask 654912  }
   0xd   :  { %v203_v32 = vld [vmem:[%s367_s0 + $0x5] ss:$16 sm:%s121_s4]   ;;  %v5_v33 = vld [vmem:[%s367_s0] ss:$16 sm:%s4_s8]   ;;  %s143_s22 = smov 3  ;;  %s236_s23 = smov 56  }
   0xe   :  { %v206_v35 = vld [vmem:[%s367_s0 + $0x22] sm:$0x4]   ;;  %v7_v36 = vsel %vm6_vm1, %v5_v33, %v3_v30  ;;  %s154_s24 = smov 3  ;;  %s237_s25 = smov 48   ;;  %v126_v37 = vsel %vm15_vm0, %v204_v29, %v203_v32  ;;  %v207_v39 = vld [vmem:[%s367_s0 + $0x3] ss:$16 sm:%s143_s22]  }
   0xf   :  { %9 = vst.msk [vmem:[#allocation0] sm:$0xf] %vm8_vm2, %v7_v36   ;;  %v137_v38 = vsel %vm15_vm0, %v206_v35, %v205_v34  ;;  %v208_v40 = vld [vmem:[%s367_s0 + $0x21] sm:$0x4]   ;;  %v209_v41 = vld [vmem:[%s367_s0 + $0x2] ss:$16 sm:%s154_s24]  }
  0x10   :  { %83 = vrot.lane.b32.xlu0 %v82_v22, %s234_s6  ;;  %94 = vrot.lane.b32.xlu1 %v93_v23, %s235_s9  ;;  %v210_v42 = vld [vmem:[%s367_s0 + $0x20] sm:$0x4]   ;;  %s165_s5 = smov 3  ;;  %s238_s6 = smov 40   ;;  %v148_v43 = vsel %vm15_vm0, %v208_v40, %v207_v39  ;;  %v212_v46 = vld [vmem:[%s367_s0 + $0x1f] sm:$0x4]  }
  0x11   :  { %s239_s7 = smov 32   ;;  %v159_v44 = vsel %vm15_vm0, %v210_v42, %v209_v41  ;;  %v211_v45 = vld [vmem:[%s367_s0 + $0x1] ss:$16 sm:%s165_s5]   ;;  %s240_s0 = smov 24   ;;  %vm96_vm10 = vcmask 589312   ;;  %vm107_vm11 = vcmask 523712  }
  0x12   :  { %s241_s12 = smov 16   ;;  %v170_v47 = vsel %vm15_vm0, %v212_v46, %v211_v45  ;;  %s242_s13 = smov 8   ;;  %vm118_vm12 = vcmask 458112   ;;  %vm129_vm13 = vcmask 392512   ;;  %vm140_vm14 = vcmask 326912  }
  0x13   :  { %vm151_vm15 = vcmask 261312   ;;  %vm162_vm0 = vcmask 195712   ;;  %vm173_vm1 = vcmask 130112  }
  0x14   :  { %105 = vrot.lane.b32.xlu0 %v104_v28, %s236_s23  ;;  %116 = vrot.lane.b32.xlu1 %v115_v31, %s237_s25 }
  0x18   :  { %127 = vrot.lane.b32.xlu0 %v126_v37, %s238_s6  ;;  %138 = vrot.lane.b32.xlu1 %v137_v38, %s239_s7 }
  0x1c   :  { %149 = vrot.lane.b32.xlu0 %v148_v43, %s240_s0  ;;  %160 = vrot.lane.b32.xlu1 %v159_v44, %s241_s12 }
  0x20   :  { %171 = vrot.lane.b32.xlu0 %v170_v47, %s242_s13 }
  0x76   :  { %v18_v48 = vpop.permute.xlu0 %17   ;;  %v40_v49 = vpop.permute.xlu1 %39  }
  0x77   :  { %20 = vst.msk [vmem:[#allocation0] sm:$0x7] %vm19_vm3, %v18_v48  }
  0x7a   :  { %v29_v50 = vpop.permute.xlu0 %28   ;;  %v51_v51 = vpop.permute.xlu1 %50  }
  0x7b   :  { %31 = vst.msk [vmem:[#allocation0] sm:$0x7] %vm30_vm4, %v29_v50  }
  0x7c   :  { %42 = vst.msk [vmem:[#allocation0] sm:$0x7] %vm41_vm5, %v40_v49  }
  0x7d   :  { %53 = vst.msk [vmem:[#allocation0] sm:$0x7] %vm52_vm6, %v51_v51  }
  0x7e   :  { %v62_v52 = vpop.permute.xlu0 %61   ;;  %v73_v53 = vpop.permute.xlu1 %72  }
  0x7f   :  { %64 = vst.msk [vmem:[#allocation0] sm:$0x7] %vm63_vm7, %v62_v52  }
  0x80   :  { %75 = vst.msk [vmem:[#allocation0] sm:$0x7] %vm74_vm8, %v73_v53  }
  0x82   :  { %v84_v54 = vpop.permute.xlu0 %83   ;;  %v95_v55 = vpop.permute.xlu1 %94  }
  0x83   :  { %86 = vst.msk [vmem:[#allocation0] sm:$0x7] %vm85_vm9, %v84_v54  }
  0x84   :  { %97 = vst.msk [vmem:[#allocation0] sm:$0x7] %vm96_vm10, %v95_v55  }
  0x86   :  { %v106_v56 = vpop.permute.xlu0 %105   ;;  %v117_v57 = vpop.permute.xlu1 %116  }
  0x87   :  { %108 = vst.msk [vmem:[#allocation0] sm:$0x7] %vm107_vm11, %v106_v56  }
  0x88   :  { %119 = vst.msk [vmem:[#allocation0] sm:$0x7] %vm118_vm12, %v117_v57  }
  0x8a   :  { %v128_v58 = vpop.permute.xlu0 %127   ;;  %v139_v59 = vpop.permute.xlu1 %138  }
  0x8b   :  { %130 = vst.msk [vmem:[#allocation0] sm:$0x7] %vm129_vm13, %v128_v58  }
  0x8c   :  { %141 = vst.msk [vmem:[#allocation0] sm:$0x7] %vm140_vm14, %v139_v59  }
  0x8e   :  { %v150_v60 = vpop.permute.xlu0 %149   ;;  %v161_v61 = vpop.permute.xlu1 %160  }
  0x8f   :  { %152 = vst.msk [vmem:[#allocation0] sm:$0x7] %vm151_vm15, %v150_v60  }
  0x90   :  { %163 = vst.msk [vmem:[#allocation0] sm:$0x7] %vm162_vm0, %v161_v61  }
  0x92   :  { %v172_v62 = vpop.permute.xlu0 %171  }
  0x93   :  { %174 = vst.msk [vmem:[#allocation0] sm:$0x7] %vm173_vm1, %v172_v62  }
  0x9a   :  { %v179_v63 = vld [vmem:[#allocation0] sm:$0xf] }
  0x9b   :  { %182 = vst [vmem:[%s368_s1] sm:$0xf] %v179_v63 }

// kernel: _lambda_.25
= control target key start
LH: loop header
LB: loop body
LE: loop exit
PB: predicated region body
PF: predicated region fallthrough
CT: control target
= control target key end

     0   :  { %s2115_s18 = smov 0   ;;  %s2117_s19 = smov 0   ;;  %s2655_s0 = inlined_call_operand.vmem [shape: f32[512,512], index: 0, kind: input, shape index: {}]   ;;  %s2656_s1 = inlined_call_operand.vmem [shape: bf16[512,128], index: 1, kind: input, shape index: {}]   ;;  %s2657_s2 = inlined_call_operand.vmem [shape: f32[1,512], index: 2, kind: input, shape index: {}]   ;;  %s2658_s3 = inlined_call_operand.vmem [shape: f32[1,512], index: 3, kind: input, shape index: {}]   ;;  %s2659_s4 = inlined_call_operand.vmem [shape: f32[1,128], index: 4, kind: input, shape index: {}]   ;;  %s2660_s5 = inlined_call_operand.vmem [shape: f32[512,128], index: 5, kind: output, shape index: {}]  }
   0x1   :  { %s2119_s20 = smov 0   ;;  %s2121_s21 = smov 0  }
   0x2   :  { %s2123_s22 = smov 0   ;;  %s2125_s23 = smov 0  }
   0x3   :  { %s2127_s24 = smov 0  }
   0x4 LB: > { %s27_s25 = sadd.s32 1, %s2074_s22  ;;  %s34_s26 = sadd.s32 1, %s2078_s23  ;;  %s2082_s24 = sphi %s2127_s24, %s15_s24   ;;  %s2078_s23 = sphi %s2125_s23, %s2666_s23   ;;  %s2074_s22 = sphi %s2123_s22, %s2665_s22   ;;  %s2070_s21 = sphi %s2121_s21, %s2664_s21   ;;  %s2066_s20 = sphi %s2119_s20, %s2663_s20   ;;  %s2062_s19 = sphi %s2117_s19, %s2662_s19   ;;  %s2058_s18 = sphi %s2115_s18, %s2661_s18  }
   0x5   : > { %p28_p0 = scmp.ge.s32.totalorder %s27_s25, 2  ;;  %p50_p1 = scmp.ne.s32.totalorder %s2062_s19, %s2058_s18 }
   0x6   : > { %p51_p2 = scmp.eq.s32.totalorder %s2082_s24, 0  ;;  %s43_s30 = sadd.s32 1, %s2062_s19 }
   0x7   : > { %s2668_s25 = smov (%p28_p0, %s27_s25), 0  ;;  %s2670_s26 = smov (!%p28_p0, %s34_s26), %s2078_s23 }
   0x8   : > { %p52_p3 = por %p51_p2, %p50_p1  ;;  %p36_p4 = scmp.ge.s32.totalorder %s2670_s26, 2 }
   0x9   : > { %s39_s27 = ssub.s32 %s2074_s22, %s2668_s25  ;;  %p1727_p6 = scmp.ge.s32.totalorder %s2082_s24, 4 }
   0xa   : > { %s2672_s26 = smov (%p36_p4, %s2670_s26), 0 }
   0xb   : > { %s38_s28 = ssub.s32 %s2078_s23, %s2672_s26  ;;  %216 = sbr.rel (%p1727_p6) target bundleno = 55 (0x37), region = 20 }
   0xc   : > { %s40_s29 = sor.u32 %s39_s27, %s38_s28 }
   0xd   : > { %p41_p5 = scmp.eq.s32.totalorder %s40_s29, 0 }
   0xf   : > { %s2166_s6 = scalar_select %p41_p5, %s2062_s19, %s43_s30  }
  0x10   : > { %219 = sbr.rel (!%p52_p3) target bundleno = 55 (0x37), region = 24  ;;  %s221_s7 = sand.u32 (%p52_p3), 1, %s2062_s19  }
  0x11   : > { %s1730_s8 = sshll.u32 (%p52_p3), %s2074_s22, 1  ;;  %s1728_s9 = sshll.u32 (%p52_p3), %s221_s7, 9 }
  0x12   : > { %s1762_s10 = sshll.u32 (%p52_p3), %s2078_s23, 7  ;;  %s2180_s16 = scalar_lea.vmem (%p52_p3), [#allocation3], %s1728_s9 }
  0x13   : > { %s227_s11 = sadd.s32 (%p52_p3), %s1762_s10, %s1730_s8 }
  0x14   : > { %s1732_s12 = sshll.u32 (%p52_p3), %s227_s11, 3 }
  0x15   : > { %s2175_s15 = scalar_lea.vmem %s2655_s0, %s1732_s12 }
  0x16   : > { %v242_v0 = vld [vmem:[%s2175_s15] sm:$0xff]  ;;  %v244_v1 = vld [vmem:[%s2175_s15 + $0x8] sm:$0xff] }
  0x17   : > { %v246_v2 = vld [vmem:[%s2175_s15 + $0x20] sm:$0xff]  ;;  %243 = vst [vmem:[%s2180_s16] sm:$0xff] %v242_v0  ;;  %245 = vst [vmem:[%s2180_s16 + $0x8] sm:$0xff] %v244_v1  ;;  %v248_v3 = vld [vmem:[%s2175_s15 + $0x28] sm:$0xff] }
  0x18   : > { %247 = vst [vmem:[%s2180_s16 + $0x10] sm:$0xff] %v246_v2  ;;  %v250_v4 = vld [vmem:[%s2175_s15 + $0x40] sm:$0xff]  ;;  %v252_v5 = vld [vmem:[%s2175_s15 + $0x48] sm:$0xff]  ;;  %249 = vst [vmem:[%s2180_s16 + $0x18] sm:$0xff] %v248_v3 }
  0x19   : > { %251 = vst [vmem:[%s2180_s16 + $0x20] sm:$0xff] %v250_v4  ;;  %253 = vst [vmem:[%s2180_s16 + $0x28] sm:$0xff] %v252_v5  ;;  %v254_v6 = vld [vmem:[%s2175_s15 + $0x60] sm:$0xff]  ;;  %v256_v7 = vld [vmem:[%s2175_s15 + $0x68] sm:$0xff] }
  0x1a   : > { %v258_v8 = vld [vmem:[%s2175_s15 + $0x80] sm:$0xff]  ;;  %255 = vst [vmem:[%s2180_s16 + $0x30] sm:$0xff] %v254_v6  ;;  %257 = vst [vmem:[%s2180_s16 + $0x38] sm:$0xff] %v256_v7  ;;  %v260_v9 = vld [vmem:[%s2175_s15 + $0x88] sm:$0xff] }
  0x1b   : > { %259 = vst [vmem:[%s2180_s16 + $0x40] sm:$0xff] %v258_v8  ;;  %v262_v10 = vld [vmem:[%s2175_s15 + $0xa0] sm:$0xff]  ;;  %v264_v11 = vld [vmem:[%s2175_s15 + $0xa8] sm:$0xff]  ;;  %261 = vst [vmem:[%s2180_s16 + $0x48] sm:$0xff] %v260_v9 }
  0x1c   : > { %263 = vst [vmem:[%s2180_s16 + $0x50] sm:$0xff] %v262_v10  ;;  %265 = vst [vmem:[%s2180_s16 + $0x58] sm:$0xff] %v264_v11  ;;  %v266_v12 = vld [vmem:[%s2175_s15 + $0xc0] sm:$0xff]  ;;  %v268_v13 = vld [vmem:[%s2175_s15 + $0xc8] sm:$0xff] }
  0x1d   : > { %v270_v14 = vld [vmem:[%s2175_s15 + $0xe0] sm:$0xff]  ;;  %267 = vst [vmem:[%s2180_s16 + $0x60] sm:$0xff] %v266_v12  ;;  %269 = vst [vmem:[%s2180_s16 + $0x68] sm:$0xff] %v268_v13  ;;  %v272_v15 = vld [vmem:[%s2175_s15 + $0xe8] sm:$0xff] }
  0x1e   : > { %271 = vst [vmem:[%s2180_s16 + $0x70] sm:$0xff] %v270_v14  ;;  %v274_v16 = vld [vmem:[%s2175_s15 + $0x100] sm:$0xff]  ;;  %v276_v17 = vld [vmem:[%s2175_s15 + $0x108] sm:$0xff]  ;;  %273 = vst [vmem:[%s2180_s16 + $0x78] sm:$0xff] %v272_v15 }
  0x1f   : > { %275 = vst [vmem:[%s2180_s16 + $0x80] sm:$0xff] %v274_v16  ;;  %277 = vst [vmem:[%s2180_s16 + $0x88] sm:$0xff] %v276_v17  ;;  %v278_v18 = vld [vmem:[%s2175_s15 + $0x120] sm:$0xff]  ;;  %v280_v19 = vld [vmem:[%s2175_s15 + $0x128] sm:$0xff] }
  0x20   : > { %v282_v20 = vld [vmem:[%s2175_s15 + $0x140] sm:$0xff]  ;;  %279 = vst [vmem:[%s2180_s16 + $0x90] sm:$0xff] %v278_v18  ;;  %281 = vst [vmem:[%s2180_s16 + $0x98] sm:$0xff] %v280_v19  ;;  %v284_v21 = vld [vmem:[%s2175_s15 + $0x148] sm:$0xff] }
  0x21   : > { %283 = vst [vmem:[%s2180_s16 + $0xa0] sm:$0xff] %v282_v20  ;;  %v286_v22 = vld [vmem:[%s2175_s15 + $0x160] sm:$0xff]  ;;  %v288_v23 = vld [vmem:[%s2175_s15 + $0x168] sm:$0xff]  ;;  %285 = vst [vmem:[%s2180_s16 + $0xa8] sm:$0xff] %v284_v21 }
  0x22   : > { %287 = vst [vmem:[%s2180_s16 + $0xb0] sm:$0xff] %v286_v22  ;;  %289 = vst [vmem:[%s2180_s16 + $0xb8] sm:$0xff] %v288_v23  ;;  %v290_v24 = vld [vmem:[%s2175_s15 + $0x180] sm:$0xff]  ;;  %v292_v25 = vld [vmem:[%s2175_s15 + $0x188] sm:$0xff] }
  0x23   : > { %v294_v26 = vld [vmem:[%s2175_s15 + $0x1a0] sm:$0xff]  ;;  %291 = vst [vmem:[%s2180_s16 + $0xc0] sm:$0xff] %v290_v24  ;;  %293 = vst [vmem:[%s2180_s16 + $0xc8] sm:$0xff] %v292_v25  ;;  %v296_v27 = vld [vmem:[%s2175_s15 + $0x1a8] sm:$0xff] }
  0x24   : > { %295 = vst [vmem:[%s2180_s16 + $0xd0] sm:$0xff] %v294_v26  ;;  %v298_v28 = vld [vmem:[%s2175_s15 + $0x1c0] sm:$0xff]  ;;  %v300_v29 = vld [vmem:[%s2175_s15 + $0x1c8] sm:$0xff]  ;;  %297 = vst [vmem:[%s2180_s16 + $0xd8] sm:$0xff] %v296_v27 }
  0x25   : > { %299 = vst [vmem:[%s2180_s16 + $0xe0] sm:$0xff] %v298_v28  ;;  %301 = vst [vmem:[%s2180_s16 + $0xe8] sm:$0xff] %v300_v29  ;;  %v302_v30 = vld [vmem:[%s2175_s15 + $0x1e0] sm:$0xff]  ;;  %v304_v31 = vld [vmem:[%s2175_s15 + $0x1e8] sm:$0xff] }
  0x26   : > { %v306_v32 = vld [vmem:[%s2175_s15 + $0x200] sm:$0xff]  ;;  %303 = vst [vmem:[%s2180_s16 + $0xf0] sm:$0xff] %v302_v30  ;;  %305 = vst [vmem:[%s2180_s16 + $0xf8] sm:$0xff] %v304_v31  ;;  %v308_v33 = vld [vmem:[%s2175_s15 + $0x208] sm:$0xff] }
  0x27   : > { %307 = vst [vmem:[%s2180_s16 + $0x100] sm:$0xff] %v306_v32  ;;  %v310_v34 = vld [vmem:[%s2175_s15 + $0x220] sm:$0xff]  ;;  %v312_v35 = vld [vmem:[%s2175_s15 + $0x228] sm:$0xff]  ;;  %309 = vst [vmem:[%s2180_s16 + $0x108] sm:$0xff] %v308_v33 }
  0x28   : > { %311 = vst [vmem:[%s2180_s16 + $0x110] sm:$0xff] %v310_v34  ;;  %313 = vst [vmem:[%s2180_s16 + $0x118] sm:$0xff] %v312_v35  ;;  %v314_v36 = vld [vmem:[%s2175_s15 + $0x240] sm:$0xff]  ;;  %v316_v37 = vld [vmem:[%s2175_s15 + $0x248] sm:$0xff] }
  0x29   : > { %v318_v38 = vld [vmem:[%s2175_s15 + $0x260] sm:$0xff]  ;;  %315 = vst [vmem:[%s2180_s16 + $0x120] sm:$0xff] %v314_v36  ;;  %317 = vst [vmem:[%s2180_s16 + $0x128] sm:$0xff] %v316_v37  ;;  %v320_v39 = vld [vmem:[%s2175_s15 + $0x268] sm:$0xff] }
  0x2a   : > { %319 = vst [vmem:[%s2180_s16 + $0x130] sm:$0xff] %v318_v38  ;;  %v322_v40 = vld [vmem:[%s2175_s15 + $0x280] sm:$0xff]  ;;  %v324_v41 = vld [vmem:[%s2175_s15 + $0x288] sm:$0xff]  ;;  %321 = vst [vmem:[%s2180_s16 + $0x138] sm:$0xff] %v320_v39 }
  0x2b   : > { %323 = vst [vmem:[%s2180_s16 + $0x140] sm:$0xff] %v322_v40  ;;  %325 = vst [vmem:[%s2180_s16 + $0x148] sm:$0xff] %v324_v41  ;;  %v326_v42 = vld [vmem:[%s2175_s15 + $0x2a0] sm:$0xff]  ;;  %v328_v43 = vld [vmem:[%s2175_s15 + $0x2a8] sm:$0xff] }
  0x2c   : > { %v330_v44 = vld [vmem:[%s2175_s15 + $0x2c0] sm:$0xff]  ;;  %327 = vst [vmem:[%s2180_s16 + $0x150] sm:$0xff] %v326_v42  ;;  %329 = vst [vmem:[%s2180_s16 + $0x158] sm:$0xff] %v328_v43  ;;  %v332_v45 = vld [vmem:[%s2175_s15 + $0x2c8] sm:$0xff] }
  0x2d   : > { %331 = vst [vmem:[%s2180_s16 + $0x160] sm:$0xff] %v330_v44  ;;  %v334_v46 = vld [vmem:[%s2175_s15 + $0x2e0] sm:$0xff]  ;;  %v336_v47 = vld [vmem:[%s2175_s15 + $0x2e8] sm:$0xff]  ;;  %333 = vst [vmem:[%s2180_s16 + $0x168] sm:$0xff] %v332_v45 }
  0x2e   : > { %335 = vst [vmem:[%s2180_s16 + $0x170] sm:$0xff] %v334_v46  ;;  %337 = vst [vmem:[%s2180_s16 + $0x178] sm:$0xff] %v336_v47  ;;  %v338_v48 = vld [vmem:[%s2175_s15 + $0x300] sm:$0xff]  ;;  %v340_v49 = vld [vmem:[%s2175_s15 + $0x308] sm:$0xff] }
  0x2f   : > { %v342_v50 = vld [vmem:[%s2175_s15 + $0x320] sm:$0xff]  ;;  %339 = vst [vmem:[%s2180_s16 + $0x180] sm:$0xff] %v338_v48  ;;  %341 = vst [vmem:[%s2180_s16 + $0x188] sm:$0xff] %v340_v49  ;;  %v344_v51 = vld [vmem:[%s2175_s15 + $0x328] sm:$0xff] }
  0x30   : > { %343 = vst [vmem:[%s2180_s16 + $0x190] sm:$0xff] %v342_v50  ;;  %v346_v52 = vld [vmem:[%s2175_s15 + $0x340] sm:$0xff]  ;;  %v348_v53 = vld [vmem:[%s2175_s15 + $0x348] sm:$0xff]  ;;  %345 = vst [vmem:[%s2180_s16 + $0x198] sm:$0xff] %v344_v51 }
  0x31   : > { %347 = vst [vmem:[%s2180_s16 + $0x1a0] sm:$0xff] %v346_v52  ;;  %349 = vst [vmem:[%s2180_s16 + $0x1a8] sm:$0xff] %v348_v53  ;;  %v350_v54 = vld [vmem:[%s2175_s15 + $0x360] sm:$0xff]  ;;  %v352_v55 = vld [vmem:[%s2175_s15 + $0x368] sm:$0xff] }
  0x32   : > { %v354_v56 = vld [vmem:[%s2175_s15 + $0x380] sm:$0xff]  ;;  %351 = vst [vmem:[%s2180_s16 + $0x1b0] sm:$0xff] %v350_v54  ;;  %353 = vst [vmem:[%s2180_s16 + $0x1b8] sm:$0xff] %v352_v55  ;;  %v356_v57 = vld [vmem:[%s2175_s15 + $0x388] sm:$0xff] }
  0x33   : > { %355 = vst [vmem:[%s2180_s16 + $0x1c0] sm:$0xff] %v354_v56  ;;  %v358_v58 = vld [vmem:[%s2175_s15 + $0x3a0] sm:$0xff]  ;;  %v360_v59 = vld [vmem:[%s2175_s15 + $0x3a8] sm:$0xff]  ;;  %357 = vst [vmem:[%s2180_s16 + $0x1c8] sm:$0xff] %v356_v57 }
  0x34   : > { %359 = vst [vmem:[%s2180_s16 + $0x1d0] sm:$0xff] %v358_v58  ;;  %361 = vst [vmem:[%s2180_s16 + $0x1d8] sm:$0xff] %v360_v59  ;;  %v362_v60 = vld [vmem:[%s2175_s15 + $0x3c0] sm:$0xff]  ;;  %v364_v61 = vld [vmem:[%s2175_s15 + $0x3c8] sm:$0xff] }
  0x35   : > { %v366_v62 = vld [vmem:[%s2175_s15 + $0x3e0] sm:$0xff]  ;;  %363 = vst [vmem:[%s2180_s16 + $0x1e0] sm:$0xff] %v362_v60  ;;  %365 = vst [vmem:[%s2180_s16 + $0x1e8] sm:$0xff] %v364_v61  ;;  %v368_v63 = vld [vmem:[%s2175_s15 + $0x3e8] sm:$0xff] }
  0x36   : > { %367 = vst [vmem:[%s2180_s16 + $0x1f0] sm:$0xff] %v366_v62  ;;  %369 = vst [vmem:[%s2180_s16 + $0x1f8] sm:$0xff] %v368_v63 }
  0x37 PF: > { %p1733_p7 = scmp.ge.s32.totalorder %s2082_s24, 1  ;;  %p402_p8 = scmp.lt.s32.totalorder %s2082_s24, 5 }
  0x39   : > { %p403_p9 = pnand %p1733_p7, %p402_p8 }
  0x3a   : > { %s409_s17 = sand.u32 (!%p403_p9), 1, %s2058_s18   ;;  %s1735_s27 = sshll.u32 (!%p403_p9), %s2066_s20, 5 }
  0x3b   : > { %406 = sbr.rel (%p403_p9) target bundleno = 451 (0x1c3), region = 59  ;;  %s1734_s28 = sshll.u32 (!%p403_p9), %s409_s17, 9 }
  0x3c   : > { %p461_p10 = scmp.lt.s32.totalorder (!%p403_p9), %s1735_s27, 63  ;;  %s1737_s29 = sshll.u32 (!%p403_p9), %s2066_s20, 1 }
  0x3d   : > { %p470_p11 = scmp.lt.s32.totalorder (!%p403_p9), %s1737_s29, 3  ;;  %s1739_s30 = sshll.u32 (!%p403_p9), %s2070_s21, 5 }
  0x3e   : > { %p483_p12 = scmp.lt.s32.totalorder (!%p403_p9), %s1739_s30, 63  ;;  %p1741_p13 = scmp.ne.s32.totalorder (!%p403_p9), %s2066_s20, 0 }
  0x40   : > { %s2674_s27 = smov (!%p461_p10, %s1735_s27), 63  ;;  %s2676_s29 = smov (!%p470_p11, %s1737_s29), 3 }
  0x41   : > { %s1736_s7 = sshll.u32 %s2674_s27, 2  ;;  %s2678_s30 = smov (!%p483_p12, %s1739_s30), 63 }
  0x42   : > { %s2316_s10 = scalar_lea.vmem %s2656_s1, %s1736_s7  ;;  %s472_s12 = scalar_lea.vmem %s2657_s2, %s2676_s29 }
  0x43   : > { %s477_s21 = scalar_lea.vmem %s2658_s3, %s2676_s29  ;;  %s1740_s15 = sshll.u32 %s2678_s30, 3 }
  0x44   : > { %s2331_s27 = scalar_lea.vmem %s2660_s5, %s1740_s15  ;;  %s2333_s7 = scalar_lea.vmem [#allocation3], %s1734_s28 }
  0x45   : > { %495 = sbr.rel (%p1741_p13) target bundleno = 91 (0x5b), region = 67 }
  0x4a   : > { %v2084_v0 = vmov 0.0  }
  0x4b   : > { %496 = vst [vmem:[#allocation2 + $0xb0] sm:$0xff] %v2084_v0  ;;  %497 = vst [vmem:[#allocation2] sm:$0xff] %v2084_v0 }
  0x4c   : > { %498 = vst [vmem:[#allocation2 + $0xd8] sm:$0xff] %v2084_v0  ;;  %499 = vst [vmem:[#allocation2 + $0x18] sm:$0xff] %v2084_v0 }
  0x4d   : > { %500 = vst [vmem:[#allocation2 + $0x50] sm:$0xff] %v2084_v0  ;;  %501 = vst [vmem:[#allocation2 + $0x68] sm:$0xff] %v2084_v0 }
  0x4e   : > { %502 = vst [vmem:[#allocation2 + $0x30] sm:$0xff] %v2084_v0  ;;  %503 = vst [vmem:[#allocation2 + $0x48] sm:$0xff] %v2084_v0 }
  0x4f   : > { %504 = vst [vmem:[#allocation2 + $0x80] sm:$0xff] %v2084_v0  ;;  %505 = vst [vmem:[#allocation2 + $0x88] sm:$0xff] %v2084_v0 }
  0x50   : > { %506 = vst [vmem:[#allocation2 + $0xe8] sm:$0xff] %v2084_v0  ;;  %507 = vst [vmem:[#allocation2 + $0xb8] sm:$0xff] %v2084_v0 }
  0x51   : > { %508 = vst [vmem:[#allocation2 + $0x60] sm:$0xff] %v2084_v0  ;;  %509 = vst [vmem:[#allocation2 + $0xf0] sm:$0xff] %v2084_v0 }
  0x52   : > { %510 = vst [vmem:[#allocation2 + $0x8] sm:$0xff] %v2084_v0  ;;  %511 = vst [vmem:[#allocation2 + $0x78] sm:$0xff] %v2084_v0 }
  0x53   : > { %512 = vst [vmem:[#allocation2 + $0x38] sm:$0xff] %v2084_v0  ;;  %513 = vst [vmem:[#allocation2 + $0x58] sm:$0xff] %v2084_v0 }
  0x54   : > { %514 = vst [vmem:[#allocation2 + $0x40] sm:$0xff] %v2084_v0  ;;  %515 = vst [vmem:[#allocation2 + $0xc8] sm:$0xff] %v2084_v0 }
  0x55   : > { %516 = vst [vmem:[#allocation2 + $0xe0] sm:$0xff] %v2084_v0  ;;  %517 = vst [vmem:[#allocation2 + $0x90] sm:$0xff] %v2084_v0 }
  0x56   : > { %518 = vst [vmem:[#allocation2 + $0x70] sm:$0xff] %v2084_v0  ;;  %519 = vst [vmem:[#allocation2 + $0xc0] sm:$0xff] %v2084_v0 }
  0x57   : > { %520 = vst [vmem:[#allocation2 + $0xa8] sm:$0xff] %v2084_v0  ;;  %521 = vst [vmem:[#allocation2 + $0xd0] sm:$0xff] %v2084_v0 }
  0x58   : > { %522 = vst [vmem:[#allocation2 + $0x10] sm:$0xff] %v2084_v0  ;;  %523 = vst [vmem:[#allocation2 + $0x28] sm:$0xff] %v2084_v0 }
  0x59   : > { %524 = vst [vmem:[#allocation2 + $0xa0] sm:$0xff] %v2084_v0  ;;  %525 = vst [vmem:[#allocation2 + $0xf8] sm:$0xff] %v2084_v0 }
  0x5a   : > { %526 = vst [vmem:[#allocation2 + $0x20] sm:$0xff] %v2084_v0  ;;  %527 = vst [vmem:[#allocation2 + $0x98] sm:$0xff] %v2084_v0 }
  0x5b PF: > { %v1948_v1 = vld [vmem:[%s2316_s10 + $0x78] sm:$0xff]   ;;  %v1950_v3 = vld [vmem:[%s2316_s10 + $0x70] sm:$0xff]   ;;  %v1952_v5 = vld [vmem:[%s2316_s10 + $0x68] sm:$0xff]   ;;  %v594_v6 = vlaneseq  ;;  %p1758_p0 = scmp.ne.s32.totalorder %s2066_s20, 1 }
  0x5c   : > { %v1949_v2 = vld [vmem:[%s2316_s10 + $0x38] sm:$0xff]   ;;  %1763 = vmatprep.subr.bf16.mxu0 %v1948_v1  ;;  %1875 = vmatprep.subr.bf16.mxu1 %v1948_v1  ;;  %v1951_v4 = vld [vmem:[%s2316_s10 + $0x30] sm:$0xff]   ;;  %v1953_v7 = vld [vmem:[%s2316_s10 + $0x28] sm:$0xff]  }
  0x5d   : > { %1764 = vmatpush3.bf16.msra.mxu0 %v1949_v2  ;;  %1883 = vmatpush3.bf16.msra.mxu1 %v1949_v2  ;;  %v1954_v8 = vld [vmem:[%s2316_s10 + $0x60] sm:$0xff]   ;;  %v595_v9 = vshrl.u32 %v594_v6, 7  ;;  %v1956_v11 = vld [vmem:[%s2316_s10 + $0x58] sm:$0xff]   ;;  %v1958_v15 = vld [vmem:[%s2316_s10 + $0x50] sm:$0xff]  }
  0x5e   : > { %1765 = vmatprep.subr.bf16.mxu0 %v1950_v3  ;;  %1876 = vmatprep.subr.bf16.mxu1 %v1950_v3  ;;  %v1955_v10 = vld [vmem:[%s2316_s10 + $0x20] sm:$0xff]   ;;  %v1957_v14 = vld [vmem:[%s2316_s10 + $0x18] sm:$0xff]   ;;  %v529_v16 = vld [vmem:[%s2333_s7 + $0x8] sm:$0xff] }
  0x5f   : > { %v596_v12 = vsub.s32 0, %v595_v9  ;;  %v600_v13 = vsub.s32 1, %v595_v9  ;;  %v531_v17 = vld [vmem:[%s2333_s7 + $0x18] sm:$0xff]  ;;  %v592_v18 = vld [vmem:[%s472_s12] sm:$0x3]  ;;  %v561_v22 = vld [vmem:[%s2333_s7 + $0x108] sm:$0xff] }
  0x60   : > { %v668_v21 = vld [vmem:[%s477_s21] sm:$0x3]  ;;  %v563_v23 = vld [vmem:[%s2333_s7 + $0x118] sm:$0xff]  ;;  %v530_v27 = vld [vmem:[%s2333_s7 + $0x10] sm:$0xff] }
  0x61   : > { %1766 = vmatpush3.bf16.msra.mxu0 %v1951_v4  ;;  %1884 = vmatpush3.bf16.msra.mxu1 %v1951_v4  ;;  %v2354_v19 = vrot.slane %v592_v18, %v596_v12  ;;  %v2356_v20 = vrot.slane %v592_v18, %v600_v13  ;;  %v2365_v24 = vrot.slane %v668_v21, %v596_v12  ;;  %v528_v26 = vld [vmem:[%s2333_s7] sm:$0xff]  ;;  %v1959_v29 = vld [vmem:[%s2316_s10 + $0x10] sm:$0xff]   ;;  %v1960_v34 = vld [vmem:[%s2316_s10 + $0x48] sm:$0xff]  }
  0x62   : > { %1767 = vmatprep.subr.bf16.mxu0 %v1952_v5  ;;  %1877 = vmatprep.subr.bf16.mxu1 %v1952_v5  ;;  %v2367_v25 = vrot.slane %v668_v21, %v600_v13  ;;  %v560_v28 = vld [vmem:[%s2333_s7 + $0x100] sm:$0xff]  ;;  %v562_v33 = vld [vmem:[%s2333_s7 + $0x110] sm:$0xff]  ;;  %v1961_v42 = vld [vmem:[%s2316_s10 + $0x8] sm:$0xff]  }
  0x63   : > { %v605_v30 = vmul.f32 %v2356_v20, %v529_v16  ;;  %v607_v31 = vmul.f32 %v2356_v20, %v531_v17  ;;  %v637_v32 = vmul.f32 %v2356_v20, %v561_v22  ;;  %v639_v35 = vmul.f32 %v2356_v20, %v563_v23  ;;  %v1962_v43 = vld [vmem:[%s2316_s10 + $0x40] sm:$0xff]   ;;  %v533_v54 = vld [vmem:[%s2333_s7 + $0x28] sm:$0xff]  ;;  %v535_v55 = vld [vmem:[%s2333_s7 + $0x38] sm:$0xff] }
  0x64   : > { %v604_v36 = vmul.f32 %v2354_v19, %v528_v26  ;;  %v606_v37 = vmul.f32 %v2354_v19, %v530_v27  ;;  %v636_v41 = vmul.f32 %v2354_v19, %v560_v28  ;;  %v638_v47 = vmul.f32 %v2354_v19, %v562_v33  ;;  %v1963_v60 = vld [vmem:[%s2316_s10] sm:$0xff]   ;;  %v565_v4 = vld [vmem:[%s2333_s7 + $0x128] sm:$0xff]  ;;  %v567_v5 = vld [vmem:[%s2333_s7 + $0x138] sm:$0xff] }
  0x65   : > { %1768 = vmatpush3.bf16.msra.mxu0 %v1953_v7  ;;  %1885 = vmatpush3.bf16.msra.mxu1 %v1953_v7  ;;  %v681_v38 = vadd.f32 %v2367_v25, %v605_v30  ;;  %v683_v39 = vadd.f32 %v2367_v25, %v607_v31  ;;  %v713_v40 = vadd.f32 %v2367_v25, %v637_v32  ;;  %v534_v16 = vld [vmem:[%s2333_s7 + $0x30] sm:$0xff]  ;;  %v564_v17 = vld [vmem:[%s2333_s7 + $0x120] sm:$0xff]  ;;  %v537_v33 = vld [vmem:[%s2333_s7 + $0x48] sm:$0xff] }
  0x66   : > { %1769 = vmatprep.subr.bf16.mxu0 %v1954_v8  ;;  %1878 = vmatprep.subr.bf16.mxu1 %v1954_v8  ;;  %v715_v44 = vadd.f32 %v2367_v25, %v639_v35  ;;  %v680_v45 = vadd.f32 %v2365_v24, %v604_v36  ;;  %v682_v46 = vadd.f32 %v2365_v24, %v606_v37  ;;  %v566_v31 = vld [vmem:[%s2333_s7 + $0x130] sm:$0xff] }
  0x67   : > { %vm745_vm0 = vcmp.ge.f32.partialorder %v681_v38, 0.0  ;;  %vm747_vm1 = vcmp.ge.f32.partialorder %v683_v39, 0.0  ;;  %v809_v48 = vmul.f32 0.01, %v681_v38  ;;  %v811_v49 = vmul.f32 0.01, %v683_v39 }
  0x68   : > { %vm777_vm2 = vcmp.ge.f32.partialorder %v713_v40, 0.0  ;;  %vm779_vm3 = vcmp.ge.f32.partialorder %v715_v44, 0.0  ;;  %v841_v50 = vmul.f32 0.01, %v713_v40  ;;  %v843_v51 = vmul.f32 0.01, %v715_v44 }
  0x69   : > { %1770 = vmatpush3.bf16.msra.mxu0 %v1955_v10  ;;  %1886 = vmatpush3.bf16.msra.mxu1 %v1955_v10  ;;  %v873_v52 = vsel %vm745_vm0, %v681_v38, %v809_v48  ;;  %v875_v53 = vsel %vm747_vm1, %v683_v39, %v811_v49  ;;  %vm744_vm4 = vcmp.ge.f32.partialorder %v680_v45, 0.0  ;;  %vm746_vm5 = vcmp.ge.f32.partialorder %v682_v46, 0.0 }
  0x6a   : > { %1771 = vmatprep.subr.bf16.mxu0 %v1956_v11  ;;  %1879 = vmatprep.subr.bf16.mxu1 %v1956_v11  ;;  %v969_v56 = vpack.c.bf16 %v875_v53, %v873_v52  ;;  %v905_v57 = vsel %vm777_vm2, %v713_v40, %v841_v50  ;;  %v907_v58 = vsel %vm779_vm3, %v715_v44, %v843_v51  ;;  %v808_v59 = vmul.f32 0.01, %v680_v45 }
  0x6b   : > { %v985_v61 = vpack.c.bf16 %v907_v58, %v905_v57  ;;  %v810_v62 = vmul.f32 0.01, %v682_v46  ;;  %v712_v63 = vadd.f32 %v2365_v24, %v636_v41  ;;  %v714_v0 = vadd.f32 %v2365_v24, %v638_v47  ;;  %v569_v47 = vld [vmem:[%s2333_s7 + $0x148] sm:$0xff] }
  0x6c   : > { %v872_v1 = vsel %vm744_vm4, %v680_v45, %v808_v59  ;;  %v609_v2 = vmul.f32 %v2356_v20, %v533_v54  ;;  %v611_v3 = vmul.f32 %v2356_v20, %v535_v55  ;;  %1160 = vmatprep.mubr.bf16.mxu0 %v969_v56  ;;  %v641_v13 = vmul.f32 %v2356_v20, %v565_v4  ;;  %v571_v55 = vld [vmem:[%s2333_s7 + $0x158] sm:$0xff]  ;;  %v536_v59 = vld [vmem:[%s2333_s7 + $0x40] sm:$0xff] }
  0x6d   : > { %1772 = vmatpush3.bf16.msra.mxu0 %v1957_v14  ;;  %1887 = vmatpush3.bf16.msra.mxu1 %v1957_v14  ;;  %v874_v6 = vsel %vm746_vm5, %v682_v46, %v810_v62  ;;  %vm776_vm6 = vcmp.ge.f32.partialorder %v712_v63, 0.0  ;;  %vm778_vm7 = vcmp.ge.f32.partialorder %v714_v0, 0.0  ;;  %v840_v7 = vmul.f32 0.01, %v712_v63  ;;  %v568_v4 = vld [vmem:[%s2333_s7 + $0x140] sm:$0xff] }
  0x6e   : > { %1773 = vmatprep.subr.bf16.mxu0 %v1958_v15  ;;  %1880 = vmatprep.subr.bf16.mxu1 %v1958_v15  ;;  %v968_v8 = vpack.c.bf16 %v874_v6, %v872_v1  ;;  %v842_v9 = vmul.f32 0.01, %v714_v0  ;;  %v685_v10 = vadd.f32 %v2367_v25, %v609_v2  ;;  %v687_v11 = vadd.f32 %v2367_v25, %v611_v3  ;;  %v532_v15 = vld [vmem:[%s2333_s7 + $0x20] sm:$0xff]  ;;  %v538_v3 = vld [vmem:[%s2333_s7 + $0x50] sm:$0xff] }
  0x6f   : > { %1224 = vmatprep.mubr.bf16.mxu1 %v985_v61  ;;  %v904_v12 = vsel %vm776_vm6, %v712_v63, %v840_v7  ;;  %v643_v14 = vmul.f32 %v2356_v20, %v567_v5  ;;  %v717_v26 = vadd.f32 %v2367_v25, %v641_v13  ;;  %v610_v30 = vmul.f32 %v2354_v19, %v534_v16  ;;  %v541_v16 = vld [vmem:[%s2333_s7 + $0x68] sm:$0xff] }
  0x70   : > { %v906_v18 = vsel %vm778_vm7, %v714_v0, %v842_v9  ;;  %vm749_vm8 = vcmp.ge.f32.partialorder %v685_v10, 0.0  ;;  %vm751_vm9 = vcmp.ge.f32.partialorder %v687_v11, 0.0  ;;  %v813_v21 = vmul.f32 0.01, %v685_v10 }
  0x71   : > { %1774 = vmatpush3.bf16.msra.mxu0 %v1959_v29  ;;  %1888 = vmatpush3.bf16.msra.mxu1 %v1959_v29  ;;  %v984_v22 = vpack.c.bf16 %v906_v18, %v904_v12  ;;  %v815_v23 = vmul.f32 0.01, %v687_v11  ;;  %v719_v27 = vadd.f32 %v2367_v25, %v643_v14  ;;  %v608_v29 = vmul.f32 %v2354_v19, %v532_v15 }
  0x72   : > { %1775 = vmatprep.subr.bf16.mxu0 %v1960_v34  ;;  %1881 = vmatprep.subr.bf16.mxu1 %v1960_v34  ;;  %v877_v28 = vsel %vm749_vm8, %v685_v10, %v813_v21  ;;  %v640_v32 = vmul.f32 %v2354_v19, %v564_v17  ;;  %vm781_vm10 = vcmp.ge.f32.partialorder %v717_v26, 0.0  ;;  %v845_v35 = vmul.f32 0.01, %v717_v26  ;;  %v543_v17 = vld [vmem:[%s2333_s7 + $0x78] sm:$0xff] }
  0x73   : > { %v879_v34 = vsel %vm751_vm9, %v687_v11, %v815_v23  ;;  %vm783_vm11 = vcmp.ge.f32.partialorder %v719_v27, 0.0  ;;  %v847_v37 = vmul.f32 0.01, %v719_v27  ;;  %v684_v38 = vadd.f32 %v2365_v24, %v608_v29  ;;  %v570_v11 = vld [vmem:[%s2333_s7 + $0x150] sm:$0xff] }
  0x74   : > { %v971_v36 = vpack.c.bf16 %v879_v34, %v877_v28  ;;  %v686_v39 = vadd.f32 %v2365_v24, %v610_v30  ;;  %v909_v40 = vsel %vm781_vm10, %v717_v26, %v845_v35  ;;  %v642_v41 = vmul.f32 %v2354_v19, %v566_v31 }
  0x75   : > { %1776 = vmatpush3.bf16.msra.mxu0 %v1961_v42  ;;  %1889 = vmatpush3.bf16.msra.mxu1 %v1961_v42  ;;  %v716_v42 = vadd.f32 %v2365_v24, %v640_v32  ;;  %v613_v44 = vmul.f32 %v2356_v20, %v537_v33  ;;  %v911_v45 = vsel %vm783_vm11, %v719_v27, %v847_v37  ;;  %vm748_vm12 = vcmp.ge.f32.partialorder %v684_v38, 0.0  ;;  %v573_v32 = vld [vmem:[%s2333_s7 + $0x168] sm:$0xff]  ;;  %v575_v33 = vld [vmem:[%s2333_s7 + $0x178] sm:$0xff] }
  0x76   : > { %1777 = vmatprep.subr.bf16.mxu0 %v1962_v43  ;;  %1882 = vmatprep.subr.bf16.mxu1 %v1962_v43  ;;  %v539_v43 = vld [vmem:[%s2333_s7 + $0x58] sm:$0xff]  ;;  %vm750_vm13 = vcmp.ge.f32.partialorder %v686_v39, 0.0  ;;  %v812_v46 = vmul.f32 0.01, %v684_v38  ;;  %v987_v48 = vpack.c.bf16 %v911_v45, %v909_v40  ;;  %v814_v49 = vmul.f32 0.01, %v686_v39 }
  0x77   : > { %v718_v50 = vadd.f32 %v2365_v24, %v642_v41  ;;  %vm780_vm14 = vcmp.ge.f32.partialorder %v716_v42, 0.0  ;;  %v844_v52 = vmul.f32 0.01, %v716_v42  ;;  %v615_v53 = vmul.f32 %v2356_v20, %v539_v43 }
  0x78   : > { %v876_v51 = vsel %vm748_vm12, %v684_v38, %v812_v46  ;;  %v689_v54 = vadd.f32 %v2367_v25, %v613_v44  ;;  %v878_v56 = vsel %vm750_vm13, %v686_v39, %v814_v49  ;;  %v645_v58 = vmul.f32 %v2356_v20, %v569_v47  ;;  %v540_v44 = vld [vmem:[%s2333_s7 + $0x60] sm:$0xff] }
  0x79   : > { %1778 = vmatpush3.bf16.msra.mxu0 %v1963_v60  ;;  %1890 = vmatpush3.bf16.msra.mxu1 %v1963_v60  ;;  %vm782_vm15 = vcmp.ge.f32.partialorder %v718_v50, 0.0  ;;  %v846_v57 = vmul.f32 0.01, %v718_v50  ;;  %v970_v60 = vpack.c.bf16 %v878_v56, %v876_v51  ;;  %v908_v61 = vsel %vm780_vm14, %v716_v42, %v844_v52 }
  0x7a   : > { %v691_v62 = vadd.f32 %v2367_v25, %v615_v53  ;;  %vm753_vm0 = vcmp.ge.f32.partialorder %v689_v54, 0.0  ;;  %v817_v0 = vmul.f32 0.01, %v689_v54  ;;  %v647_v1 = vmul.f32 %v2356_v20, %v571_v55  ;;  %v572_v55 = vld [vmem:[%s2333_s7 + $0x160] sm:$0xff] }
  0x7b   : > { %v910_v63 = vsel %vm782_vm15, %v718_v50, %v846_v57  ;;  %v721_v2 = vadd.f32 %v2367_v25, %v645_v58  ;;  %v612_v7 = vmul.f32 %v2354_v19, %v536_v59  ;;  %v614_v13 = vmul.f32 %v2354_v19, %v538_v3 }
  0x7c   : > { %1161 = vmatmul.mubr.bf16.vlgmr.msra.gmra.mxu0 %v968_v8  ;;  %1225 = vmatmul.mubr.bf16.vlgmr.msra.gmra.mxu1 %v984_v22  ;;  %v986_v5 = vpack.c.bf16 %v910_v63, %v908_v61  ;;  %vm755_vm1 = vcmp.ge.f32.partialorder %v691_v62, 0.0  ;;  %v819_v6 = vmul.f32 0.01, %v691_v62  ;;  %v881_v8 = vsel %vm753_vm0, %v689_v54, %v817_v0  ;;  %v545_v61 = vld [vmem:[%s2333_s7 + $0x88] sm:$0xff] }
  0x7d   : > { %1168 = vmatprep.mubr.bf16.mxu0 %v971_v36  ;;  %1232 = vmatprep.mubr.bf16.mxu1 %v987_v48  ;;  %v723_v9 = vadd.f32 %v2367_v25, %v647_v1  ;;  %vm785_vm2 = vcmp.ge.f32.partialorder %v721_v2, 0.0  ;;  %v849_v10 = vmul.f32 0.01, %v721_v2  ;;  %v688_v14 = vadd.f32 %v2365_v24, %v612_v7  ;;  %v542_v48 = vld [vmem:[%s2333_s7 + $0x70] sm:$0xff] }
  0x7e   : > { %v883_v12 = vsel %vm755_vm1, %v691_v62, %v819_v6  ;;  %v644_v15 = vmul.f32 %v2354_v19, %v568_v4  ;;  %v690_v23 = vadd.f32 %v2365_v24, %v614_v13  ;;  %v646_v27 = vmul.f32 %v2354_v19, %v570_v11  ;;  %v547_v62 = vld [vmem:[%s2333_s7 + $0x98] sm:$0xff] }
  0x7f   : > { %v973_v18 = vpack.c.bf16 %v883_v12, %v881_v8  ;;  %vm787_vm3 = vcmp.ge.f32.partialorder %v723_v9, 0.0  ;;  %v851_v21 = vmul.f32 0.01, %v723_v9  ;;  %v913_v22 = vsel %vm785_vm2, %v721_v2, %v849_v10 }
  0x80   : > { %vm752_vm4 = vcmp.ge.f32.partialorder %v688_v14, 0.0  ;;  %v816_v26 = vmul.f32 0.01, %v688_v14  ;;  %v720_v29 = vadd.f32 %v2365_v24, %v644_v15  ;;  %v617_v30 = vmul.f32 %v2356_v20, %v541_v16 }
  0x81   : > { %v915_v28 = vsel %vm787_vm3, %v723_v9, %v851_v21  ;;  %v619_v31 = vmul.f32 %v2356_v20, %v543_v17  ;;  %vm754_vm5 = vcmp.ge.f32.partialorder %v690_v23, 0.0  ;;  %v818_v35 = vmul.f32 0.01, %v690_v23  ;;  %v577_v9 = vld [vmem:[%s2333_s7 + $0x188] sm:$0xff]  ;;  %v579_v21 = vld [vmem:[%s2333_s7 + $0x198] sm:$0xff] }
  0x82   : > { %v989_v34 = vpack.c.bf16 %v915_v28, %v913_v22  ;;  %v880_v36 = vsel %vm752_vm4, %v688_v14, %v816_v26  ;;  %v722_v37 = vadd.f32 %v2365_v24, %v646_v27  ;;  %vm784_vm6 = vcmp.ge.f32.partialorder %v720_v29, 0.0  ;;  %v544_v27 = vld [vmem:[%s2333_s7 + $0x80] sm:$0xff]  ;;  %v546_v28 = vld [vmem:[%s2333_s7 + $0x90] sm:$0xff] }
  0x83   : > { %v848_v38 = vmul.f32 0.01, %v720_v29  ;;  %v693_v39 = vadd.f32 %v2367_v25, %v617_v30  ;;  %v882_v40 = vsel %vm754_vm5, %v690_v23, %v818_v35  ;;  %v695_v41 = vadd.f32 %v2367_v25, %v619_v31 }
  0x84   : > { %1169 = vmatmul.mubr.bf16.gmra.mxu0 %v970_v60  ;;  %1233 = vmatmul.mubr.bf16.gmra.mxu1 %v986_v5  ;;  %v649_v42 = vmul.f32 %v2356_v20, %v573_v32  ;;  %v651_v43 = vmul.f32 %v2356_v20, %v575_v33  ;;  %v972_v45 = vpack.c.bf16 %v882_v40, %v880_v36  ;;  %vm786_vm7 = vcmp.ge.f32.partialorder %v722_v37, 0.0  ;;  %v574_v60 = vld [vmem:[%s2333_s7 + $0x170] sm:$0xff] }
  0x85   : > { %1176 = vmatprep.mubr.bf16.mxu0 %v973_v18  ;;  %1240 = vmatprep.mubr.bf16.mxu1 %v989_v34  ;;  %v850_v46 = vmul.f32 0.01, %v722_v37  ;;  %v912_v47 = vsel %vm784_vm6, %v720_v29, %v848_v38  ;;  %vm757_vm8 = vcmp.ge.f32.partialorder %v693_v39, 0.0  ;;  %vm759_vm9 = vcmp.ge.f32.partialorder %v695_v41, 0.0 }
  0x86   : > { %v821_v49 = vmul.f32 0.01, %v693_v39  ;;  %v823_v50 = vmul.f32 0.01, %v695_v41  ;;  %v725_v52 = vadd.f32 %v2367_v25, %v649_v42  ;;  %v727_v53 = vadd.f32 %v2367_v25, %v651_v43 }
  0x87   : > { %v914_v51 = vsel %vm786_vm7, %v722_v37, %v850_v46  ;;  %v616_v54 = vmul.f32 %v2354_v19, %v540_v44  ;;  %v618_v59 = vmul.f32 %v2354_v19, %v542_v48  ;;  %v648_v4 = vmul.f32 %v2354_v19, %v572_v55  ;;  %v578_v44 = vld [vmem:[%s2333_s7 + $0x190] sm:$0xff]  ;;  %v551_v55 = vld [vmem:[%s2333_s7 + $0xb8] sm:$0xff] }
  0x88   : > { %v988_v56 = vpack.c.bf16 %v914_v51, %v912_v47  ;;  %v885_v57 = vsel %vm757_vm8, %v693_v39, %v821_v49  ;;  %v887_v58 = vsel %vm759_vm9, %v695_v41, %v823_v50  ;;  %vm789_vm10 = vcmp.ge.f32.partialorder %v725_v52, 0.0  ;;  %v576_v39 = vld [vmem:[%s2333_s7 + $0x180] sm:$0xff]  ;;  %v549_v51 = vld [vmem:[%s2333_s7 + $0xa8] sm:$0xff] }
  0x89   : > { %v975_v63 = vpack.c.bf16 %v887_v58, %v885_v57  ;;  %vm791_vm11 = vcmp.ge.f32.partialorder %v727_v53, 0.0  ;;  %v853_v0 = vmul.f32 0.01, %v725_v52  ;;  %v855_v1 = vmul.f32 0.01, %v727_v53 }
  0x8a   : > { %v692_v2 = vadd.f32 %v2365_v24, %v616_v54  ;;  %v694_v3 = vadd.f32 %v2365_v24, %v618_v59  ;;  %v650_v6 = vmul.f32 %v2354_v19, %v574_v60  ;;  %v621_v7 = vmul.f32 %v2356_v20, %v545_v61 }
  0x8b   : > { %v917_v5 = vsel %vm789_vm10, %v725_v52, %v853_v0  ;;  %v623_v8 = vmul.f32 %v2356_v20, %v547_v62  ;;  %v919_v10 = vsel %vm791_vm11, %v727_v53, %v855_v1  ;;  %v724_v14 = vadd.f32 %v2365_v24, %v648_v4  ;;  %v583_v0 = vld [vmem:[%s2333_s7 + $0x1b8] sm:$0xff]  ;;  %v548_v4 = vld [vmem:[%s2333_s7 + $0xa0] sm:$0xff] }
  0x8c   : > { %1177 = vmatmul.mubr.bf16.gmra.mxu0 %v972_v45  ;;  %1241 = vmatmul.mubr.bf16.gmra.mxu1 %v988_v56  ;;  %vm756_vm12 = vcmp.ge.f32.partialorder %v692_v2, 0.0  ;;  %vm758_vm13 = vcmp.ge.f32.partialorder %v694_v3, 0.0  ;;  %v820_v11 = vmul.f32 0.01, %v692_v2  ;;  %v991_v12 = vpack.c.bf16 %v919_v10, %v917_v5 }
  0x8d   : > { %1184 = vmatprep.mubr.bf16.mxu0 %v975_v63  ;;  %v822_v13 = vmul.f32 0.01, %v694_v3  ;;  %v726_v15 = vadd.f32 %v2365_v24, %v650_v6  ;;  %v697_v17 = vadd.f32 %v2367_v25, %v621_v7  ;;  %v699_v18 = vadd.f32 %v2367_v25, %v623_v8  ;;  %v581_v63 = vld [vmem:[%s2333_s7 + $0x1a8] sm:$0xff] }
  0x8e   : > { %v884_v16 = vsel %vm756_vm12, %v692_v2, %v820_v11  ;;  %v653_v22 = vmul.f32 %v2356_v20, %v577_v9  ;;  %1248 = vmatprep.mubr.bf16.mxu1 %v991_v12  ;;  %vm788_vm14 = vcmp.ge.f32.partialorder %v724_v14, 0.0  ;;  %v852_v26 = vmul.f32 0.01, %v724_v14  ;;  %v550_v12 = vld [vmem:[%s2333_s7 + $0xb0] sm:$0xff] }
  0x8f   : > { %v886_v23 = vsel %vm758_vm13, %v694_v3, %v822_v13  ;;  %vm790_vm15 = vcmp.ge.f32.partialorder %v726_v15, 0.0  ;;  %v854_v30 = vmul.f32 0.01, %v726_v15  ;;  %vm761_vm0 = vcmp.ge.f32.partialorder %v697_v17, 0.0 }
  0x90   : > { %v974_v29 = vpack.c.bf16 %v886_v23, %v884_v16  ;;  %vm763_vm1 = vcmp.ge.f32.partialorder %v699_v18, 0.0  ;;  %v916_v31 = vsel %vm788_vm14, %v724_v14, %v852_v26  ;;  %v825_v32 = vmul.f32 0.01, %v697_v17  ;;  %v580_v16 = vld [vmem:[%s2333_s7 + $0x1a0] sm:$0xff] }
  0x91   : > { %v827_v33 = vmul.f32 0.01, %v699_v18  ;;  %v655_v34 = vmul.f32 %v2356_v20, %v579_v21  ;;  %v918_v35 = vsel %vm790_vm15, %v726_v15, %v854_v30  ;;  %v729_v36 = vadd.f32 %v2367_v25, %v653_v22 }
  0x92   : > { %v620_v37 = vmul.f32 %v2354_v19, %v544_v27  ;;  %v622_v38 = vmul.f32 %v2354_v19, %v546_v28  ;;  %v990_v40 = vpack.c.bf16 %v918_v35, %v916_v31  ;;  %v889_v41 = vsel %vm761_vm0, %v697_v17, %v825_v32  ;;  %v582_v28 = vld [vmem:[%s2333_s7 + $0x1b0] sm:$0xff]  ;;  %v553_v35 = vld [vmem:[%s2333_s7 + $0xc8] sm:$0xff] }
  0x93   : > { %v891_v42 = vsel %vm763_vm1, %v699_v18, %v827_v33  ;;  %v731_v43 = vadd.f32 %v2367_v25, %v655_v34  ;;  %vm793_vm2 = vcmp.ge.f32.partialorder %v729_v36, 0.0  ;;  %v857_v46 = vmul.f32 0.01, %v729_v36 }
  0x94   : > { %1185 = vmatmul.mubr.bf16.gmra.mxu0 %v974_v29  ;;  %v977_v45 = vpack.c.bf16 %v891_v42, %v889_v41  ;;  %v696_v47 = vadd.f32 %v2365_v24, %v620_v37  ;;  %1249 = vmatmul.mubr.bf16.gmra.mxu1 %v990_v40  ;;  %v698_v49 = vadd.f32 %v2365_v24, %v622_v38 }
  0x95   : > { %vm795_vm3 = vcmp.ge.f32.partialorder %v731_v43, 0.0  ;;  %v859_v48 = vmul.f32 0.01, %v731_v43  ;;  %v652_v50 = vmul.f32 %v2354_v19, %v576_v39  ;;  %v921_v52 = vsel %vm793_vm2, %v729_v36, %v857_v46  ;;  %v555_v39 = vld [vmem:[%s2333_s7 + $0xd8] sm:$0xff] }
  0x96   : > { %1192 = vmatprep.mubr.bf16.mxu0 %v977_v45  ;;  %vm760_vm4 = vcmp.ge.f32.partialorder %v696_v47, 0.0  ;;  %v824_v53 = vmul.f32 0.01, %v696_v47  ;;  %v654_v54 = vmul.f32 %v2354_v19, %v578_v44  ;;  %vm762_vm5 = vcmp.ge.f32.partialorder %v698_v49, 0.0 }
  0x97   : > { %v923_v56 = vsel %vm795_vm3, %v731_v43, %v859_v48  ;;  %v826_v57 = vmul.f32 0.01, %v698_v49  ;;  %v728_v58 = vadd.f32 %v2365_v24, %v652_v50  ;;  %v625_v62 = vmul.f32 %v2356_v20, %v549_v51  ;;  %v587_v48 = vld [vmem:[%s2333_s7 + $0x1d8] sm:$0xff] }
  0x98   : > { %v993_v59 = vpack.c.bf16 %v923_v56, %v921_v52  ;;  %v888_v60 = vsel %vm760_vm4, %v696_v47, %v824_v53  ;;  %v730_v61 = vadd.f32 %v2365_v24, %v654_v54  ;;  %v627_v3 = vmul.f32 %v2356_v20, %v551_v55  ;;  %v585_v47 = vld [vmem:[%s2333_s7 + $0x1c8] sm:$0xff]  ;;  %v552_v52 = vld [vmem:[%s2333_s7 + $0xc0] sm:$0xff] }
  0x99   : > { %v890_v1 = vsel %vm762_vm5, %v698_v49, %v826_v57  ;;  %vm792_vm6 = vcmp.ge.f32.partialorder %v728_v58, 0.0  ;;  %v856_v2 = vmul.f32 0.01, %v728_v58  ;;  %v701_v7 = vadd.f32 %v2367_v25, %v625_v62 }
  0x9a   : > { %1256 = vmatprep.mubr.bf16.mxu1 %v993_v59  ;;  %v976_v5 = vpack.c.bf16 %v890_v1, %v888_v60  ;;  %vm794_vm7 = vcmp.ge.f32.partialorder %v730_v61, 0.0  ;;  %v858_v6 = vmul.f32 0.01, %v730_v61  ;;  %v703_v9 = vadd.f32 %v2367_v25, %v627_v3  ;;  %v554_v60 = vld [vmem:[%s2333_s7 + $0xd0] sm:$0xff] }
  0x9b   : > { %v920_v8 = vsel %vm792_vm6, %v728_v58, %v856_v2  ;;  %v657_v10 = vmul.f32 %v2356_v20, %v581_v63  ;;  %v659_v11 = vmul.f32 %v2356_v20, %v583_v0  ;;  %vm765_vm8 = vcmp.ge.f32.partialorder %v701_v7, 0.0  ;;  %v584_v0 = vld [vmem:[%s2333_s7 + $0x1c0] sm:$0xff] }
  0x9c   : > { %1193 = vmatmul.mubr.bf16.gmra.mxu0 %v976_v5  ;;  %v922_v13 = vsel %vm794_vm7, %v730_v61, %v858_v6  ;;  %v829_v14 = vmul.f32 0.01, %v701_v7  ;;  %v624_v15 = vmul.f32 %v2354_v19, %v548_v4  ;;  %vm767_vm9 = vcmp.ge.f32.partialorder %v703_v9, 0.0 }
  0x9d   : > { %v992_v17 = vpack.c.bf16 %v922_v13, %v920_v8  ;;  %v831_v18 = vmul.f32 0.01, %v703_v9  ;;  %v733_v21 = vadd.f32 %v2367_v25, %v657_v10  ;;  %v735_v23 = vadd.f32 %v2367_v25, %v659_v11  ;;  %v586_v8 = vld [vmem:[%s2333_s7 + $0x1d0] sm:$0xff] }
  0x9e   : > { %v893_v22 = vsel %vm765_vm8, %v701_v7, %v829_v14  ;;  %v626_v26 = vmul.f32 %v2354_v19, %v550_v12  ;;  %v700_v27 = vadd.f32 %v2365_v24, %v624_v15  ;;  %v656_v31 = vmul.f32 %v2354_v19, %v580_v16  ;;  %v557_v15 = vld [vmem:[%s2333_s7 + $0xe8] sm:$0xff] }
  0x9f   : > { %1257 = vmatmul.mubr.bf16.gmra.mxu1 %v992_v17  ;;  %v895_v29 = vsel %vm767_vm9, %v703_v9, %v831_v18  ;;  %vm797_vm10 = vcmp.ge.f32.partialorder %v733_v21, 0.0  ;;  %v861_v30 = vmul.f32 0.01, %v733_v21  ;;  %vm799_vm11 = vcmp.ge.f32.partialorder %v735_v23, 0.0 }
  0xa0   : > { %v979_v32 = vpack.c.bf16 %v895_v29, %v893_v22  ;;  %v863_v33 = vmul.f32 0.01, %v735_v23  ;;  %v702_v34 = vadd.f32 %v2365_v24, %v626_v26  ;;  %vm764_vm12 = vcmp.ge.f32.partialorder %v700_v27, 0.0 }
  0xa1   : > { %v925_v36 = vsel %vm797_vm10, %v733_v21, %v861_v30  ;;  %v828_v37 = vmul.f32 0.01, %v700_v27  ;;  %v658_v38 = vmul.f32 %v2354_v19, %v582_v28  ;;  %v732_v42 = vadd.f32 %v2365_v24, %v656_v31  ;;  %v559_v21 = vld [vmem:[%s2333_s7 + $0xf8] sm:$0xff]  ;;  %v589_v31 = vld [vmem:[%s2333_s7 + $0x1e8] sm:$0xff] }
  0xa2   : > { %1200 = vmatprep.mubr.bf16.mxu0 %v979_v32  ;;  %v927_v40 = vsel %vm799_vm11, %v735_v23, %v863_v33  ;;  %vm766_vm13 = vcmp.ge.f32.partialorder %v702_v34, 0.0  ;;  %v830_v41 = vmul.f32 0.01, %v702_v34  ;;  %v629_v46 = vmul.f32 %v2356_v20, %v553_v35  ;;  %v591_v32 = vld [vmem:[%s2333_s7 + $0x1f8] sm:$0xff] }
  0xa3   : > { %v995_v43 = vpack.c.bf16 %v927_v40, %v925_v36  ;;  %v892_v44 = vsel %vm764_vm12, %v700_v27, %v828_v37  ;;  %v734_v45 = vadd.f32 %v2365_v24, %v658_v38  ;;  %vm796_vm14 = vcmp.ge.f32.partialorder %v732_v42, 0.0  ;;  %v556_v36 = vld [vmem:[%s2333_s7 + $0xe0] sm:$0xff] }
  0xa4   : > { %v894_v49 = vsel %vm766_vm13, %v702_v34, %v830_v41  ;;  %v860_v50 = vmul.f32 0.01, %v732_v42  ;;  %v631_v51 = vmul.f32 %v2356_v20, %v555_v39  ;;  %v705_v55 = vadd.f32 %v2367_v25, %v629_v46 }
  0xa5   : > { %1264 = vmatprep.mubr.bf16.mxu1 %v995_v43  ;;  %v978_v53 = vpack.c.bf16 %v894_v49, %v892_v44  ;;  %vm798_vm15 = vcmp.ge.f32.partialorder %v734_v45, 0.0  ;;  %v862_v54 = vmul.f32 0.01, %v734_v45  ;;  %v661_v58 = vmul.f32 %v2356_v20, %v585_v47  ;;  %v558_v44 = vld [vmem:[%s2333_s7 + $0xf0] sm:$0xff] }
  0xa6   : > { %v924_v56 = vsel %vm796_vm14, %v732_v42, %v860_v50  ;;  %v707_v57 = vadd.f32 %v2367_v25, %v631_v51  ;;  %v663_v59 = vmul.f32 %v2356_v20, %v587_v48  ;;  %vm769_vm0 = vcmp.ge.f32.partialorder %v705_v55, 0.0  ;;  %v588_v48 = vld [vmem:[%s2333_s7 + $0x1e0] sm:$0xff] }
  0xa7   : > { %1201 = vmatmul.mubr.bf16.gmra.mxu0 %v978_v53  ;;  %v926_v61 = vsel %vm798_vm15, %v734_v45, %v862_v54  ;;  %v833_v62 = vmul.f32 0.01, %v705_v55  ;;  %v628_v63 = vmul.f32 %v2354_v19, %v552_v52  ;;  %v737_v3 = vadd.f32 %v2367_v25, %v661_v58 }
  0xa8   : > { %v994_v1 = vpack.c.bf16 %v926_v61, %v924_v56  ;;  %vm771_vm1 = vcmp.ge.f32.partialorder %v707_v57, 0.0  ;;  %v835_v2 = vmul.f32 0.01, %v707_v57  ;;  %v739_v5 = vadd.f32 %v2367_v25, %v663_v59 }
  0xa9   : > { %v897_v4 = vsel %vm769_vm0, %v705_v55, %v833_v62  ;;  %v630_v6 = vmul.f32 %v2354_v19, %v554_v60  ;;  %v704_v7 = vadd.f32 %v2365_v24, %v628_v63  ;;  %vm801_vm2 = vcmp.ge.f32.partialorder %v737_v3, 0.0  ;;  %v590_v55 = vld [vmem:[%s2333_s7 + $0x1f0] sm:$0xff] }
  0xaa   : > { %1265 = vmatmul.mubr.bf16.gmra.mxu1 %v994_v1  ;;  %v899_v9 = vsel %vm771_vm1, %v707_v57, %v835_v2  ;;  %v865_v10 = vmul.f32 0.01, %v737_v3  ;;  %v660_v11 = vmul.f32 %v2354_v19, %v584_v0  ;;  %vm803_vm3 = vcmp.ge.f32.partialorder %v739_v5, 0.0 }
  0xab   : > { %v981_v12 = vpack.c.bf16 %v899_v9, %v897_v4  ;;  %v867_v13 = vmul.f32 0.01, %v739_v5  ;;  %v706_v14 = vadd.f32 %v2365_v24, %v630_v6  ;;  %vm768_vm4 = vcmp.ge.f32.partialorder %v704_v7, 0.0 }
  0xac   : > { %v929_v16 = vsel %vm801_vm2, %v737_v3, %v865_v10  ;;  %v832_v17 = vmul.f32 0.01, %v704_v7  ;;  %v662_v18 = vmul.f32 %v2354_v19, %v586_v8  ;;  %v736_v26 = vadd.f32 %v2365_v24, %v660_v11 }
  0xad   : > { %1208 = vmatprep.mubr.bf16.mxu0 %v981_v12  ;;  %v931_v22 = vsel %vm803_vm3, %v739_v5, %v867_v13  ;;  %vm770_vm5 = vcmp.ge.f32.partialorder %v706_v14, 0.0  ;;  %v834_v23 = vmul.f32 0.01, %v706_v14  ;;  %v633_v30 = vmul.f32 %v2356_v20, %v557_v15 }
  0xae   : > { %v997_v27 = vpack.c.bf16 %v931_v22, %v929_v16  ;;  %v896_v28 = vsel %vm768_vm4, %v704_v7, %v832_v17  ;;  %v738_v29 = vadd.f32 %v2365_v24, %v662_v18  ;;  %vm800_vm6 = vcmp.ge.f32.partialorder %v736_v26, 0.0  ;;  %v952_v17 = vld [vmem:[#allocation2 + $0x38] sm:$0xff] }
  0xaf   : > { %v898_v33 = vsel %vm770_vm5, %v706_v14, %v834_v23  ;;  %v864_v34 = vmul.f32 0.01, %v736_v26  ;;  %v635_v35 = vmul.f32 %v2356_v20, %v559_v21  ;;  %v709_v39 = vadd.f32 %v2367_v25, %v633_v30  ;;  %v936_v14 = vld [vmem:[#allocation2 + $0xb0] sm:$0xff]  ;;  %v953_v30 = vld [vmem:[#allocation2 + $0x58] sm:$0xff] }
  0xb0   : > { %1272 = vmatprep.mubr.bf16.mxu1 %v997_v27  ;;  %v980_v37 = vpack.c.bf16 %v898_v33, %v896_v28  ;;  %vm802_vm7 = vcmp.ge.f32.partialorder %v738_v29, 0.0  ;;  %v866_v38 = vmul.f32 0.01, %v738_v29  ;;  %v665_v42 = vmul.f32 %v2356_v20, %v589_v31  ;;  %v937_v27 = vld [vmem:[#allocation2] sm:$0xff] }
  0xb1   : > { %v928_v40 = vsel %vm800_vm6, %v736_v26, %v864_v34  ;;  %v711_v41 = vadd.f32 %v2367_v25, %v635_v35  ;;  %v667_v43 = vmul.f32 %v2356_v20, %v591_v32  ;;  %vm773_vm8 = vcmp.ge.f32.partialorder %v709_v39, 0.0 }
  0xb2   : > { %1209 = vmatmul.mubr.bf16.gmra.mxu0 %v980_v37  ;;  %v930_v45 = vsel %vm802_vm7, %v738_v29, %v866_v38  ;;  %v837_v46 = vmul.f32 0.01, %v709_v39  ;;  %v632_v47 = vmul.f32 %v2354_v19, %v556_v36  ;;  %v741_v51 = vadd.f32 %v2367_v25, %v665_v42  ;;  %v938_v37 = vld [vmem:[#allocation2 + $0xd8] sm:$0xff] }
  0xb3   : > { %v996_v49 = vpack.c.bf16 %v930_v45, %v928_v40  ;;  %vm775_vm9 = vcmp.ge.f32.partialorder %v711_v41, 0.0  ;;  %v839_v50 = vmul.f32 0.01, %v711_v41  ;;  %v743_v53 = vadd.f32 %v2367_v25, %v667_v43  ;;  %v954_v40 = vld [vmem:[#allocation2 + $0x40] sm:$0xff] }
  0xb4   : > { %v901_v52 = vsel %vm773_vm8, %v709_v39, %v837_v46  ;;  %v634_v54 = vmul.f32 %v2354_v19, %v558_v44  ;;  %v708_v20 = vadd.f32 %v2365_v24, %v632_v47  ;;  %vm805_vm10 = vcmp.ge.f32.partialorder %v741_v51, 0.0  ;;  %v939_v46 = vld [vmem:[#allocation2 + $0x18] sm:$0xff] }
  0xb5   : > { %1273 = vmatmul.mubr.bf16.gmra.mxu1 %v996_v49  ;;  %v903_v56 = vsel %vm775_vm9, %v711_v41, %v839_v50  ;;  %v869_v57 = vmul.f32 0.01, %v741_v51  ;;  %v664_v58 = vmul.f32 %v2354_v19, %v588_v48  ;;  %vm807_vm11 = vcmp.ge.f32.partialorder %v743_v53, 0.0  ;;  %v955_v50 = vld [vmem:[#allocation2 + $0xc8] sm:$0xff] }
  0xb6   : > { %v983_v59 = vpack.c.bf16 %v903_v56, %v901_v52  ;;  %v871_v60 = vmul.f32 0.01, %v743_v53  ;;  %v710_v61 = vadd.f32 %v2365_v24, %v634_v54  ;;  %vm772_vm12 = vcmp.ge.f32.partialorder %v708_v20, 0.0 }
  0xb7   : > { %v933_v62 = vsel %vm805_vm10, %v741_v51, %v869_v57  ;;  %v836_v63 = vmul.f32 0.01, %v708_v20  ;;  %v666_v25 = vmul.f32 %v2354_v19, %v590_v55  ;;  %v740_v2 = vadd.f32 %v2365_v24, %v664_v58  ;;  %v940_v55 = vld [vmem:[#allocation2 + $0x50] sm:$0xff] }
  0xb8   : > { %1216 = vmatprep.mubr.bf16.mxu0 %v983_v59  ;;  %v935_v0 = vsel %vm807_vm11, %v743_v53, %v871_v60  ;;  %vm774_vm13 = vcmp.ge.f32.partialorder %v710_v61, 0.0  ;;  %v838_v1 = vmul.f32 0.01, %v710_v61 }
  0xb9   : > { %v999_v3 = vpack.c.bf16 %v935_v0, %v933_v62  ;;  %v900_v4 = vsel %vm772_vm12, %v708_v20, %v836_v63  ;;  %v742_v5 = vadd.f32 %v2365_v24, %v666_v25  ;;  %vm804_vm14 = vcmp.ge.f32.partialorder %v740_v2, 0.0  ;;  %v941_v25 = vld [vmem:[#allocation2 + $0x68] sm:$0xff] }
  0xba   : > { %v902_v6 = vsel %vm774_vm13, %v710_v61, %v838_v1  ;;  %v868_v7 = vmul.f32 0.01, %v740_v2  ;;  %v956_v61 = vld [vmem:[#allocation2 + $0xe0] sm:$0xff] }
  0xbb   : > { %1280 = vmatprep.mubr.bf16.mxu1 %v999_v3  ;;  %v982_v8 = vpack.c.bf16 %v902_v6, %v900_v4  ;;  %vm806_vm15 = vcmp.ge.f32.partialorder %v742_v5, 0.0  ;;  %v870_v9 = vmul.f32 0.01, %v742_v5 }
  0xbc   : > { %v932_v10 = vsel %vm804_vm14, %v740_v2, %v868_v7 }
  0xbd   : > { %1217 = vmatmul.mubr.bf16.gmra.mxu0 %v982_v8  ;;  %v934_v19 = vsel %vm806_vm15, %v742_v5, %v870_v9  ;;  %v957_v5 = vld [vmem:[#allocation2 + $0x90] sm:$0xff] }
  0xbe   : > { %v998_v11 = vpack.c.bf16 %v934_v19, %v932_v10  ;;  %v942_v10 = vld [vmem:[#allocation2 + $0x30] sm:$0xff] }
  0xc0   : > { %1281 = vmatmul.mubr.bf16.gmra.mxu1 %v998_v11 }
 0x13c   : > { %v1779_v12 = vpop.f32.mrf.mxu0  ;;  %v1827_v13 = vpop.f32.mrf.mxu1 }
 0x13e   : > { %v1780_v15 = vpop.f32.mrf.mxu0  ;;  %v1828_v18 = vpop.f32.mrf.mxu1 }
 0x13f   : > { %v1781_v16 = vadd.f32 %v1780_v15, %v1779_v12  ;;  %v1829_v24 = vadd.f32 %v1828_v18, %v1827_v13  ;;  %v958_v15 = vld [vmem:[#allocation2 + $0x70] sm:$0xff]  ;;  %v943_v18 = vld [vmem:[#allocation2 + $0x48] sm:$0xff] }
 0x140   : > { %v1782_v21 = vpop.f32.mrf.mxu0  ;;  %v1830_v23 = vpop.f32.mrf.mxu1 }
 0x141   : > { %v1289_v22 = vadd.f32 %v1781_v16, %v936_v14  ;;  %v1305_v26 = vadd.f32 %v1829_v24, %v952_v17 }
 0x142   : > { %v1783_v28 = vpop.f32.mrf.mxu0  ;;  %v1831_v31 = vpop.f32.mrf.mxu1 }
 0x143   : > { %1321 = vst [vmem:[#allocation2 + $0xb0] sm:$0xff] %v1289_v22  ;;  %v1784_v29 = vadd.f32 %v1783_v28, %v1782_v21  ;;  %1337 = vst [vmem:[#allocation2 + $0x38] sm:$0xff] %v1305_v26  ;;  %v1832_v32 = vadd.f32 %v1831_v31, %v1830_v23 }
 0x144   : > { %v1785_v35 = vpop.f32.mrf.mxu0  ;;  %v1833_v36 = vpop.f32.mrf.mxu1 }
 0x145   : > { %v1290_v33 = vadd.f32 %v1784_v29, %v937_v27  ;;  %v1306_v34 = vadd.f32 %v1832_v32, %v953_v30  ;;  %v959_v27 = vld [vmem:[#allocation2 + $0xc0] sm:$0xff] }
 0x146   : > { %v1786_v38 = vpop.f32.mrf.mxu0  ;;  %v1834_v41 = vpop.f32.mrf.mxu1  ;;  %v944_v32 = vld [vmem:[#allocation2 + $0x80] sm:$0xff] }
 0x147   : > { %1322 = vst [vmem:[#allocation2] sm:$0xff] %v1290_v33  ;;  %1338 = vst [vmem:[#allocation2 + $0x58] sm:$0xff] %v1306_v34  ;;  %v1787_v39 = vadd.f32 %v1786_v38, %v1785_v35  ;;  %v1835_v44 = vadd.f32 %v1834_v41, %v1833_v36  ;;  %v960_v38 = vld [vmem:[#allocation2 + $0xa8] sm:$0xff] }
 0x148   : > { %v1788_v42 = vpop.f32.mrf.mxu0  ;;  %v1836_v45 = vpop.f32.mrf.mxu1  ;;  %v945_v41 = vld [vmem:[#allocation2 + $0x88] sm:$0xff] }
 0x149   : > { %v1291_v43 = vadd.f32 %v1787_v39, %v938_v37  ;;  %v1307_v48 = vadd.f32 %v1835_v44, %v954_v40 }
 0x14a   : > { %v1789_v47 = vpop.f32.mrf.mxu0  ;;  %v1837_v51 = vpop.f32.mrf.mxu1 }
 0x14b   : > { %1323 = vst [vmem:[#allocation2 + $0xd8] sm:$0xff] %v1291_v43  ;;  %v1790_v49 = vadd.f32 %v1789_v47, %v1788_v42  ;;  %1339 = vst [vmem:[#allocation2 + $0x40] sm:$0xff] %v1307_v48  ;;  %v1838_v53 = vadd.f32 %v1837_v51, %v1836_v45  ;;  %v961_v47 = vld [vmem:[#allocation2 + $0xd0] sm:$0xff] }
 0x14c   : > { %v1791_v20 = vpop.f32.mrf.mxu0  ;;  %v1839_v57 = vpop.f32.mrf.mxu1 }
 0x14d   : > { %v1292_v52 = vadd.f32 %v1790_v49, %v939_v46  ;;  %v1308_v54 = vadd.f32 %v1838_v53, %v955_v50 }
 0x14e   : > { %v1792_v56 = vpop.f32.mrf.mxu0  ;;  %v1840_v62 = vpop.f32.mrf.mxu1 }
 0x14f   : > { %1324 = vst [vmem:[#allocation2 + $0x18] sm:$0xff] %v1292_v52  ;;  %1340 = vst [vmem:[#allocation2 + $0xc8] sm:$0xff] %v1308_v54  ;;  %v1793_v58 = vadd.f32 %v1792_v56, %v1791_v20  ;;  %v1841_v63 = vadd.f32 %v1840_v62, %v1839_v57  ;;  %v946_v52 = vld [vmem:[#allocation2 + $0xe8] sm:$0xff]  ;;  %v962_v57 = vld [vmem:[#allocation2 + $0x10] sm:$0xff] }
 0x150   : > { %v1794_v59 = vpop.f32.mrf.mxu0  ;;  %v1842_v1 = vpop.f32.mrf.mxu1 }
 0x151   : > { %v1293_v60 = vadd.f32 %v1793_v58, %v940_v55  ;;  %v1309_v3 = vadd.f32 %v1841_v63, %v956_v61 }
 0x152   : > { %v1795_v0 = vpop.f32.mrf.mxu0  ;;  %v1843_v6 = vpop.f32.mrf.mxu1 }
 0x153   : > { %1325 = vst [vmem:[#allocation2 + $0x50] sm:$0xff] %v1293_v60  ;;  %v1796_v2 = vadd.f32 %v1795_v0, %v1794_v59  ;;  %1341 = vst [vmem:[#allocation2 + $0xe0] sm:$0xff] %v1309_v3  ;;  %v1844_v7 = vadd.f32 %v1843_v6, %v1842_v1  ;;  %v947_v60 = vld [vmem:[#allocation2 + $0xb8] sm:$0xff]  ;;  %v963_v1 = vld [vmem:[#allocation2 + $0x28] sm:$0xff] }
 0x154   : > { %v1797_v8 = vpop.f32.mrf.mxu0  ;;  %v1845_v11 = vpop.f32.mrf.mxu1  ;;  %v948_v6 = vld [vmem:[#allocation2 + $0x60] sm:$0xff] }
 0x155   : > { %v1294_v4 = vadd.f32 %v1796_v2, %v941_v25  ;;  %v1310_v9 = vadd.f32 %v1844_v7, %v957_v5 }
 0x156   : > { %v1798_v19 = vpop.f32.mrf.mxu0  ;;  %v1846_v16 = vpop.f32.mrf.mxu1 }
 0x157   : > { %1326 = vst [vmem:[#allocation2 + $0x68] sm:$0xff] %v1294_v4  ;;  %1342 = vst [vmem:[#allocation2 + $0x90] sm:$0xff] %v1310_v9  ;;  %v1799_v12 = vadd.f32 %v1798_v19, %v1797_v8  ;;  %v1847_v17 = vadd.f32 %v1846_v16, %v1845_v11  ;;  %v964_v11 = vld [vmem:[#allocation2 + $0xa0] sm:$0xff] }
 0x158   : > { %v1800_v13 = vpop.f32.mrf.mxu0  ;;  %v1848_v21 = vpop.f32.mrf.mxu1 }
 0x159   : > { %v1295_v14 = vadd.f32 %v1799_v12, %v942_v10  ;;  %v1311_v23 = vadd.f32 %v1847_v17, %v958_v15 }
 0x15a   : > { %v1801_v24 = vpop.f32.mrf.mxu0  ;;  %v1849_v28 = vpop.f32.mrf.mxu1 }
 0x15b   : > { %1327 = vst [vmem:[#allocation2 + $0x30] sm:$0xff] %v1295_v14  ;;  %v1802_v22 = vadd.f32 %v1801_v24, %v1800_v13  ;;  %1343 = vst [vmem:[#allocation2 + $0x70] sm:$0xff] %v1311_v23  ;;  %v1850_v29 = vadd.f32 %v1849_v28, %v1848_v21  ;;  %v949_v14 = vld [vmem:[#allocation2 + $0xf0] sm:$0xff]  ;;  %v965_v21 = vld [vmem:[#allocation2 + $0xf8] sm:$0xff] }
 0x15c   : > { %v1803_v30 = vpop.f32.mrf.mxu0  ;;  %v950_v28 = vld [vmem:[#allocation2 + $0x8] sm:$0xff] }
 0x15d   : > { %v1296_v26 = vadd.f32 %v1802_v22, %v943_v18  ;;  %v1312_v31 = vadd.f32 %v1850_v29, %v959_v27 }
 0x15e   : > { %v1804_v33 = vpop.f32.mrf.mxu0 }
 0x15f   : > { %1328 = vst [vmem:[#allocation2 + $0x48] sm:$0xff] %v1296_v26  ;;  %v1851_v34 = vpop.f32.mrf.mxu1  ;;  %v1805_v35 = vadd.f32 %v1804_v33, %v1803_v30  ;;  %1344 = vst [vmem:[#allocation2 + $0xc0] sm:$0xff] %v1312_v31 }
 0x160   : > { %v1806_v36 = vpop.f32.mrf.mxu0 }
 0x161   : > { %v1297_v37 = vadd.f32 %v1805_v35, %v944_v32  ;;  %v1852_v39 = vpop.f32.mrf.mxu1 }
 0x162   : > { %v1853_v40 = vadd.f32 %v1852_v39, %v1851_v34  ;;  %v1807_v42 = vpop.f32.mrf.mxu0  ;;  %v966_v34 = vld [vmem:[#allocation2 + $0x20] sm:$0xff] }
 0x163   : > { %1329 = vst [vmem:[#allocation2 + $0x80] sm:$0xff] %v1297_v37  ;;  %v1854_v43 = vpop.f32.mrf.mxu1  ;;  %v1808_v44 = vadd.f32 %v1807_v42, %v1806_v36  ;;  %v951_v37 = vld [vmem:[#allocation2 + $0x78] sm:$0xff] }
 0x164   : > { %v1313_v45 = vadd.f32 %v1853_v40, %v960_v38 }
 0x165   : > { %v1298_v46 = vadd.f32 %v1808_v44, %v945_v41  ;;  %v1855_v48 = vpop.f32.mrf.mxu1 }
 0x166   : > { %1345 = vst [vmem:[#allocation2 + $0xa8] sm:$0xff] %v1313_v45  ;;  %v1856_v49 = vadd.f32 %v1855_v48, %v1854_v43  ;;  %v967_v43 = vld [vmem:[#allocation2 + $0x98] sm:$0xff] }
 0x167   : > { %1330 = vst [vmem:[#allocation2 + $0x88] sm:$0xff] %v1298_v46  ;;  %v1809_v50 = vpop.f32.mrf.mxu0 }
 0x168   : > { %v1314_v51 = vadd.f32 %v1856_v49, %v961_v47 }
 0x169   : > { %v1810_v53 = vpop.f32.mrf.mxu0 }
 0x16a   : > { %1346 = vst [vmem:[#allocation2 + $0xd0] sm:$0xff] %v1314_v51  ;;  %v1857_v54 = vpop.f32.mrf.mxu1  ;;  %v1811_v20 = vadd.f32 %v1810_v53, %v1809_v50 }
 0x16b   : > { %v1812_v55 = vpop.f32.mrf.mxu0 }
 0x16c   : > { %v1299_v56 = vadd.f32 %v1811_v20, %v946_v52  ;;  %v1858_v58 = vpop.f32.mrf.mxu1 }
 0x16d   : > { %v1859_v59 = vadd.f32 %v1858_v58, %v1857_v54  ;;  %v1813_v61 = vpop.f32.mrf.mxu0 }
 0x16e   : > { %1331 = vst [vmem:[#allocation2 + $0xe8] sm:$0xff] %v1299_v56  ;;  %v1860_v62 = vpop.f32.mrf.mxu1  ;;  %v1814_v63 = vadd.f32 %v1813_v61, %v1812_v55 }
 0x16f   : > { %v1315_v25 = vadd.f32 %v1859_v59, %v962_v57 }
 0x170   : > { %v1300_v0 = vadd.f32 %v1814_v63, %v947_v60  ;;  %v1861_v2 = vpop.f32.mrf.mxu1 }
 0x171   : > { %1347 = vst [vmem:[#allocation2 + $0x10] sm:$0xff] %v1315_v25  ;;  %v1862_v3 = vadd.f32 %v1861_v2, %v1860_v62 }
 0x172   : > { %1332 = vst [vmem:[#allocation2 + $0xb8] sm:$0xff] %v1300_v0  ;;  %v1815_v4 = vpop.f32.mrf.mxu0 }
 0x173   : > { %v1316_v5 = vadd.f32 %v1862_v3, %v963_v1 }
 0x174   : > { %v1816_v7 = vpop.f32.mrf.mxu0 }
 0x175   : > { %1348 = vst [vmem:[#allocation2 + $0x28] sm:$0xff] %v1316_v5  ;;  %v1863_v8 = vpop.f32.mrf.mxu1  ;;  %v1817_v9 = vadd.f32 %v1816_v7, %v1815_v4 }
 0x176   : > { %v1818_v10 = vpop.f32.mrf.mxu0 }
 0x177   : > { %v1301_v19 = vadd.f32 %v1817_v9, %v948_v6  ;;  %v1864_v12 = vpop.f32.mrf.mxu1 }
 0x178   : > { %v1865_v13 = vadd.f32 %v1864_v12, %v1863_v8  ;;  %v1819_v15 = vpop.f32.mrf.mxu0 }
 0x179   : > { %1333 = vst [vmem:[#allocation2 + $0x60] sm:$0xff] %v1301_v19  ;;  %v1866_v16 = vpop.f32.mrf.mxu1  ;;  %v1820_v17 = vadd.f32 %v1819_v15, %v1818_v10 }
 0x17a   : > { %v1317_v18 = vadd.f32 %v1865_v13, %v964_v11 }
 0x17b   : > { %v1302_v24 = vadd.f32 %v1820_v17, %v949_v14  ;;  %v1867_v22 = vpop.f32.mrf.mxu1 }
 0x17c   : > { %1349 = vst [vmem:[#allocation2 + $0xa0] sm:$0xff] %v1317_v18  ;;  %v1868_v23 = vadd.f32 %v1867_v22, %v1866_v16 }
 0x17d   : > { %1334 = vst [vmem:[#allocation2 + $0xf0] sm:$0xff] %v1302_v24  ;;  %v1821_v26 = vpop.f32.mrf.mxu0 }
 0x17e   : > { %v1318_v27 = vadd.f32 %v1868_v23, %v965_v21 }
 0x17f   : > { %v1822_v29 = vpop.f32.mrf.mxu0 }
 0x180   : > { %1350 = vst [vmem:[#allocation2 + $0xf8] sm:$0xff] %v1318_v27  ;;  %v1869_v30 = vpop.f32.mrf.mxu1  ;;  %v1823_v31 = vadd.f32 %v1822_v29, %v1821_v26 }
 0x181   : > { %v1824_v32 = vpop.f32.mrf.mxu0 }
 0x182   : > { %v1303_v33 = vadd.f32 %v1823_v31, %v950_v28  ;;  %v1870_v35 = vpop.f32.mrf.mxu1 }
 0x183   : > { %v1871_v36 = vadd.f32 %v1870_v35, %v1869_v30  ;;  %v1825_v38 = vpop.f32.mrf.mxu0 }
 0x184   : > { %1335 = vst [vmem:[#allocation2 + $0x8] sm:$0xff] %v1303_v33  ;;  %v1872_v39 = vpop.f32.mrf.mxu1  ;;  %v1826_v40 = vadd.f32 %v1825_v38, %v1824_v32 }
 0x185   : > { %v1319_v41 = vadd.f32 %v1871_v36, %v966_v34 }
 0x186   : > { %v1304_v42 = vadd.f32 %v1826_v40, %v951_v37  ;;  %v1873_v44 = vpop.f32.mrf.mxu1 }
 0x187   : > { %1351 = vst [vmem:[#allocation2 + $0x20] sm:$0xff] %v1319_v41  ;;  %v1874_v45 = vadd.f32 %v1873_v44, %v1872_v39  ;;  %1356 = sbr.rel (%p1758_p0) target bundleno = 451 (0x1c3), region = 71 }
 0x188   : > { %1336 = vst [vmem:[#allocation2 + $0x78] sm:$0xff] %v1304_v42 }
 0x189   : > { %v1320_v46 = vadd.f32 %v1874_v45, %v967_v43 }
 0x18b   : > { %1352 = vst [vmem:[#allocation2 + $0x98] sm:$0xff] %v1320_v46 }
 0x18c   : > { %v1357_v47 = vld [vmem:[#allocation2 + $0xb0] sm:$0xff]  ;;  %v2568_v48 = vld [vmem:[%s2659_s4] ss:$0 sm:$0xff]  ;;  %v1359_v52 = vld [vmem:[#allocation2 + $0xd8] sm:$0xff] }
 0x18d   : > { %v1358_v49 = vld [vmem:[#allocation2] sm:$0xff]  ;;  %v1396_v50 = vadd.f32 %v2568_v48, %v1357_v47  ;;  %v1360_v53 = vld [vmem:[#allocation2 + $0x18] sm:$0xff]  ;;  %v1361_v54 = vld [vmem:[#allocation2 + $0x50] sm:$0xff]  ;;  %v1398_v20 = vadd.f32 %v2568_v48, %v1359_v52 }
 0x18e   : > { %v1397_v51 = vadd.f32 %v2568_v48, %v1358_v49  ;;  %v1399_v55 = vadd.f32 %v2568_v48, %v1360_v53  ;;  %v1400_v56 = vadd.f32 %v2568_v48, %v1361_v54  ;;  %v1362_v57 = vld [vmem:[#allocation2 + $0x68] sm:$0xff]  ;;  %v1363_v58 = vld [vmem:[#allocation2 + $0x30] sm:$0xff]  ;;  %v1365_v25 = vld [vmem:[#allocation2 + $0x80] sm:$0xff] }
 0x18f   : > { %v1364_v59 = vld [vmem:[#allocation2 + $0x48] sm:$0xff]  ;;  %v1428_v60 = vmul.f32 0.5, %v1396_v50  ;;  %v1401_v62 = vadd.f32 %v2568_v48, %v1362_v57  ;;  %v1402_v63 = vadd.f32 %v2568_v48, %v1363_v58  ;;  %v1430_v1 = vmul.f32 0.5, %v1398_v20  ;;  %v1368_v5 = vld [vmem:[#allocation2 + $0xb8] sm:$0xff]  ;;  %v1369_v8 = vld [vmem:[#allocation2 + $0x60] sm:$0xff] }
 0x190   : > { %v1429_v61 = vmul.f32 0.5, %v1397_v51  ;;  %v1366_v0 = vld [vmem:[#allocation2 + $0x88] sm:$0xff]  ;;  %v1431_v2 = vmul.f32 0.5, %v1399_v55  ;;  %v1403_v3 = vadd.f32 %v2568_v48, %v1364_v59  ;;  %v1432_v6 = vmul.f32 0.5, %v1400_v56  ;;  %v1370_v19 = vld [vmem:[#allocation2 + $0xf0] sm:$0xff]  ;;  %v1372_v24 = vld [vmem:[#allocation2 + $0x78] sm:$0xff] }
 0x191   : > { %v1367_v4 = vld [vmem:[#allocation2 + $0xe8] sm:$0xff]  ;;  %1964 = vtanh.f32 %v1428_v60  ;;  %v1404_v7 = vadd.f32 %v2568_v48, %v1365_v25  ;;  %v1433_v9 = vmul.f32 0.5, %v1401_v62  ;;  %v1405_v10 = vadd.f32 %v2568_v48, %v1366_v0  ;;  %v1373_v21 = vld [vmem:[#allocation2 + $0x38] sm:$0xff]  ;;  %v1375_v26 = vld [vmem:[#allocation2 + $0x40] sm:$0xff] }
 0x192   : > { %1966 = vtanh.f32 %v1429_v61  ;;  %v1434_v11 = vmul.f32 0.5, %v1402_v63  ;;  %v1406_v12 = vadd.f32 %v2568_v48, %v1367_v4  ;;  %v1407_v13 = vadd.f32 %v2568_v48, %v1368_v5  ;;  %v1371_v16 = vld [vmem:[#allocation2 + $0x8] sm:$0xff]  ;;  %v1374_v23 = vld [vmem:[#allocation2 + $0x58] sm:$0xff]  ;;  %v1377_v31 = vld [vmem:[#allocation2 + $0xe0] sm:$0xff] }
 0x193   : > { %1968 = vtanh.f32 %v1430_v1  ;;  %v1435_v14 = vmul.f32 0.5, %v1403_v3  ;;  %v1408_v15 = vadd.f32 %v2568_v48, %v1369_v8  ;;  %v1436_v17 = vmul.f32 0.5, %v1404_v7  ;;  %v1376_v30 = vld [vmem:[#allocation2 + $0xc8] sm:$0xff]  ;;  %v1378_v32 = vld [vmem:[#allocation2 + $0x90] sm:$0xff]  ;;  %v1380_v37 = vld [vmem:[#allocation2 + $0xc0] sm:$0xff] }
 0x194   : > { %1970 = vtanh.f32 %v1431_v2  ;;  %v1409_v18 = vadd.f32 %v2568_v48, %v1370_v19  ;;  %v1437_v22 = vmul.f32 0.5, %v1405_v10  ;;  %v1438_v27 = vmul.f32 0.5, %v1406_v12  ;;  %v1379_v36 = vld [vmem:[#allocation2 + $0x70] sm:$0xff]  ;;  %v1381_v41 = vld [vmem:[#allocation2 + $0xa8] sm:$0xff]  ;;  %v1385_v4 = vld [vmem:[#allocation2 + $0xa0] sm:$0xff] }
 0x195   : > { %1972 = vtanh.f32 %v1432_v6  ;;  %v1439_v28 = vmul.f32 0.5, %v1407_v13  ;;  %v1410_v29 = vadd.f32 %v2568_v48, %v1371_v16  ;;  %v1440_v33 = vmul.f32 0.5, %v1408_v15  ;;  %v1382_v45 = vld [vmem:[#allocation2 + $0xd0] sm:$0xff]  ;;  %v1384_v25 = vld [vmem:[#allocation2 + $0x28] sm:$0xff]  ;;  %v1386_v12 = vld [vmem:[#allocation2 + $0xf8] sm:$0xff] }
 0x196   : > { %1974 = vtanh.f32 %v1433_v9  ;;  %v1411_v34 = vadd.f32 %v2568_v48, %v1372_v24  ;;  %v1412_v35 = vadd.f32 %v2568_v48, %v1373_v21  ;;  %v1441_v38 = vmul.f32 0.5, %v1409_v18  ;;  %v1383_v55 = vld [vmem:[#allocation2 + $0x10] sm:$0xff] }
 0x197   : > { %1976 = vtanh.f32 %v1434_v11  ;;  %v1413_v39 = vadd.f32 %v2568_v48, %v1374_v23  ;;  %v1414_v40 = vadd.f32 %v2568_v48, %v1375_v26  ;;  %v1415_v42 = vadd.f32 %v2568_v48, %v1376_v30 }
 0x198   : > { %1978 = vtanh.f32 %v1435_v14  ;;  %v1416_v43 = vadd.f32 %v2568_v48, %v1377_v31  ;;  %v1417_v44 = vadd.f32 %v2568_v48, %v1378_v32  ;;  %v1442_v46 = vmul.f32 0.5, %v1410_v29  ;;  %v1388_v29 = vld [vmem:[#allocation2 + $0x98] sm:$0xff] }
 0x199   : > { %1980 = vtanh.f32 %v1436_v17  ;;  %v1418_v47 = vadd.f32 %v2568_v48, %v1379_v36  ;;  %v1419_v49 = vadd.f32 %v2568_v48, %v1380_v37  ;;  %v1443_v50 = vmul.f32 0.5, %v1411_v34 }
 0x19a   : > { %1982 = vtanh.f32 %v1437_v22  ;;  %v1444_v51 = vmul.f32 0.5, %v1412_v35  ;;  %v1420_v52 = vadd.f32 %v2568_v48, %v1381_v41  ;;  %v1445_v53 = vmul.f32 0.5, %v1413_v39  ;;  %v1387_v22 = vld [vmem:[#allocation2 + $0x20] sm:$0xff] }
 0x19b   : > { %1984 = vtanh.f32 %v1438_v27  ;;  %v1446_v54 = vmul.f32 0.5, %v1414_v40  ;;  %v1421_v20 = vadd.f32 %v2568_v48, %v1382_v45  ;;  %v1447_v57 = vmul.f32 0.5, %v1415_v42 }
 0x19c   : > { %1986 = vtanh.f32 %v1439_v28  ;;  %v1448_v58 = vmul.f32 0.5, %v1416_v43  ;;  %v1449_v59 = vmul.f32 0.5, %v1417_v44  ;;  %v1450_v62 = vmul.f32 0.5, %v1418_v47 }
 0x19d   : > { %1988 = vtanh.f32 %v1440_v33  ;;  %v1451_v63 = vmul.f32 0.5, %v1419_v49  ;;  %v1452_v2 = vmul.f32 0.5, %v1420_v52  ;;  %v1422_v3 = vadd.f32 %v2568_v48, %v1383_v55 }
 0x19e   : > { %v1965_v56 = vpop.eup %1964  ;;  %1990 = vtanh.f32 %v1441_v38  ;;  %v1453_v8 = vmul.f32 0.5, %v1421_v20  ;;  %v1423_v11 = vadd.f32 %v2568_v48, %v1384_v25  ;;  %v1424_v16 = vadd.f32 %v2568_v48, %v1385_v4 }
 0x19f   : > { %v1967_v60 = vpop.eup %1966  ;;  %v1492_v61 = vadd.f32 1.0, %v1965_v56  ;;  %1992 = vtanh.f32 %v1442_v46  ;;  %v1454_v21 = vmul.f32 0.5, %v1422_v3  ;;  %v1425_v28 = vadd.f32 %v2568_v48, %v1386_v12 }
 0x1a0   : > { %v1969_v0 = vpop.eup %1968  ;;  %v1493_v1 = vadd.f32 1.0, %v1967_v60  ;;  %1994 = vtanh.f32 %v1443_v50  ;;  %v1455_v33 = vmul.f32 0.5, %v1423_v11  ;;  %v1426_v37 = vadd.f32 %v2568_v48, %v1387_v22 }
 0x1a1   : > { %v1971_v5 = vpop.eup %1970  ;;  %v1524_v6 = vmul.f32 0.5, %v1492_v61  ;;  %v1494_v7 = vadd.f32 1.0, %v1969_v0  ;;  %1996 = vtanh.f32 %v1444_v51  ;;  %v1427_v41 = vadd.f32 %v2568_v48, %v1388_v29 }
 0x1a2   : > { %v1973_v9 = vpop.eup %1972  ;;  %v1525_v10 = vmul.f32 0.5, %v1493_v1  ;;  %v1495_v19 = vadd.f32 1.0, %v1971_v5  ;;  %1998 = vtanh.f32 %v1445_v53  ;;  %v1456_v45 = vmul.f32 0.5, %v1424_v16 }
 0x1a3   : > { %v1975_v13 = vpop.eup %1974  ;;  %1556 = vst [vmem:[%s2331_s27] sm:$0xff] %v1524_v6  ;;  %v1526_v14 = vmul.f32 0.5, %v1494_v7  ;;  %v1496_v15 = vadd.f32 1.0, %v1973_v9  ;;  %2000 = vtanh.f32 %v1446_v54  ;;  %v1457_v50 = vmul.f32 0.5, %v1425_v28 }
 0x1a4   : > { %v1977_v17 = vpop.eup %1976  ;;  %1557 = vst [vmem:[%s2331_s27 + $0x8] sm:$0xff] %v1525_v10  ;;  %v1527_v18 = vmul.f32 0.5, %v1495_v19  ;;  %v1497_v24 = vadd.f32 1.0, %v1975_v13  ;;  %2002 = vtanh.f32 %v1447_v57  ;;  %v1458_v48 = vmul.f32 0.5, %v1426_v37 }
 0x1a5   : > { %v1979_v23 = vpop.eup %1978  ;;  %1558 = vst [vmem:[%s2331_s27 + $0x10] sm:$0xff] %v1526_v14  ;;  %v1528_v26 = vmul.f32 0.5, %v1496_v15  ;;  %v1498_v27 = vadd.f32 1.0, %v1977_v17  ;;  %2004 = vtanh.f32 %v1448_v58  ;;  %v1459_v56 = vmul.f32 0.5, %v1427_v41 }
 0x1a6   : > { %v1981_v30 = vpop.eup %1980  ;;  %1559 = vst [vmem:[%s2331_s27 + $0x18] sm:$0xff] %v1527_v18  ;;  %v1529_v31 = vmul.f32 0.5, %v1497_v24  ;;  %v1499_v32 = vadd.f32 1.0, %v1979_v23  ;;  %2006 = vtanh.f32 %v1449_v59 }
 0x1a7   : > { %v1983_v34 = vpop.eup %1982  ;;  %1560 = vst [vmem:[%s2331_s27 + $0x20] sm:$0xff] %v1528_v26  ;;  %v1530_v35 = vmul.f32 0.5, %v1498_v27  ;;  %v1500_v36 = vadd.f32 1.0, %v1981_v30  ;;  %2008 = vtanh.f32 %v1450_v62 }
 0x1a8   : > { %v1985_v38 = vpop.eup %1984  ;;  %1561 = vst [vmem:[%s2331_s27 + $0x28] sm:$0xff] %v1529_v31  ;;  %v1531_v39 = vmul.f32 0.5, %v1499_v32  ;;  %v1501_v40 = vadd.f32 1.0, %v1983_v34  ;;  %2010 = vtanh.f32 %v1451_v63 }
 0x1a9   : > { %v1987_v42 = vpop.eup %1986  ;;  %1562 = vst [vmem:[%s2331_s27 + $0x30] sm:$0xff] %v1530_v35  ;;  %v1532_v43 = vmul.f32 0.5, %v1500_v36  ;;  %v1502_v44 = vadd.f32 1.0, %v1985_v38  ;;  %2012 = vtanh.f32 %v1452_v2 }
 0x1aa   : > { %v1989_v46 = vpop.eup %1988  ;;  %1563 = vst [vmem:[%s2331_s27 + $0x38] sm:$0xff] %v1531_v39  ;;  %v1533_v47 = vmul.f32 0.5, %v1501_v40  ;;  %v1503_v49 = vadd.f32 1.0, %v1987_v42  ;;  %2014 = vtanh.f32 %v1453_v8 }
 0x1ab   : > { %v1991_v51 = vpop.eup %1990  ;;  %1564 = vst [vmem:[%s2331_s27 + $0x40] sm:$0xff] %v1532_v43  ;;  %v1534_v52 = vmul.f32 0.5, %v1502_v44  ;;  %v1504_v53 = vadd.f32 1.0, %v1989_v46  ;;  %2016 = vtanh.f32 %v1454_v21 }
 0x1ac   : > { %v1993_v54 = vpop.eup %1992  ;;  %1565 = vst [vmem:[%s2331_s27 + $0x48] sm:$0xff] %v1533_v47  ;;  %v1535_v20 = vmul.f32 0.5, %v1503_v49  ;;  %v1505_v55 = vadd.f32 1.0, %v1991_v51  ;;  %2018 = vtanh.f32 %v1455_v33 }
 0x1ad   : > { %v1995_v57 = vpop.eup %1994  ;;  %1566 = vst [vmem:[%s2331_s27 + $0x50] sm:$0xff] %v1534_v52  ;;  %v1536_v58 = vmul.f32 0.5, %v1504_v53  ;;  %v1506_v59 = vadd.f32 1.0, %v1993_v54  ;;  %2020 = vtanh.f32 %v1456_v45 }
 0x1ae   : > { %v1997_v60 = vpop.eup %1996  ;;  %1567 = vst [vmem:[%s2331_s27 + $0x58] sm:$0xff] %v1535_v20  ;;  %v1537_v61 = vmul.f32 0.5, %v1505_v55  ;;  %v1507_v62 = vadd.f32 1.0, %v1995_v57  ;;  %2022 = vtanh.f32 %v1457_v50 }
 0x1af   : > { %v1999_v63 = vpop.eup %1998  ;;  %1568 = vst [vmem:[%s2331_s27 + $0x60] sm:$0xff] %v1536_v58  ;;  %v1538_v25 = vmul.f32 0.5, %v1506_v59  ;;  %v1508_v0 = vadd.f32 1.0, %v1997_v60  ;;  %2024 = vtanh.f32 %v1458_v48 }
 0x1b0   : > { %v2001_v1 = vpop.eup %2000  ;;  %1569 = vst [vmem:[%s2331_s27 + $0x68] sm:$0xff] %v1537_v61  ;;  %v1539_v2 = vmul.f32 0.5, %v1507_v62  ;;  %v1509_v3 = vadd.f32 1.0, %v1999_v63  ;;  %2026 = vtanh.f32 %v1459_v56 }
 0x1b1   : > { %v2003_v4 = vpop.eup %2002  ;;  %1570 = vst [vmem:[%s2331_s27 + $0x70] sm:$0xff] %v1538_v25  ;;  %v1540_v5 = vmul.f32 0.5, %v1508_v0  ;;  %v1510_v6 = vadd.f32 1.0, %v2001_v1 }
 0x1b2   : > { %v2005_v7 = vpop.eup %2004  ;;  %1571 = vst [vmem:[%s2331_s27 + $0x78] sm:$0xff] %v1539_v2  ;;  %v1541_v8 = vmul.f32 0.5, %v1509_v3  ;;  %v1511_v9 = vadd.f32 1.0, %v2003_v4 }
 0x1b3   : > { %v2007_v10 = vpop.eup %2006  ;;  %1572 = vst [vmem:[%s2331_s27 + $0x80] sm:$0xff] %v1540_v5  ;;  %v1542_v19 = vmul.f32 0.5, %v1510_v6  ;;  %v1512_v11 = vadd.f32 1.0, %v2005_v7 }
 0x1b4   : > { %v2009_v12 = vpop.eup %2008  ;;  %1573 = vst [vmem:[%s2331_s27 + $0x88] sm:$0xff] %v1541_v8  ;;  %v1543_v13 = vmul.f32 0.5, %v1511_v9  ;;  %v1513_v14 = vadd.f32 1.0, %v2007_v10 }
 0x1b5   : > { %v2011_v15 = vpop.eup %2010  ;;  %1574 = vst [vmem:[%s2331_s27 + $0x90] sm:$0xff] %v1542_v19  ;;  %v1544_v16 = vmul.f32 0.5, %v1512_v11  ;;  %v1514_v17 = vadd.f32 1.0, %v2009_v12 }
 0x1b6   : > { %v2013_v18 = vpop.eup %2012  ;;  %1575 = vst [vmem:[%s2331_s27 + $0x98] sm:$0xff] %v1543_v13  ;;  %v1545_v24 = vmul.f32 0.5, %v1513_v14  ;;  %v1515_v21 = vadd.f32 1.0, %v2011_v15 }
 0x1b7   : > { %v2015_v22 = vpop.eup %2014  ;;  %1576 = vst [vmem:[%s2331_s27 + $0xa0] sm:$0xff] %v1544_v16  ;;  %v1546_v23 = vmul.f32 0.5, %v1514_v17  ;;  %v1516_v26 = vadd.f32 1.0, %v2013_v18 }
 0x1b8   : > { %v2017_v27 = vpop.eup %2016  ;;  %1577 = vst [vmem:[%s2331_s27 + $0xa8] sm:$0xff] %v1545_v24  ;;  %v1547_v28 = vmul.f32 0.5, %v1515_v21  ;;  %v1517_v29 = vadd.f32 1.0, %v2015_v22 }
 0x1b9   : > { %v2019_v30 = vpop.eup %2018  ;;  %1578 = vst [vmem:[%s2331_s27 + $0xb0] sm:$0xff] %v1546_v23  ;;  %v1548_v31 = vmul.f32 0.5, %v1516_v26  ;;  %v1518_v32 = vadd.f32 1.0, %v2017_v27 }
 0x1ba   : > { %v2021_v33 = vpop.eup %2020  ;;  %1579 = vst [vmem:[%s2331_s27 + $0xb8] sm:$0xff] %v1547_v28  ;;  %v1549_v34 = vmul.f32 0.5, %v1517_v29  ;;  %v1519_v35 = vadd.f32 1.0, %v2019_v30 }
 0x1bb   : > { %v2023_v36 = vpop.eup %2022  ;;  %1580 = vst [vmem:[%s2331_s27 + $0xc0] sm:$0xff] %v1548_v31  ;;  %v1550_v37 = vmul.f32 0.5, %v1518_v32  ;;  %v1520_v38 = vadd.f32 1.0, %v2021_v33 }
 0x1bc   : > { %v2025_v39 = vpop.eup %2024  ;;  %1581 = vst [vmem:[%s2331_s27 + $0xc8] sm:$0xff] %v1549_v34  ;;  %v1551_v40 = vmul.f32 0.5, %v1519_v35  ;;  %v1521_v41 = vadd.f32 1.0, %v2023_v36 }
 0x1bd   : > { %v2027_v42 = vpop.eup %2026  ;;  %1582 = vst [vmem:[%s2331_s27 + $0xd0] sm:$0xff] %v1550_v37  ;;  %v1552_v43 = vmul.f32 0.5, %v1520_v38  ;;  %v1522_v44 = vadd.f32 1.0, %v2025_v39 }
 0x1be   : > { %1583 = vst [vmem:[%s2331_s27 + $0xd8] sm:$0xff] %v1551_v40  ;;  %v1553_v45 = vmul.f32 0.5, %v1521_v41  ;;  %v1523_v46 = vadd.f32 1.0, %v2027_v42 }
 0x1bf   : > { %1584 = vst [vmem:[%s2331_s27 + $0xe0] sm:$0xff] %v1552_v43  ;;  %v1554_v47 = vmul.f32 0.5, %v1522_v44 }
 0x1c0   : > { %1585 = vst [vmem:[%s2331_s27 + $0xe8] sm:$0xff] %v1553_v45  ;;  %v1555_v49 = vmul.f32 0.5, %v1523_v46 }
 0x1c1   : > { %1586 = vst [vmem:[%s2331_s27 + $0xf0] sm:$0xff] %v1554_v47 }
 0x1c2   : > { %1587 = vst [vmem:[%s2331_s27 + $0xf8] sm:$0xff] %v1555_v49 }
 0x1c3 PF: > { %s15_s24 = sadd.s32 1, %s2082_s24   ;;  %s2661_s18 = smov %s2062_s19 }
 0x1c4   : > { %p12_p1 = scmp.ge.s32.totalorder %s15_s24, 6   ;;  %s2662_s19 = smov %s2166_s6 }
 0x1c5   : > { %s2663_s20 = smov %s2074_s22  ;;  %s2664_s21 = smov %s2078_s23 }
 0x1c6   : > { %s2665_s22 = smov %s2668_s25  ;;  %s2666_s23 = smov %s2672_s26 }
 0x1c7   :  { %14 = sbr.rel (!%p12_p1) target bundleno = 4 (0x4), region = 118 }

</bundles_post_ra>
